<compile_context>
chip_gen: v5e
topology: v5e:2x2
jax: 0.10.0
libtpu: 0.0.40
codegen_flags: <defaults>
</compile_context>

<pallas_src>
import numpy as np

import jax
import jax.numpy as jnp
from jax.experimental import pallas as pl
from jax.experimental.pallas import tpu as pltpu


def _cdiv(a, b):
    return (a + b - 1) // b


def _reflect_np(p, size):
    # PyTorch ReflectionPad2d index mapping (pad < size assumed).
    p = np.where(p < 0, -p, p)
    p = np.where(p >= size, 2 * size - 2 - p, p)
    return p


def upsample_conv_layer(x, conv_w, conv_b, gamma, beta, *,
                        kernel_size, stride=1, upsample=None, block_rows=None):
    """x: (N, C_in, H, W) f32 -> (N, C_out, H_out, W_out) f32 (PyTorch semantics)."""
    N, Cin, H, W = map(int, x.shape)
    Cout = int(conv_w.shape[0])
    K = int(kernel_size)
    s = int(stride)
    u = int(upsample) if upsample else 1
    pad = K // 2

    Hu, Wu = H * u, W * u                       # after nearest upsample
    if pad > 0:
        assert pad < Hu and pad < Wu, "reflection pad must be < upsampled spatial size"
    Hp, Wp = Hu + 2 * pad, Wu + 2 * pad         # after reflection pad
    Ho1, Wo1 = Hp - K + 1, Wp - K + 1           # stride-1 conv output extent
    Ho, Wo = (Hp - K) // s + 1, (Wp - K) // s + 1   # final (strided) output extent
    Coutp = _cdiv(Cout, 128) * 128              # lane-dense output channels (MXU / stores)
    KKCin = K * K * Cin                         # deep contraction dim

    # ---- generation-gated block sizing ------------------------------------------------
    try:
        vmem_cap = int(pltpu.get_tpu_info().vmem_capacity_bytes)
    except Exception:
        vmem_cap = 64 * 1024 * 1024
    if vmem_cap >= 100 * 1024 * 1024:           # v5e / v6e: 128 MiB VMEM
        vmem_limit = 64 * 1024 * 1024
        mr_target = 8192
    else:                                       # v7x: 64 MiB VMEM per TC
        vmem_limit = 32 * 1024 * 1024
        mr_target = 4096

    def _step_bytes(th):
        thk = th + K - 1
        mr = th * Wo1
        return (2 * thk * Wp * Cin * 2          # slab block, double-buffered bf16
                + 2 * mr * Coutp * 2            # bf16 output block, double-buffered
                + mr * (KKCin * 2 + Coutp * 4)  # in-kernel patch matrix + f32 dot result
                + 2 * KKCin * Coutp * 2         # weights
                + 4 * 2 * Coutp * 4)            # stats blocks

    if block_rows is None:
        TH = max(1, min(Ho1, mr_target // max(1, Wo1)))
        budget = int(0.6 * vmem_limit)
        while TH > 1 and _step_bytes(TH) > budget:
            TH = max(1, TH // 2)
        # ensure at least a few grid steps so both v7x TensorCores get work (N=1 case)
        min_steps = 4
        if N * _cdiv(Ho1, TH) < min_steps:
            rb_target = min(Ho1, max(_cdiv(Ho1, TH), _cdiv(min_steps, N)))
            TH = max(1, _cdiv(Ho1, rb_target))
    else:
        TH = max(1, min(Ho1, int(block_rows)))  # test hook: force masked / multi-block path

    RB = _cdiv(Ho1, TH)
    THK = TH + K - 1                            # slab rows (block + halo)
    MR = TH * Wo1                               # matmul rows per grid step
    needs_mask = (RB * TH != Ho1) or (s != 1)

    # ---- static gather: reflect-pad + nearest-upsample + NCHW->NHWC + row slabs --------
    idx_h = _reflect_np(np.arange(Hp) - pad, Hu) // u            # (Hp,) -> source H
    idx_w = _reflect_np(np.arange(Wp) - pad, Wu) // u            # (Wp,) -> source W
    rows = np.minimum(np.arange(RB)[:, None] * TH + np.arange(THK)[None, :], Hp - 1)
    idx_h_slab = idx_h[rows]                                     # (RB, THK)

    xb = jnp.transpose(x.astype(jnp.bfloat16), (0, 2, 3, 1))     # (N, H, W, Cin)
    xb = xb[:, :, jnp.asarray(idx_w, dtype=jnp.int32), :]        # (N, H, Wp, Cin)
    slabs = xb[:, jnp.asarray(idx_h_slab, dtype=jnp.int32), :, :]  # (N, RB, THK, Wp, Cin)

    # ---- parameters: (ki,kj,cin)-major weights, zero-padded to Coutp lanes --------------
    w_t = jnp.transpose(conv_w, (2, 3, 1, 0)).reshape(KKCin, Cout)
    w_p = jnp.zeros((KKCin, Coutp), jnp.bfloat16).at[:, :Cout].set(w_t.astype(jnp.bfloat16))
    b_p = jnp.zeros((1, Coutp), jnp.float32).at[0, :Cout].set(conv_b.astype(jnp.float32))
    g_p = jnp.zeros((Coutp,), jnp.float32).at[:Cout].set(gamma.astype(jnp.float32))
    be_p = jnp.zeros((Coutp,), jnp.float32).at[:Cout].set(beta.astype(jnp.float32))

    # ---- kernel: conv via one deep matmul + partial instance-norm stats ----------------
    def conv_kernel(slab_ref, w_ref, b_ref, out_ref, st_ref):
        # slab_ref: (THK, Wp, Cin) bf16   w_ref: (K*K*Cin, Coutp) bf16   b_ref: (1, Coutp) f32
        # out_ref : (MR, Coutp) bf16      st_ref: (2, Coutp) f32
        taps = []
        for ki in range(K):
            for kj in range(K):
                taps.append(slab_ref[ki:ki + TH, kj:kj + Wo1, :].reshape(MR, Cin))
        a = jnp.concatenate(taps, axis=-1)                        # (MR, K*K*Cin) in VMEM
        y = jnp.dot(a, w_ref[...], preferred_element_type=jnp.float32) + b_ref[...]

        # per-(image, row-block) partial sum / sum-of-squares over kept positions (f32)
        if needs_mask:
            lr = jax.lax.broadcasted_iota(jnp.int32, (MR, 1), 0)
            gi = pl.program_id(1) * TH + lr // Wo1
            keep = gi < Ho1
            if s != 1:
                keep = jnp.logical_and(keep, (gi % s) == 0)
                keep = jnp.logical_and(keep, ((lr % Wo1) % s) == 0)
            yk = jnp.where(keep, y, 0.0)
        else:
            yk = y
        st_ref[0:1, :] = jnp.sum(yk, axis=0, keepdims=True)
        st_ref[1:2, :] = jnp.sum(yk * yk, axis=0, keepdims=True)

        out_ref[...] = y.astype(out_ref.dtype)                    # bf16 intermediate

    conv_flops = 2 * N * RB * MR * KKCin * Coutp
    conv_bytes = (N * RB * THK * Wp * Cin * 2 + KKCin * Coutp * 2 + Coutp * 4
                  + N * RB * MR * Coutp * 2 + N * RB * 2 * Coutp * 4)

    conv_out, part = pl.pallas_call(
        conv_kernel,
        out_shape=(jax.ShapeDtypeStruct((N, RB, MR, Coutp), jnp.bfloat16),
                   jax.ShapeDtypeStruct((N, RB, 2, Coutp), jnp.float32)),
        grid=(N, RB),
        in_specs=[
            pl.BlockSpec((None, None, THK, Wp, Cin), lambda n, rb: (n, rb, 0, 0, 0)),
            pl.BlockSpec((KKCin, Coutp), lambda n, rb: (0, 0)),
            pl.BlockSpec((1, Coutp), lambda n, rb: (0, 0)),
        ],
        out_specs=(
            pl.BlockSpec((None, None, MR, Coutp), lambda n, rb: (n, rb, 0, 0)),
            pl.BlockSpec((None, None, 2, Coutp), lambda n, rb: (n, rb, 0, 0)),
        ),
        compiler_params=pltpu.CompilerParams(
            dimension_semantics=("parallel", "parallel"),
            vmem_limit_bytes=vmem_limit),
        cost_estimate=pl.CostEstimate(flops=conv_flops, transcendentals=0,
                                      bytes_accessed=conv_bytes),
    )(slabs, w_p, b_p)

    # ---- finalize instance-norm stats + apply + trim/subsample/transpose (one fused pass)
    count = float(Ho * Wo)                      # biased variance, PyTorch InstanceNorm
    tot = jnp.sum(part, axis=1)                 # (N, 2, Coutp)
    mean = tot[:, 0, :] / count
    var = jnp.maximum(tot[:, 1, :] / count - mean * mean, 0.0)
    inv = jax.lax.rsqrt(var + 1e-5)
    scale = g_p[None, :] * inv                  # (N, Coutp)
    shift = be_p[None, :] - mean * scale        # (N, Coutp)

    y4 = conv_out.reshape(N, RB * TH, Wo1, Coutp)[:, :Ho1:s, ::s, :Cout]   # (N,Ho,Wo,Cout)
    y = y4.astype(jnp.float32) * scale[:, None, None, :Cout] + shift[:, None, None, :Cout]
    return jnp.transpose(y, (0, 3, 1, 2))       # NCHW f32


# ---------------- demo / sanity checks ----------------

def _reference(x, conv_w, conv_b, gamma, beta, K, stride, upsample):
    x_in = x
    if upsample:
        x_in = jnp.repeat(jnp.repeat(x_in, upsample, axis=2), upsample, axis=3)
    p = K // 2
    x_rp = jnp.pad(x_in, ((0, 0), (0, 0), (p, p), (p, p)), mode="reflect")
    co = conv_w.shape[0]
    r = jax.lax.conv_general_dilated(
        x_rp, conv_w, (stride, stride), "VALID",
        dimension_numbers=("NCHW", "OIHW", "NCHW")) + conv_b.reshape(1, co, 1, 1)
    mu = r.mean(axis=(2, 3), keepdims=True)
    var = ((r - mu) ** 2).mean(axis=(2, 3), keepdims=True)
    return gamma.reshape(1, co, 1, 1) * (r - mu) / jnp.sqrt(var + 1e-5) \
        + beta.reshape(1, co, 1, 1)


if __name__ == "__main__":
    key = jax.random.PRNGKey(0)
    k1, k2, k3, k4, k5 = jax.random.split(key, 5)

    # main config (as used in johnson's transformer net: stride=1, upsample=2)
    N, Cin, H, W = 2, 4, 16, 16
    Cout, K, stride, upsample = 8, 3, 1, 2

    x = jax.random.normal(k1, (N, Cin, H, W), dtype=jnp.float32)
    conv_w = 0.1 * jax.random.normal(k2, (Cout, Cin, K, K), dtype=jnp.float32)
    conv_b = 0.1 * jax.random.normal(k3, (Cout,), dtype=jnp.float32)
    gamma = 1.0 + 0.1 * jax.random.normal(k4, (Cout,), dtype=jnp.float32)
    beta = 0.1 * jax.random.normal(k5, (Cout,), dtype=jnp.float32)

    y = upsample_conv_layer(x, conv_w, conv_b, gamma, beta,
                            kernel_size=K, stride=stride, upsample=upsample)
    jax.block_until_ready(y)
    assert y.shape == (N, Cout, upsample * H, upsample * W)
    ref = _reference(x, conv_w, conv_b, gamma, beta, K, stride, upsample)
    np.testing.assert_allclose(np.asarray(y), np.asarray(ref), rtol=5e-2, atol=5e-2)

    # same config, forced small row-block -> exercises multi-block partial stats
    # and the padded-row masking path.
    y2 = upsample_conv_layer(x, conv_w, conv_b, gamma, beta,
                             kernel_size=K, stride=stride, upsample=upsample,
                             block_rows=12)
    np.testing.assert_allclose(np.asarray(y2), np.asarray(ref), rtol=5e-2, atol=5e-2)

    # stride>1, no upsample -> exercises the strided-output masking/subsample path.
    xk = jax.random.split(key, 9)
    x3 = jax.random.normal(xk[5], (1, 3, 8, 8), dtype=jnp.float32)
    w3 = 0.1 * jax.random.normal(xk[6], (6, 3, 3, 3), dtype=jnp.float32)
    b3 = 0.1 * jax.random.normal(xk[7], (6,), dtype=jnp.float32)
    g3 = 1.0 + 0.1 * jax.random.normal(xk[8], (6,), dtype=jnp.float32)
    be3 = jnp.zeros((6,), jnp.float32)
    y3 = upsample_conv_layer(x3, w3, b3, g3, be3, kernel_size=3, stride=2, upsample=None)
    jax.block_until_ready(y3)
    ref3 = _reference(x3, w3, b3, g3, be3, 3, 2, None)
    assert y3.shape == ref3.shape == (1, 6, 4, 4)
    np.testing.assert_allclose(np.asarray(y3), np.asarray(ref3), rtol=5e-2, atol=5e-2)

    print("KERNEL_OK")
</pallas_src>

<mosaic_0001>
module attributes {stable_mosaic.version = 11 : i64} {
  func.func @conv_kernel(%arg0: i32, %arg1: i32, %arg2: memref<1x1x18x34x4xbf16, #tpu.memory_space<vmem>>, %arg3: memref<36x128xbf16, #tpu.memory_space<vmem>>, %arg4: memref<1x128xf32, #tpu.memory_space<vmem>>, %arg5: memref<1x1x512x128xbf16, #tpu.memory_space<vmem>>, %arg6: memref<1x1x2x128xf32, #tpu.memory_space<vmem>>) attributes {dimension_semantics = [#tpu.dimension_semantics<parallel>, #tpu.dimension_semantics<parallel>], iteration_bounds = array<i64: 2, 2>, scalar_prefetch = 0 : i64, scratch_operands = 0 : i64, tpu.core_type = #tpu.core_type<tc>, window_params = [{transform_indices = @transform_0, window_bounds = array<i64: 1, 1, 18, 34, 4>}, {pipeline_mode = #tpu.pipeline_mode<synchronous>, transform_indices = @transform_1, window_bounds = array<i64: 36, 128>}, {pipeline_mode = #tpu.pipeline_mode<synchronous>, transform_indices = @transform_2, window_bounds = array<i64: 1, 128>}, {transform_indices = @transform_3, window_bounds = array<i64: 1, 1, 512, 128>}, {transform_indices = @transform_4, window_bounds = array<i64: 1, 1, 2, 128>}]} {
    %c0 = arith.constant 0 : index
    %c0_0 = arith.constant 0 : index
    %c0_1 = arith.constant 0 : index
    %c0_2 = arith.constant 0 : index
    %c0_3 = arith.constant 0 : index
    %0 = vector.load %arg2[%c0, %c0_0, %c0_1, %c0_2, %c0_3] : memref<1x1x18x34x4xbf16, #tpu.memory_space<vmem>>, vector<1x1x16x32x4xbf16>
    %1 = vector.shape_cast %0 : vector<1x1x16x32x4xbf16> to vector<16x32x4xbf16>
    %2 = vector.shape_cast %1 : vector<16x32x4xbf16> to vector<512x4xbf16>
    %c0_4 = arith.constant 0 : index
    %c0_5 = arith.constant 0 : index
    %c0_6 = arith.constant 0 : index
    %c1 = arith.constant 1 : index
    %c0_7 = arith.constant 0 : index
    %3 = vector.load %arg2[%c0_4, %c0_5, %c0_6, %c1, %c0_7] : memref<1x1x18x34x4xbf16, #tpu.memory_space<vmem>>, vector<1x1x16x32x4xbf16>
    %4 = vector.shape_cast %3 : vector<1x1x16x32x4xbf16> to vector<16x32x4xbf16>
    %5 = vector.shape_cast %4 : vector<16x32x4xbf16> to vector<512x4xbf16>
    %c0_8 = arith.constant 0 : index
    %c0_9 = arith.constant 0 : index
    %c0_10 = arith.constant 0 : index
    %c2 = arith.constant 2 : index
    %c0_11 = arith.constant 0 : index
    %6 = vector.load %arg2[%c0_8, %c0_9, %c0_10, %c2, %c0_11] : memref<1x1x18x34x4xbf16, #tpu.memory_space<vmem>>, vector<1x1x16x32x4xbf16>
    %7 = vector.shape_cast %6 : vector<1x1x16x32x4xbf16> to vector<16x32x4xbf16>
    %8 = vector.shape_cast %7 : vector<16x32x4xbf16> to vector<512x4xbf16>
    %c0_12 = arith.constant 0 : index
    %c0_13 = arith.constant 0 : index
    %c1_14 = arith.constant 1 : index
    %c0_15 = arith.constant 0 : index
    %c0_16 = arith.constant 0 : index
    %9 = vector.load %arg2[%c0_12, %c0_13, %c1_14, %c0_15, %c0_16] : memref<1x1x18x34x4xbf16, #tpu.memory_space<vmem>>, vector<1x1x16x32x4xbf16>
    %10 = vector.shape_cast %9 : vector<1x1x16x32x4xbf16> to vector<16x32x4xbf16>
    %11 = vector.shape_cast %10 : vector<16x32x4xbf16> to vector<512x4xbf16>
    %c0_17 = arith.constant 0 : index
    %c0_18 = arith.constant 0 : index
    %c1_19 = arith.constant 1 : index
    %c1_20 = arith.constant 1 : index
    %c0_21 = arith.constant 0 : index
    %12 = vector.load %arg2[%c0_17, %c0_18, %c1_19, %c1_20, %c0_21] : memref<1x1x18x34x4xbf16, #tpu.memory_space<vmem>>, vector<1x1x16x32x4xbf16>
    %13 = vector.shape_cast %12 : vector<1x1x16x32x4xbf16> to vector<16x32x4xbf16>
    %14 = vector.shape_cast %13 : vector<16x32x4xbf16> to vector<512x4xbf16>
    %c0_22 = arith.constant 0 : index
    %c0_23 = arith.constant 0 : index
    %c1_24 = arith.constant 1 : index
    %c2_25 = arith.constant 2 : index
    %c0_26 = arith.constant 0 : index
    %15 = vector.load %arg2[%c0_22, %c0_23, %c1_24, %c2_25, %c0_26] : memref<1x1x18x34x4xbf16, #tpu.memory_space<vmem>>, vector<1x1x16x32x4xbf16>
    %16 = vector.shape_cast %15 : vector<1x1x16x32x4xbf16> to vector<16x32x4xbf16>
    %17 = vector.shape_cast %16 : vector<16x32x4xbf16> to vector<512x4xbf16>
    %c0_27 = arith.constant 0 : index
    %c0_28 = arith.constant 0 : index
    %c2_29 = arith.constant 2 : index
    %c0_30 = arith.constant 0 : index
    %c0_31 = arith.constant 0 : index
    %18 = vector.load %arg2[%c0_27, %c0_28, %c2_29, %c0_30, %c0_31] : memref<1x1x18x34x4xbf16, #tpu.memory_space<vmem>>, vector<1x1x16x32x4xbf16>
    %19 = vector.shape_cast %18 : vector<1x1x16x32x4xbf16> to vector<16x32x4xbf16>
    %20 = vector.shape_cast %19 : vector<16x32x4xbf16> to vector<512x4xbf16>
    %c0_32 = arith.constant 0 : index
    %c0_33 = arith.constant 0 : index
    %c2_34 = arith.constant 2 : index
    %c1_35 = arith.constant 1 : index
    %c0_36 = arith.constant 0 : index
    %21 = vector.load %arg2[%c0_32, %c0_33, %c2_34, %c1_35, %c0_36] : memref<1x1x18x34x4xbf16, #tpu.memory_space<vmem>>, vector<1x1x16x32x4xbf16>
    %22 = vector.shape_cast %21 : vector<1x1x16x32x4xbf16> to vector<16x32x4xbf16>
    %23 = vector.shape_cast %22 : vector<16x32x4xbf16> to vector<512x4xbf16>
    %c0_37 = arith.constant 0 : index
    %c0_38 = arith.constant 0 : index
    %c2_39 = arith.constant 2 : index
    %c2_40 = arith.constant 2 : index
    %c0_41 = arith.constant 0 : index
    %24 = vector.load %arg2[%c0_37, %c0_38, %c2_39, %c2_40, %c0_41] : memref<1x1x18x34x4xbf16, #tpu.memory_space<vmem>>, vector<1x1x16x32x4xbf16>
    %25 = vector.shape_cast %24 : vector<1x1x16x32x4xbf16> to vector<16x32x4xbf16>
    %26 = vector.shape_cast %25 : vector<16x32x4xbf16> to vector<512x4xbf16>
    %27 = tpu.concatenate %2, %5, %8, %11, %14, %17, %20, %23, %26 in 1 : vector<512x4xbf16>, vector<512x4xbf16>, vector<512x4xbf16>, vector<512x4xbf16>, vector<512x4xbf16>, vector<512x4xbf16>, vector<512x4xbf16>, vector<512x4xbf16>, vector<512x4xbf16> -> vector<512x36xbf16>
    %c0_42 = arith.constant 0 : index
    %c0_43 = arith.constant 0 : index
    %28 = vector.load %arg3[%c0_42, %c0_43] : memref<36x128xbf16, #tpu.memory_space<vmem>>, vector<36x128xbf16>
    %cst = arith.constant dense<0.000000e+00> : vector<512x128xf32>
    %29 = tpu.matmul %27, %28, %cst {dimension_numbers = #tpu.dot_dimension_numbers<[1], [0], [0], [1], [0, 0, 1, 1], [], []>} : vector<512x36xbf16>, vector<36x128xbf16>, vector<512x128xf32> -> vector<512x128xf32>
    %c0_44 = arith.constant 0 : index
    %c0_45 = arith.constant 0 : index
    %30 = vector.load %arg4[%c0_44, %c0_45] : memref<1x128xf32, #tpu.memory_space<vmem>>, vector<1x128xf32>
    %31 = vector.broadcast %30 : vector<1x128xf32> to vector<512x128xf32>
    %32 = arith.addf %29, %31 : vector<512x128xf32>
    %cst_46 = arith.constant dense<0.000000e+00> : vector<128xf32>
    %33 = vector.multi_reduction <add>, %32, %cst_46 [0] : vector<512x128xf32> to vector<128xf32>
    %34 = vector.shape_cast %33 : vector<128xf32> to vector<1x128xf32>
    %c0_47 = arith.constant 0 : index
    %c0_48 = arith.constant 0 : index
    %c0_49 = arith.constant 0 : index
    %c0_50 = arith.constant 0 : index
    %35 = vector.load %arg6[%c0_47, %c0_48, %c0_49, %c0_50] : memref<1x1x2x128xf32, #tpu.memory_space<vmem>>, vector<1x1x1x128xf32>
    %36 = vector.shape_cast %35 : vector<1x1x1x128xf32> to vector<1x128xf32>
    %37 = vector.shape_cast %34 : vector<1x128xf32> to vector<1x1x1x128xf32>
    tpu.vector_store %arg6[%c0_47, %c0_48, %c0_49, %c0_50], %37 {strides = array<i32>} : memref<1x1x2x128xf32, #tpu.memory_space<vmem>>, vector<1x1x1x128xf32>,
    %38 = arith.mulf %32, %32 : vector<512x128xf32>
    %cst_51 = arith.constant dense<0.000000e+00> : vector<128xf32>
    %39 = vector.multi_reduction <add>, %38, %cst_51 [0] : vector<512x128xf32> to vector<128xf32>
    %40 = vector.shape_cast %39 : vector<128xf32> to vector<1x128xf32>
    %c0_52 = arith.constant 0 : index
    %c0_53 = arith.constant 0 : index
    %c1_54 = arith.constant 1 : index
    %c0_55 = arith.constant 0 : index
    %41 = vector.load %arg6[%c0_52, %c0_53, %c1_54, %c0_55] : memref<1x1x2x128xf32, #tpu.memory_space<vmem>>, vector<1x1x1x128xf32>
    %42 = vector.shape_cast %41 : vector<1x1x1x128xf32> to vector<1x128xf32>
    %43 = vector.shape_cast %40 : vector<1x128xf32> to vector<1x1x1x128xf32>
    tpu.vector_store %arg6[%c0_52, %c0_53, %c1_54, %c0_55], %43 {strides = array<i32>} : memref<1x1x2x128xf32, #tpu.memory_space<vmem>>, vector<1x1x1x128xf32>,
    %44 = arith.truncf %32 : vector<512x128xf32> to vector<512x128xbf16>
    %c0_56 = arith.constant 0 : index
    %c0_57 = arith.constant 0 : index
    %c0_58 = arith.constant 0 : index
    %c0_59 = arith.constant 0 : index
    %45 = vector.load %arg5[%c0_56, %c0_57, %c0_58, %c0_59] : memref<1x1x512x128xbf16, #tpu.memory_space<vmem>>, vector<1x1x512x128xbf16>
    %46 = vector.shape_cast %45 : vector<1x1x512x128xbf16> to vector<512x128xbf16>
    %47 = vector.shape_cast %44 : vector<512x128xbf16> to vector<1x1x512x128xbf16>
    tpu.vector_store %arg5[%c0_56, %c0_57, %c0_58, %c0_59], %47 {strides = array<i32>} : memref<1x1x512x128xbf16, #tpu.memory_space<vmem>>, vector<1x1x512x128xbf16>,
    return
  }
  func.func @transform_0(%arg0: i32, %arg1: i32) -> (i32, i32, i32, i32, i32) {
    %c0_i32 = arith.constant 0 : i32
    %c0_i32_0 = arith.constant 0 : i32
    %c0_i32_1 = arith.constant 0 : i32
    %c0_i32_2 = arith.constant 0 : i32
    return %arg0, %arg1, %c0_i32, %c0_i32_0, %c0_i32_1 : i32, i32, i32, i32, i32
  }
  func.func @transform_1(%arg0: i32, %arg1: i32) -> (i32, i32) {
    %c0_i32 = arith.constant 0 : i32
    %c0_i32_0 = arith.constant 0 : i32
    %c0_i32_1 = arith.constant 0 : i32
    return %c0_i32, %c0_i32_0 : i32, i32
  }
  func.func @transform_2(%arg0: i32, %arg1: i32) -> (i32, i32) {
    %c0_i32 = arith.constant 0 : i32
    %c0_i32_0 = arith.constant 0 : i32
    %c0_i32_1 = arith.constant 0 : i32
    return %c0_i32, %c0_i32_0 : i32, i32
  }
  func.func @transform_3(%arg0: i32, %arg1: i32) -> (i32, i32, i32, i32) {
    %c0_i32 = arith.constant 0 : i32
    %c0_i32_0 = arith.constant 0 : i32
    %c0_i32_1 = arith.constant 0 : i32
    return %arg0, %arg1, %c0_i32, %c0_i32_0 : i32, i32, i32, i32
  }
  func.func @transform_4(%arg0: i32, %arg1: i32) -> (i32, i32, i32, i32) {
    %c0_i32 = arith.constant 0 : i32
    %c0_i32_0 = arith.constant 0 : i32
    %c0_i32_1 = arith.constant 0 : i32
    return %arg0, %arg1, %c0_i32, %c0_i32_0 : i32, i32, i32, i32
  }
}

</mosaic_0001>

<bundles_post_ra>
// kernel: tpu_custom_call.1
= control target key start
LH: loop header
LB: loop body
LE: loop exit
PB: predicated region body
PF: predicated region fallthrough
CT: control target
= control target key end

     0   :  { %s11587_s0 = inlined_call_operand.vmem [shape: bf16[2,2,18,34,4], index: 0, kind: input, shape index: {}]   ;;  %s11588_s1 = inlined_call_operand.vmem [shape: bf16[36,128], index: 1, kind: input, shape index: {}]   ;;  %s11589_s2 = inlined_call_operand.vmem [shape: f32[1,128], index: 2, kind: input, shape index: {}]   ;;  %s11590_s3 = inlined_call_operand.hbm [shape: bf16[2,2,512,128], index: 3, kind: output, shape index: {0}]   ;;  %s11591_s4 = inlined_call_operand.hbm [shape: f32[2,2,2,128], index: 4, kind: output, shape index: {1}]  }
   0x1   :  { %11614 = sst [smem:[#allocation67_spill]] %s11587_s0 }
   0x2   :  { %10 = vsyncpa [#allocation3], 0 }
   0x3   :  { %12 = vsyncpa [#allocation3 + $0x1], 0 }
   0x4   :  { %13 = vsyncpa [#allocation5], 0 }
   0x5   :  { %15 = vsyncpa [#allocation5 + $0x1], 0  ;;  %s7554_s15 = smov 0   ;;  %s7556_s16 = smov 0  }
   0x6   :  { %s7558_s17 = smov 0   ;;  %s7560_s18 = smov 0  }
   0x7   :  { %s7562_s19 = smov 0   ;;  %s7564_s20 = smov 0  }
   0x8   :  { %s7566_s21 = smov 0   ;;  %s7568_s22 = smov 0  }
   0x9 LB: > { %s6239_s23 = sadd.s32 4294967295, %s7518_s22   ;;  %s6240_s24 = sadd.s32 4294967294, %s7518_s22   ;;  %s7518_s22 = sphi %s7568_s22, %s21_s22   ;;  %s7514_s21 = sphi %s7566_s21, %s11825_s21   ;;  %s7510_s20 = sphi %s7564_s20, %s11824_s20   ;;  %s7506_s19 = sphi %s7562_s19, %s11823_s19   ;;  %s7502_s18 = sphi %s7560_s18, %s11822_s18   ;;  %s7498_s17 = sphi %s7558_s17, %s11821_s17   ;;  %s7494_s16 = sphi %s7556_s16, %s11820_s16   ;;  %s7490_s15 = sphi %s7554_s15, %s11819_s15  }
   0xa   : > { %s30_s25 = sadd.s32 1, %s7510_s20  ;;  %s33_s26 = sadd.s32 1, %s7514_s21 }
   0xb   : > { %p31_p0 = scmp.ge.s32.totalorder %s30_s25, 2  ;;  %p122_p1 = scmp.ne.s32.totalorder %s7498_s17, %s7494_s16 }
   0xc   : > { %p123_p2 = scmp.eq.s32.totalorder %s6239_s23, 3  ;;  %p128_p5 = scmp.ne.s32.totalorder %s7494_s16, %s7490_s15 }
   0xd   : > { %s11827_s25 = smov (%p31_p0, %s30_s25), 0  ;;  %s11829_s26 = smov (!%p31_p0, %s33_s26), %s7514_s21 }
   0xe   : > { %s108_s27 = ssub.s32 %s7510_s20, %s11827_s25  ;;  %p7605_p3 = por %p123_p2, %p122_p1 }
   0xf   : > { %p35_p4 = scmp.ge.s32.totalorder %s11829_s26, 2  ;;  %p129_p6 = scmp.eq.s32.totalorder %s6240_s24, 3 }
  0x10   : > { %p6243_p7 = scmp.ge.s32.totalorder %s7518_s22, 1  ;;  %p193_p9 = scmp.lt.s32.totalorder %s7518_s22, 5 }
  0x11   : > { %s11831_s26 = smov (%p35_p4, %s11829_s26), 0  ;;  %p7614_p8 = por %p129_p6, %p128_p5 }
  0x12   : > { %s107_s30 = ssub.s32 %s7514_s21, %s11831_s26  ;;  %s112_s5 = sadd.s32 1, %s7498_s17 }
  0x13   : > { %s109_s6 = sor.u32 %s108_s27, %s107_s30  ;;  %p194_p10 = pnand %p6243_p7, %p193_p9 }
  0x14   : > { %p110_p11 = scmp.eq.s32.totalorder %s109_s6, 0 }
  0x15   : > { %197 = sbr.rel (%p194_p10) target bundleno = 1103 (0x44f), region = 32 }
  0x16   : > { %s7623_s7 = scalar_select %p110_p11, %s7498_s17, %s112_s5  }
  0x1a   : > { %p228_p12 = scmp.lt.s32.totalorder %s7506_s19, 1  ;;  %p230_p13 = scmp.lt.s32.totalorder %s7502_s18, 1  ;;  %vm318_vm0 = vsmask.f32 3328  ;;  %vm319_vm1 = vsmask.f32 7440 }
  0x1b   : > { %s11617_s0 = sld [smem:[#allocation67_spill]]  ;;  %vm7643_vm2 = vmor %vm318_vm0, %vm319_vm1  ;;  %s11613_s27 = smov 4   ;;  %vm1121_vm3 = vcmask 1042432   ;;  %vm1122_vm4 = vcmask 1046532   ;;  %vm4934_vm6 = vcmask 31744   ;;  %vm5031_vm7 = vcmask 64512  }
  0x1c   : > { %s229_s8 = scalar_select %p228_p12, %s7506_s19, 1  ;;  %vm8016_vm5 = vmor %vm1121_vm3, %vm1122_vm4  ;;  %vm5096_vm8 = vcmask 97280   ;;  %vm5161_vm9 = vcmask 130048   ;;  %vm5226_vm10 = vcmask 162816   ;;  %vm5575_vm11 = vcmask 1041408  }
  0x1d   : > { %s231_s9 = scalar_select %p230_p13, %s7502_s18, 1  ;;  %vm5291_vm12 = vcmask 195584   ;;  %vm5356_vm13 = vcmask 228352   ;;  %vm5421_vm14 = vcmask 261120   ;;  %vm5510_vm15 = vcmask 293888  }
  0x1e   : > { %s7219_s10 = smul.u32 180, %s229_s8  ;;  %s7521_s30 = smov 8  }
  0x1f   : > { %s7218_s11 = smul.u32 90, %s231_s9  ;;  %s7522_s5 = smov 12  }
  0x20   : > { %s7523_s6 = smov 16   ;;  %s7524_s8 = smov 20  }
  0x21   : > { %s234_s12 = sadd.s32 %s7219_s10, %s7218_s11  ;;  %s7525_s9 = smov 32  }
  0x22   : > { %s6246_s13 = sshll.u32 %s234_s12, 2  ;;  %s7526_s10 = smov 28  }
  0x23   : > { %s7632_s24 = scalar_lea.vmem %s11617_s0, %s6246_s13  ;;  %s7527_s11 = smov 24  }
  0x24   : > { %v246_v0 = vld [vmem:[%s7632_s24 + $0x28] sm:$0xf]  ;;  %v247_v1 = vld [vmem:[%s7632_s24 + $0x2c] sm:$0xf]  ;;  %v248_v2 = vld [vmem:[%s7632_s24 + $0x30] sm:$0xf] }
  0x25   : > { %v410_v3 = vshrl.u32 %v246_v0, 16  ;;  %v413_v4 = vshll.u32 %v246_v0, 16  ;;  %v419_v5 = vshll.u32 %v247_v1, 16  ;;  %v423_v6 = vshrl.u32 %v247_v1, 16  ;;  %v242_v7 = vld [vmem:[%s7632_s24 + $0x14] sm:$0xf] }
  0x26   : > { %v429_v8 = vshll.u32 %v248_v2, 16  ;;  %v433_v9 = vshrl.u32 %v248_v2, 16  ;;  %v243_v10 = vld [vmem:[%s7632_s24 + $0x18] sm:$0xf]  ;;  %v244_v15 = vld [vmem:[%s7632_s24 + $0x1c] sm:$0xf] }
  0x27   : > { %v412_v11 = vrot.slane %v410_v3, 4  ;;  %v415_v12 = vrot.slane %v413_v4, 5  ;;  %v421_v13 = vrot.slane %v419_v5, 5  ;;  %v425_v14 = vrot.slane %v423_v6, 4  ;;  %v238_v24 = vld [vmem:[%s7632_s24] sm:$0xf] }
  0x28   : > { %v431_v16 = vrot.slane %v429_v8, 5  ;;  %v435_v17 = vrot.slane %v433_v9, 4  ;;  %v366_v18 = vshrl.u32 %v242_v7, 16  ;;  %v369_v19 = vshll.u32 %v242_v7, 16  ;;  %v239_v37 = vld [vmem:[%s7632_s24 + $0x4] sm:$0xf] }
  0x29   : > { %v416_v20 = vor.u32 %v415_v12, %v412_v11  ;;  %v426_v21 = vor.u32 %v425_v14, %v421_v13  ;;  %v375_v22 = vshll.u32 %v243_v10, 16  ;;  %v379_v23 = vshrl.u32 %v243_v10, 16  ;;  %v240_v48 = vld [vmem:[%s7632_s24 + $0x8] sm:$0xf]  ;;  %v249_v56 = vld [vmem:[%s7632_s24 + $0x34] sm:$0xf] }
  0x2a   : > { %v436_v26 = vor.u32 %v435_v17, %v431_v16  ;;  %v368_v27 = vrot.slane %v366_v18, 4  ;;  %v371_v28 = vrot.slane %v369_v19, 5  ;;  %v385_v29 = vshll.u32 %v244_v15, 16  ;;  %v304_v1 = vld [vmem:[%s7632_s24 + $0x38] sm:$0x1]  ;;  %s10544_s14 = sand.u32 1, %s7494_s16  }
  0x2b   : > { %v417_v30 = vrot.slane %v416_v20, 4  ;;  %v427_v31 = vrot.slane %v426_v21, 4  ;;  %v377_v32 = vrot.slane %v375_v22, 5  ;;  %v381_v33 = vrot.slane %v379_v23, 4  ;;  %v245_v10 = vld [vmem:[%s7632_s24 + $0x20] sm:$0xf] }
  0x2c   : > { %v372_v34 = vor.u32 %v371_v28, %v368_v27  ;;  %v387_v35 = vrot.slane %v385_v29, 5  ;;  %v389_v36 = vshrl.u32 %v244_v15, 16  ;;  %v322_v38 = vshrl.u32 %v238_v24, 16  ;;  %v303_v15 = vld [vmem:[%s7632_s24 + $0x24] sm:$0x1]  ;;  %s6244_s23 = sshll.u32 %s10544_s14, 8 }
  0x2d   : > { %v422_v39 = vsel %vm7643_vm2, %v417_v30, %v421_v13  ;;  %v432_v40 = vsel %vm7643_vm2, %v427_v31, %v431_v16  ;;  %v382_v41 = vor.u32 %v381_v33, %v377_v32  ;;  %v325_v42 = vshll.u32 %v238_v24, 16  ;;  %v241_v24 = vld [vmem:[%s7632_s24 + $0xc] sm:$0xf]  ;;  %v302_v30 = vld [vmem:[%s7632_s24 + $0x10] sm:$0x1] }
  0x2e   : > { %v3630_v43 = vunpack.c.l.b16 %v422_v39  ;;  %v3631_v44 = vunpack.c.l.b16 %v432_v40  ;;  %v373_v45 = vrot.slane %v372_v34, 4  ;;  %v391_v46 = vrot.slane %v389_v36, 4  ;;  %v254_v39 = vld [vmem:[%s7632_s24 + $0x50] sm:$0xf] }
  0x2f   : > { %v383_v47 = vrot.slane %v382_v41, 4  ;;  %v324_v49 = vrot.slane %v322_v38, 4  ;;  %v327_v50 = vrot.slane %v325_v42, 5  ;;  %v331_v51 = vshll.u32 %v239_v37, 16 }
  0x30   : > { %v3690_v52 = vpack.c.b16 %v3631_v44, %v3630_v43  ;;  %v378_v53 = vsel %vm7643_vm2, %v373_v45, %v377_v32  ;;  %v392_v54 = vor.u32 %v391_v46, %v387_v35  ;;  %v335_v55 = vshrl.u32 %v239_v37, 16  ;;  %v255_v44 = vld [vmem:[%s7632_s24 + $0x54] sm:$0xf] }
  0x31   : > { %v388_v57 = vsel %vm7643_vm2, %v383_v47, %v387_v35  ;;  %v3626_v58 = vunpack.c.l.b16 %v378_v53  ;;  %v328_v59 = vor.u32 %v327_v50, %v324_v49  ;;  %v333_v60 = vrot.slane %v331_v51, 5  ;;  %v7679_v51 = vld [vmem:[%s7632_s24 + $0x58] sm:$0xf] }
  0x32   : > { %3726 = vrot.lane.b32.xlu2 %v3690_v52, %s11613_s27  ;;  %v3627_v61 = vunpack.c.l.b16 %v388_v57  ;;  %v337_v62 = vrot.slane %v335_v55, 4  ;;  %v341_v63 = vshll.u32 %v240_v48, 16  ;;  %v345_v0 = vshrl.u32 %v240_v48, 16 }
  0x33   : > { %v329_v2 = vrot.slane %v328_v59, 4  ;;  %v437_v3 = vrot.slane %v436_v26, 4  ;;  %v439_v4 = vshll.u32 %v249_v56, 16  ;;  %v443_v5 = vshrl.u32 %v249_v56, 16 }
  0x34   : > { %v3688_v6 = vpack.c.b16 %v3627_v61, %v3626_v58  ;;  %v338_v7 = vor.u32 %v337_v62, %v333_v60  ;;  %v343_v8 = vrot.slane %v341_v63, 5  ;;  %v347_v9 = vrot.slane %v345_v0, 4  ;;  %v252_v58 = vld [vmem:[%s7632_s24 + $0x44] sm:$0xf]  ;;  %v253_v63 = vld [vmem:[%s7632_s24 + $0x48] sm:$0xf] }
  0x35   : > { %v334_v11 = vsel %vm7643_vm2, %v329_v2, %v333_v60  ;;  %v441_v12 = vrot.slane %v439_v4, 5  ;;  %v445_v13 = vrot.slane %v443_v5, 4  ;;  %v449_v14 = vshll.u32 %v304_v1, 16 }
  0x36   : > { %3722 = vrot.lane.b32.xlu1 %v3688_v6, %s11613_s27  ;;  %v339_v16 = vrot.slane %v338_v7, 4  ;;  %v348_v17 = vor.u32 %v347_v9, %v343_v8  ;;  %v3622_v18 = vunpack.c.l.b16 %v334_v11  ;;  %v393_v19 = vrot.slane %v392_v54, 4  ;;  %v305_v7 = vld [vmem:[%s7632_s24 + $0x4c] sm:$0x1] }
  0x37   : > { %v442_v20 = vsel %vm7643_vm2, %v437_v3, %v441_v12  ;;  %v446_v21 = vor.u32 %v445_v13, %v441_v12  ;;  %v451_v22 = vrot.slane %v449_v14, 5  ;;  %v395_v23 = vshll.u32 %v245_v10, 16  ;;  %v250_v13 = vld [vmem:[%s7632_s24 + $0x3c] sm:$0xf] }
  0x38   : > { %v344_v26 = vsel %vm7643_vm2, %v339_v16, %v343_v8  ;;  %v3632_v27 = vunpack.c.l.b16 %v442_v20  ;;  %v399_v28 = vshrl.u32 %v245_v10, 16  ;;  %v405_v29 = vshll.u32 %v303_v15, 16 }
  0x39   : > { %v3623_v31 = vunpack.c.l.b16 %v344_v26  ;;  %v447_v32 = vrot.slane %v446_v21, 4  ;;  %v397_v33 = vrot.slane %v395_v23, 5  ;;  %v349_v34 = vrot.slane %v348_v17, 4  ;;  %v251_v26 = vld [vmem:[%s7632_s24 + $0x40] sm:$0xf] }
  0x3a   : > { %v401_v35 = vrot.slane %v399_v28, 4  ;;  %v407_v36 = vrot.slane %v405_v29, 5  ;;  %v351_v37 = vshll.u32 %v241_v24, 16  ;;  %v355_v38 = vshrl.u32 %v241_v24, 16 }
  0x3b   : > { %v3686_v40 = vpack.c.b16 %v3623_v31, %v3622_v18  ;;  %v452_v41 = vsel %vm7643_vm2, %v447_v32, %v451_v22  ;;  %v398_v42 = vsel %vm7643_vm2, %v393_v19, %v397_v33  ;;  %v361_v43 = vshll.u32 %v302_v30, 16  ;;  %v260_v32 = vld [vmem:[%s7632_s24 + $0x6c] sm:$0xf] }
  0x3c   : > { %v3633_v45 = vunpack.c.l.b16 %v452_v41  ;;  %v402_v46 = vor.u32 %v401_v35, %v397_v33  ;;  %v3628_v47 = vunpack.c.l.b16 %v398_v42  ;;  %v353_v48 = vrot.slane %v351_v37, 5 }
  0x3d   : > { %3718 = vrot.lane.b32.xlu0 %v3686_v40, %s11613_s27  ;;  %v357_v49 = vrot.slane %v355_v38, 4  ;;  %v363_v50 = vrot.slane %v361_v43, 5  ;;  %v498_v52 = vshrl.u32 %v254_v39, 16  ;;  %v501_v53 = vshll.u32 %v254_v39, 16 }
  0x3e   : > { %v3691_v54 = vpack.c.b16 %v3633_v45, %v3632_v27  ;;  %v403_v55 = vrot.slane %v402_v46, 4  ;;  %v354_v56 = vsel %vm7643_vm2, %v349_v34, %v353_v48  ;;  %v507_v57 = vshll.u32 %v255_v44, 16 }
  0x3f   : > { %v358_v59 = vor.u32 %v357_v49, %v353_v48  ;;  %v3624_v60 = vunpack.c.l.b16 %v354_v56  ;;  %v500_v61 = vrot.slane %v498_v52, 4  ;;  %v503_v62 = vrot.slane %v501_v53, 5  ;;  %v307_v49 = vld [vmem:[%s7632_s24 + $0x74] sm:$0x1] }
  0x40   : > { %3728 = vrot.lane.b32.xlu2 %v3691_v54, %s11613_s27  ;;  %v408_v0 = vsel %vm7643_vm2, %v403_v55, %v407_v36  ;;  %v509_v1 = vrot.slane %v507_v57, 5  ;;  %v511_v2 = vshrl.u32 %v255_v44, 16  ;;  %v517_v3 = vshll.u32 %v7679_v51, 16  ;;  %v261_v44 = vld [vmem:[%s7632_s24 + $0x70] sm:$0xf] }
  0x41   : > { %v3629_v4 = vunpack.c.l.b16 %v408_v0  ;;  %v359_v5 = vrot.slane %v358_v59, 4  ;;  %v504_v6 = vor.u32 %v503_v62, %v500_v61  ;;  %v473_v8 = vshll.u32 %v252_v58, 16 }
  0x42   : > { %v513_v9 = vrot.slane %v511_v2, 4  ;;  %v7690_v10 = vrot.slane %v517_v3, 5  ;;  %v477_v11 = vshrl.u32 %v252_v58, 16  ;;  %v483_v12 = vshll.u32 %v253_v63, 16 }
  0x43   : > { %v3689_v14 = vpack.c.b16 %v3629_v4, %v3628_v47  ;;  %v364_v15 = vsel %vm7643_vm2, %v359_v5, %v363_v50  ;;  %v505_v16 = vrot.slane %v504_v6, 4  ;;  %v475_v17 = vrot.slane %v473_v8, 5  ;;  %v259_v8 = vld [vmem:[%s7632_s24 + $0x68] sm:$0xf] }
  0x44   : > { %v3625_v18 = vunpack.c.l.b16 %v364_v15  ;;  %v514_v19 = vor.u32 %v513_v9, %v509_v1  ;;  %v479_v20 = vrot.slane %v477_v11, 4  ;;  %v485_v21 = vrot.slane %v483_v12, 5 }
  0x45   : > { %3724 = vrot.lane.b32.xlu1 %v3689_v14, %s11613_s27  ;;  %v510_v22 = vsel %vm7643_vm2, %v505_v16, %v509_v1  ;;  %v487_v23 = vshrl.u32 %v253_v63, 16  ;;  %v493_v24 = vshll.u32 %v305_v7, 16  ;;  %v454_v27 = vshrl.u32 %v250_v13, 16 }
  0x46   : > { %v3687_v28 = vpack.c.b16 %v3625_v18, %v3624_v60  ;;  %v515_v29 = vrot.slane %v514_v19, 4  ;;  %v3638_v30 = vunpack.c.l.b16 %v510_v22  ;;  %v480_v31 = vor.u32 %v479_v20, %v475_v17  ;;  %v258_v60 = vld [vmem:[%s7632_s24 + $0x64] sm:$0xf]  ;;  %v257_v20 = vld [vmem:[%s7632_s24 + $0x5c] sm:$0xf] }
  0x47   : > { %v489_v33 = vrot.slane %v487_v23, 4  ;;  %v495_v34 = vrot.slane %v493_v24, 5  ;;  %v456_v35 = vrot.slane %v454_v27, 4  ;;  %v457_v36 = vshll.u32 %v250_v13, 16  ;;  %v306_v24 = vld [vmem:[%s7632_s24 + $0x60] sm:$0x1] }
  0x48   : > { %3720 = vrot.lane.b32.xlu0 %v3687_v28, %s11613_s27  ;;  %v520_v37 = vsel %vm7643_vm2, %v515_v29, %v7690_v10  ;;  %v481_v38 = vrot.slane %v480_v31, 4  ;;  %v463_v39 = vshll.u32 %v251_v26, 16  ;;  %v467_v40 = vshrl.u32 %v251_v26, 16 }
  0x49   : > { %v3639_v41 = vunpack.c.l.b16 %v520_v37  ;;  %v490_v42 = vor.u32 %v489_v33, %v485_v21  ;;  %v459_v43 = vrot.slane %v457_v36, 5  ;;  %v561_v45 = vshll.u32 %v260_v32, 16 }
  0x4a   : > { %v486_v46 = vsel %vm7643_vm2, %v481_v38, %v485_v21  ;;  %v465_v47 = vrot.slane %v463_v39, 5  ;;  %v469_v48 = vrot.slane %v467_v40, 4  ;;  %v565_v50 = vshrl.u32 %v260_v32, 16 }
  0x4b   : > { %v3694_v52 = vpack.c.b16 %v3639_v41, %v3638_v30  ;;  %v491_v53 = vrot.slane %v490_v42, 4  ;;  %v3636_v54 = vunpack.c.l.b16 %v486_v46  ;;  %v460_v55 = vor.u32 %v459_v43, %v456_v35  ;;  %v267_v42 = vld [vmem:[%s7632_s24 + $0x90] sm:$0xf] }
  0x4c   : > { %v470_v56 = vor.u32 %v469_v48, %v465_v47  ;;  %v7708_v57 = vrot.slane %v561_v45, 5  ;;  %v567_v58 = vrot.slane %v565_v50, 4  ;;  %v571_v59 = vshll.u32 %v261_v44, 16 }
  0x4d   : > { %3734 = vrot.lane.b32.xlu2 %v3694_v52, %s11613_s27  ;;  %v496_v61 = vsel %vm7643_vm2, %v491_v53, %v495_v34  ;;  %v461_v62 = vrot.slane %v460_v55, 4  ;;  %v575_v63 = vshrl.u32 %v261_v44, 16  ;;  %v581_v0 = vshll.u32 %v307_v49, 16  ;;  %v266_v34 = vld [vmem:[%s7632_s24 + $0x8c] sm:$0xf] }
  0x4e   : > { %v3637_v1 = vunpack.c.l.b16 %v496_v61  ;;  %v471_v2 = vrot.slane %v470_v56, 4  ;;  %v568_v3 = vor.u32 %v567_v58, %v7708_v57  ;;  %v573_v4 = vrot.slane %v571_v59, 5  ;;  %v264_v56 = vld [vmem:[%s7632_s24 + $0x80] sm:$0xf] }
  0x4f   : > { %v466_v5 = vsel %vm7643_vm2, %v461_v62, %v465_v47  ;;  %v577_v6 = vrot.slane %v575_v63, 4  ;;  %v583_v7 = vrot.slane %v581_v0, 5  ;;  %v542_v9 = vshrl.u32 %v258_v60, 16  ;;  %v265_v62 = vld [vmem:[%s7632_s24 + $0x84] sm:$0xf] }
  0x50   : > { %v3693_v11 = vpack.c.b16 %v3637_v1, %v3636_v54  ;;  %v476_v12 = vsel %vm7643_vm2, %v471_v2, %v475_v17  ;;  %v3634_v13 = vunpack.c.l.b16 %v466_v5  ;;  %v569_v14 = vrot.slane %v568_v3, 4  ;;  %v7735_v54 = vld [vmem:[%s7632_s24 + $0x94] sm:$0xf] }
  0x51   : > { %v3635_v15 = vunpack.c.l.b16 %v476_v12  ;;  %v578_v16 = vor.u32 %v577_v6, %v573_v4  ;;  %v544_v18 = vrot.slane %v542_v9, 4  ;;  %v545_v19 = vshll.u32 %v258_v60, 16 }
  0x52   : > { %3732 = vrot.lane.b32.xlu1 %v3693_v11, %s11613_s27  ;;  %v574_v21 = vsel %vm7643_vm2, %v569_v14, %v573_v4  ;;  %v551_v22 = vshll.u32 %v259_v8, 16  ;;  %v555_v23 = vshrl.u32 %v259_v8, 16  ;;  %v521_v26 = vshrl.u32 %v7679_v51, 16  ;;  %v308_v8 = vld [vmem:[%s7632_s24 + $0x88] sm:$0x1] }
  0x53   : > { %v3692_v27 = vpack.c.b16 %v3635_v15, %v3634_v13  ;;  %v579_v17 = vrot.slane %v578_v16, 4  ;;  %v3644_v28 = vunpack.c.l.b16 %v574_v21  ;;  %v547_v29 = vrot.slane %v545_v19, 5  ;;  %v262_v16 = vld [vmem:[%s7632_s24 + $0x78] sm:$0xf] }
  0x54   : > { %v553_v30 = vrot.slane %v551_v22, 5  ;;  %v557_v31 = vrot.slane %v555_v23, 4  ;;  %v523_v32 = vrot.slane %v521_v26, 4  ;;  %v527_v33 = vshll.u32 %v257_v20, 16  ;;  %v263_v22 = vld [vmem:[%s7632_s24 + $0x7c] sm:$0xf] }
  0x55   : > { %3730 = vrot.lane.b32.xlu0 %v3692_v27, %s11613_s27  ;;  %v584_v35 = vsel %vm7643_vm2, %v579_v17, %v583_v7  ;;  %v548_v36 = vor.u32 %v547_v29, %v544_v18  ;;  %v531_v37 = vshrl.u32 %v257_v20, 16  ;;  %v537_v38 = vshll.u32 %v306_v24, 16 }
  0x56   : > { %v3645_v51 = vunpack.c.l.b16 %v584_v35  ;;  %v558_v39 = vor.u32 %v557_v31, %v553_v30  ;;  %v524_v40 = vor.u32 %v523_v32, %v7690_v10  ;;  %v529_v41 = vrot.slane %v527_v33, 5  ;;  %v272_v31 = vld [vmem:[%s7632_s24 + $0xa8] sm:$0xf] }
  0x57   : > { %v549_v43 = vrot.slane %v548_v36, 4  ;;  %v533_v44 = vrot.slane %v531_v37, 4  ;;  %v539_v45 = vrot.slane %v537_v38, 5  ;;  %v630_v46 = vshrl.u32 %v266_v34, 16 }
  0x58   : > { %v3697_v47 = vpack.c.b16 %v3645_v51, %v3644_v28  ;;  %v559_v48 = vrot.slane %v558_v39, 4  ;;  %v525_v49 = vrot.slane %v524_v40, 4  ;;  %v633_v50 = vshll.u32 %v266_v34, 16 }
  0x59   : > { %v554_v52 = vsel %vm7643_vm2, %v549_v43, %v553_v30  ;;  %v534_v53 = vor.u32 %v533_v44, %v529_v41  ;;  %v632_v55 = vrot.slane %v630_v46, 4  ;;  %v639_v10 = vshll.u32 %v267_v42, 16 }
  0x5a   : > { %3740 = vrot.lane.b32.xlu2 %v3697_v47, %s11613_s27  ;;  %v564_v58 = vsel %vm7643_vm2, %v559_v48, %v7708_v57  ;;  %v3642_v59 = vunpack.c.l.b16 %v554_v52  ;;  %v530_v60 = vsel %vm7643_vm2, %v525_v49, %v529_v41  ;;  %v635_v61 = vrot.slane %v633_v50, 5  ;;  %v310_v50 = vld [vmem:[%s7632_s24 + $0xb0] sm:$0x1] }
  0x5b   : > { %v3643_v63 = vunpack.c.l.b16 %v564_v58  ;;  %v535_v0 = vrot.slane %v534_v53, 4  ;;  %v3640_v1 = vunpack.c.l.b16 %v530_v60  ;;  %v641_v2 = vrot.slane %v639_v10, 5 }
  0x5c   : > { %v636_v3 = vor.u32 %v635_v61, %v632_v55  ;;  %v643_v4 = vshrl.u32 %v267_v42, 16  ;;  %v649_v5 = vshll.u32 %v7735_v54, 16  ;;  %v605_v6 = vshll.u32 %v264_v56, 16  ;;  %v273_v42 = vld [vmem:[%s7632_s24 + $0xac] sm:$0xf] }
  0x5d   : > { %v3696_v7 = vpack.c.b16 %v3643_v63, %v3642_v59  ;;  %v540_v57 = vsel %vm7643_vm2, %v535_v0, %v539_v45  ;;  %v609_v9 = vshrl.u32 %v264_v56, 16  ;;  %v615_v11 = vshll.u32 %v265_v62, 16  ;;  %v270_v55 = vld [vmem:[%s7632_s24 + $0xa0] sm:$0xf] }
  0x5e   : > { %v3641_v12 = vunpack.c.l.b16 %v540_v57  ;;  %v637_v13 = vrot.slane %v636_v3, 4  ;;  %v645_v14 = vrot.slane %v643_v4, 4  ;;  %v7749_v15 = vrot.slane %v649_v5, 5  ;;  %v271_v57 = vld [vmem:[%s7632_s24 + $0xa4] sm:$0xf] }
  0x5f   : > { %3738 = vrot.lane.b32.xlu1 %v3696_v7, %s11613_s27  ;;  %v607_v18 = vrot.slane %v605_v6, 5  ;;  %v611_v19 = vrot.slane %v609_v9, 4  ;;  %v617_v20 = vrot.slane %v615_v11, 5  ;;  %v619_v21 = vshrl.u32 %v265_v62, 16 }
  0x60   : > { %v3695_v23 = vpack.c.b16 %v3641_v12, %v3640_v1  ;;  %v642_v24 = vsel %vm7643_vm2, %v637_v13, %v641_v2  ;;  %v646_v26 = vor.u32 %v645_v14, %v641_v2  ;;  %v625_v27 = vshll.u32 %v308_v8, 16  ;;  %v7776_v8 = vld [vmem:[%s7632_s24 + $0x98] sm:$0xf] }
  0x61   : > { %v3650_v17 = vunpack.c.l.b16 %v642_v24  ;;  %v612_v28 = vor.u32 %v611_v19, %v607_v18  ;;  %v621_v29 = vrot.slane %v619_v21, 4  ;;  %v586_v30 = vshrl.u32 %v262_v16, 16 }
  0x62   : > { %3736 = vrot.lane.b32.xlu0 %v3695_v23, %s11613_s27  ;;  %v647_v32 = vrot.slane %v646_v26, 4  ;;  %v627_v33 = vrot.slane %v625_v27, 5  ;;  %v589_v34 = vshll.u32 %v262_v16, 16  ;;  %v595_v35 = vshll.u32 %v263_v22, 16 }
  0x63   : > { %v613_v36 = vrot.slane %v612_v28, 4  ;;  %v622_v37 = vor.u32 %v621_v29, %v617_v20  ;;  %v588_v38 = vrot.slane %v586_v30, 4  ;;  %v599_v51 = vshrl.u32 %v263_v22, 16  ;;  %v7786_v28 = vld [vmem:[%s7632_s24 + $0x9c] sm:$0x1] }
  0x64   : > { %v652_v39 = vsel %vm7643_vm2, %v647_v32, %v7749_v15  ;;  %v591_v40 = vrot.slane %v589_v34, 5  ;;  %v597_v41 = vrot.slane %v595_v35, 5  ;;  %v693_v43 = vshll.u32 %v272_v31, 16 }
  0x65   : > { %v3651_v44 = vunpack.c.l.b16 %v652_v39  ;;  %v618_v45 = vsel %vm7643_vm2, %v613_v36, %v617_v20  ;;  %v623_v46 = vrot.slane %v622_v37, 4  ;;  %v601_v47 = vrot.slane %v599_v51, 4 }
  0x66   : > { %v3648_v48 = vunpack.c.l.b16 %v618_v45  ;;  %v592_v49 = vor.u32 %v591_v40, %v588_v38  ;;  %v7765_v52 = vrot.slane %v693_v43, 5  ;;  %v697_v53 = vshrl.u32 %v272_v31, 16 }
  0x67   : > { %v3700_v10 = vpack.c.b16 %v3651_v44, %v3650_v17  ;;  %v628_v56 = vsel %vm7643_vm2, %v623_v46, %v627_v33  ;;  %v602_v58 = vor.u32 %v601_v47, %v597_v41  ;;  %v703_v59 = vshll.u32 %v273_v42, 16  ;;  %v278_v33 = vld [vmem:[%s7632_s24 + $0xc8] sm:$0xf] }
  0x68   : > { %v3649_v60 = vunpack.c.l.b16 %v628_v56  ;;  %v593_v61 = vrot.slane %v592_v49, 4  ;;  %v699_v62 = vrot.slane %v697_v53, 4  ;;  %v707_v63 = vshrl.u32 %v273_v42, 16  ;;  %v279_v42 = vld [vmem:[%s7632_s24 + $0xcc] sm:$0xf] }
  0x69   : > { %3746 = vrot.lane.b32.xlu2 %v3700_v10, %s11613_s27  ;;  %v603_v0 = vrot.slane %v602_v58, 4  ;;  %v705_v1 = vrot.slane %v703_v59, 5  ;;  %v713_v2 = vshll.u32 %v310_v50, 16  ;;  %v674_v3 = vshrl.u32 %v270_v55, 16  ;;  %v7799_v53 = vld [vmem:[%s7632_s24 + $0xd0] sm:$0xf] }
  0x6a   : > { %v3699_v4 = vpack.c.b16 %v3649_v60, %v3648_v48  ;;  %v598_v5 = vsel %vm7643_vm2, %v593_v61, %v597_v41  ;;  %v700_v6 = vor.u32 %v699_v62, %v7765_v52  ;;  %v709_v7 = vrot.slane %v707_v63, 4  ;;  %v7802_v10 = vld [vmem:[%s7632_s24 + $0xbc] sm:$0xf] }
  0x6b   : > { %v608_v9 = vsel %vm7643_vm2, %v603_v0, %v607_v18  ;;  %v3646_v11 = vunpack.c.l.b16 %v598_v5  ;;  %v715_v12 = vrot.slane %v713_v2, 5  ;;  %v676_v13 = vrot.slane %v674_v3, 4 }
  0x6c   : > { %3744 = vrot.lane.b32.xlu1 %v3699_v4, %s11613_s27  ;;  %v3647_v14 = vunpack.c.l.b16 %v608_v9  ;;  %v701_v16 = vrot.slane %v700_v6, 4  ;;  %v710_v19 = vor.u32 %v709_v7, %v705_v1  ;;  %v677_v20 = vshll.u32 %v270_v55, 16  ;;  %v277_v4 = vld [vmem:[%s7632_s24 + $0xc0] sm:$0xf] }
  0x6d   : > { %v683_v21 = vshll.u32 %v271_v57, 16  ;;  %v687_v22 = vshrl.u32 %v271_v57, 16  ;;  %v653_v23 = vshrl.u32 %v7735_v54, 16  ;;  %v659_v24 = vshll.u32 %v7776_v8, 16  ;;  %v311_v57 = vld [vmem:[%s7632_s24 + $0xc4] sm:$0x1] }
  0x6e   : > { %v3698_v26 = vpack.c.b16 %v3647_v14, %v3646_v11  ;;  %v706_v18 = vsel %vm7643_vm2, %v701_v16, %v705_v1  ;;  %v711_v27 = vrot.slane %v710_v19, 4  ;;  %v679_v17 = vrot.slane %v677_v20, 5  ;;  %v274_v16 = vld [vmem:[%s7632_s24 + $0xb4] sm:$0xf] }
  0x6f   : > { %v3656_v29 = vunpack.c.l.b16 %v706_v18  ;;  %v685_v30 = vrot.slane %v683_v21, 5  ;;  %v689_v31 = vrot.slane %v687_v22, 4  ;;  %v655_v32 = vrot.slane %v653_v23, 4  ;;  %v7826_v23 = vld [vmem:[%s7632_s24 + $0xb8] sm:$0xf] }
  0x70   : > { %3742 = vrot.lane.b32.xlu0 %v3698_v26, %s11613_s27  ;;  %v716_v54 = vsel %vm7643_vm2, %v711_v27, %v715_v12  ;;  %v680_v34 = vor.u32 %v679_v17, %v676_v13  ;;  %v661_v35 = vrot.slane %v659_v24, 5  ;;  %v663_v36 = vshrl.u32 %v7776_v8, 16 }
  0x71   : > { %v3657_v37 = vunpack.c.l.b16 %v716_v54  ;;  %v690_v38 = vor.u32 %v689_v31, %v685_v30  ;;  %v656_v51 = vor.u32 %v655_v32, %v7749_v15  ;;  %v669_v39 = vshll.u32 %v7786_v28, 16  ;;  %v7830_v32 = vld [vmem:[%s7632_s24 + $0xe4] sm:$0xf] }
  0x72   : > { %v681_v40 = vrot.slane %v680_v34, 4  ;;  %v665_v41 = vrot.slane %v663_v36, 4  ;;  %v762_v43 = vshrl.u32 %v278_v33, 16  ;;  %v765_v44 = vshll.u32 %v278_v33, 16 }
  0x73   : > { %v3703_v45 = vpack.c.b16 %v3657_v37, %v3656_v29  ;;  %v691_v46 = vrot.slane %v690_v38, 4  ;;  %v657_v47 = vrot.slane %v656_v51, 4  ;;  %v671_v48 = vrot.slane %v669_v39, 5 }
  0x74   : > { %v686_v49 = vsel %vm7643_vm2, %v681_v40, %v685_v30  ;;  %v666_v50 = vor.u32 %v665_v41, %v661_v35  ;;  %v764_v15 = vrot.slane %v762_v43, 4  ;;  %v767_v55 = vrot.slane %v765_v44, 5 }
  0x75   : > { %3752 = vrot.lane.b32.xlu2 %v3703_v45, %s11613_s27  ;;  %v696_v56 = vsel %vm7643_vm2, %v691_v46, %v7765_v52  ;;  %v3654_v58 = vunpack.c.l.b16 %v686_v49  ;;  %v662_v59 = vsel %vm7643_vm2, %v657_v47, %v661_v35  ;;  %v771_v60 = vshll.u32 %v279_v42, 16 }
  0x76   : > { %v3655_v61 = vunpack.c.l.b16 %v696_v56  ;;  %v667_v62 = vrot.slane %v666_v50, 4  ;;  %v3652_v63 = vunpack.c.l.b16 %v662_v59  ;;  %v768_v0 = vor.u32 %v767_v55, %v764_v15  ;;  %v7845_v50 = vld [vmem:[%s7632_s24 + $0xec] sm:$0x1]  ;;  %v282_v56 = vld [vmem:[%s7632_s24 + $0xdc] sm:$0xf] }
  0x77   : > { %v773_v1 = vrot.slane %v771_v60, 5  ;;  %v775_v2 = vshrl.u32 %v279_v42, 16  ;;  %v781_v3 = vshll.u32 %v7799_v53, 16  ;;  %v737_v5 = vshll.u32 %v7802_v10, 16  ;;  %v7839_v42 = vld [vmem:[%s7632_s24 + $0xe8] sm:$0xf] }
  0x78   : > { %v3702_v52 = vpack.c.b16 %v3655_v61, %v3654_v58  ;;  %v672_v6 = vsel %vm7643_vm2, %v667_v62, %v671_v48  ;;  %v769_v7 = vrot.slane %v768_v0, 4  ;;  %v741_v9 = vshrl.u32 %v7802_v10, 16 }
  0x79   : > { %v3653_v11 = vunpack.c.l.b16 %v672_v6  ;;  %v777_v12 = vrot.slane %v775_v2, 4  ;;  %v7817_v13 = vrot.slane %v781_v3, 5  ;;  %v7819_v14 = vrot.slane %v737_v5, 5 }
  0x7a   : > { %3750 = vrot.lane.b32.xlu1 %v3702_v52, %s11613_s27  ;;  %v774_v19 = vsel %vm7643_vm2, %v769_v7, %v773_v1  ;;  %v743_v20 = vrot.slane %v741_v9, 4  ;;  %v747_v21 = vshll.u32 %v277_v4, 16  ;;  %v751_v22 = vshrl.u32 %v277_v4, 16  ;;  %v7861_v9 = vld [vmem:[%s7632_s24 + $0xe0] sm:$0xf] }
  0x7b   : > { %v3701_v24 = vpack.c.b16 %v3653_v11, %v3652_v63  ;;  %v778_v26 = vor.u32 %v777_v12, %v773_v1  ;;  %v3662_v18 = vunpack.c.l.b16 %v774_v19  ;;  %v757_v27 = vshll.u32 %v311_v57, 16  ;;  %v7864_v11 = vld [vmem:[%s7632_s24 + $0xd4] sm:$0xf] }
  0x7c   : > { %v744_v17 = vor.u32 %v743_v20, %v7819_v14  ;;  %v749_v29 = vrot.slane %v747_v21, 5  ;;  %v753_v30 = vrot.slane %v751_v22, 4  ;;  %v718_v31 = vshrl.u32 %v274_v16, 16 }
  0x7d   : > { %3748 = vrot.lane.b32.xlu0 %v3701_v24, %s11613_s27  ;;  %v779_v33 = vrot.slane %v778_v26, 4  ;;  %v759_v54 = vrot.slane %v757_v27, 5  ;;  %v721_v34 = vshll.u32 %v274_v16, 16  ;;  %v727_v35 = vshll.u32 %v7826_v23, 16 }
  0x7e   : > { %v745_v36 = vrot.slane %v744_v17, 4  ;;  %v754_v37 = vor.u32 %v753_v30, %v749_v29  ;;  %v720_v38 = vrot.slane %v718_v31, 4  ;;  %v731_v51 = vshrl.u32 %v7826_v23, 16 }
  0x7f   : > { %v784_v39 = vsel %vm7643_vm2, %v779_v33, %v7817_v13  ;;  %v723_v40 = vrot.slane %v721_v34, 5  ;;  %v729_v41 = vrot.slane %v727_v35, 5  ;;  %v825_v43 = vshll.u32 %v7830_v32, 16 }
  0x80   : > { %v3663_v44 = vunpack.c.l.b16 %v784_v39  ;;  %v750_v45 = vsel %vm7643_vm2, %v745_v36, %v749_v29  ;;  %v755_v46 = vrot.slane %v754_v37, 4  ;;  %v733_v47 = vrot.slane %v731_v51, 4 }
  0x81   : > { %v3660_v48 = vunpack.c.l.b16 %v750_v45  ;;  %v724_v49 = vor.u32 %v723_v40, %v720_v38  ;;  %v7847_v15 = vrot.slane %v825_v43, 5  ;;  %v829_v55 = vshrl.u32 %v7830_v32, 16  ;;  %v290_v38 = vld [vmem:[%s7632_s24 + $0x104] sm:$0xf] }
  0x82   : > { %v3706_v58 = vpack.c.b16 %v3663_v44, %v3662_v18  ;;  %v760_v59 = vsel %vm7643_vm2, %v755_v46, %v759_v54  ;;  %v734_v60 = vor.u32 %v733_v47, %v729_v41  ;;  %v835_v61 = vshll.u32 %v7839_v42, 16  ;;  %v7877_v54 = vld [vmem:[%s7632_s24 + $0xd8] sm:$0x1] }
  0x83   : > { %v3661_v62 = vunpack.c.l.b16 %v760_v59  ;;  %v725_v63 = vrot.slane %v724_v49, 4  ;;  %v831_v0 = vrot.slane %v829_v55, 4  ;;  %v839_v1 = vshrl.u32 %v7839_v42, 16 }
  0x84   : > { %3758 = vrot.lane.b32.xlu2 %v3706_v58, %s11613_s27  ;;  %v735_v2 = vrot.slane %v734_v60, 4  ;;  %v837_v3 = vrot.slane %v835_v61, 5  ;;  %v845_v4 = vshll.u32 %v7845_v50, 16  ;;  %v806_v5 = vshrl.u32 %v282_v56, 16 }
  0x85   : > { %v3705_v52 = vpack.c.b16 %v3661_v62, %v3660_v48  ;;  %v730_v6 = vsel %vm7643_vm2, %v725_v63, %v729_v41  ;;  %v832_v7 = vor.u32 %v831_v0, %v7847_v15  ;;  %v841_v57 = vrot.slane %v839_v1, 4  ;;  %v7887_v48 = vld [vmem:[%s7632_s24 + $0x108] sm:$0xf]  ;;  %v7892_v63 = vld [vmem:[%s7632_s24 + $0x10c] sm:$0xf] }
  0x86   : > { %v740_v12 = vsel %vm7643_vm2, %v735_v2, %v7819_v14  ;;  %v3658_v16 = vunpack.c.l.b16 %v730_v6  ;;  %v847_v19 = vrot.slane %v845_v4, 5  ;;  %v808_v20 = vrot.slane %v806_v5, 4  ;;  %v7895_v1 = vld [vmem:[%s7632_s24 + $0xf8] sm:$0xf] }
  0x87   : > { %3756 = vrot.lane.b32.xlu1 %v3705_v52, %s11613_s27  ;;  %v3659_v21 = vunpack.c.l.b16 %v740_v12  ;;  %v833_v22 = vrot.slane %v832_v7, 4  ;;  %v842_v24 = vor.u32 %v841_v57, %v837_v3  ;;  %v809_v26 = vshll.u32 %v282_v56, 16 }
  0x88   : > { %v815_v18 = vshll.u32 %v7861_v9, 16  ;;  %v819_v27 = vshrl.u32 %v7861_v9, 16  ;;  %v785_v17 = vshrl.u32 %v7799_v53, 16  ;;  %v791_v29 = vshll.u32 %v7864_v11, 16 }
  0x89   : > { %v3704_v14 = vpack.c.b16 %v3659_v21, %v3658_v16  ;;  %v838_v30 = vsel %vm7643_vm2, %v833_v22, %v837_v3  ;;  %v843_v31 = vrot.slane %v842_v24, 4  ;;  %v811_v33 = vrot.slane %v809_v26, 5  ;;  %v7913_v26 = vld [vmem:[%s7632_s24 + $0x100] sm:$0x1] }
  0x8a   : > { %v3668_v34 = vunpack.c.l.b16 %v838_v30  ;;  %v817_v35 = vrot.slane %v815_v18, 5  ;;  %v821_v36 = vrot.slane %v819_v27, 4  ;;  %v787_v37 = vrot.slane %v785_v17, 4  ;;  %v286_v30 = vld [vmem:[%s7632_s24 + $0xf0] sm:$0xf] }
  0x8b   : > { %3754 = vrot.lane.b32.xlu0 %v3704_v14, %s11613_s27  ;;  %v848_v53 = vsel %vm7643_vm2, %v843_v31, %v847_v19  ;;  %v812_v51 = vor.u32 %v811_v33, %v808_v20  ;;  %v793_v39 = vrot.slane %v791_v29, 5  ;;  %v795_v40 = vshrl.u32 %v7864_v11, 16  ;;  %v7907_v20 = vld [vmem:[%s7632_s24 + $0xfc] sm:$0xf] }
  0x8c   : > { %v3669_v41 = vunpack.c.l.b16 %v848_v53  ;;  %v822_v43 = vor.u32 %v821_v36, %v817_v35  ;;  %v788_v44 = vor.u32 %v787_v37, %v7817_v13  ;;  %v801_v45 = vshll.u32 %v7877_v54, 16  ;;  %v7927_v36 = vld [vmem:[%s7632_s24 + $0xf4] sm:$0xf] }
  0x8d   : > { %v813_v46 = vrot.slane %v812_v51, 4  ;;  %v797_v47 = vrot.slane %v795_v40, 4  ;;  %v894_v49 = vshrl.u32 %v290_v38, 16  ;;  %v897_v55 = vshll.u32 %v290_v38, 16 }
  0x8e   : > { %v3709_v56 = vpack.c.b16 %v3669_v41, %v3668_v34  ;;  %v823_v58 = vrot.slane %v822_v43, 4  ;;  %v789_v59 = vrot.slane %v788_v44, 4  ;;  %v803_v60 = vrot.slane %v801_v45, 5  ;;  %v7932_v44 = vld [vmem:[%s7632_s24 + $0x120] sm:$0xf] }
  0x8f   : > { %v818_v61 = vsel %vm7643_vm2, %v813_v46, %v817_v35  ;;  %v798_v62 = vor.u32 %v797_v47, %v793_v39  ;;  %v896_v13 = vrot.slane %v894_v49, 4  ;;  %v899_v0 = vrot.slane %v897_v55, 5 }
  0x90   : > { %3764 = vrot.lane.b32.xlu2 %v3709_v56, %s11613_s27  ;;  %v828_v2 = vsel %vm7643_vm2, %v823_v58, %v7847_v15  ;;  %v3666_v3 = vunpack.c.l.b16 %v818_v61  ;;  %v794_v4 = vsel %vm7643_vm2, %v789_v59, %v793_v39  ;;  %v903_v5 = vshll.u32 %v7887_v48, 16 }
  0x91   : > { %v3667_v52 = vunpack.c.l.b16 %v828_v2  ;;  %v799_v6 = vrot.slane %v798_v62, 4  ;;  %v3664_v7 = vunpack.c.l.b16 %v794_v4  ;;  %v900_v57 = vor.u32 %v899_v0, %v896_v13  ;;  %v7941_v13 = vld [vmem:[%s7632_s24 + $0x124] sm:$0xf] }
  0x92   : > { %v905_v12 = vrot.slane %v903_v5, 5  ;;  %v907_v16 = vshrl.u32 %v7887_v48, 16  ;;  %v913_v19 = vshll.u32 %v7892_v63, 16  ;;  %v869_v15 = vshll.u32 %v7895_v1, 16 }
  0x93   : > { %v3708_v21 = vpack.c.b16 %v3667_v52, %v3666_v3  ;;  %v804_v22 = vsel %vm7643_vm2, %v799_v6, %v803_v60  ;;  %v901_v24 = vrot.slane %v900_v57, 4  ;;  %v873_v18 = vshrl.u32 %v7895_v1, 16 }
  0x94   : > { %v3665_v27 = vunpack.c.l.b16 %v804_v22  ;;  %v909_v17 = vrot.slane %v907_v16, 4  ;;  %v7916_v29 = vrot.slane %v913_v19, 5  ;;  %v7918_v14 = vrot.slane %v869_v15, 5  ;;  %v294_v16 = vld [vmem:[%s7632_s24 + $0x118] sm:$0xf] }
  0x95   : > { %3762 = vrot.lane.b32.xlu1 %v3708_v21, %s11613_s27  ;;  %v906_v31 = vsel %vm7643_vm2, %v901_v24, %v905_v12  ;;  %v875_v33 = vrot.slane %v873_v18, 4  ;;  %v879_v34 = vshll.u32 %v7907_v20, 16  ;;  %v883_v35 = vshrl.u32 %v7907_v20, 16 }
  0x96   : > { %v3707_v37 = vpack.c.b16 %v3665_v27, %v3664_v7  ;;  %v910_v38 = vor.u32 %v909_v17, %v905_v12  ;;  %v3674_v53 = vunpack.c.l.b16 %v906_v31  ;;  %v889_v51 = vshll.u32 %v7913_v26, 16  ;;  %v7947_v7 = vld [vmem:[%s7632_s24 + $0x128] sm:$0x1] }
  0x97   : > { %v876_v39 = vor.u32 %v875_v33, %v7918_v14  ;;  %v881_v40 = vrot.slane %v879_v34, 5  ;;  %v885_v41 = vrot.slane %v883_v35, 4  ;;  %v850_v43 = vshrl.u32 %v286_v30, 16 }
  0x98   : > { %3760 = vrot.lane.b32.xlu0 %v3707_v37, %s11613_s27  ;;  %v911_v45 = vrot.slane %v910_v38, 4  ;;  %v891_v46 = vrot.slane %v889_v51, 5  ;;  %v853_v47 = vshll.u32 %v286_v30, 16  ;;  %v859_v49 = vshll.u32 %v7927_v36, 16  ;;  %v7963_v51 = vld [vmem:[%s7632_s24 + $0x11c] sm:$0xf] }
  0x99   : > { %v877_v55 = vrot.slane %v876_v39, 4  ;;  %v886_v56 = vor.u32 %v885_v41, %v881_v40  ;;  %v852_v58 = vrot.slane %v850_v43, 4  ;;  %v863_v59 = vshrl.u32 %v7927_v36, 16  ;;  %v7966_v39 = vld [vmem:[%s7632_s24 + $0x110] sm:$0xf] }
  0x9a   : > { %v916_v60 = vsel %vm7643_vm2, %v911_v45, %v7916_v29  ;;  %v855_v61 = vrot.slane %v853_v47, 5  ;;  %v861_v62 = vrot.slane %v859_v49, 5  ;;  %v957_v0 = vshll.u32 %v7932_v44, 16 }
  0x9b   : > { %v3675_v2 = vunpack.c.l.b16 %v916_v60  ;;  %v882_v3 = vsel %vm7643_vm2, %v877_v55, %v881_v40  ;;  %v887_v4 = vrot.slane %v886_v56, 4  ;;  %v865_v5 = vrot.slane %v863_v59, 4 }
  0x9c   : > { %v3672_v52 = vunpack.c.l.b16 %v882_v3  ;;  %v856_v6 = vor.u32 %v855_v61, %v852_v58  ;;  %v7949_v57 = vrot.slane %v957_v0, 5  ;;  %v961_v12 = vshrl.u32 %v7932_v44, 16 }
  0x9d   : > { %v3712_v19 = vpack.c.b16 %v3675_v2, %v3674_v53  ;;  %v892_v15 = vsel %vm7643_vm2, %v887_v4, %v891_v46  ;;  %v866_v21 = vor.u32 %v865_v5, %v861_v62  ;;  %v967_v22 = vshll.u32 %v7941_v13, 16  ;;  %v7979_v2 = vld [vmem:[%s7632_s24 + $0x114] sm:$0x1] }
  0x9e   : > { %v3673_v24 = vunpack.c.l.b16 %v892_v15  ;;  %v857_v18 = vrot.slane %v856_v6, 4  ;;  %v963_v27 = vrot.slane %v961_v12, 4  ;;  %v971_v17 = vshrl.u32 %v7941_v13, 16  ;;  %v7982_v6 = vld [vmem:[%s7632_s24 + $0x134] sm:$0xf] }
  0x9f   : > { %3770 = vrot.lane.b32.xlu2 %v3712_v19, %s11613_s27  ;;  %v867_v30 = vrot.slane %v866_v21, 4  ;;  %v969_v31 = vrot.slane %v967_v22, 5  ;;  %v977_v33 = vshll.u32 %v7947_v7, 16  ;;  %v938_v34 = vshrl.u32 %v294_v16, 16 }
  0xa0   : > { %v3711_v35 = vpack.c.b16 %v3673_v24, %v3672_v52  ;;  %v862_v37 = vsel %vm7643_vm2, %v857_v18, %v861_v62  ;;  %v964_v38 = vor.u32 %v963_v27, %v7949_v57  ;;  %v973_v53 = vrot.slane %v971_v17, 4 }
  0xa1   : > { %v872_v40 = vsel %vm7643_vm2, %v867_v30, %v7918_v14  ;;  %v3670_v41 = vunpack.c.l.b16 %v862_v37  ;;  %v979_v43 = vrot.slane %v977_v33, 5  ;;  %v940_v45 = vrot.slane %v938_v34, 4  ;;  %v7991_v30 = vld [vmem:[%s7632_s24 + $0x138] sm:$0xf] }
  0xa2   : > { %3768 = vrot.lane.b32.xlu1 %v3711_v35, %s11613_s27  ;;  %v3671_v46 = vunpack.c.l.b16 %v872_v40  ;;  %v965_v47 = vrot.slane %v964_v38, 4  ;;  %v974_v49 = vor.u32 %v973_v53, %v969_v31  ;;  %v941_v55 = vshll.u32 %v294_v16, 16 }
  0xa3   : > { %v947_v56 = vshll.u32 %v7963_v51, 16  ;;  %v951_v58 = vshrl.u32 %v7963_v51, 16  ;;  %v917_v59 = vshrl.u32 %v7892_v63, 16  ;;  %v923_v60 = vshll.u32 %v7966_v39, 16 }
  0xa4   : > { %v3710_v14 = vpack.c.b16 %v3671_v46, %v3670_v41  ;;  %v970_v61 = vsel %vm7643_vm2, %v965_v47, %v969_v31  ;;  %v975_v62 = vrot.slane %v974_v49, 4  ;;  %v943_v0 = vrot.slane %v941_v55, 5 }
  0xa5   : > { %v3680_v3 = vunpack.c.l.b16 %v970_v61  ;;  %v949_v4 = vrot.slane %v947_v56, 5  ;;  %v953_v5 = vrot.slane %v951_v58, 4  ;;  %v919_v52 = vrot.slane %v917_v59, 4 }
  0xa6   : > { %3766 = vrot.lane.b32.xlu0 %v3710_v14, %s11613_s27  ;;  %v980_v12 = vsel %vm7643_vm2, %v975_v62, %v979_v43  ;;  %v944_v16 = vor.u32 %v943_v0, %v940_v45  ;;  %v925_v19 = vrot.slane %v923_v60, 5  ;;  %v927_v15 = vshrl.u32 %v7966_v39, 16  ;;  %v1025_v60 = vld [vmem:[%s7632_s24] sm:$0xe] }
  0xa7   : > { %v3681_v21 = vunpack.c.l.b16 %v980_v12  ;;  %v954_v22 = vor.u32 %v953_v5, %v949_v4  ;;  %v920_v24 = vor.u32 %v919_v52, %v7916_v29  ;;  %v933_v18 = vshll.u32 %v7979_v2, 16  ;;  %v7998_v29 = vld [vmem:[%s7632_s24 + $0x13c] sm:$0x1] }
  0xa8   : > { %v945_v27 = vrot.slane %v944_v16, 4  ;;  %v929_v17 = vrot.slane %v927_v15, 4  ;;  %v1001_v31 = vshll.u32 %v7982_v6, 16  ;;  %v1005_v33 = vshrl.u32 %v7982_v6, 16  ;;  %v8021_v15 = vld [vmem:[%s7632_s24 + $0x130] sm:$0xf] }
  0xa9   : > { %v3715_v34 = vpack.c.b16 %v3681_v21, %v3680_v3  ;;  %v955_v35 = vrot.slane %v954_v22, 4  ;;  %v921_v37 = vrot.slane %v920_v24, 4  ;;  %v935_v38 = vrot.slane %v933_v18, 5  ;;  %v8023_v21 = vpop.permute.xlu2 %3726  ;;  %v7306_v24 = vld [vmem:[%s7632_s24 + $0x4] sm:$0xf] }
  0xaa   : > { %v950_v53 = vsel %vm7643_vm2, %v945_v27, %v949_v4  ;;  %v930_v40 = vor.u32 %v929_v17, %v925_v19  ;;  %v8000_v41 = vrot.slane %v1001_v31, 5  ;;  %v1007_v43 = vrot.slane %v1005_v33, 4  ;;  %v7307_v27 = vld [vmem:[%s7632_s24 + $0x8] sm:$0xf] }
  0xab   : > { %3776 = vrot.lane.b32.xlu2 %v3715_v34, %s11613_s27  ;;  %v960_v45 = vsel %vm7643_vm2, %v955_v35, %v7949_v57  ;;  %v3678_v46 = vunpack.c.l.b16 %v950_v53  ;;  %v926_v47 = vsel %vm7643_vm2, %v921_v37, %v925_v19  ;;  %v1011_v49 = vshll.u32 %v7991_v30, 16  ;;  %v298_v57 = vld [vmem:[%s7632_s24 + $0x12c] sm:$0xf] }
  0xac   : > { %v3679_v55 = vunpack.c.l.b16 %v960_v45  ;;  %v931_v56 = vrot.slane %v930_v40, 4  ;;  %v3676_v58 = vunpack.c.l.b16 %v926_v47  ;;  %v1008_v59 = vor.u32 %v1007_v43, %v8000_v41 }
  0xad   : > { %v1013_v14 = vrot.slane %v1011_v49, 5  ;;  %v1015_v61 = vshrl.u32 %v7991_v30, 16  ;;  %v1021_v62 = vshll.u32 %v7998_v29, 16  ;;  %v11620_v16 = vmov 0 }
  0xae   : > { %v3714_v0 = vpack.c.b16 %v3679_v55, %v3678_v46  ;;  %v936_v3 = vsel %vm7643_vm2, %v931_v56, %v935_v38  ;;  %v1009_v4 = vrot.slane %v1008_v59, 4  ;;  %v11621_v16 = vsel %vm8016_vm5, 4294967295, %v11620_v16  ;;  %v1026_v38 = vld [vmem:[%s7632_s24 + $0x14] sm:$0xe] }
  0xaf   : > { %v3677_v5 = vunpack.c.l.b16 %v936_v3  ;;  %v1017_v52 = vrot.slane %v1015_v61, 4  ;;  %v1023_v12 = vrot.slane %v1021_v62, 5  ;;  %11622 = vst [vmem:[#allocation8_spill] sm:$0xff] %v11621_v16  ;;  %v6247_v19 = vrot.slane %v1025_v60, 9  ;;  %v7308_v60 = vld [vmem:[%s7632_s24 + $0x18] sm:$0xf] }
  0xb0   : > { %3774 = vrot.lane.b32.xlu1 %v3714_v0, %s11613_s27  ;;  %v1014_v22 = vsel %vm7643_vm2, %v1009_v4, %v1013_v14  ;;  %v1126_v18 = vrot.slane %v7306_v24, 5  ;;  %v1129_v17 = vrot.slane %v7307_v27, 5  ;;  %v982_v31 = vshrl.u32 %v298_v57, 16 }
  0xb1   : > { %v3713_v33 = vpack.c.b16 %v3677_v5, %v3676_v58  ;;  %v1018_v34 = vor.u32 %v1017_v52, %v1013_v14  ;;  %v3684_v35 = vunpack.c.l.b16 %v1014_v22  ;;  %v985_v37 = vshll.u32 %v298_v57, 16  ;;  %v7309_v52 = vld [vmem:[%s7632_s24 + $0x1c] sm:$0xf] }
  0xb2   : > { %v1127_v53 = vsel %vm8016_vm5, %v6247_v19, %v1126_v18  ;;  %v1128_v40 = vrot.slane %v1126_v18, 4  ;;  %v984_v43 = vrot.slane %v982_v31, 4  ;;  %v991_v45 = vshll.u32 %v8021_v15, 16 }
  0xb3   : > { %3772 = vrot.lane.b32.xlu0 %v3713_v33, %s11613_s27  ;;  %v1019_v46 = vrot.slane %v1018_v34, 4  ;;  %v3782_v47 = vunpack.c.l.b16 %v1127_v53  ;;  %v987_v49 = vrot.slane %v985_v37, 5  ;;  %v995_v55 = vshrl.u32 %v8021_v15, 16  ;;  %v7310_v34 = vld [vmem:[%s7632_s24 + $0x20] sm:$0xf] }
  0xb4   : > { %v1130_v56 = vsel %vm8016_vm5, %v1128_v40, %v1129_v17  ;;  %v993_v58 = vrot.slane %v991_v45, 5  ;;  %v6248_v59 = vrot.slane %v1026_v38, 9  ;;  %v1139_v14 = vrot.slane %v7308_v60, 5 }
  0xb5   : > { %v1024_v61 = vsel %vm7643_vm2, %v1019_v46, %v1023_v12  ;;  %v3783_v62 = vunpack.c.l.b16 %v1130_v56  ;;  %v988_v57 = vor.u32 %v987_v49, %v984_v43  ;;  %v997_v0 = vrot.slane %v995_v55, 4  ;;  %v7311_v43 = vld [vmem:[%s7632_s24 + $0x24] sm:$0x1] }
  0xb6   : > { %v3685_v3 = vunpack.c.l.b16 %v1024_v61  ;;  %v1140_v4 = vsel %vm8016_vm5, %v6248_v59, %v1139_v14  ;;  %v1141_v5 = vrot.slane %v1139_v14, 4  ;;  %v1142_v19 = vrot.slane %v7309_v52, 5  ;;  %v7312_v59 = vld [vmem:[%s7632_s24 + $0xc] sm:$0xf] }
  0xb7   : > { %v3846_v22 = vpack.c.b16 %v3783_v62, %v3782_v47  ;;  %v989_v24 = vrot.slane %v988_v57, 4  ;;  %v998_v18 = vor.u32 %v997_v0, %v993_v58  ;;  %v3786_v27 = vunpack.c.l.b16 %v1140_v4  ;;  %v7313_v62 = vld [vmem:[%s7632_s24 + $0x10] sm:$0x1]  ;;  %v1028_v0 = vld [vmem:[%s7632_s24 + $0x3c] sm:$0xe] }
  0xb8   : > { %v3717_v31 = vpack.c.b16 %v3685_v3, %v3684_v35  ;;  %v1143_v12 = vsel %vm8016_vm5, %v1141_v5, %v1142_v19  ;;  %v1144_v33 = vrot.slane %v1142_v19, 4  ;;  %v1145_v37 = vrot.slane %v7310_v34, 5  ;;  %v8051_v35 = vpop.permute.xlu2 %3728  ;;  %v7314_v19 = vld [vmem:[%s7632_s24 + $0x30] sm:$0xf] }
  0xb9   : > { %3878 = vrot.lane.b32.xlu2 %v3846_v22, %s7521_s30  ;;  %v994_v38 = vsel %vm7643_vm2, %v989_v24, %v993_v58  ;;  %v999_v53 = vrot.slane %v998_v18, 4  ;;  %v3787_v40 = vunpack.c.l.b16 %v1143_v12  ;;  %v1148_v45 = vrot.slane %v7311_v43, 5  ;;  %v7315_v24 = vld [vmem:[%s7632_s24 + $0x34] sm:$0xf]  ;;  %v7317_v43 = vld [vmem:[%s7632_s24 + $0x40] sm:$0xf] }
  0xba   : > { %3780 = vrot.lane.b32.xlu1 %v3717_v31, %s11613_s27  ;;  %v3682_v46 = vunpack.c.l.b16 %v994_v38  ;;  %v1146_v47 = vsel %vm8016_vm5, %v1144_v33, %v1145_v37  ;;  %v1147_v49 = vrot.slane %v1145_v37, 4  ;;  %v1131_v55 = vrot.slane %v1129_v17, 4  ;;  %v1027_v31 = vld [vmem:[%s7632_s24 + $0x28] sm:$0xe] }
  0xbb   : > { %v1004_v56 = vsel %vm7643_vm2, %v999_v53, %v8000_v41  ;;  %v3788_v58 = vunpack.c.l.b16 %v1146_v47  ;;  %v1132_v60 = vrot.slane %v7312_v59, 5  ;;  %v1135_v57 = vrot.slane %v7313_v62, 5 }
  0xbc   : > { %v3683_v14 = vunpack.c.l.b16 %v1004_v56  ;;  %v1149_v61 = vsel %vm8016_vm5, %v1147_v49, %v1148_v45  ;;  %v3848_v3 = vpack.c.b16 %v3787_v40, %v3786_v27  ;;  %v1155_v22 = vrot.slane %v7314_v19, 5  ;;  %v7316_v27 = vld [vmem:[%s7632_s24 + $0x38] sm:$0x1] }
  0xbd   : > { %v3789_v17 = vunpack.c.l.b16 %v1149_v61  ;;  %v1133_v4 = vsel %vm8016_vm5, %v1131_v55, %v1132_v60  ;;  %v1134_v5 = vrot.slane %v1132_v60, 4  ;;  %v1158_v18 = vrot.slane %v7315_v24, 5  ;;  %v7319_v55 = vld [vmem:[%s7632_s24 + $0x2c] sm:$0xf] }
  0xbe   : > { %v3716_v41 = vpack.c.b16 %v3683_v14, %v3682_v46  ;;  %v3784_v52 = vunpack.c.l.b16 %v1133_v4  ;;  %v1161_v34 = vrot.slane %v7316_v27, 5  ;;  %v6250_v37 = vrot.slane %v1028_v0, 9  ;;  %v7318_v46 = vld [vmem:[%s7632_s24 + $0x44] sm:$0xf] }
  0xbf   : > { %v3849_v12 = vpack.c.b16 %v3789_v17, %v3788_v58  ;;  %v1136_v33 = vsel %vm8016_vm5, %v1134_v5, %v1135_v57  ;;  %v1157_v53 = vrot.slane %v1155_v22, 4  ;;  %v1160_v40 = vrot.slane %v1158_v18, 4  ;;  %v1029_v58 = vld [vmem:[%s7632_s24 + $0x50] sm:$0xe] }
  0xc0   : > { %3778 = vrot.lane.b32.xlu0 %v3716_v41, %s11613_s27  ;;  %v3785_v38 = vunpack.c.l.b16 %v1136_v33  ;;  %v1165_v45 = vrot.slane %v7317_v43, 5  ;;  %v1168_v47 = vrot.slane %v7318_v46, 5  ;;  %v6249_v49 = vrot.slane %v1027_v31, 9  ;;  %v8085_v4 = vpop.permute.xlu2 %3734  ;;  %v7321_v31 = vld [vmem:[%s7632_s24 + $0x58] sm:$0xf] }
  0xc1   : > { %3884 = vrot.lane.b32.xlu2 %v3849_v12, %s7521_s30  ;;  %v1152_v56 = vrot.slane %v7319_v55, 5  ;;  %v1159_v60 = vsel %vm8016_vm5, %v1157_v53, %v1158_v18  ;;  %v1162_v14 = vsel %vm8016_vm5, %v1160_v40, %v1161_v34  ;;  %v6251_v41 = vrot.slane %v1029_v58, 9  ;;  %v7322_v43 = vld [vmem:[%s7632_s24 + $0x5c] sm:$0xf]  ;;  %v7323_v55 = vld [vmem:[%s7632_s24 + $0x60] sm:$0x1]  ;;  %v8102_v58 = vpop.permute.xlu1 %3722 }
  0xc2   : > { %3882 = vrot.lane.b32.xlu1 %v3848_v3, %s7521_s30  ;;  %v3847_v59 = vpack.c.b16 %v3785_v38, %v3784_v52  ;;  %v1166_v61 = vsel %vm8016_vm5, %v6250_v37, %v1165_v45  ;;  %v3792_v62 = vunpack.c.l.b16 %v1159_v60  ;;  %v3793_v57 = vunpack.c.l.b16 %v1162_v14  ;;  %v7320_v52 = vld [vmem:[%s7632_s24 + $0x54] sm:$0xf] }
  0xc3   : > { %v1167_v0 = vrot.slane %v1165_v45, 4  ;;  %v3794_v17 = vunpack.c.l.b16 %v1166_v61  ;;  %v1153_v3 = vsel %vm8016_vm5, %v6249_v49, %v1152_v56  ;;  %v1154_v5 = vrot.slane %v1152_v56, 4 }
  0xc4   : > { %v1178_v19 = vrot.slane %v7320_v52, 5  ;;  %v3851_v24 = vpack.c.b16 %v3793_v57, %v3792_v62  ;;  %v1181_v12 = vrot.slane %v7321_v31, 5  ;;  %v3790_v38 = vunpack.c.l.b16 %v1153_v3  ;;  %v7324_v57 = vld [vmem:[%s7632_s24 + $0x48] sm:$0xf]  ;;  %v1031_v3 = vld [vmem:[%s7632_s24 + $0x78] sm:$0xe] }
  0xc5   : > { %v1169_v18 = vsel %vm8016_vm5, %v1167_v0, %v1168_v47  ;;  %v1156_v27 = vsel %vm8016_vm5, %v1154_v5, %v1155_v22  ;;  %v1184_v45 = vrot.slane %v7322_v43, 5  ;;  %v1187_v22 = vrot.slane %v7323_v55, 5  ;;  %v7326_v52 = vld [vmem:[%s7632_s24 + $0x6c] sm:$0xf]  ;;  %v1030_v43 = vld [vmem:[%s7632_s24 + $0x64] sm:$0xe] }
  0xc6   : > { %v3795_v33 = vunpack.c.l.b16 %v1169_v18  ;;  %v1179_v34 = vsel %vm8016_vm5, %v6251_v41, %v1178_v19  ;;  %v1180_v37 = vrot.slane %v1178_v19, 4  ;;  %v3791_v53 = vunpack.c.l.b16 %v1156_v27  ;;  %v7327_v18 = vld [vmem:[%s7632_s24 + $0x70] sm:$0xf]  ;;  %v7328_v27 = vld [vmem:[%s7632_s24 + $0x74] sm:$0x1] }
  0xc7   : > { %v1183_v40 = vrot.slane %v1181_v12, 4  ;;  %v1170_v56 = vrot.slane %v1168_v47, 4  ;;  %v3798_v60 = vunpack.c.l.b16 %v1179_v34  ;;  %v1186_v62 = vrot.slane %v1184_v45, 4  ;;  %v7329_v55 = vld [vmem:[%s7632_s24 + $0x7c] sm:$0xf] }
  0xc8   : > { %3880 = vrot.lane.b32.xlu0 %v3847_v59, %s7521_s30  ;;  %v3852_v46 = vpack.c.b16 %v3795_v33, %v3794_v17  ;;  %v1182_v49 = vsel %vm8016_vm5, %v1180_v37, %v1181_v12  ;;  %v1171_v0 = vrot.slane %v7324_v57, 5  ;;  %v7325_v17 = vld [vmem:[%s7632_s24 + $0x4c] sm:$0x1]  ;;  %v3850_v5 = vpack.c.b16 %v3791_v53, %v3790_v38 }
  0xc9   : > { %v3799_v14 = vunpack.c.l.b16 %v1182_v49  ;;  %v1185_v61 = vsel %vm8016_vm5, %v1183_v40, %v1184_v45  ;;  %v1174_v47 = vrot.slane %v7325_v17, 5  ;;  %v1188_v41 = vsel %vm8016_vm5, %v1186_v62, %v1187_v22  ;;  %v8119_v45 = vpop.permute.xlu2 %3740  ;;  %v8125_v62 = vpop.permute.xlu0 %3718  ;;  %v1032_v17 = vld [vmem:[%s7632_s24 + $0x8c] sm:$0xe] }
  0xca   : > { %3888 = vrot.lane.b32.xlu1 %v3851_v24, %s7521_s30  ;;  %3890 = vrot.lane.b32.xlu2 %v3852_v46, %s7521_s30  ;;  %v3800_v59 = vunpack.c.l.b16 %v1185_v61  ;;  %v1194_v19 = vrot.slane %v7326_v52, 5  ;;  %v1197_v31 = vrot.slane %v7327_v18, 5  ;;  %v3801_v24 = vunpack.c.l.b16 %v1188_v41  ;;  %v7330_v61 = vld [vmem:[%s7632_s24 + $0x80] sm:$0xf]  ;;  %v7331_v18 = vld [vmem:[%s7632_s24 + $0x68] sm:$0xf] }
  0xcb   : > { %v1172_v12 = vsel %vm8016_vm5, %v1170_v56, %v1171_v0  ;;  %v1173_v33 = vrot.slane %v1171_v0, 4  ;;  %v1200_v34 = vrot.slane %v7328_v27, 5  ;;  %v3854_v37 = vpack.c.b16 %v3799_v14, %v3798_v60 }
  0xcc   : > { %v1196_v40 = vrot.slane %v1194_v19, 4  ;;  %v1199_v38 = vrot.slane %v1197_v31, 4  ;;  %v6253_v53 = vrot.slane %v1031_v3, 9  ;;  %v3855_v46 = vpack.c.b16 %v3801_v24, %v3800_v59 }
  0xcd   : > { %v1175_v49 = vsel %vm8016_vm5, %v1173_v33, %v1174_v47  ;;  %v1204_v22 = vrot.slane %v7329_v55, 5  ;;  %v1207_v56 = vrot.slane %v7330_v61, 5  ;;  %v3796_v57 = vunpack.c.l.b16 %v1172_v12  ;;  %v8140_v33 = vpop.permute.xlu1 %3724 }
  0xce   : > { %v3797_v60 = vunpack.c.l.b16 %v1175_v49  ;;  %v1198_v14 = vsel %vm8016_vm5, %v1196_v40, %v1197_v31  ;;  %v1201_v0 = vsel %vm8016_vm5, %v1199_v38, %v1200_v34  ;;  %v6252_v3 = vrot.slane %v1030_v43, 9  ;;  %v7333_v49 = vld [vmem:[%s7632_s24 + $0x94] sm:$0xf] }
  0xcf   : > { %v1205_v59 = vsel %vm8016_vm5, %v6253_v53, %v1204_v22  ;;  %v1206_v47 = vrot.slane %v1204_v22, 4  ;;  %v3804_v41 = vunpack.c.l.b16 %v1198_v14  ;;  %v3805_v52 = vunpack.c.l.b16 %v1201_v0  ;;  %v7332_v53 = vld [vmem:[%s7632_s24 + $0x90] sm:$0xf] }
  0xd0   : > { %3886 = vrot.lane.b32.xlu0 %v3850_v5, %s7521_s30  ;;  %v1191_v24 = vrot.slane %v7331_v18, 5  ;;  %v3806_v12 = vunpack.c.l.b16 %v1205_v59  ;;  %v6254_v5 = vrot.slane %v1032_v17, 9  ;;  %v3853_v27 = vpack.c.b16 %v3797_v60, %v3796_v57 }
  0xd1   : > { %v1208_v31 = vsel %vm8016_vm5, %v1206_v47, %v1207_v56  ;;  %v1217_v43 = vrot.slane %v7332_v53, 5  ;;  %v3857_v55 = vpack.c.b16 %v3805_v52, %v3804_v41  ;;  %v1226_v61 = vrot.slane %v7786_v28, 5  ;;  %v7334_v47 = vld [vmem:[%s7632_s24 + $0x84] sm:$0xf]  ;;  %v8153_v18 = vpop.permute.xlu2 %3746  ;;  %v8160_v52 = vpop.permute.xlu0 %3720 }
  0xd2   : > { %3894 = vrot.lane.b32.xlu1 %v3854_v37, %s7521_s30  ;;  %3896 = vrot.lane.b32.xlu2 %v3855_v46, %s7521_s30  ;;  %v3807_v34 = vunpack.c.l.b16 %v1208_v31  ;;  %v1193_v40 = vrot.slane %v1191_v24, 4  ;;  %v1192_v38 = vsel %vm8016_vm5, %v6252_v3, %v1191_v24  ;;  %v1220_v37 = vrot.slane %v7333_v49, 5  ;;  %11623 = vst [vmem:[#allocation9_spill] sm:$0xff] %v8153_v18  ;;  %v7337_v49 = vld [vmem:[%s7632_s24 + $0xac] sm:$0xf] }
  0xd3   : > { %v1223_v46 = vrot.slane %v7776_v8, 5  ;;  %v1218_v57 = vsel %vm8016_vm5, %v6254_v5, %v1217_v43  ;;  %v1219_v60 = vrot.slane %v1217_v43, 4  ;;  %v3802_v17 = vunpack.c.l.b16 %v1192_v38 }
  0xd4   : > { %v1195_v22 = vsel %vm8016_vm5, %v1193_v40, %v1194_v19  ;;  %v3858_v14 = vpack.c.b16 %v3807_v34, %v3806_v12  ;;  %v1222_v0 = vrot.slane %v1220_v37, 4  ;;  %v1210_v3 = vrot.slane %v7334_v47, 5  ;;  %v7335_v12 = vld [vmem:[%s7632_s24 + $0x88] sm:$0x1] }
  0xd5   : > { %v1225_v59 = vrot.slane %v1223_v46, 4  ;;  %v3803_v8 = vunpack.c.l.b16 %v1195_v22  ;;  %v1221_v28 = vsel %vm8016_vm5, %v1219_v60, %v1220_v37  ;;  %v1209_v41 = vrot.slane %v1207_v56, 4  ;;  %v7336_v56 = vld [vmem:[%s7632_s24 + $0xa8] sm:$0xf]  ;;  %v8173_v60 = vpop.permute.xlu1 %3732 }
  0xd6   : > { %v1224_v19 = vsel %vm8016_vm5, %v1222_v0, %v1223_v46  ;;  %v3810_v24 = vunpack.c.l.b16 %v1218_v57  ;;  %v1213_v5 = vrot.slane %v7335_v12, 5  ;;  %v3811_v34 = vunpack.c.l.b16 %v1221_v28  ;;  %v1033_v28 = vld [vmem:[%s7632_s24 + $0xa0] sm:$0xe] }
  0xd7   : > { %v1227_v31 = vsel %vm8016_vm5, %v1225_v59, %v1226_v61  ;;  %v3812_v40 = vunpack.c.l.b16 %v1224_v19  ;;  %v1212_v53 = vrot.slane %v1210_v3, 4  ;;  %v1233_v43 = vrot.slane %v7336_v56, 5  ;;  %v7338_v61 = vld [vmem:[%s7632_s24 + $0xb0] sm:$0x1] }
  0xd8   : > { %3892 = vrot.lane.b32.xlu0 %v3853_v27, %s7521_s30  ;;  %v1034_v27 = vld [vmem:[%s7632_s24 + $0xb4] sm:$0xe]  ;;  %v3813_v38 = vunpack.c.l.b16 %v1227_v31  ;;  %v1236_v37 = vrot.slane %v7337_v49, 5  ;;  %v3856_v46 = vpack.c.b16 %v3803_v8, %v3802_v17  ;;  %v1211_v22 = vsel %vm8016_vm5, %v1209_v41, %v1210_v3  ;;  %v7339_v8 = vld [vmem:[%s7632_s24 + $0xa4] sm:$0xf] }
  0xd9   : > { %v1239_v57 = vrot.slane %v7338_v61, 5  ;;  %v1235_v0 = vrot.slane %v1233_v43, 4  ;;  %v1243_v47 = vrot.slane %v7826_v23, 5  ;;  %v3860_v19 = vpack.c.b16 %v3811_v34, %v3810_v24  ;;  %v8189_v56 = vpop.permute.xlu2 %3752 }
  0xda   : > { %3900 = vrot.lane.b32.xlu1 %v3857_v55, %s7521_s30  ;;  %3902 = vrot.lane.b32.xlu2 %v3858_v14, %s7521_s30  ;;  %v6256_v55 = vrot.slane %v1034_v27, 9  ;;  %v1214_v14 = vsel %vm8016_vm5, %v1212_v53, %v1213_v5  ;;  %v1238_v59 = vrot.slane %v1236_v37, 4  ;;  %v3861_v31 = vpack.c.b16 %v3813_v38, %v3812_v40  ;;  %v1035_v27 = vld [vmem:[%s7632_s24 + $0xc8] sm:$0xe] }
  0xdb   : > { %v1246_v17 = vrot.slane %v7802_v10, 5  ;;  %v1230_v3 = vrot.slane %v7339_v8, 5  ;;  %v1237_v41 = vsel %vm8016_vm5, %v1235_v0, %v1236_v37  ;;  %v3808_v23 = vunpack.c.l.b16 %v1211_v22 }
  0xdc   : > { %v1240_v12 = vsel %vm8016_vm5, %v1238_v59, %v1239_v57  ;;  %v1244_v5 = vsel %vm8016_vm5, %v6256_v55, %v1243_v47  ;;  %v3809_v24 = vunpack.c.l.b16 %v1214_v14  ;;  %v1245_v34 = vrot.slane %v1243_v47, 4  ;;  %v7340_v57 = vld [vmem:[%s7632_s24 + $0xcc] sm:$0xf]  ;;  %v7341_v14 = vld [vmem:[%s7632_s24 + $0xd0] sm:$0xf] }
  0xdd   : > { %v6255_v10 = vrot.slane %v1033_v28, 9  ;;  %v3816_v40 = vunpack.c.l.b16 %v1237_v41  ;;  %v3817_v38 = vunpack.c.l.b16 %v1240_v12  ;;  %v1232_v53 = vrot.slane %v1230_v3, 4 }
  0xde   : > { %v1247_v49 = vsel %vm8016_vm5, %v1245_v34, %v1246_v17  ;;  %v3818_v37 = vunpack.c.l.b16 %v1244_v5  ;;  %v6257_v22 = vrot.slane %v1035_v27, 9  ;;  %v1256_v55 = vrot.slane %v7340_v57, 5 }
  0xdf   : > { %v3819_v61 = vunpack.c.l.b16 %v1247_v49  ;;  %v1259_v0 = vrot.slane %v7341_v14, 5  ;;  %v3859_v59 = vpack.c.b16 %v3809_v24, %v3808_v23  ;;  %v1231_v47 = vsel %vm8016_vm5, %v6255_v10, %v1230_v3  ;;  %v7342_v24 = vld [vmem:[%s7632_s24 + $0xc0] sm:$0xf]  ;;  %v8208_v3 = vpop.permute.xlu1 %3738 }
  0xe0   : > { %3898 = vrot.lane.b32.xlu0 %v3856_v46, %s7521_s30  ;;  %v8195_v46 = vpop.permute.xlu0 %3730  ;;  %v1262_v28 = vrot.slane %v7864_v11, 5  ;;  %v1234_v8 = vsel %vm8016_vm5, %v1232_v53, %v1233_v43  ;;  %v1258_v41 = vrot.slane %v1256_v55, 4  ;;  %v1257_v27 = vsel %vm8016_vm5, %v6257_v22, %v1256_v55  ;;  %v1037_v53 = vld [vmem:[%s7632_s24 + $0xf0] sm:$0xe] }
  0xe1   : > { %v1261_v12 = vrot.slane %v1259_v0, 4  ;;  %v3864_v5 = vpack.c.b16 %v3819_v61, %v3818_v37  ;;  %v1249_v34 = vrot.slane %v7342_v24, 5  ;;  %v3814_v43 = vunpack.c.l.b16 %v1231_v47  ;;  %v7343_v61 = vld [vmem:[%s7632_s24 + $0xc4] sm:$0x1]  ;;  %v8223_v47 = vpop.permute.xlu2 %3758 }
  0xe2   : > { %3906 = vrot.lane.b32.xlu1 %v3860_v19, %s7521_s30  ;;  %3908 = vrot.lane.b32.xlu2 %v3861_v31, %s7521_s30  ;;  %v1265_v19 = vrot.slane %v7877_v54, 5  ;;  %v3863_v31 = vpack.c.b16 %v3817_v38, %v3816_v40  ;;  %v1264_v23 = vrot.slane %v1262_v28, 4  ;;  %v1260_v11 = vsel %vm8016_vm5, %v1258_v41, %v1259_v0  ;;  %11624 = vst [vmem:[#allocation10_spill] sm:$0xff] %v8223_v47 }
  0xe3   : > { %v1263_v54 = vsel %vm8016_vm5, %v1261_v12, %v1262_v28  ;;  %v3815_v10 = vunpack.c.l.b16 %v1234_v8  ;;  %v1248_v38 = vrot.slane %v1246_v17, 4  ;;  %v3822_v49 = vunpack.c.l.b16 %v1257_v27  ;;  %v1036_v27 = vld [vmem:[%s7632_s24 + $0xdc] sm:$0xe] }
  0xe4   : > { %v1266_v40 = vsel %vm8016_vm5, %v1264_v23, %v1265_v19  ;;  %v3823_v37 = vunpack.c.l.b16 %v1260_v11  ;;  %v1251_v22 = vrot.slane %v1249_v34, 4  ;;  %v1252_v57 = vrot.slane %v7343_v61, 5 }
  0xe5   : > { %v3824_v55 = vunpack.c.l.b16 %v1263_v54  ;;  %v3825_v14 = vunpack.c.l.b16 %v1266_v40  ;;  %v1272_v0 = vrot.slane %v7830_v32, 5  ;;  %v1278_v17 = vrot.slane %v7845_v50, 5 }
  0xe6   : > { %v6259_v28 = vrot.slane %v1037_v53, 9  ;;  %v3862_v19 = vpack.c.b16 %v3815_v10, %v3814_v43  ;;  %v1282_v12 = vrot.slane %v7927_v36, 5  ;;  %v1253_v32 = vsel %vm8016_vm5, %v1251_v22, %v1252_v57  ;;  %v1038_v36 = vld [vmem:[%s7632_s24 + $0x104] sm:$0xe] }
  0xe7   : > { %v1274_v41 = vrot.slane %v1272_v0, 4  ;;  %v1269_v50 = vrot.slane %v7861_v9, 5  ;;  %v3866_v23 = vpack.c.b16 %v3823_v37, %v3822_v49  ;;  %v3867_v24 = vpack.c.b16 %v3825_v14, %v3824_v55  ;;  %v8244_v9 = vpop.permute.xlu1 %3744 }
  0xe8   : > { %3904 = vrot.lane.b32.xlu0 %v3859_v59, %s7521_s30  ;;  %v1275_v59 = vrot.slane %v7839_v42, 5  ;;  %v8226_v8 = vpop.permute.xlu0 %3736  ;;  %v1285_v42 = vrot.slane %v7895_v1, 5  ;;  %v1284_v43 = vrot.slane %v1282_v12, 4  ;;  %v3821_v1 = vunpack.c.l.b16 %v1253_v32 }
  0xe9   : > { %v1271_v37 = vrot.slane %v1269_v50, 4  ;;  %v6260_v22 = vrot.slane %v1038_v36, 9  ;;  %v1295_v55 = vrot.slane %v7887_v48, 5  ;;  %v1298_v14 = vrot.slane %v7892_v63, 5 }
  0xea   : > { %3912 = vrot.lane.b32.xlu1 %v3863_v31, %s7521_s30  ;;  %3914 = vrot.lane.b32.xlu2 %v3864_v5, %s7521_s30  ;;  %v1277_v31 = vrot.slane %v1275_v59, 4  ;;  %v1250_v5 = vsel %vm8016_vm5, %v1248_v38, %v1249_v34  ;;  %v1276_v11 = vsel %vm8016_vm5, %v1274_v41, %v1275_v59  ;;  %v1283_v34 = vsel %vm8016_vm5, %v6259_v28, %v1282_v12 }
  0xeb   : > { %v3820_v10 = vunpack.c.l.b16 %v1250_v5  ;;  %v3828_v40 = vunpack.c.l.b16 %v1276_v11  ;;  %v6258_v38 = vrot.slane %v1036_v27, 9  ;;  %v1286_v49 = vsel %vm8016_vm5, %v1284_v43, %v1285_v42  ;;  %v8258_v5 = vpop.permute.xlu2 %3764 }
  0xec   : > { %v1279_v54 = vsel %vm8016_vm5, %v1277_v31, %v1278_v17  ;;  %v3830_v61 = vunpack.c.l.b16 %v1283_v34  ;;  %v3831_v57 = vunpack.c.l.b16 %v1286_v49  ;;  %v1301_v59 = vrot.slane %v7966_v39, 5  ;;  %11625 = vst [vmem:[#allocation11_spill] sm:$0xff] %v8258_v5  ;;  %v6931_v5 = vld [vmem:[%s7632_s24 + $0x6c] sm:$0xff] }
  0xed   : > { %v3829_v53 = vunpack.c.l.b16 %v1279_v54  ;;  %v1304_v17 = vrot.slane %v7979_v2, 5  ;;  %v3865_v28 = vpack.c.b16 %v3821_v1, %v3820_v10  ;;  %v1297_v41 = vrot.slane %v1295_v55, 4 }
  0xee   : > { %v1300_v31 = vrot.slane %v1298_v14, 4  ;;  %v1273_v12 = vsel %vm8016_vm5, %v1271_v37, %v1272_v0  ;;  %v1296_v48 = vsel %vm8016_vm5, %v6260_v22, %v1295_v55  ;;  %v1303_v63 = vrot.slane %v1301_v59, 4 }
  0xef   : > { %v1288_v39 = vrot.slane %v7907_v20, 5  ;;  %v3869_v32 = vpack.c.b16 %v3829_v53, %v3828_v40  ;;  %v3870_v2 = vpack.c.b16 %v3831_v57, %v3830_v61  ;;  %v3827_v11 = vunpack.c.l.b16 %v1273_v12  ;;  %v1040_v20 = vld [vmem:[%s7632_s24 + $0x12c] sm:$0xe]  ;;  %v8278_v49 = vpop.permute.xlu1 %3750 }
  0xf0   : > { %3910 = vrot.lane.b32.xlu0 %v3862_v19, %s7521_s30  ;;  %v1270_v19 = vsel %vm8016_vm5, %v6258_v38, %v1269_v50  ;;  %v8263_v27 = vpop.permute.xlu0 %3742  ;;  %v1299_v50 = vsel %vm8016_vm5, %v1297_v41, %v1298_v14  ;;  %v1305_v0 = vsel %vm8016_vm5, %v1303_v63, %v1304_v17  ;;  %v3834_v54 = vunpack.c.l.b16 %v1296_v48 }
  0xf1   : > { %v1287_v36 = vrot.slane %v1285_v42, 4  ;;  %v1290_v34 = vrot.slane %v1288_v39, 4  ;;  %v1291_v43 = vrot.slane %v7913_v26, 5  ;;  %v1311_v10 = vrot.slane %v7932_v44, 5 }
  0xf2   : > { %3918 = vrot.lane.b32.xlu1 %v3866_v23, %s7521_s30  ;;  %3920 = vrot.lane.b32.xlu2 %v3867_v24, %s7521_s30  ;;  %v1302_v23 = vsel %vm8016_vm5, %v1300_v31, %v1301_v59  ;;  %v3826_v24 = vunpack.c.l.b16 %v1270_v19  ;;  %v1314_v1 = vrot.slane %v7941_v13, 5  ;;  %v3835_v40 = vunpack.c.l.b16 %v1299_v50 }
  0xf3   : > { %v3836_v38 = vunpack.c.l.b16 %v1302_v23  ;;  %v3837_v53 = vunpack.c.l.b16 %v1305_v0  ;;  %v1317_v42 = vrot.slane %v7947_v7, 5  ;;  %v1313_v37 = vrot.slane %v1311_v10, 4  ;;  %v1039_v7 = vld [vmem:[%s7632_s24 + $0x118] sm:$0xe] }
  0xf4   : > { %v1316_v22 = vrot.slane %v1314_v1, 4  ;;  %v6262_v61 = vrot.slane %v1040_v20, 9  ;;  %v1321_v26 = vrot.slane %v8021_v15, 5  ;;  %v3868_v44 = vpack.c.b16 %v3827_v11, %v3826_v24 }
  0xf5   : > { %v1324_v13 = vrot.slane %v7982_v6, 5  ;;  %v1289_v57 = vsel %vm8016_vm5, %v1287_v36, %v1288_v39  ;;  %v1292_v55 = vsel %vm8016_vm5, %v1290_v34, %v1291_v43  ;;  %v1308_v14 = vrot.slane %v7963_v51, 5 }
  0xf6   : > { %v3872_v59 = vpack.c.b16 %v3835_v40, %v3834_v54  ;;  %v3873_v17 = vpack.c.b16 %v3837_v53, %v3836_v38  ;;  %v1315_v15 = vsel %vm8016_vm5, %v1313_v37, %v1314_v1  ;;  %v1318_v6 = vsel %vm8016_vm5, %v1316_v22, %v1317_v42 }
  0xf7   : > { %v1322_v41 = vsel %vm8016_vm5, %v6262_v61, %v1321_v26  ;;  %v3832_v31 = vunpack.c.l.b16 %v1289_v57  ;;  %v3833_v12 = vunpack.c.l.b16 %v1292_v55  ;;  %v6261_v63 = vrot.slane %v1039_v7, 9  ;;  %v6952_v61 = vld [vmem:[%s7632_s24 + $0x14] sm:$0xff] }
  0xf8   : > { %3916 = vrot.lane.b32.xlu0 %v3865_v28, %s7521_s30  ;;  %v1323_v28 = vrot.slane %v1321_v26, 4  ;;  %v8298_v51 = vpop.permute.xlu0 %3748  ;;  %v1310_v39 = vrot.slane %v1308_v14, 4  ;;  %v3842_v50 = vunpack.c.l.b16 %v1322_v41  ;;  %v1327_v36 = vrot.slane %v7991_v30, 5  ;;  %v6953_v26 = vld [vmem:[%s7632_s24 + $0x1c] sm:$0xff]  ;;  %v6958_v41 = vld [vmem:[%s7632_s24 + $0x50] sm:$0xff] }
  0xf9   : > { %v8289_v19 = vpop.permute.xlu2 %3770  ;;  %11627 = vst [vmem:[#allocation13_spill] sm:$0xff] %v8298_v51  ;;  %v3871_v0 = vpack.c.b16 %v3833_v12, %v3832_v31  ;;  %v8304_v24 = vpop.permute.xlu1 %3756  ;;  %v1309_v11 = vsel %vm8016_vm5, %v6261_v63, %v1308_v14  ;;  %v1326_v38 = vrot.slane %v1324_v13, 4  ;;  %v1330_v42 = vrot.slane %v7998_v29, 5  ;;  %v6959_v31 = vld [vmem:[%s7632_s24 + $0x58] sm:$0xff] }
  0xfa   : > { %3924 = vrot.lane.b32.xlu1 %v3869_v32, %s7521_s30  ;;  %3926 = vrot.lane.b32.xlu2 %v3870_v2, %s7521_s30  ;;  %11626 = vst [vmem:[#allocation12_spill] sm:$0xff] %v8289_v19  ;;  %v1325_v48 = vsel %vm8016_vm5, %v1323_v28, %v1324_v13  ;;  %v3840_v32 = vunpack.c.l.b16 %v1315_v15  ;;  %v3841_v2 = vunpack.c.l.b16 %v1318_v6  ;;  %v1312_v54 = vsel %vm8016_vm5, %v1310_v39, %v1311_v10  ;;  %v6954_v15 = vld [vmem:[%s7632_s24 + $0x28] sm:$0xff] }
  0xfb   : > { %v3843_v23 = vunpack.c.l.b16 %v1325_v48  ;;  %v3838_v43 = vunpack.c.l.b16 %v1309_v11  ;;  %v3839_v1 = vunpack.c.l.b16 %v1312_v54  ;;  %v1329_v53 = vrot.slane %v1327_v36, 4  ;;  %v6957_v48 = vld [vmem:[%s7632_s24 + $0x44] sm:$0xff]  ;;  %v6961_v39 = vld [vmem:[%s7632_s24 + $0x6c] sm:$0xff]  ;;  %v6965_v54 = vld [vmem:[%s7632_s24 + $0x94] sm:$0xff] }
  0xfc   : > { %v3875_v20 = vpack.c.b16 %v3841_v2, %v3840_v32  ;;  %v1328_v37 = vsel %vm8016_vm5, %v1326_v38, %v1327_v36  ;;  %v6962_v32 = vld [vmem:[%s7632_s24 + $0x78] sm:$0xff]  ;;  %v6964_v11 = vld [vmem:[%s7632_s24 + $0x8c] sm:$0xff] }
  0xfd   : > { %v3876_v34 = vpack.c.b16 %v3843_v23, %v3842_v50  ;;  %v3874_v30 = vpack.c.b16 %v3839_v1, %v3838_v43  ;;  %v1331_v22 = vsel %vm8016_vm5, %v1329_v53, %v1330_v42  ;;  %v3844_v29 = vunpack.c.l.b16 %v1328_v37  ;;  %v6960_v50 = vld [vmem:[%s7632_s24 + $0x64] sm:$0xff]  ;;  %v6968_v38 = vld [vmem:[%s7632_s24 + $0xb4] sm:$0xff] }
  0xfe   : > { %v3845_v13 = vunpack.c.l.b16 %v1331_v22  ;;  %v6967_v1 = vld [vmem:[%s7632_s24 + $0xa8] sm:$0xff]  ;;  %v6966_v42 = vld [vmem:[%s7632_s24 + $0xa0] sm:$0xff] }
  0xff   : > { %v6970_v22 = vld [vmem:[%s7632_s24 + $0xc8] sm:$0xff] }
 0x100   : > { %3922 = vrot.lane.b32.xlu0 %v3868_v44, %s7521_s30  ;;  %v8317_v10 = vpop.permute.xlu0 %3754  ;;  %v3877_v55 = vpack.c.b16 %v3845_v13, %v3844_v29  ;;  %v6265_v29 = vld [vmem:[%s7632_s24 + $0x1c] sm:$0xf]  ;;  %v6266_v13 = vld [vmem:[%s7632_s24 + $0x20] sm:$0xf] }
 0x102   : > { %3930 = vrot.lane.b32.xlu1 %v3872_v59, %s7521_s30  ;;  %3932 = vrot.lane.b32.xlu2 %v3873_v17, %s7521_s30  ;;  %v6955_v59 = vld [vmem:[%s7632_s24 + $0x30] sm:$0xff]  ;;  %v6956_v17 = vld [vmem:[%s7632_s24 + $0x3c] sm:$0xff] }
 0x105   : > { %v8312_v40 = vpop.permute.xlu2 %3776 }
 0x106   : > { %11628 = vst [vmem:[#allocation14_spill] sm:$0xff] %v8312_v40 }
 0x107   : > { %v8325_v44 = vpop.permute.xlu1 %3762 }
 0x108   : > { %3928 = vrot.lane.b32.xlu0 %v3871_v0, %s7521_s30  ;;  %11629 = vst [vmem:[#allocation15_spill] sm:$0xff] %v8325_v44 }
 0x10a   : > { %3936 = vrot.lane.b32.xlu1 %v3875_v20, %s7521_s30  ;;  %3938 = vrot.lane.b32.xlu2 %v3876_v34, %s7521_s30  ;;  %v8332_v14 = vpop.permute.xlu0 %3760  ;;  %v6963_v20 = vld [vmem:[%s7632_s24 + $0x80] sm:$0xff] }
 0x10b   : > { %11630 = vst [vmem:[#allocation16_spill] sm:$0xff] %v8332_v14  ;;  %v6271_v14 = vld [vmem:[%s7632_s24 + $0x3c] sm:$0xf] }
 0x110   : > { %3934 = vrot.lane.b32.xlu0 %v3874_v30, %s7521_s30 }
 0x112   : > { %4054 = vrot.lane.b32.xlu1 %v6952_v61, %s7522_s5  ;;  %4056 = vrot.lane.b32.xlu2 %v6953_v26, %s7522_s5  ;;  %v6971_v61 = vld [vmem:[%s7632_s24 + $0xd0] sm:$0xff] }
 0x113   : > { %v8330_v57 = vpop.permute.xlu2 %3878 }
 0x114   : > { %v8337_v28 = vpop.permute.xlu1 %3768 }
 0x118   : > { %3940 = vrot.lane.b32.xlu0 %v3877_v55, %s7521_s30  ;;  %v8344_v6 = vpop.permute.xlu0 %3766  ;;  %v1433_v55 = vshll.u32 %v6265_v29, 16  ;;  %s10633_s30 = scalar_lea.vmem [#allocation2], %s6244_s23 }
 0x119   : > { %s6100_s23 = sshll.u32 %s10633_s30, 4  ;;  %s6101_s23 = int_to_ptr.vmem [resolvable:$true] %s6100_s23 }
 0x11a   : > { %4060 = vrot.lane.b32.xlu1 %v6955_v59, %s7522_s5  ;;  %4062 = vrot.lane.b32.xlu2 %v6956_v17, %s7522_s5  ;;  %v1437_v59 = vshrl.u32 %v6265_v29, 16  ;;  %v1443_v17 = vshll.u32 %v6266_v13, 16 }
 0x11b   : > { %v8341_v7 = vpop.permute.xlu2 %3884 }
 0x120   : > { %4058 = vrot.lane.b32.xlu0 %v6954_v15, %s7522_s5  ;;  %v6969_v15 = vld [vmem:[%s7632_s24 + $0xbc] sm:$0xff] }
 0x122   : > { %4066 = vrot.lane.b32.xlu1 %v6958_v41, %s7522_s5  ;;  %4068 = vrot.lane.b32.xlu2 %v6959_v31, %s7522_s5  ;;  %v8351_v12 = vpop.permute.xlu1 %3774 }
 0x123   : > { %11631 = vst [vmem:[#allocation17_spill] sm:$0xff] %v8351_v12  ;;  %v6922_v12 = vld [vmem:[%s7632_s24 + $0x14] sm:$0xff] }
 0x124   : > { %v8354_v63 = vpop.permute.xlu2 %3890  ;;  %v8460_v19 = vsel %vm4934_vm6, %v6922_v12, %v8102_v58 }
 0x125   : > { %v8359_v2 = vpop.permute.xlu0 %3772 }
 0x126   : > { %11632 = vst [vmem:[#allocation18_spill] sm:$0xff] %v8359_v2 }
 0x128   : > { %4064 = vrot.lane.b32.xlu0 %v6957_v48, %s7522_s5  ;;  %v1447_v48 = vshrl.u32 %v6266_v13, 16  ;;  %v6928_v13 = vld [vmem:[%s7632_s24 + $0x50] sm:$0xff] }
 0x12a   : > { %4072 = vrot.lane.b32.xlu1 %v6961_v39, %s7522_s5  ;;  %4074 = vrot.lane.b32.xlu2 %v6962_v32, %s7522_s5  ;;  %v6267_v39 = vld [vmem:[%s7632_s24 + $0x28] sm:$0xf] }
 0x12b   : > { %v6973_v32 = vld [vmem:[%s7632_s24 + $0xe4] sm:$0xff]  ;;  %v1461_v29 = vshll.u32 %v6267_v39, 16 }
 0x12c   : > { %v8364_v23 = vpop.permute.xlu1 %3780  ;;  %v8366_v0 = vpop.permute.xlu2 %3896 }
 0x12d   : > { %11633 = vst [vmem:[#allocation19_spill] sm:$0xff] %v8364_v23  ;;  %v6925_v23 = vld [vmem:[%s7632_s24 + $0x30] sm:$0xff]  ;;  %v1463_v44 = vrot.slane %v1461_v29, 5 }
 0x130   : > { %4070 = vrot.lane.b32.xlu0 %v6960_v50, %s7522_s5  ;;  %v6974_v50 = vld [vmem:[%s7632_s24 + $0xf0] sm:$0xff] }
 0x132   : > { %v8371_v36 = vpop.permute.xlu0 %3778  ;;  %4078 = vrot.lane.b32.xlu1 %v6964_v11, %s7522_s5  ;;  %4080 = vrot.lane.b32.xlu2 %v6965_v54, %s7522_s5  ;;  %v8409_v11 = vrot.slane %v1433_v55, 5  ;;  %v1439_v54 = vrot.slane %v1437_v59, 4  ;;  %v6263_v59 = vld [vmem:[%s7632_s24 + $0x14] sm:$0xf] }
 0x133   : > { %11634 = vst [vmem:[#allocation20_spill] sm:$0xff] %v8371_v36  ;;  %v1417_v51 = vshll.u32 %v6263_v59, 16 }
 0x134   : > { %v8376_v34 = vpop.permute.xlu1 %3882  ;;  %v8378_v43 = vpop.permute.xlu2 %3902  ;;  %v1440_v55 = vor.u32 %v1439_v54, %v8409_v11 }
 0x135   : > { %v1419_v16 = vrot.slane %v1417_v51, 5 }
 0x138   : > { %4076 = vrot.lane.b32.xlu0 %v6963_v20, %s7522_s5  ;;  %v6327_v20 = vld [vmem:[%s7632_s24 + $0x24] sm:$0x1] }
 0x139   : > { %v1453_v36 = vshll.u32 %v6327_v20, 16  ;;  %v6920_v20 = vld [vmem:[%s7632_s24] sm:$0xff] }
 0x13a   : > { %v8383_v53 = vpop.permute.xlu0 %3880  ;;  %4084 = vrot.lane.b32.xlu1 %v6967_v1, %s7522_s5  ;;  %4086 = vrot.lane.b32.xlu2 %v6968_v38, %s7522_s5  ;;  %v8412_v1 = vrot.slane %v1443_v17, 5  ;;  %v1449_v38 = vrot.slane %v1447_v48, 4 }
 0x13c   : > { %v8388_v30 = vpop.permute.xlu1 %3888  ;;  %v8390_v37 = vpop.permute.xlu2 %3908  ;;  %v1450_v17 = vor.u32 %v1449_v38, %v8412_v1  ;;  %v6264_v38 = vld [vmem:[%s7632_s24 + $0x18] sm:$0xf] }
 0x13d   : > { %11635 = vst [vmem:[#allocation21_spill] sm:$0xff] %v8390_v37  ;;  %v1414_v37 = vshrl.u32 %v6263_v59, 16  ;;  %v6976_v59 = vld [vmem:[%s7632_s24 + $0x104] sm:$0xff] }
 0x13e   : > { %v1451_v2 = vrot.slane %v1450_v17, 4 }
 0x13f   : > { %v1416_v47 = vrot.slane %v1414_v37, 4  ;;  %v6937_v37 = vld [vmem:[%s7632_s24 + $0xa8] sm:$0xff] }
 0x140   : > { %4082 = vrot.lane.b32.xlu0 %v6966_v42, %s7522_s5  ;;  %v6268_v42 = vld [vmem:[%s7632_s24 + $0x2c] sm:$0xf] }
 0x141   : > { %v1467_v48 = vshll.u32 %v6268_v42, 16  ;;  %v1471_v40 = vshrl.u32 %v6268_v42, 16  ;;  %v8436_v42 = vsel %vm4934_vm6, %v6925_v23, %v8051_v35  ;;  %v1455_v35 = vrot.slane %v1453_v36, 5  ;;  %v8450_v23 = vld [vmem:[%s7632_s24 + $0x30] sm:$0xf] }
 0x142   : > { %v8395_v26 = vpop.permute.xlu0 %3886  ;;  %4090 = vrot.lane.b32.xlu1 %v6970_v22, %s7522_s5  ;;  %4092 = vrot.lane.b32.xlu2 %v6971_v61, %s7522_s5  ;;  %v6924_v22 = vld [vmem:[%s7632_s24 + $0x28] sm:$0xff]  ;;  %v1458_v61 = vshrl.u32 %v6267_v39, 16  ;;  %v1423_v36 = vshll.u32 %v6264_v38, 16 }
 0x143   : > { %v8430_v54 = vsel %vm4934_vm6, %v6924_v22, %v8023_v21  ;;  %v1441_v22 = vrot.slane %v1440_v55, 4  ;;  %v8452_v18 = vrot.slane %v1467_v48, 5  ;;  %v6921_v55 = vld [vmem:[%s7632_s24 + $0x8] sm:$0xff]  ;;  %v1427_v48 = vshrl.u32 %v6264_v38, 16 }
 0x144   : > { %v8402_v41 = vpop.permute.xlu1 %3894  ;;  %v8404_v31 = vpop.permute.xlu2 %3914  ;;  %v8476_v12 = vrot.slane %v1423_v36, 5 }
 0x145   : > { %11636 = vst [vmem:[#allocation22_spill] sm:$0xff] %v8402_v41  ;;  %v1446_v51 = vsel %vm7643_vm2, %v1441_v22, %v8412_v1  ;;  %v8492_v1 = vsel %vm4934_vm6, %v6921_v55, %v8160_v52  ;;  %v1420_v22 = vor.u32 %v1419_v16, %v1416_v47  ;;  %v6274_v52 = vld [vmem:[%s7632_s24 + $0x48] sm:$0xf]  ;;  %v8505_v55 = vsel %vm4934_vm6, %v6937_v37, %v8189_v56 }
 0x146   : > { %11637 = vst [vmem:[#allocation23_spill] sm:$0xff] %v8404_v31  ;;  %v6927_v16 = vld [vmem:[%s7632_s24 + $0x44] sm:$0xff]  ;;  %v8508_v47 = vunpack.c.l.b16 %v1446_v51  ;;  %v1531_v37 = vshll.u32 %v6274_v52, 16 }
 0x147   : > { %11646 = vst [vmem:[#allocation32_spill] sm:$0xff] %v8505_v55  ;;  %v1421_v31 = vrot.slane %v1420_v22, 4  ;;  %v1535_v55 = vshrl.u32 %v6274_v52, 16  ;;  %v6270_v22 = vld [vmem:[%s7632_s24 + $0x34] sm:$0xf] }
 0x148   : > { %4088 = vrot.lane.b32.xlu0 %v6969_v15, %s7522_s5  ;;  %v1460_v15 = vrot.slane %v1458_v61, 4  ;;  %v6972_v61 = vld [vmem:[%s7632_s24 + $0xdc] sm:$0xff] }
 0x14a   : > { %v8424_v39 = vpop.permute.xlu0 %3892  ;;  %4096 = vrot.lane.b32.xlu1 %v6973_v32, %s7522_s5  ;;  %4098 = vrot.lane.b32.xlu2 %v6974_v50, %s7522_s5  ;;  %v8440_v32 = vsel %vm4934_vm6, %v6928_v13, %v8085_v4  ;;  %v6923_v50 = vld [vmem:[%s7632_s24 + $0x1c] sm:$0xff]  ;;  %v1473_v4 = vrot.slane %v1471_v40, 4  ;;  %v8456_v13 = vsel %vm4934_vm6, %v6931_v5, %v8119_v45  ;;  %v1464_v17 = vor.u32 %v1463_v44, %v1460_v15  ;;  %v6273_v44 = vld [vmem:[%s7632_s24 + $0x44] sm:$0xf] }
 0x14b   : > { %11638 = vst [vmem:[#allocation24_spill] sm:$0xff] %v8424_v39  ;;  %v1502_v40 = vshrl.u32 %v6271_v14, 16  ;;  %v8468_v45 = vsel %vm4934_vm6, %v6920_v20, %v8125_v62  ;;  %v8472_v58 = vsel %vm4934_vm6, %v6923_v50, %v8140_v33  ;;  %v1477_v5 = vshll.u32 %v8450_v23, 16 }
 0x14c   : > { %11639 = vst [vmem:[#allocation25_spill] sm:$0xff] %v8440_v32  ;;  %v8444_v29 = vpop.permute.xlu1 %3900  ;;  %v8446_v21 = vpop.permute.xlu2 %3920  ;;  %v1456_v62 = vsel %vm7643_vm2, %v1451_v2, %v1455_v35  ;;  %v1474_v15 = vor.u32 %v1473_v4, %v8452_v18  ;;  %v1429_v33 = vrot.slane %v1427_v48, 4  ;;  %v1505_v50 = vshll.u32 %v6271_v14, 16  ;;  %v6975_v4 = vld [vmem:[%s7632_s24 + $0xf8] sm:$0xff] }
 0x14d   : > { %11640 = vst [vmem:[#allocation26_spill] sm:$0xff] %v8444_v29  ;;  %v6272_v29 = vld [vmem:[%s7632_s24 + $0x40] sm:$0xf]  ;;  %v1504_v38 = vrot.slane %v1502_v40, 4  ;;  %v1465_v2 = vrot.slane %v1464_v17, 4  ;;  %v1521_v35 = vshll.u32 %v6273_v44, 16  ;;  %v8510_v17 = vunpack.c.l.b16 %v1456_v62 }
 0x14e   : > { %11641 = vst [vmem:[#allocation27_spill] sm:$0xff] %v8446_v21  ;;  %v6977_v21 = vld [vmem:[%s7632_s24 + $0x10c] sm:$0xff]  ;;  %v1515_v36 = vshrl.u32 %v6272_v29, 16  ;;  %v1430_v14 = vor.u32 %v1429_v33, %v8476_v12  ;;  %v1507_v48 = vrot.slane %v1505_v50, 5  ;;  %v1475_v50 = vrot.slane %v1474_v15, 4 }
 0x14f   : > { %11642 = vst [vmem:[#allocation28_spill] sm:$0xff] %v8456_v13  ;;  %v6979_v13 = vld [vmem:[%s7632_s24 + $0x120] sm:$0xff]  ;;  %v6980_v33 = vld [vmem:[%s7632_s24 + $0x12c] sm:$0xff]  ;;  %v1525_v39 = vshrl.u32 %v6273_v44, 16  ;;  %v1523_v56 = vrot.slane %v1521_v35, 5  ;;  %v1537_v44 = vrot.slane %v1535_v55, 4  ;;  %v8528_v35 = vsel %vm4934_vm6, %v6927_v16, %v8173_v60 }
 0x150   : > { %4094 = vrot.lane.b32.xlu0 %v6972_v61, %s7522_s5  ;;  %v1511_v61 = vshll.u32 %v6272_v29, 16  ;;  %v1517_v40 = vrot.slane %v1515_v36, 4  ;;  %v1431_v51 = vrot.slane %v1430_v14, 4  ;;  %v6978_v14 = vld [vmem:[%s7632_s24 + $0x118] sm:$0xff]  ;;  %v1487_v55 = vshll.u32 %v6270_v22, 16 }
 0x151   : > { %v1527_v62 = vrot.slane %v1525_v39, 4  ;;  %v1491_v16 = vshrl.u32 %v6270_v22, 16 }
 0x152   : > { %v8486_v20 = vpop.permute.xlu0 %3898  ;;  %4102 = vrot.lane.b32.xlu1 %v6976_v59, %s7522_s5  ;;  %4104 = vrot.lane.b32.xlu2 %v6977_v21, %s7522_s5  ;;  %v8500_v29 = vrot.slane %v1511_v61, 5  ;;  %v1508_v61 = vor.u32 %v1507_v48, %v1504_v38  ;;  %v8523_v38 = vrot.slane %v1531_v37, 5  ;;  %v6983_v37 = vld [vmem:[%s7632_s24 + $0x148] sm:$0xff] }
 0x153   : > { %11643 = vst [vmem:[#allocation29_spill] sm:$0xff] %v8486_v20  ;;  %v8512_v20 = vrot.slane %v1477_v5, 5  ;;  %v1470_v5 = vsel %vm7643_vm2, %v1465_v2, %v8452_v18  ;;  %v1481_v2 = vshrl.u32 %v8450_v23, 16  ;;  %v1493_v22 = vrot.slane %v1491_v16, 4 }
 0x154   : > { %v8495_v59 = vpop.permute.xlu1 %3906  ;;  %v8497_v21 = vpop.permute.xlu2 %3926  ;;  %v1518_v36 = vor.u32 %v1517_v40, %v8500_v29  ;;  %v1509_v41 = vrot.slane %v1508_v61, 4  ;;  %v1538_v23 = vor.u32 %v1537_v44, %v8523_v38  ;;  %v8567_v44 = vrot.slane %v1487_v55, 5 }
 0x155   : > { %11644 = vst [vmem:[#allocation30_spill] sm:$0xff] %v8495_v59  ;;  %v6329_v59 = vld [vmem:[%s7632_s24 + $0x4c] sm:$0x1]  ;;  %v1480_v60 = vsel %vm7643_vm2, %v1475_v50, %v8512_v20  ;;  %v1483_v52 = vrot.slane %v1481_v2, 4  ;;  %v1436_v50 = vsel %vm7643_vm2, %v1431_v51, %v8409_v11  ;;  %v6278_v11 = vld [vmem:[%s7632_s24 + $0x5c] sm:$0xf] }
 0x156   : > { %11645 = vst [vmem:[#allocation31_spill] sm:$0xff] %v8497_v21  ;;  %v6926_v21 = vld [vmem:[%s7632_s24 + $0x3c] sm:$0xff]  ;;  %v1541_v32 = vshll.u32 %v6329_v59, 16  ;;  %v1519_v15 = vrot.slane %v1518_v36, 4  ;;  %v8544_v59 = vunpack.c.l.b16 %v1470_v5  ;;  %v1579_v55 = vshrl.u32 %v6278_v11, 16 }
 0x157   : > { %v6982_v36 = vld [vmem:[%s7632_s24 + $0x140] sm:$0xff]  ;;  %v1484_v2 = vor.u32 %v1483_v52, %v8512_v20 }
 0x158   : > { %4100 = vrot.lane.b32.xlu0 %v6975_v4, %s7522_s5  ;;  %v8532_v4 = vsel %vm4934_vm6, %v6926_v21, %v8195_v46  ;;  %v1426_v46 = vsel %vm7643_vm2, %v1421_v31, %v8476_v12  ;;  %v6328_v21 = vld [vmem:[%s7632_s24 + $0x38] sm:$0x1]  ;;  %v1514_v31 = vsel %vm7643_vm2, %v1509_v41, %v8500_v29  ;;  %v1524_v12 = vsel %vm7643_vm2, %v1519_v15, %v1523_v56  ;;  %v6330_v20 = vld [vmem:[%s7632_s24 + $0x60] sm:$0x1] }
 0x159   : > { %v1543_v61 = vrot.slane %v1541_v32, 5  ;;  %v1497_v39 = vshll.u32 %v6328_v21, 16  ;;  %v4123_v41 = vunpack.c.l.b16 %v1480_v60  ;;  %v8572_v29 = vunpack.c.l.b16 %v1426_v46 }
 0x15a   : > { %v8534_v18 = vpop.permute.xlu0 %3904  ;;  %4108 = vrot.lane.b32.xlu1 %v6979_v13, %s7522_s5  ;;  %4110 = vrot.lane.b32.xlu2 %v6980_v33, %s7522_s5  ;;  %v1528_v13 = vor.u32 %v1527_v62, %v1523_v56  ;;  %v6277_v33 = vld [vmem:[%s7632_s24 + $0x58] sm:$0xf]  ;;  %v1539_v62 = vrot.slane %v1538_v23, 4  ;;  %v8574_v32 = vunpack.c.l.b16 %v1436_v50  ;;  %v1494_v56 = vor.u32 %v1493_v22, %v8567_v44 }
 0x15b   : > { %v1565_v51 = vshll.u32 %v6277_v33, 16  ;;  %v8577_v15 = vunpack.c.l.b16 %v1514_v31  ;;  %v1485_v16 = vrot.slane %v1484_v2, 4  ;;  %v1499_v50 = vrot.slane %v1497_v39, 5  ;;  %v6279_v31 = vld [vmem:[%s7632_s24 + $0x64] sm:$0xf] }
 0x15c   : > { %v8551_v48 = vpop.permute.xlu1 %3912  ;;  %v8553_v40 = vpop.permute.xlu2 %3932  ;;  %v1529_v5 = vrot.slane %v1528_v13, 4  ;;  %v8579_v13 = vunpack.c.l.b16 %v1524_v12  ;;  %v1544_v46 = vsel %vm7643_vm2, %v1539_v62, %v1543_v61  ;;  %v6981_v12 = vld [vmem:[%s7632_s24 + $0x134] sm:$0xff]  ;;  %v1581_v22 = vrot.slane %v1579_v55, 4  ;;  %v6280_v62 = vld [vmem:[%s7632_s24 + $0x68] sm:$0xf] }
 0x15d   : > { %11647 = vst [vmem:[#allocation33_spill] sm:$0xff] %v8553_v40  ;;  %v1569_v40 = vshrl.u32 %v6277_v33, 16  ;;  %v8582_v21 = vrot.slane %v1565_v51, 5  ;;  %v1495_v33 = vrot.slane %v1494_v56, 4  ;;  %v1585_v61 = vshll.u32 %v6330_v20, 16 }
 0x15e   : > { %v1534_v60 = vsel %vm7643_vm2, %v1529_v5, %v8523_v38  ;;  %v4184_v38 = vpack.c.b16 %v4123_v41, %v8544_v59  ;;  %v4182_v39 = vpack.c.b16 %v8574_v32, %v8572_v29  ;;  %v8608_v56 = vunpack.c.l.b16 %v1544_v46  ;;  %v6275_v41 = vld [vmem:[%s7632_s24 + $0x50] sm:$0xf] }
 0x15f   : > { %v1571_v23 = vrot.slane %v1569_v40, 4  ;;  %v1590_v59 = vshrl.u32 %v6279_v31, 16  ;;  %v1490_v20 = vsel %vm7643_vm2, %v1485_v16, %v8567_v44  ;;  %v1500_v29 = vsel %vm7643_vm2, %v1495_v33, %v1499_v50 }
 0x160   : > { %4106 = vrot.lane.b32.xlu0 %v6978_v14, %s7522_s5  ;;  %v1575_v14 = vshll.u32 %v6278_v11, 16  ;;  %v8606_v11 = vunpack.c.l.b16 %v1534_v60  ;;  %v1593_v32 = vshll.u32 %v6279_v31, 16  ;;  %v6276_v60 = vld [vmem:[%s7632_s24 + $0x54] sm:$0xf]  ;;  %v1546_v44 = vshrl.u32 %v6275_v41, 16 }
 0x161   : > { %v1572_v40 = vor.u32 %v1571_v23, %v8582_v21  ;;  %v11652_v33 = vpack.c.b16 %v8510_v17, %v8508_v47 }
 0x162   : > { %v8584_v52 = vpop.permute.xlu0 %3910  ;;  %4114 = vrot.lane.b32.xlu1 %v6982_v36, %s7522_s5  ;;  %4116 = vrot.lane.b32.xlu2 %v6983_v37, %s7522_s5  ;;  %v1577_v5 = vrot.slane %v1575_v14, 5  ;;  %v1599_v14 = vshll.u32 %v6280_v62, 16 }
 0x163   : > { %11648 = vst [vmem:[#allocation34_spill] sm:$0xff] %v8584_v52  ;;  %v1573_v51 = vrot.slane %v1572_v40, 4  ;;  %v1592_v40 = vrot.slane %v1590_v59, 4 }
 0x164   : > { %v8596_v36 = vpop.permute.xlu1 %3918  ;;  %v8598_v37 = vpop.permute.xlu2 %3938  ;;  %v1582_v23 = vor.u32 %v1581_v22, %v1577_v5  ;;  %v1603_v22 = vshrl.u32 %v6280_v62, 16  ;;  %v1601_v2 = vrot.slane %v1599_v14, 5  ;;  %v4187_v62 = vpack.c.b16 %v8608_v56, %v8606_v11 }
 0x165   : > { %11649 = vst [vmem:[#allocation35_spill] sm:$0xff] %v8596_v36  ;;  %v8611_v36 = vld [vmem:[%s7632_s24 + $0x6c] sm:$0xf]  ;;  %v1578_v46 = vsel %vm7643_vm2, %v1573_v51, %v1577_v5  ;;  %v1555_v5 = vshll.u32 %v6276_v60, 16  ;;  %v8635_v51 = vunpack.c.l.b16 %v1490_v20 }
 0x166   : > { %11650 = vst [vmem:[#allocation36_spill] sm:$0xff] %v8598_v37  ;;  %v1587_v37 = vrot.slane %v1585_v61, 5  ;;  %v1583_v55 = vrot.slane %v1582_v23, 4  ;;  %v1595_v61 = vrot.slane %v1593_v32, 5  ;;  %v1609_v52 = vshll.u32 %v8611_v36, 16 }
 0x167   : > { %v1605_v31 = vrot.slane %v1603_v22, 4  ;;  %v8637_v23 = vunpack.c.l.b16 %v1500_v29  ;;  %v6283_v32 = vld [vmem:[%s7632_s24 + $0x78] sm:$0xf]  ;;  %v8647_v22 = vunpack.c.l.b16 %v1578_v46  ;;  %v1557_v20 = vrot.slane %v1555_v5, 5 }
 0x168   : > { %4112 = vrot.lane.b32.xlu0 %v6981_v12, %s7522_s5  ;;  %v1588_v50 = vsel %vm7643_vm2, %v1583_v55, %v1587_v37  ;;  %v1549_v12 = vshll.u32 %v6275_v41, 16  ;;  %v1596_v59 = vor.u32 %v1595_v61, %v1592_v40  ;;  %v8644_v37 = vrot.slane %v1609_v52, 5  ;;  %v6284_v55 = vld [vmem:[%s7632_s24 + $0x7c] sm:$0xf]  ;;  %s6916_s5 = sshll.u32 %s7506_s19, 1 }
 0x169   : > { %v1548_v41 = vrot.slane %v1546_v44, 4  ;;  %v8649_v11 = vunpack.c.l.b16 %v1588_v50  ;;  %v1559_v61 = vshrl.u32 %v6276_v60, 16  ;;  %v1637_v52 = vshll.u32 %v6283_v32, 16 }
 0x16a   : > { %v8624_v16 = vpop.permute.xlu0 %3916  ;;  %4216 = vrot.lane.b32.xlu1 %v11652_v33, %s7523_s6  ;;  %4218 = vrot.lane.b32.xlu2 %v4184_v38, %s7523_s6  ;;  %v1606_v38 = vor.u32 %v1605_v31, %v1601_v2  ;;  %v1551_v14 = vrot.slane %v1549_v12, 5  ;;  %v1597_v56 = vrot.slane %v1596_v59, 4  ;;  %v1634_v33 = vshrl.u32 %v6283_v32, 16  ;;  %v6285_v31 = vld [vmem:[%s7632_s24 + $0x80] sm:$0xf] }
 0x16b   : > { %11651 = vst [vmem:[#allocation37_spill] sm:$0xff] %v8624_v16  ;;  %v1643_v16 = vshll.u32 %v6284_v55, 16  ;;  %v1647_v44 = vshrl.u32 %v6284_v55, 16  ;;  %v1561_v5 = vrot.slane %v1559_v61, 4  ;;  %v11656_v32 = vpack.c.b16 %v8579_v13, %v8577_v15 }
 0x16c   : > { %v8640_v47 = vpop.permute.xlu1 %3924  ;;  %v8642_v17 = vpop.permute.xlu2 %4056  ;;  %v1607_v29 = vrot.slane %v1606_v38, 4  ;;  %v1552_v40 = vor.u32 %v1551_v14, %v1548_v41  ;;  %v1636_v59 = vrot.slane %v1634_v33, 4  ;;  %v1639_v38 = vrot.slane %v1637_v52, 5 }
 0x16d   : > { %11653 = vst [vmem:[#allocation38_spill] sm:$0xff] %v8640_v47  ;;  %v6930_v47 = vld [vmem:[%s7632_s24 + $0x64] sm:$0xff]  ;;  %v1645_v41 = vrot.slane %v1643_v16, 5  ;;  %v1649_v14 = vrot.slane %v1647_v44, 4  ;;  %v1653_v55 = vshll.u32 %v6285_v31, 16  ;;  %v4189_v15 = vpack.c.b16 %v8649_v11, %v8647_v22 }
 0x16e   : > { %11654 = vst [vmem:[#allocation39_spill] sm:$0xff] %v8642_v17  ;;  %v1602_v17 = vsel %vm7643_vm2, %v1597_v56, %v1601_v2  ;;  %v1612_v46 = vsel %vm7643_vm2, %v1607_v29, %v8644_v37  ;;  %v1553_v12 = vrot.slane %v1552_v40, 4  ;;  %v6286_v56 = vld [vmem:[%s7632_s24 + $0x84] sm:$0xf]  ;;  %v8671_v16 = vsel %vm4934_vm6, %v6930_v47, %v8208_v3  ;;  %v8683_v44 = vld [vmem:[%s7632_s24 + $0x88] sm:$0x1] }
 0x16f   : > { %v4134_v50 = vunpack.c.l.b16 %v1602_v17  ;;  %v4135_v60 = vunpack.c.l.b16 %v1612_v46  ;;  %v1562_v17 = vor.u32 %v1561_v5, %v1557_v20  ;;  %v4185_v29 = vpack.c.b16 %v8637_v23, %v8635_v51  ;;  %v6933_v47 = vld [vmem:[%s7632_s24 + $0x80] sm:$0xff] }
 0x170   : > { %4214 = vrot.lane.b32.xlu0 %v4182_v39, %s7523_s6  ;;  %v1558_v39 = vsel %vm7643_vm2, %v1553_v12, %v1557_v20  ;;  %v1640_v13 = vor.u32 %v1639_v38, %v1636_v59  ;;  %v1650_v33 = vor.u32 %v1649_v14, %v1645_v41  ;;  %v1655_v52 = vrot.slane %v1653_v55, 5  ;;  %v6932_v38 = vld [vmem:[%s7632_s24 + $0x78] sm:$0xff] }
 0x171   : > { %v1563_v61 = vrot.slane %v1562_v17, 4  ;;  %v1657_v3 = vshrl.u32 %v6285_v31, 16  ;;  %v4190_v46 = vpack.c.b16 %v4135_v60, %v4134_v50  ;;  %v4130_v51 = vunpack.c.l.b16 %v1558_v39  ;;  %v6282_v60 = vld [vmem:[%s7632_s24 + $0x70] sm:$0xf] }
 0x172   : > { %v8659_v2 = vpop.permute.xlu0 %3922  ;;  %4222 = vrot.lane.b32.xlu1 %v11656_v32, %s7523_s6  ;;  %4224 = vrot.lane.b32.xlu2 %v4187_v62, %s7523_s6  ;;  %v6929_v62 = vld [vmem:[%s7632_s24 + $0x58] sm:$0xff]  ;;  %v1641_v23 = vrot.slane %v1640_v13, 4  ;;  %v1663_v12 = vshll.u32 %v6286_v56, 16  ;;  %v1651_v11 = vrot.slane %v1650_v33, 4  ;;  %v1667_v59 = vshrl.u32 %v6286_v56, 16 }
 0x173   : > { %11655 = vst [vmem:[#allocation40_spill] sm:$0xff] %v8659_v2  ;;  %v1568_v22 = vsel %vm7643_vm2, %v1563_v61, %v8582_v21  ;;  %v1659_v5 = vrot.slane %v1657_v3, 4  ;;  %v1673_v50 = vshll.u32 %v8683_v44, 16  ;;  %v8696_v39 = vsel %vm4934_vm6, %v6929_v62, %v8226_v8  ;;  %v6331_v56 = vld [vmem:[%s7632_s24 + $0x74] sm:$0x1] }
 0x174   : > { %v8678_v40 = vpop.permute.xlu1 %3930  ;;  %v8680_v20 = vpop.permute.xlu2 %4062  ;;  %v4131_v32 = vunpack.c.l.b16 %v1568_v22  ;;  %v1646_v17 = vsel %vm7643_vm2, %v1641_v23, %v1645_v41  ;;  %v1665_v31 = vrot.slane %v1663_v12, 5  ;;  %v1656_v21 = vsel %vm7643_vm2, %v1651_v11, %v1655_v52  ;;  %v6936_v41 = vld [vmem:[%s7632_s24 + $0xa0] sm:$0xff]  ;;  %v6289_v11 = vld [vmem:[%s7632_s24 + $0x94] sm:$0xf] }
 0x175   : > { %11657 = vst [vmem:[#allocation41_spill] sm:$0xff] %v8678_v40  ;;  %v1660_v14 = vor.u32 %v1659_v5, %v1655_v52  ;;  %v1669_v55 = vrot.slane %v1667_v59, 4  ;;  %v8704_v13 = vsel %vm4934_vm6, %v6933_v47, %v8244_v9  ;;  %v4138_v61 = vunpack.c.l.b16 %v1646_v17 }
 0x176   : > { %v4139_v33 = vunpack.c.l.b16 %v1656_v21  ;;  %v1675_v3 = vrot.slane %v1673_v50, 5  ;;  %v1613_v62 = vshrl.u32 %v8611_v36, 16  ;;  %v1619_v52 = vshll.u32 %v6282_v60, 16  ;;  %v6290_v50 = vld [vmem:[%s7632_s24 + $0x98] sm:$0xf]  ;;  %v6939_v21 = vld [vmem:[%s7632_s24 + $0xbc] sm:$0xff] }
 0x177   : > { %v1661_v8 = vrot.slane %v1660_v14, 4  ;;  %v8714_v9 = vsel %vm4934_vm6, %v6932_v38, %v8263_v27  ;;  %v4188_v47 = vpack.c.b16 %v4131_v32, %v4130_v51  ;;  %v1623_v12 = vshrl.u32 %v6282_v60, 16  ;;  %v8729_v60 = vld [vmem:[%s7632_s24 + $0x9c] sm:$0x1] }
 0x178   : > { %4220 = vrot.lane.b32.xlu0 %v4185_v29, %s7523_s6  ;;  %v1670_v29 = vor.u32 %v1669_v55, %v1665_v31  ;;  %v1629_v22 = vshll.u32 %v6331_v56, 16  ;;  %v1615_v36 = vrot.slane %v1613_v62, 4  ;;  %v1621_v17 = vrot.slane %v1619_v52, 5  ;;  %11659 = vst [vmem:[#allocation43_spill] sm:$0xff] %v8729_v60 }
 0x179   : > { %v8726_v27 = vsel %vm4934_vm6, %v6936_v41, %v8278_v49  ;;  %v4192_v51 = vpack.c.b16 %v4139_v33, %v4138_v61  ;;  %v1625_v32 = vrot.slane %v1623_v12, 4  ;;  %v1697_v56 = vshll.u32 %v6289_v11, 16  ;;  %v6938_v12 = vld [vmem:[%s7632_s24 + $0xb4] sm:$0xff] }
 0x17a   : > { %v8707_v23 = vpop.permute.xlu0 %3928  ;;  %4228 = vrot.lane.b32.xlu1 %v4189_v15, %s7523_s6  ;;  %4230 = vrot.lane.b32.xlu2 %v4190_v46, %s7523_s6  ;;  %v1666_v46 = vsel %vm7643_vm2, %v1661_v8, %v1665_v31  ;;  %v1671_v59 = vrot.slane %v1670_v29, 4  ;;  %v1616_v31 = vor.u32 %v1615_v36, %v8644_v37  ;;  %v1631_v55 = vrot.slane %v1629_v22, 5 }
 0x17b   : > { %v4140_v38 = vunpack.c.l.b16 %v1666_v46  ;;  %v1626_v29 = vor.u32 %v1625_v32, %v1621_v17  ;;  %v1701_v62 = vshrl.u32 %v6289_v11, 16  ;;  %v1707_v49 = vshll.u32 %v6290_v50, 16 }
 0x17c   : > { %v8717_v5 = vpop.permute.xlu1 %3936  ;;  %v8719_v15 = vpop.permute.xlu2 %4068  ;;  %v1676_v14 = vsel %vm7643_vm2, %v1671_v59, %v1675_v3  ;;  %v1617_v41 = vrot.slane %v1616_v31, 4  ;;  %v8736_v61 = vrot.slane %v1697_v56, 5  ;;  %v1711_v33 = vshrl.u32 %v6290_v50, 16  ;;  %v6291_v59 = vld [vmem:[%s7632_s24 + $0xa0] sm:$0xf] }
 0x17d   : > { %11658 = vst [vmem:[#allocation42_spill] sm:$0xff] %v8717_v5  ;;  %v4141_v8 = vunpack.c.l.b16 %v1676_v14  ;;  %v1717_v52 = vshll.u32 %v8729_v60, 16  ;;  %v1627_v46 = vrot.slane %v1626_v29, 4  ;;  %v1703_v37 = vrot.slane %v1701_v62, 4  ;;  %v6288_v5 = vld [vmem:[%s7632_s24 + $0x90] sm:$0xf] }
 0x17e   : > { %v1709_v22 = vrot.slane %v1707_v49, 5  ;;  %v8743_v36 = vsel %vm4934_vm6, %v6939_v21, %v8304_v24  ;;  %v1622_v11 = vsel %vm7643_vm2, %v1617_v41, %v1621_v17  ;;  %v1713_v50 = vrot.slane %v1711_v33, 4  ;;  %v8760_v17 = vld [vmem:[%s7632_s24 + $0xa8] sm:$0xf]  ;;  %v6945_v41 = vld [vmem:[%s7632_s24 + $0xf8] sm:$0xff] }
 0x17f   : > { %v4193_v3 = vpack.c.b16 %v4141_v8, %v4140_v38  ;;  %v6292_v38 = vld [vmem:[%s7632_s24 + $0xa4] sm:$0xf]  ;;  %v1632_v32 = vsel %vm7643_vm2, %v1627_v46, %v1631_v55  ;;  %v4136_v24 = vunpack.c.l.b16 %v1622_v11  ;;  %v1704_v21 = vor.u32 %v1703_v37, %v8736_v61 }
 0x180   : > { %4226 = vrot.lane.b32.xlu0 %v4188_v47, %s7523_s6  ;;  %v1719_v14 = vrot.slane %v1717_v52, 5  ;;  %v4137_v31 = vunpack.c.l.b16 %v1632_v32  ;;  %v1714_v8 = vor.u32 %v1713_v50, %v1709_v22  ;;  %v1722_v29 = vshrl.u32 %v6291_v59, 16 }
 0x181   : > { %v1725_v62 = vshll.u32 %v6291_v59, 16  ;;  %v8764_v49 = vsel %vm4934_vm6, %v6938_v12, %v8317_v10  ;;  %v8769_v55 = vsel %vm5031_vm7, %v8468_v45, %v8330_v57  ;;  %v1705_v33 = vrot.slane %v1704_v21, 4 }
 0x182   : > { %v8745_v47 = vpop.permute.xlu0 %3934  ;;  %4234 = vrot.lane.b32.xlu1 %v4192_v51, %s7523_s6  ;;  %4236 = vrot.lane.b32.xlu2 %v4193_v3, %s7523_s6  ;;  %v1731_v52 = vshll.u32 %v6292_v38, 16  ;;  %v6287_v3 = vld [vmem:[%s7632_s24 + $0x8c] sm:$0xf]  ;;  %v4191_v46 = vpack.c.b16 %v4137_v31, %v4136_v24  ;;  %v1715_v37 = vrot.slane %v1714_v8, 4  ;;  %v1724_v11 = vrot.slane %v1722_v29, 4  ;;  %v6944_v8 = vld [vmem:[%s7632_s24 + $0xf0] sm:$0xff] }
 0x183   : > { %11660 = vst [vmem:[#allocation44_spill] sm:$0xff] %v8745_v47  ;;  %v1727_v50 = vrot.slane %v1725_v62, 5  ;;  %v1710_v59 = vsel %vm7643_vm2, %v1705_v33, %v1709_v22  ;;  %v1735_v12 = vshrl.u32 %v6292_v38, 16  ;;  %v1741_v32 = vshll.u32 %v8760_v17, 16  ;;  %v6295_v62 = vld [vmem:[%s7632_s24 + $0xb4] sm:$0xf] }
 0x184   : > { %v8755_v56 = vpop.permute.xlu1 %4054  ;;  %v8757_v51 = vpop.permute.xlu2 %4074  ;;  %v1733_v10 = vrot.slane %v1731_v52, 5  ;;  %v1720_v57 = vsel %vm7643_vm2, %v1715_v37, %v1719_v14  ;;  %v4144_v45 = vunpack.c.l.b16 %v1710_v59  ;;  %v1678_v24 = vshrl.u32 %v6287_v3, 16 }
 0x185   : > { %v1728_v21 = vor.u32 %v1727_v50, %v1724_v11  ;;  %v8782_v31 = vsel %vm4934_vm6, %v6945_v41, %v8337_v28  ;;  %v4145_v29 = vunpack.c.l.b16 %v1720_v57  ;;  %v1737_v22 = vrot.slane %v1735_v12, 4 }
 0x186   : > { %v1681_v38 = vshll.u32 %v6287_v3, 16  ;;  %v1687_v47 = vshll.u32 %v6288_v5, 16  ;;  %v1691_v2 = vshrl.u32 %v6288_v5, 16  ;;  %v8788_v11 = vrot.slane %v1741_v32, 5  ;;  %v6296_v3 = vld [vmem:[%s7632_s24 + $0xb8] sm:$0xf] }
 0x187   : > { %v1729_v52 = vrot.slane %v1728_v21, 4  ;;  %v4195_v14 = vpack.c.b16 %v4145_v29, %v4144_v45  ;;  %v1738_v37 = vor.u32 %v1737_v22, %v1733_v10  ;;  %v1766_v57 = vshrl.u32 %v6295_v62, 16 }
 0x188   : > { %4232 = vrot.lane.b32.xlu0 %v4191_v46, %s7523_s6  ;;  %v1680_v46 = vrot.slane %v1678_v24, 4  ;;  %v1683_v50 = vrot.slane %v1681_v38, 5  ;;  %v1689_v41 = vrot.slane %v1687_v47, 5  ;;  %v1693_v59 = vrot.slane %v1691_v2, 4 }
 0x189   : > { %v1734_v28 = vsel %vm7643_vm2, %v1729_v52, %v1733_v10  ;;  %v8798_v21 = vsel %vm5031_vm7, %v8472_v58, %v8341_v7  ;;  %v8802_v5 = vsel %vm4934_vm6, %v6944_v8, %v8344_v6  ;;  %v1739_v32 = vrot.slane %v1738_v37, 4  ;;  %v6297_v10 = vld [vmem:[%s7632_s24 + $0xbc] sm:$0xf] }
 0x18a   : > { %v8786_v33 = vpop.permute.xlu0 %3940  ;;  %4240 = vrot.lane.b32.xlu1 %v4195_v14, %s7523_s6  ;;  %v1684_v45 = vor.u32 %v1683_v50, %v1680_v46  ;;  %v4146_v47 = vunpack.c.l.b16 %v1734_v28  ;;  %v1694_v2 = vor.u32 %v1693_v59, %v1689_v41  ;;  %v1768_v29 = vrot.slane %v1766_v57, 4  ;;  %v6298_v59 = vld [vmem:[%s7632_s24 + $0xc0] sm:$0xf] }
 0x18b   : > { %11661 = vst [vmem:[#allocation45_spill] sm:$0xff] %v8786_v33  ;;  %v1769_v22 = vshll.u32 %v6295_v62, 16  ;;  %v1744_v7 = vsel %vm7643_vm2, %v1739_v32, %v8788_v11  ;;  %v1775_v38 = vshll.u32 %v6296_v3, 16  ;;  %v1779_v6 = vshrl.u32 %v6296_v3, 16 }
 0x18c   : > { %v8792_v12 = vpop.permute.xlu1 %4060  ;;  %v8806_v24 = vpop.permute.xlu2 %4080  ;;  %v1685_v58 = vrot.slane %v1684_v45, 4  ;;  %v4147_v8 = vunpack.c.l.b16 %v1744_v7  ;;  %v1695_v52 = vrot.slane %v1694_v2, 4  ;;  %v1785_v46 = vshll.u32 %v6297_v10, 16  ;;  %v8820_v2 = vld [vmem:[%s7632_s24 + $0xc4] sm:$0x1] }
 0x18d   : > { %v1771_v14 = vrot.slane %v1769_v22, 5  ;;  %v1777_v50 = vrot.slane %v1775_v38, 5  ;;  %v1781_v28 = vrot.slane %v1779_v6, 4  ;;  %v1789_v57 = vshrl.u32 %v6297_v10, 16 }
 0x18e   : > { %v1690_v37 = vsel %vm7643_vm2, %v1685_v58, %v1689_v41  ;;  %v4196_v62 = vpack.c.b16 %v4147_v8, %v4146_v47  ;;  %v1700_v32 = vsel %vm7643_vm2, %v1695_v52, %v8736_v61  ;;  %v8825_v41 = vsel %vm5031_vm7, %v8532_v4, %v8354_v63  ;;  %v6294_v52 = vld [vmem:[%s7632_s24 + $0xac] sm:$0xf] }
 0x18f   : > { %v4142_v45 = vunpack.c.l.b16 %v1690_v37  ;;  %v1772_v3 = vor.u32 %v1771_v14, %v1768_v29  ;;  %v4143_v22 = vunpack.c.l.b16 %v1700_v32  ;;  %v1782_v7 = vor.u32 %v1781_v28, %v1777_v50 }
 0x190   : > { %v1787_v10 = vrot.slane %v1785_v46, 5  ;;  %4242 = vrot.lane.b32.xlu2 %v4196_v62, %s7523_s6  ;;  %v1791_v61 = vrot.slane %v1789_v57, 4  ;;  %v1795_v58 = vshll.u32 %v6298_v59, 16  ;;  %v1799_v38 = vshrl.u32 %v6298_v59, 16  ;;  %v8840_v57 = vld [vmem:[%s7632_s24 + $0xb0] sm:$0x1] }
 0x191   : > { %v1773_v47 = vrot.slane %v1772_v3, 4  ;;  %v8833_v29 = vsel %vm5031_vm7, %v8696_v39, %v8366_v0  ;;  %v4194_v8 = vpack.c.b16 %v4143_v22, %v4142_v45  ;;  %v1783_v63 = vrot.slane %v1782_v7, 4  ;;  %11663 = vst [vmem:[#allocation47_spill] sm:$0xff] %v8840_v57 }
 0x192   : > { %v8817_v33 = vpop.permute.xlu0 %4058  ;;  %11662 = vst [vmem:[#allocation46_spill] sm:$0xff] %v8833_v29  ;;  %v1805_v4 = vshll.u32 %v8820_v2, 16  ;;  %v1792_v46 = vor.u32 %v1791_v61, %v1787_v10  ;;  %v1797_v37 = vrot.slane %v1795_v58, 5  ;;  %v1801_v28 = vrot.slane %v1799_v38, 4  ;;  %v11668_v29 = vld [vmem:[#allocation22_spill] sm:$0xff] }
 0x193   : > { %v1778_v14 = vsel %vm7643_vm2, %v1773_v47, %v1777_v50  ;;  %4238 = vrot.lane.b32.xlu0 %v4194_v8, %s7523_s6  ;;  %v1788_v59 = vsel %vm7643_vm2, %v1783_v63, %v1787_v10  ;;  %v1745_v62 = vshrl.u32 %v8760_v17, 16  ;;  %v1751_v22 = vshll.u32 %v6294_v52, 16 }
 0x194   : > { %v8828_v6 = vpop.permute.xlu1 %4066  ;;  %v4150_v0 = vunpack.c.l.b16 %v1778_v14  ;;  %v1807_v39 = vrot.slane %v1805_v4, 5  ;;  %v4151_v32 = vunpack.c.l.b16 %v1788_v59  ;;  %v1793_v45 = vrot.slane %v1792_v46, 4  ;;  %v8846_v50 = vpop.permute.xlu2 %4086  ;;  %v6301_v4 = vld [vmem:[%s7632_s24 + $0xd0] sm:$0xf]  ;;  %v6302_v46 = vld [vmem:[%s7632_s24 + $0xd4] sm:$0xf] }
 0x195   : > { %v1802_v3 = vor.u32 %v1801_v28, %v1797_v37  ;;  %v8851_v7 = vsel %vm5031_vm7, %v8460_v19, %v8376_v34  ;;  %v1747_v47 = vrot.slane %v1745_v62, 4  ;;  %v1755_v10 = vshrl.u32 %v6294_v52, 16  ;;  %v8867_v28 = vld [vmem:[%s7632_s24 + $0xd8] sm:$0x1] }
 0x196   : > { %v1761_v61 = vshll.u32 %v8840_v57, 16  ;;  %v4198_v58 = vpack.c.b16 %v4151_v32, %v4150_v0  ;;  %v1798_v17 = vsel %vm7643_vm2, %v1793_v45, %v1797_v37  ;;  %v1753_v8 = vrot.slane %v1751_v22, 5 }
 0x197   : > { %v1803_v38 = vrot.slane %v1802_v3, 4  ;;  %v8862_v14 = vsel %vm5031_vm7, %v8714_v9, %v8378_v43  ;;  %v4152_v19 = vunpack.c.l.b16 %v1798_v17  ;;  %v1748_v34 = vor.u32 %v1747_v47, %v8788_v11 }
 0x198   : > { %11664 = vst [vmem:[#allocation48_spill] sm:$0xff] %v8862_v14  ;;  %v1757_v52 = vrot.slane %v1755_v10, 4  ;;  %v8872_v37 = vsel %vm5031_vm7, %v8492_v1, %v8383_v53  ;;  %v8877_v59 = vsel %vm5031_vm7, %v8436_v42, %v8388_v30  ;;  %4246 = vrot.lane.b32.xlu1 %v4198_v58, %s7523_s6  ;;  %v1763_v9 = vrot.slane %v1761_v61, 5  ;;  %v6303_v42 = vld [vmem:[%s7632_s24 + $0xdc] sm:$0xf] }
 0x199   : > { %v1808_v43 = vsel %vm7643_vm2, %v1803_v38, %v1807_v39  ;;  %v1749_v0 = vrot.slane %v1748_v34, 4  ;;  %v1829_v32 = vshll.u32 %v6301_v4, 16  ;;  %v1833_v53 = vshrl.u32 %v6301_v4, 16  ;;  %v6304_v61 = vld [vmem:[%s7632_s24 + $0xe0] sm:$0xf] }
 0x19a   : > { %v8856_v63 = vpop.permute.xlu0 %4064  ;;  %v4153_v11 = vunpack.c.l.b16 %v1808_v43  ;;  %v1758_v62 = vor.u32 %v1757_v52, %v1753_v8  ;;  %v1839_v1 = vshll.u32 %v6302_v46, 16  ;;  %v1843_v3 = vshrl.u32 %v6302_v46, 16  ;;  %v8892_v52 = vld [vmem:[%s7632_s24 + $0xe4] sm:$0xf] }
 0x19b   : > { %v1849_v30 = vshll.u32 %v8867_v28, 16  ;;  %v1754_v47 = vsel %vm7643_vm2, %v1749_v0, %v1753_v8  ;;  %v8888_v10 = vrot.slane %v1829_v32, 5  ;;  %v1835_v17 = vrot.slane %v1833_v53, 4  ;;  %v6299_v32 = vld [vmem:[%s7632_s24 + $0xc8] sm:$0xf] }
 0x19c   : > { %v8882_v45 = vpop.permute.xlu1 %4072  ;;  %v4199_v22 = vpack.c.b16 %v4153_v11, %v4152_v19  ;;  %v1759_v39 = vrot.slane %v1758_v62, 4  ;;  %v4148_v58 = vunpack.c.l.b16 %v1754_v47  ;;  %v1841_v38 = vrot.slane %v1839_v1, 5  ;;  %v8904_v53 = vpop.permute.xlu2 %4092 }
 0x19d   : > { %v1845_v34 = vrot.slane %v1843_v3, 4  ;;  %v8897_v4 = vsel %vm5031_vm7, %v8430_v54, %v8395_v26  ;;  %v1851_v19 = vrot.slane %v1849_v30, 5  ;;  %v1854_v46 = vshrl.u32 %v6303_v42, 16  ;;  %11665 = vst [vmem:[#allocation49_spill] sm:$0xff] %v8904_v53  ;;  %v6307_v53 = vld [vmem:[%s7632_s24 + $0xf0] sm:$0xf] }
 0x19e   : > { %4248 = vrot.lane.b32.xlu2 %v4199_v22, %s7523_s6  ;;  %v1764_v8 = vsel %vm7643_vm2, %v1759_v39, %v1763_v9  ;;  %v1836_v11 = vor.u32 %v1835_v17, %v8888_v10  ;;  %v1857_v62 = vshll.u32 %v6303_v42, 16  ;;  %v1863_v54 = vshll.u32 %v6304_v61, 16 }
 0x19f   : > { %v4149_v43 = vunpack.c.l.b16 %v1764_v8  ;;  %v1846_v0 = vor.u32 %v1845_v34, %v1841_v38  ;;  %v1856_v26 = vrot.slane %v1854_v46, 4  ;;  %v1867_v3 = vshrl.u32 %v6304_v61, 16  ;;  %v6300_v34 = vld [vmem:[%s7632_s24 + $0xcc] sm:$0xf] }
 0x1a0   : > { %v1873_v22 = vshll.u32 %v8892_v52, 16  ;;  %v1837_v9 = vrot.slane %v1836_v11, 4  ;;  %v1859_v39 = vrot.slane %v1857_v62, 5  ;;  %v1865_v8 = vrot.slane %v1863_v54, 5 }
 0x1a1   : > { %v4197_v47 = vpack.c.b16 %v4149_v43, %v4148_v58  ;;  %v1847_v30 = vrot.slane %v1846_v0, 4  ;;  %v1869_v40 = vrot.slane %v1867_v3, 4  ;;  %v1810_v42 = vshrl.u32 %v6299_v32, 16 }
 0x1a2   : > { %v8906_v1 = vpop.permute.xlu0 %4070  ;;  %v8909_v17 = vrot.slane %v1873_v22, 5  ;;  %v1842_v46 = vsel %vm7643_vm2, %v1837_v9, %v1841_v38  ;;  %v1860_v14 = vor.u32 %v1859_v39, %v1856_v26  ;;  %v1813_v58 = vshll.u32 %v6299_v32, 16  ;;  %v11669_v38 = vld [vmem:[#allocation25_spill] sm:$0xff] }
 0x1a3   : > { %11666 = vst [vmem:[#allocation50_spill] sm:$0xff] %v8906_v1  ;;  %4244 = vrot.lane.b32.xlu0 %v4197_v47, %s7523_s6  ;;  %v1852_v61 = vsel %vm7643_vm2, %v1847_v30, %v1851_v19  ;;  %v4156_v43 = vunpack.c.l.b16 %v1842_v46  ;;  %v1870_v0 = vor.u32 %v1869_v40, %v1865_v8  ;;  %v1812_v62 = vrot.slane %v1810_v42, 4  ;;  %v11670_v19 = vld [vmem:[#allocation23_spill] sm:$0xff]  ;;  %v6309_v46 = vld [vmem:[%s7632_s24 + $0xf8] sm:$0xf] }
 0x1a4   : > { %v4157_v11 = vunpack.c.l.b16 %v1852_v61  ;;  %v8917_v54 = vpop.permute.xlu1 %4078  ;;  %v1861_v3 = vrot.slane %v1860_v14, 4  ;;  %v1815_v22 = vrot.slane %v1813_v58, 5  ;;  %v1819_v1 = vshll.u32 %v6300_v34, 16  ;;  %v11672_v61 = vld [vmem:[#allocation24_spill] sm:$0xff] }
 0x1a5   : > { %11667 = vst [vmem:[#allocation51_spill] sm:$0xff] %v8917_v54  ;;  %v1823_v47 = vshrl.u32 %v6300_v34, 16  ;;  %v8923_v9 = vsel %vm5031_vm7, %v11669_v38, %v11668_v29  ;;  %v8928_v32 = vsel %vm5031_vm7, %v8764_v49, %v11670_v19  ;;  %v1871_v26 = vrot.slane %v1870_v0, 4  ;;  %v6308_v34 = vld [vmem:[%s7632_s24 + $0xf4] sm:$0xf] }
 0x1a6   : > { %11671 = vst [vmem:[#allocation22_spill] sm:$0xff] %v8928_v32  ;;  %v4201_v40 = vpack.c.b16 %v4157_v11, %v4156_v43  ;;  %v1866_v30 = vsel %vm7643_vm2, %v1861_v3, %v1865_v8  ;;  %v1816_v14 = vor.u32 %v1815_v22, %v1812_v62  ;;  %v1821_v39 = vrot.slane %v1819_v1, 5  ;;  %v8943_v62 = vpop.permute.xlu2 %4098  ;;  %v6310_v19 = vld [vmem:[%s7632_s24 + $0xfc] sm:$0xf] }
 0x1a7   : > { %v1825_v42 = vrot.slane %v1823_v47, 4  ;;  %v8937_v29 = vsel %vm5031_vm7, %v8528_v35, %v11672_v61  ;;  %v1876_v49 = vsel %vm7643_vm2, %v1871_v26, %v8909_v17  ;;  %v4158_v58 = vunpack.c.l.b16 %v1866_v30  ;;  %11673 = vst [vmem:[#allocation25_spill] sm:$0xff] %v8943_v62 }
 0x1a8   : > { %4252 = vrot.lane.b32.xlu1 %v4201_v40, %s7523_s6  ;;  %v1898_v43 = vshrl.u32 %v6307_v53, 16  ;;  %v4159_v8 = vunpack.c.l.b16 %v1876_v49  ;;  %v1817_v1 = vrot.slane %v1816_v14, 4  ;;  %v1901_v0 = vshll.u32 %v6307_v53, 16  ;;  %v8951_v49 = vld [vmem:[%s7632_s24 + $0x100] sm:$0x1] }
 0x1a9   : > { %v1826_v11 = vor.u32 %v1825_v42, %v1821_v39  ;;  %v1907_v35 = vshll.u32 %v6308_v34, 16  ;;  %v1911_v47 = vshrl.u32 %v6308_v34, 16  ;;  %v1917_v38 = vshll.u32 %v6309_v46, 16  ;;  %11675 = vst [vmem:[#allocation24_spill] sm:$0xff] %v8951_v49 }
 0x1aa   : > { %v8945_v3 = vpop.permute.xlu0 %4076  ;;  %v1900_v22 = vrot.slane %v1898_v43, 4  ;;  %v4202_v40 = vpack.c.b16 %v4159_v8, %v4158_v58  ;;  %v1822_v26 = vsel %vm7643_vm2, %v1817_v1, %v1821_v39  ;;  %v1903_v61 = vrot.slane %v1901_v0, 5  ;;  %v6306_v0 = vld [vmem:[%s7632_s24 + $0xe8] sm:$0xf] }
 0x1ab   : > { %11674 = vst [vmem:[#allocation23_spill] sm:$0xff] %v8945_v3  ;;  %v1827_v30 = vrot.slane %v1826_v11, 4  ;;  %v4154_v14 = vunpack.c.l.b16 %v1822_v26  ;;  %v1909_v53 = vrot.slane %v1907_v35, 5  ;;  %v1913_v42 = vrot.slane %v1911_v47, 4  ;;  %v11677_v35 = vld [vmem:[#allocation26_spill] sm:$0xff]  ;;  %v11678_v47 = vld [vmem:[#allocation28_spill] sm:$0xff] }
 0x1ac   : > { %v1919_v62 = vrot.slane %v1917_v38, 5  ;;  %4254 = vrot.lane.b32.xlu2 %v4202_v40, %s7523_s6  ;;  %v1904_v43 = vor.u32 %v1903_v61, %v1900_v22  ;;  %v1921_v58 = vshrl.u32 %v6309_v46, 16  ;;  %v1927_v8 = vshll.u32 %v6310_v19, 16  ;;  %v8959_v26 = vpop.permute.xlu1 %4084 }
 0x1ad   : > { %v1832_v34 = vsel %vm7643_vm2, %v1827_v30, %v8888_v10  ;;  %v1914_v39 = vor.u32 %v1913_v42, %v1909_v53  ;;  %v1931_v1 = vshrl.u32 %v6310_v19, 16  ;;  %v1937_v11 = vshll.u32 %v8951_v49, 16  ;;  %11676 = vst [vmem:[#allocation52_spill] sm:$0xff] %v8959_v26 }
 0x1ae   : > { %v4155_v32 = vunpack.c.l.b16 %v1832_v34  ;;  %v8964_v38 = vsel %vm5031_vm7, %v11678_v47, %v11677_v35  ;;  %v1905_v40 = vrot.slane %v1904_v43, 4  ;;  %v1923_v3 = vrot.slane %v1921_v58, 4  ;;  %v8969_v34 = vld [vmem:[%s7632_s24 + $0xec] sm:$0x1] }
 0x1af   : > { %v1929_v10 = vrot.slane %v1927_v8, 5  ;;  %v1915_v46 = vrot.slane %v1914_v39, 4  ;;  %v1933_v30 = vrot.slane %v1931_v1, 4  ;;  %v1939_v61 = vrot.slane %v1937_v11, 5  ;;  %11679 = vst [vmem:[#allocation26_spill] sm:$0xff] %v8969_v34 }
 0x1b0   : > { %v4200_v22 = vpack.c.b16 %v4155_v32, %v4154_v14  ;;  %v1910_v19 = vsel %vm7643_vm2, %v1905_v40, %v1909_v53  ;;  %v1924_v42 = vor.u32 %v1923_v3, %v1919_v62  ;;  %v1877_v26 = vshrl.u32 %v8892_v52, 16  ;;  %v8975_v3 = vpop.permute.xlu2 %4104  ;;  %v11681_v52 = vld [vmem:[#allocation29_spill] sm:$0xff]  ;;  %v11682_v40 = vld [vmem:[#allocation31_spill] sm:$0xff] }
 0x1b1   : > { %v1883_v54 = vshll.u32 %v6306_v0, 16  ;;  %v1920_v43 = vsel %vm7643_vm2, %v1915_v46, %v1919_v62  ;;  %v4162_v58 = vunpack.c.l.b16 %v1910_v19  ;;  %v1934_v8 = vor.u32 %v1933_v30, %v1929_v10  ;;  %v6313_v30 = vld [vmem:[%s7632_s24 + $0x10c] sm:$0xf]  ;;  %v6314_v19 = vld [vmem:[%s7632_s24 + $0x110] sm:$0xf] }
 0x1b2   : > { %4250 = vrot.lane.b32.xlu0 %v4200_v22, %s7523_s6  ;;  %v1887_v32 = vshrl.u32 %v6306_v0, 16  ;;  %v4163_v14 = vunpack.c.l.b16 %v1920_v43  ;;  %v1925_v39 = vrot.slane %v1924_v42, 4  ;;  %v1879_v1 = vrot.slane %v1877_v26, 4  ;;  %v8977_v11 = vpop.permute.xlu0 %4082 }
 0x1b3   : > { %v1885_v53 = vrot.slane %v1883_v54, 5  ;;  %11680 = vst [vmem:[#allocation28_spill] sm:$0xff] %v8977_v11  ;;  %v8982_v35 = vsel %vm5031_vm7, %v8671_v16, %v11681_v52  ;;  %v1935_v62 = vrot.slane %v1934_v8, 4  ;;  %v1893_v0 = vshll.u32 %v8969_v34, 16 }
 0x1b4   : > { %v1889_v47 = vrot.slane %v1887_v32, 4  ;;  %v8988_v26 = vsel %vm5031_vm7, %v8802_v5, %v11682_v40  ;;  %v4204_v54 = vpack.c.b16 %v4163_v14, %v4162_v58  ;;  %v1930_v22 = vsel %vm7643_vm2, %v1925_v39, %v1929_v10  ;;  %v8998_v32 = vld [vmem:[%s7632_s24 + $0x114] sm:$0x1]  ;;  %v9006_v58 = vld [vmem:[%s7632_s24 + $0x4c] sm:$0x1] }
 0x1b5   : > { %11683 = vst [vmem:[#allocation29_spill] sm:$0xff] %v8988_v26  ;;  %v1880_v46 = vor.u32 %v1879_v1, %v8909_v17  ;;  %v1940_v16 = vsel %vm7643_vm2, %v1935_v62, %v1939_v61  ;;  %v4164_v42 = vunpack.c.l.b16 %v1930_v22  ;;  %v1895_v8 = vrot.slane %v1893_v0, 5  ;;  %v9010_v62 = vpop.permute.xlu1 %4090  ;;  %v6343_v40 = vld [vmem:[%s7632_s24 + $0x14] sm:$0xe] }
 0x1b6   : > { %v1890_v43 = vor.u32 %v1889_v47, %v1885_v53  ;;  %v9003_v5 = vsel %vm5031_vm7, %v8704_v13, %v8534_v18  ;;  %11684 = vst [vmem:[#allocation31_spill] sm:$0xff] %v9006_v58  ;;  %4258 = vrot.lane.b32.xlu1 %v4204_v54, %s7523_s6  ;;  %v4165_v10 = vunpack.c.l.b16 %v1940_v16  ;;  %v1961_v39 = vshll.u32 %v6313_v30, 16  ;;  %v6311_v16 = vld [vmem:[%s7632_s24 + $0x104] sm:$0xf]  ;;  %v9031_v58 = vld [vmem:[%s7632_s24 + $0x1c] sm:$0xf] }
 0x1b7   : > { %v1881_v61 = vrot.slane %v1880_v46, 4  ;;  %v1965_v1 = vshrl.u32 %v6313_v30, 16  ;;  %v1971_v52 = vshll.u32 %v6314_v19, 16  ;;  %11685 = vst [vmem:[#allocation53_spill] sm:$0xff] %v9010_v62  ;;  %v1975_v13 = vshrl.u32 %v6314_v19, 16  ;;  %v11692_v26 = vld [vmem:[#allocation34_spill] sm:$0xff] }
 0x1b8   : > { %v1891_v14 = vrot.slane %v1890_v43, 4  ;;  %v4205_v47 = vpack.c.b16 %v4165_v10, %v4164_v42  ;;  %v1981_v0 = vshll.u32 %v8998_v32, 16  ;;  %v9018_v46 = vrot.slane %v1961_v39, 5  ;;  %v11686_v42 = vld [vmem:[#allocation32_spill] sm:$0xff]  ;;  %v7345_v39 = vld [vmem:[%s7632_s24 + $0x18] sm:$0xf] }
 0x1b9   : > { %v1886_v18 = vsel %vm7643_vm2, %v1881_v61, %v1885_v53  ;;  %v1967_v30 = vrot.slane %v1965_v1, 4  ;;  %v9024_v43 = vsel %vm5031_vm7, %v11686_v42, %v8551_v48  ;;  %v1973_v19 = vrot.slane %v1971_v52, 5  ;;  %v6312_v1 = vld [vmem:[%s7632_s24 + $0x108] sm:$0xf] }
 0x1ba   : > { %v1896_v54 = vsel %vm7643_vm2, %v1891_v14, %v1895_v8  ;;  %v4160_v22 = vunpack.c.l.b16 %v1886_v18  ;;  %11687 = vst [vmem:[#allocation32_spill] sm:$0xff] %v9024_v43  ;;  %4260 = vrot.lane.b32.xlu2 %v4205_v47, %s7523_s6  ;;  %v1977_v10 = vrot.slane %v1975_v13, 4  ;;  %v1983_v61 = vrot.slane %v1981_v0, 5  ;;  %v9034_v47 = vpop.permute.xlu2 %4110  ;;  %v9036_v52 = vpop.permute.xlu0 %4088 }
 0x1bb   : > { %v4161_v53 = vunpack.c.l.b16 %v1896_v54  ;;  %v1968_v8 = vor.u32 %v1967_v30, %v9018_v46  ;;  %v6359_v14 = vrot.slane %v6343_v40, 9  ;;  %v2215_v18 = vrot.slane %v7345_v39, 5  ;;  %11688 = vst [vmem:[#allocation54_spill] sm:$0xff] %v9034_v47 }
 0x1bc   : > { %v1978_v11 = vor.u32 %v1977_v10, %v1973_v19  ;;  %v1942_v42 = vshrl.u32 %v6311_v16, 16  ;;  %11689 = vst [vmem:[#allocation55_spill] sm:$0xff] %v9036_v52  ;;  %v1945_v30 = vshll.u32 %v6311_v16, 16  ;;  %v1951_v39 = vshll.u32 %v6312_v1, 16  ;;  %v6375_v16 = vld [vmem:[%s7632_s24 + $0x28] sm:$0xf] }
 0x1bd   : > { %v4203_v17 = vpack.c.b16 %v4161_v53, %v4160_v22  ;;  %v1969_v13 = vrot.slane %v1968_v8, 4  ;;  %v2216_v0 = vsel %vm8016_vm5, %v6359_v14, %v2215_v18  ;;  %v2217_v40 = vrot.slane %v2215_v18, 4 }
 0x1be   : > { %v1979_v22 = vrot.slane %v1978_v11, 4  ;;  %v4278_v53 = vunpack.c.l.b16 %v2216_v0  ;;  %v1944_v10 = vrot.slane %v1942_v42, 4  ;;  %v11691_v47 = vrot.slane %v9031_v58, 5 }
 0x1bf   : > { %4256 = vrot.lane.b32.xlu0 %v4203_v17, %s7523_s6  ;;  %v1974_v48 = vsel %vm7643_vm2, %v1969_v13, %v1973_v19  ;;  %v1947_v14 = vrot.slane %v1945_v30, 5  ;;  %v1955_v18 = vshrl.u32 %v6312_v1, 16  ;;  %v1953_v0 = vrot.slane %v1951_v39, 5  ;;  %v9059_v1 = vpop.permute.xlu1 %4096  ;;  %v11694_v30 = vld [vmem:[#allocation37_spill] sm:$0xff] }
 0x1c0   : > { %v2219_v8 = vsel %vm8016_vm5, %v2217_v40, %v11691_v47  ;;  %v1984_v11 = vsel %vm7643_vm2, %v1979_v22, %v1983_v61  ;;  %v4168_v17 = vunpack.c.l.b16 %v1974_v48  ;;  %v9053_v19 = vsel %vm5031_vm7, %v8726_v27, %v11692_v26  ;;  %v6376_v47 = vld [vmem:[%s7632_s24 + $0x2c] sm:$0xf]  ;;  %v9057_v40 = vld [vmem:[%s7632_s24 + $0x30] sm:$0xf]  ;;  %11693 = vst [vmem:[#allocation8_spill] sm:$0xff] %v9059_v1 }
 0x1c1   : > { %v4279_v42 = vunpack.c.l.b16 %v2219_v8  ;;  %v4169_v13 = vunpack.c.l.b16 %v1984_v11  ;;  %v1948_v43 = vor.u32 %v1947_v14, %v1944_v10  ;;  %v1957_v52 = vrot.slane %v1955_v18, 4  ;;  %v9067_v48 = vld [vmem:[%s7632_s24 + $0x60] sm:$0x1]  ;;  %v6455_v26 = vld [vmem:[%s7632_s24 + $0x28] sm:$0xe] }
 0x1c2   : > { %v9064_v61 = vsel %vm5031_vm7, %v8743_v36, %v11694_v30  ;;  %11695 = vst [vmem:[#allocation34_spill] sm:$0xff] %v9067_v48  ;;  %v2503_v27 = vshrl.u32 %v6375_v16, 16  ;;  %v2506_v18 = vshll.u32 %v6375_v16, 16  ;;  %v2512_v1 = vshll.u32 %v6376_v47, 16 }
 0x1c3   : > { %v4342_v39 = vpack.c.b16 %v4279_v42, %v4278_v53  ;;  %v4207_v8 = vpack.c.b16 %v4169_v13, %v4168_v17  ;;  %v1949_v10 = vrot.slane %v1948_v43, 4  ;;  %v1958_v14 = vor.u32 %v1957_v52, %v1953_v0  ;;  %v11696_v17 = vld [vmem:[#allocation39_spill] sm:$0xff] }
 0x1c4   : > { %v2505_v11 = vrot.slane %v2503_v27, 4  ;;  %v2516_v62 = vshrl.u32 %v6376_v47, 16  ;;  %v2522_v36 = vshll.u32 %v9057_v40, 16  ;;  %v2508_v42 = vrot.slane %v2506_v18, 5  ;;  %v9083_v27 = vpop.permute.xlu0 %4094  ;;  %v7349_v18 = vld [vmem:[%s7632_s24 + $0x24] sm:$0x1] }
 0x1c5   : > { %4374 = vrot.lane.b32.xlu2 %v4342_v39, %s7524_s8  ;;  %4264 = vrot.lane.b32.xlu1 %v4207_v8, %s7523_s6  ;;  %v1954_v30 = vsel %vm7643_vm2, %v1949_v10, %v1953_v0  ;;  %v1959_v53 = vrot.slane %v1958_v14, 4  ;;  %v6471_v22 = vrot.slane %v6455_v26, 9  ;;  %v9079_v43 = vsel %vm5096_vm8, %v8872_v37, %v11696_v17  ;;  %v9081_v39 = vpop.permute.xlu2 %4116  ;;  %11698 = vst [vmem:[#allocation39_spill] sm:$0xff] %v9083_v27 }
 0x1c6   : > { %v4166_v52 = vunpack.c.l.b16 %v1954_v30  ;;  %v2514_v16 = vrot.slane %v2512_v1, 5  ;;  %v2518_v13 = vrot.slane %v2516_v62, 4  ;;  %11697 = vst [vmem:[#allocation37_spill] sm:$0xff] %v9081_v39  ;;  %v2509_v8 = vor.u32 %v2508_v42, %v2505_v11  ;;  %v6315_v11 = vld [vmem:[%s7632_s24 + $0x118] sm:$0xf] }
 0x1c7   : > { %v1964_v0 = vsel %vm7643_vm2, %v1959_v53, %v9018_v46  ;;  %v3304_v10 = vrot.slane %v6376_v47, 5  ;;  %v3307_v26 = vrot.slane %v9057_v40, 5  ;;  %v9092_v37 = vsel %vm5096_vm8, %v8897_v4, %v8680_v20 }
 0x1c8   : > { %v4167_v1 = vunpack.c.l.b16 %v1964_v0  ;;  %v2519_v62 = vor.u32 %v2518_v13, %v2514_v16  ;;  %v9094_v14 = vrot.slane %v2522_v36, 5  ;;  %v2510_v30 = vrot.slane %v2509_v8, 4  ;;  %v7348_v0 = vld [vmem:[%s7632_s24 + $0x20] sm:$0xf] }
 0x1c9   : > { %v3305_v46 = vsel %vm8016_vm5, %v6471_v22, %v3304_v10  ;;  %v3306_v47 = vrot.slane %v3304_v10, 4  ;;  %v11699_v20 = vrot.slane %v9031_v58, 5  ;;  %v2221_v8 = vrot.slane %v7348_v0, 5  ;;  %v6316_v22 = vld [vmem:[%s7632_s24 + $0x11c] sm:$0xf]  ;;  %v9109_v10 = vpop.permute.xlu1 %4102 }
 0x1ca   : > { %v4206_v53 = vpack.c.b16 %v4167_v1, %v4166_v52  ;;  %v2520_v42 = vrot.slane %v2519_v62, 4  ;;  %v4774_v17 = vunpack.c.l.b16 %v3305_v46  ;;  %v2515_v13 = vsel %vm7643_vm2, %v2510_v30, %v2514_v16 }
 0x1cb   : > { %v2220_v4 = vrot.slane %v11699_v20, 4  ;;  %v3308_v36 = vsel %vm8016_vm5, %v3306_v47, %v3307_v26  ;;  %v2224_v39 = vrot.slane %v7349_v18, 5  ;;  %v4614_v52 = vunpack.c.l.b16 %v2515_v13  ;;  %v6317_v47 = vld [vmem:[%s7632_s24 + $0x120] sm:$0xf] }
 0x1cc   : > { %4262 = vrot.lane.b32.xlu0 %v4206_v53, %s7523_s6  ;;  %v2525_v58 = vsel %vm7643_vm2, %v2520_v42, %v9094_v14  ;;  %v4775_v1 = vunpack.c.l.b16 %v3308_v36  ;;  %v1986_v16 = vshrl.u32 %v6315_v11, 16  ;;  %v2223_v46 = vrot.slane %v2221_v8, 4 }
 0x1cd   : > { %v4615_v62 = vunpack.c.l.b16 %v2525_v58  ;;  %v2222_v30 = vsel %vm8016_vm5, %v2220_v4, %v2221_v8  ;;  %v1989_v18 = vshll.u32 %v6315_v11, 16  ;;  %v9121_v20 = vsel %vm5031_vm7, %v8782_v31, %v8707_v23  ;;  %v6984_v11 = vld [vmem:[%s7632_s24 + $0x28] sm:$0xff] }
 0x1ce   : > { %v4838_v53 = vpack.c.b16 %v4775_v1, %v4774_v17  ;;  %v1988_v0 = vrot.slane %v1986_v16, 4  ;;  %v1995_v27 = vshll.u32 %v6316_v22, 16  ;;  %v2225_v13 = vsel %vm8016_vm5, %v2223_v46, %v2224_v39  ;;  %v9127_v17 = vpop.permute.xlu2 %4218  ;;  %v9129_v1 = vpop.permute.xlu0 %4100 }
 0x1cf   : > { %v4678_v42 = vpack.c.b16 %v4615_v62, %v4614_v52  ;;  %v1991_v36 = vrot.slane %v1989_v18, 5  ;;  %v1999_v58 = vshrl.u32 %v6316_v22, 16  ;;  %v4280_v4 = vunpack.c.l.b16 %v2222_v30  ;;  %11700 = vst [vmem:[#allocation56_spill] sm:$0xff] %v9129_v1  ;;  %v6378_v62 = vld [vmem:[%s7632_s24 + $0x34] sm:$0xf] }
 0x1d0   : > { %4870 = vrot.lane.b32.xlu2 %v4838_v53, %s7525_s9  ;;  %v4281_v8 = vunpack.c.l.b16 %v2225_v13  ;;  %v1997_v23 = vrot.slane %v1995_v27, 5  ;;  %v2005_v31 = vshll.u32 %v6317_v47, 16  ;;  %v9134_v39 = vsel %vm5096_vm8, %v8937_v29, %v8719_v15  ;;  %v6318_v27 = vld [vmem:[%s7632_s24 + $0x124] sm:$0xf]  ;;  %v6439_v18 = vld [vmem:[%s7632_s24 + $0x38] sm:$0x1] }
 0x1d1   : > { %4710 = vrot.lane.b32.xlu1 %v4678_v42, %s7526_s10  ;;  %v1992_v52 = vor.u32 %v1991_v36, %v1988_v0  ;;  %v2001_v16 = vrot.slane %v1999_v58, 4  ;;  %v9143_v30 = vsel %vm5096_vm8, %v8769_v55, %v8755_v56  ;;  %v3309_v15 = vrot.slane %v3307_v26, 4  ;;  %v6985_v42 = vld [vmem:[%s7632_s24 + $0x30] sm:$0xff]  ;;  %v9149_v58 = vld [vmem:[%s7632_s24 + $0x128] sm:$0x1] }
 0x1d2   : > { %v2007_v46 = vrot.slane %v2005_v31, 5  ;;  %v3310_v29 = vrot.slane %v6378_v62, 5  ;;  %v3313_v22 = vrot.slane %v6439_v18, 5  ;;  %v2009_v1 = vshrl.u32 %v6317_v47, 16 }
 0x1d3   : > { %v1993_v53 = vrot.slane %v1992_v52, 4  ;;  %v2002_v13 = vor.u32 %v2001_v16, %v1997_v23  ;;  %v4343_v0 = vpack.c.b16 %v4281_v8, %v4280_v4  ;;  %v2015_v60 = vshll.u32 %v6318_v27, 16  ;;  %v9155_v52 = vpop.permute.xlu1 %4108 }
 0x1d4   : > { %4550 = vrot.lane.b32.xlu0 %v6984_v11, %s7527_s11  ;;  %v3312_v36 = vrot.slane %v3310_v29, 4  ;;  %v2019_v48 = vshrl.u32 %v6318_v27, 16  ;;  %v3311_v26 = vsel %vm8016_vm5, %v3309_v15, %v3310_v29  ;;  %v2011_v31 = vrot.slane %v2009_v1, 4  ;;  %11701 = vst [vmem:[#allocation57_spill] sm:$0xff] %v9155_v52 }
 0x1d5   : > { %v1998_v56 = vsel %vm7643_vm2, %v1993_v53, %v1997_v23  ;;  %v2003_v55 = vrot.slane %v2002_v13, 4  ;;  %v2017_v4 = vrot.slane %v2015_v60, 5  ;;  %v9162_v16 = vsel %vm5096_vm8, %v8982_v35, %v8757_v51 }
 0x1d6   : > { %v4170_v47 = vunpack.c.l.b16 %v1998_v56  ;;  %v3314_v11 = vsel %vm8016_vm5, %v3312_v36, %v3313_v22  ;;  %v2021_v8 = vrot.slane %v2019_v48, 4  ;;  %v2012_v27 = vor.u32 %v2011_v31, %v2007_v46 }
 0x1d7   : > { %v2008_v23 = vsel %vm7643_vm2, %v2003_v55, %v2007_v46  ;;  %v2025_v15 = vshll.u32 %v9149_v58, 16  ;;  %v4776_v29 = vunpack.c.l.b16 %v3311_v26  ;;  %v2526_v22 = vshrl.u32 %v9057_v40, 16  ;;  %v9170_v55 = vpop.permute.xlu2 %4224 }
 0x1d8   : > { %4552 = vrot.lane.b32.xlu2 %v6985_v42, %s7527_s11  ;;  %v4171_v1 = vunpack.c.l.b16 %v2008_v23  ;;  %v2022_v53 = vor.u32 %v2021_v8, %v2017_v4  ;;  %v4777_v60 = vunpack.c.l.b16 %v3314_v11  ;;  %v2013_v48 = vrot.slane %v2012_v27, 4  ;;  %v9172_v42 = vpop.permute.xlu0 %4106  ;;  %v6347_v11 = vld [vmem:[%s7632_s24 + $0x64] sm:$0xe]  ;;  %v6344_v27 = vld [vmem:[%s7632_s24 + $0x28] sm:$0xe] }
 0x1d9   : > { %4376 = vrot.lane.b32.xlu1 %v4343_v0, %s7524_s8  ;;  %v2027_v51 = vrot.slane %v2025_v15, 5  ;;  %v2532_v35 = vshll.u32 %v6378_v62, 16  ;;  %v2528_v46 = vrot.slane %v2526_v22, 4  ;;  %v2536_v56 = vshrl.u32 %v6378_v62, 16  ;;  %11702 = vst [vmem:[#allocation58_spill] sm:$0xff] %v9172_v42 }
 0x1da   : > { %v4208_v13 = vpack.c.b16 %v4171_v1, %v4170_v47  ;;  %v2023_v36 = vrot.slane %v2022_v53, 4  ;;  %v9177_v40 = vsel %vm5096_vm8, %v8798_v21, %v8792_v12  ;;  %v2018_v0 = vsel %vm7643_vm2, %v2013_v48, %v2017_v4  ;;  %v7350_v48 = vld [vmem:[%s7632_s24 + $0x68] sm:$0xf] }
 0x1db   : > { %v2534_v26 = vrot.slane %v2532_v35, 5  ;;  %v2542_v31 = vshll.u32 %v6439_v18, 16  ;;  %v4172_v47 = vunpack.c.l.b16 %v2018_v0  ;;  %v2529_v8 = vor.u32 %v2528_v46, %v9094_v14  ;;  %v9199_v35 = vld [vmem:[%s7632_s24 + $0x6c] sm:$0xf] }
 0x1dc   : > { %4266 = vrot.lane.b32.xlu0 %v4208_v13, %s7523_s6  ;;  %v2028_v62 = vsel %vm7643_vm2, %v2023_v36, %v2027_v51  ;;  %v2538_v23 = vrot.slane %v2536_v56, 4  ;;  %v9190_v12 = vsel %vm5096_vm8, %v9003_v5, %v8806_v24  ;;  %v9195_v21 = vsel %vm5096_vm8, %v8851_v7, %v8817_v33  ;;  %v9202_v13 = vpop.permute.xlu1 %4114  ;;  %v9208_v36 = vld [vmem:[%s7632_s24 + $0x30] sm:$0xf] }
 0x1dd   : > { %v4839_v18 = vpack.c.b16 %v4777_v60, %v4776_v29  ;;  %v4173_v4 = vunpack.c.l.b16 %v2028_v62  ;;  %v2530_v15 = vrot.slane %v2529_v8, 4  ;;  %v2544_v53 = vrot.slane %v2542_v31, 5  ;;  %11703 = vst [vmem:[#allocation59_spill] sm:$0xff] %v9202_v13  ;;  %v7352_v29 = vld [vmem:[%s7632_s24 + $0x2c] sm:$0xf] }
 0x1de   : > { %v2539_v1 = vor.u32 %v2538_v23, %v2534_v26  ;;  %v6363_v14 = vrot.slane %v6347_v11, 9  ;;  %v2267_v51 = vrot.slane %v7350_v48, 5  ;;  %v11597_v24 = vrot.slane %v9199_v35, 5  ;;  %v6379_v11 = vld [vmem:[%s7632_s24 + $0x3c] sm:$0xf] }
 0x1df   : > { %v4209_v22 = vpack.c.b16 %v4173_v4, %v4172_v47  ;;  %v6360_v5 = vrot.slane %v6344_v27, 9  ;;  %v2535_v33 = vsel %vm7643_vm2, %v2530_v15, %v2534_v26  ;;  %v2228_v60 = vrot.slane %v7352_v29, 5  ;;  %v9222_v27 = vld [vmem:[%s7632_s24 + $0x40] sm:$0xf]  ;;  %v6391_v48 = vld [vmem:[%s7632_s24 + $0x78] sm:$0xf] }
 0x1e0   : > { %v2540_v7 = vrot.slane %v2539_v1, 4  ;;  %v11598_v46 = vrot.slane %v9208_v36, 5  ;;  %v4616_v0 = vunpack.c.l.b16 %v2535_v33  ;;  %v2268_v31 = vsel %vm8016_vm5, %v6363_v14, %v2267_v51 }
 0x1e1   : > { %4872 = vrot.lane.b32.xlu1 %v4839_v18, %s7525_s9  ;;  %4268 = vrot.lane.b32.xlu2 %v4209_v22, %s7523_s6  ;;  %v2269_v26 = vrot.slane %v2267_v51, 4  ;;  %v4294_v47 = vunpack.c.l.b16 %v2268_v31  ;;  %v2229_v8 = vsel %vm8016_vm5, %v6360_v5, %v2228_v60  ;;  %v2230_v23 = vrot.slane %v2228_v60, 4  ;;  %v9247_v51 = vpop.permute.xlu2 %4230  ;;  %v9249_v5 = vpop.permute.xlu0 %4112 }
 0x1e2   : > { %v2545_v62 = vsel %vm7643_vm2, %v2540_v7, %v2544_v53  ;;  %v9228_v4 = vsel %vm5096_vm8, %v8825_v41, %v8828_v6  ;;  %v9235_v53 = vld [vmem:[%s7632_s24 + $0x44] sm:$0xf]  ;;  %v9240_v14 = vsel %vm5096_vm8, %v9053_v19, %v8846_v50  ;;  %v2547_v6 = vshrl.u32 %v6379_v11, 16  ;;  %11704 = vst [vmem:[#allocation60_spill] sm:$0xff] %v9249_v5  ;;  %v6986_v7 = vld [vmem:[%s7632_s24 + $0x3c] sm:$0xff] }
 0x1e3   : > { %v4617_v15 = vunpack.c.l.b16 %v2545_v62  ;;  %v2271_v1 = vsel %vm8016_vm5, %v2269_v26, %v11597_v24  ;;  %v2232_v41 = vsel %vm8016_vm5, %v2230_v23, %v11598_v46  ;;  %v4282_v29 = vunpack.c.l.b16 %v2229_v8  ;;  %v6392_v19 = vld [vmem:[%s7632_s24 + $0x7c] sm:$0xf]  ;;  %v9257_v23 = vld [vmem:[%s7632_s24 + $0x80] sm:$0xf] }
 0x1e4   : > { %v4295_v22 = vunpack.c.l.b16 %v2271_v1  ;;  %v2550_v60 = vshll.u32 %v6379_v11, 16  ;;  %v2556_v50 = vshll.u32 %v9222_v27, 16  ;;  %v2549_v26 = vrot.slane %v2547_v6, 4 }
 0x1e5   : > { %v4679_v33 = vpack.c.b16 %v4617_v15, %v4616_v0  ;;  %v2560_v62 = vshrl.u32 %v9222_v27, 16  ;;  %v2566_v1 = vshll.u32 %v9235_v53, 16  ;;  %v4283_v18 = vunpack.c.l.b16 %v2232_v41 }
 0x1e6   : > { %v4350_v31 = vpack.c.b16 %v4295_v22, %v4294_v47  ;;  %v2552_v56 = vrot.slane %v2550_v60, 5  ;;  %v2558_v0 = vrot.slane %v2556_v50, 5  ;;  %v2679_v15 = vshrl.u32 %v6391_v48, 16  ;;  %v9269_v60 = vpop.permute.xlu1 %4216 }
 0x1e7   : > { %4712 = vrot.lane.b32.xlu0 %v4679_v33, %s7526_s10  ;;  %v9263_v11 = vsel %vm5096_vm8, %v8877_v59, %v8856_v63  ;;  %v2562_v47 = vrot.slane %v2560_v62, 4  ;;  %v2682_v8 = vshll.u32 %v6391_v48, 16  ;;  %v2688_v22 = vshll.u32 %v6392_v19, 16  ;;  %v6459_v33 = vld [vmem:[%s7632_s24 + $0x78] sm:$0xe] }
 0x1e8   : > { %v2553_v6 = vor.u32 %v2552_v56, %v2549_v26  ;;  %v2681_v24 = vrot.slane %v2679_v15, 4  ;;  %v2692_v46 = vshrl.u32 %v6392_v19, 16  ;;  %v2698_v41 = vshll.u32 %v9257_v23, 16 }
 0x1e9   : > { %4390 = vrot.lane.b32.xlu1 %v4350_v31, %s7524_s8  ;;  %4554 = vrot.lane.b32.xlu2 %v6986_v7, %s7527_s11  ;;  %v2563_v50 = vor.u32 %v2562_v47, %v2558_v0  ;;  %v9271_v13 = vrot.slane %v2566_v1, 5  ;;  %v2684_v63 = vrot.slane %v2682_v8, 5  ;;  %v2690_v59 = vrot.slane %v2688_v22, 5  ;;  %v9284_v8 = vpop.permute.xlu2 %4236  ;;  %v9286_v22 = vpop.permute.xlu0 %4214 }
 0x1ea   : > { %v4344_v62 = vpack.c.b16 %v4283_v18, %v4282_v29  ;;  %v2554_v5 = vrot.slane %v2553_v6, 4  ;;  %v2694_v31 = vrot.slane %v2692_v46, 4  ;;  %v9274_v56 = vrot.slane %v2698_v41, 5 }
 0x1eb   : > { %v2564_v52 = vrot.slane %v2563_v50, 4  ;;  %v2685_v7 = vor.u32 %v2684_v63, %v2681_v24  ;;  %v6475_v26 = vrot.slane %v6459_v33, 9  ;;  %v3356_v57 = vrot.slane %v6392_v19, 5 }
 0x1ec   : > { %v2559_v15 = vsel %vm7643_vm2, %v2554_v5, %v2558_v0  ;;  %v2695_v42 = vor.u32 %v2694_v31, %v2690_v59  ;;  %v11600_v1 = vrot.slane %v9257_v23, 5  ;;  %v11705_v24 = vrot.slane %v9208_v36, 5  ;;  %v11707_v36 = vld [vmem:[#allocation49_spill] sm:$0xff] }
 0x1ed   : > { %v2569_v47 = vsel %vm7643_vm2, %v2564_v52, %v9271_v13  ;;  %v4618_v18 = vunpack.c.l.b16 %v2559_v15  ;;  %v2686_v46 = vrot.slane %v2685_v7, 4  ;;  %v3357_v0 = vsel %vm8016_vm5, %v6475_v26, %v3356_v57  ;;  %v11706_v52 = vld [vmem:[#allocation46_spill] sm:$0xff] }
 0x1ee   : > { %v2233_v29 = vrot.slane %v11705_v24, 4  ;;  %v4619_v5 = vunpack.c.l.b16 %v2569_v47  ;;  %v2696_v19 = vrot.slane %v2695_v42, 4  ;;  %v3358_v6 = vrot.slane %v3356_v57, 4  ;;  %v7354_v42 = vld [vmem:[%s7632_s24 + $0x34] sm:$0xf] }
 0x1ef   : > { %4378 = vrot.lane.b32.xlu0 %v4344_v62, %s7524_s8  ;;  %v9294_v41 = vsel %vm5096_vm8, %v11706_v52, %v8882_v45  ;;  %v9299_v33 = vsel %vm5096_vm8, %v9064_v61, %v11707_v36  ;;  %v2691_v50 = vsel %vm7643_vm2, %v2686_v46, %v2690_v59  ;;  %v2234_v63 = vrot.slane %v7354_v42, 5  ;;  %v6456_v62 = vld [vmem:[%s7632_s24 + $0x3c] sm:$0xe]  ;;  %v7355_v46 = vld [vmem:[%s7632_s24 + $0x38] sm:$0x1]  ;;  %v9318_v52 = vpop.permute.xlu1 %4222 }
 0x1f0   : > { %11708 = vst [vmem:[#allocation46_spill] sm:$0xff] %v9299_v33  ;;  %v4680_v31 = vpack.c.b16 %v4619_v5, %v4618_v18  ;;  %v2701_v57 = vsel %vm7643_vm2, %v2696_v19, %v9274_v56  ;;  %v4630_v7 = vunpack.c.l.b16 %v2691_v50  ;;  %v3360_v45 = vsel %vm8016_vm5, %v3358_v6, %v11600_v1  ;;  %v6992_v59 = vld [vmem:[%s7632_s24 + $0x78] sm:$0xff] }
 0x1f1   : > { %v4631_v61 = vunpack.c.l.b16 %v2701_v57  ;;  %v4790_v26 = vunpack.c.l.b16 %v3357_v0  ;;  %v4791_v15 = vunpack.c.l.b16 %v3360_v45  ;;  %v2236_v47 = vrot.slane %v2234_v63, 4  ;;  %v11709_v36 = vld [vmem:[#allocation50_spill] sm:$0xff]  ;;  %v11711_v57 = vld [vmem:[#allocation48_spill] sm:$0xff]  ;;  %v11713_v6 = vld [vmem:[#allocation23_spill] sm:$0xff] }
 0x1f2   : > { %4714 = vrot.lane.b32.xlu1 %v4680_v31, %s7526_s10  ;;  %v2235_v18 = vsel %vm8016_vm5, %v2233_v29, %v2234_v63  ;;  %v2237_v24 = vrot.slane %v7355_v46, 5  ;;  %v6472_v5 = vrot.slane %v6456_v62, 9  ;;  %v3317_v19 = vrot.slane %v9222_v27, 5  ;;  %v11710_v31 = vld [vmem:[#allocation51_spill] sm:$0xff]  ;;  %v11716_v29 = vld [vmem:[#allocation53_spill] sm:$0xff] }
 0x1f3   : > { %v9323_v0 = vsel %vm5096_vm8, %v8923_v9, %v11709_v36  ;;  %v4686_v50 = vpack.c.b16 %v4631_v61, %v4630_v7  ;;  %v3320_v42 = vrot.slane %v9235_v53, 5  ;;  %v9335_v9 = vsel %vm5096_vm8, %v11711_v57, %v11710_v31  ;;  %v9341_v36 = vld [vmem:[%s7632_s24 + $0x84] sm:$0xf]  ;;  %v9348_v57 = vld [vmem:[%s7632_s24 + $0x88] sm:$0x1] }
 0x1f4   : > { %v2238_v63 = vsel %vm8016_vm5, %v2236_v47, %v2237_v24  ;;  %v3318_v27 = vsel %vm8016_vm5, %v6472_v5, %v3317_v19  ;;  %v3319_v62 = vrot.slane %v3317_v19, 4  ;;  %v4284_v7 = vunpack.c.l.b16 %v2235_v18  ;;  %v7356_v19 = vld [vmem:[%s7632_s24 + $0x70] sm:$0xf] }
 0x1f5   : > { %4726 = vrot.lane.b32.xlu2 %v4686_v50, %s7526_s10  ;;  %v4285_v45 = vunpack.c.l.b16 %v2238_v63  ;;  %v11712_v61 = vrot.slane %v9199_v35, 5  ;;  %v4846_v47 = vpack.c.b16 %v4791_v15, %v4790_v26  ;;  %v4778_v5 = vunpack.c.l.b16 %v3318_v27  ;;  %v7357_v63 = vld [vmem:[%s7632_s24 + $0x74] sm:$0x1]  ;;  %v9357_v26 = vpop.permute.xlu2 %4242  ;;  %v9359_v15 = vpop.permute.xlu0 %4220 }
 0x1f6   : > { %v3321_v24 = vsel %vm8016_vm5, %v3319_v62, %v3320_v42  ;;  %v2273_v31 = vrot.slane %v7356_v19, 5  ;;  %v9353_v18 = vsel %vm5096_vm8, %v8964_v38, %v11713_v6  ;;  %11714 = vst [vmem:[#allocation49_spill] sm:$0xff] %v9357_v26  ;;  %v2702_v62 = vshrl.u32 %v9257_v23, 16  ;;  %v11717_v35 = vld [vmem:[#allocation22_spill] sm:$0xff]  ;;  %v6382_v26 = vld [vmem:[%s7632_s24 + $0x48] sm:$0xf] }
 0x1f7   : > { %v2272_v46 = vrot.slane %v11712_v61, 4  ;;  %4566 = vrot.lane.b32.xlu0 %v6992_v59, %s7527_s11  ;;  %v4779_v50 = vunpack.c.l.b16 %v3321_v24  ;;  %v2276_v61 = vrot.slane %v7357_v63, 5  ;;  %v2708_v19 = vshll.u32 %v9341_v36, 16 }
 0x1f8   : > { %v2275_v27 = vrot.slane %v2273_v31, 4  ;;  %v9368_v38 = vsel %vm5096_vm8, %v9121_v20, %v8975_v3  ;;  %v4345_v6 = vpack.c.b16 %v4285_v45, %v4284_v7  ;;  %v2712_v24 = vshrl.u32 %v9341_v36, 16 }
 0x1f9   : > { %v2274_v59 = vsel %vm8016_vm5, %v2272_v46, %v2273_v31  ;;  %11715 = vst [vmem:[#allocation50_spill] sm:$0xff] %v9368_v38  ;;  %v2718_v63 = vshll.u32 %v9348_v57, 16  ;;  %v9375_v46 = vsel %vm5096_vm8, %v11717_v35, %v11716_v29  ;;  %v4840_v31 = vpack.c.b16 %v4779_v50, %v4778_v5  ;;  %v6440_v38 = vld [vmem:[%s7632_s24 + $0x4c] sm:$0x1]  ;;  %v9384_v35 = vpop.permute.xlu1 %4228 }
 0x1fa   : > { %4886 = vrot.lane.b32.xlu1 %v4846_v47, %s7525_s9  ;;  %v2704_v48 = vrot.slane %v2702_v62, 4  ;;  %v2710_v1 = vrot.slane %v2708_v19, 5  ;;  %v2277_v3 = vsel %vm8016_vm5, %v2275_v27, %v2276_v61  ;;  %v4296_v20 = vunpack.c.l.b16 %v2274_v59  ;;  %v6987_v59 = vld [vmem:[%s7632_s24 + $0x44] sm:$0xff] }
 0x1fb   : > { %v2714_v7 = vrot.slane %v2712_v24, 4  ;;  %v2720_v45 = vrot.slane %v2718_v63, 5  ;;  %v3322_v33 = vrot.slane %v3320_v42, 4  ;;  %v3323_v34 = vrot.slane %v6382_v26, 5 }
 0x1fc   : > { %v2705_v49 = vor.u32 %v2704_v48, %v9274_v56  ;;  %v2570_v29 = vshrl.u32 %v9235_v53, 16  ;;  %v3326_v5 = vrot.slane %v6440_v38, 5  ;;  %v2576_v50 = vshll.u32 %v6382_v26, 16 }
 0x1fd   : > { %4380 = vrot.lane.b32.xlu2 %v4345_v6, %s7524_s8  ;;  %v2715_v47 = vor.u32 %v2714_v7, %v2710_v1  ;;  %v2580_v61 = vshrl.u32 %v6382_v26, 16  ;;  %v4297_v27 = vunpack.c.l.b16 %v2277_v3  ;;  %v3325_v48 = vrot.slane %v3323_v34, 4 }
 0x1fe   : > { %v2706_v62 = vrot.slane %v2705_v49, 4  ;;  %v2572_v56 = vrot.slane %v2570_v29, 4  ;;  %v2578_v53 = vrot.slane %v2576_v50, 5  ;;  %v3324_v24 = vsel %vm8016_vm5, %v3322_v33, %v3323_v34  ;;  %v9401_v50 = vpop.permute.xlu0 %4226 }
 0x1ff   : > { %4874 = vrot.lane.b32.xlu0 %v4840_v31, %s7525_s9  ;;  %v2716_v42 = vrot.slane %v2715_v47, 4  ;;  %v2582_v19 = vrot.slane %v2580_v61, 4  ;;  %v2586_v63 = vshll.u32 %v6440_v38, 16  ;;  %v6993_v31 = vld [vmem:[%s7632_s24 + $0x80] sm:$0xff]  ;;  %v3327_v7 = vsel %vm8016_vm5, %v3325_v48, %v3326_v5  ;;  %v9399_v47 = vpop.permute.xlu2 %4248 }
 0x200   : > { %v2711_v6 = vsel %vm7643_vm2, %v2706_v62, %v2710_v1  ;;  %v2573_v26 = vor.u32 %v2572_v56, %v9271_v13  ;;  %v6351_v1 = vld [vmem:[%s7632_s24 + $0xb4] sm:$0xe]  ;;  %v4351_v34 = vpack.c.b16 %v4297_v27, %v4296_v20  ;;  %v3365_v62 = vrot.slane %v9348_v57, 5 }
 0x201   : > { %v2721_v49 = vsel %vm7643_vm2, %v2716_v42, %v2720_v45  ;;  %v4632_v3 = vunpack.c.l.b16 %v2711_v6  ;;  %v2583_v29 = vor.u32 %v2582_v19, %v2578_v53  ;;  %v2588_v38 = vrot.slane %v2586_v63, 5  ;;  %v7358_v6 = vld [vmem:[%s7632_s24 + $0xb8] sm:$0xf] }
 0x202   : > { %4556 = vrot.lane.b32.xlu1 %v6987_v59, %s7527_s11  ;;  %v4633_v13 = vunpack.c.l.b16 %v2721_v49  ;;  %v2574_v33 = vrot.slane %v2573_v26, 4  ;;  %v11718_v45 = vrot.slane %v9257_v23, 5  ;;  %v4780_v5 = vunpack.c.l.b16 %v3324_v24  ;;  %v9415_v23 = vld [vmem:[%s7632_s24 + $0xbc] sm:$0xf]  ;;  %v9422_v49 = vpop.permute.xlu1 %4234 }
 0x203   : > { %v2584_v48 = vrot.slane %v2583_v29, 4  ;;  %v4781_v56 = vunpack.c.l.b16 %v3327_v7  ;;  %v6367_v19 = vrot.slane %v6351_v1, 9  ;;  %v2319_v59 = vrot.slane %v7358_v6, 5  ;;  %v11719_v7 = vld [vmem:[#allocation55_spill] sm:$0xff]  ;;  %v11720_v29 = vld [vmem:[#allocation32_spill] sm:$0xff] }
 0x204   : > { %v3361_v61 = vrot.slane %v11718_v45, 4  ;;  %v2579_v42 = vsel %vm7643_vm2, %v2574_v33, %v2578_v53  ;;  %v4687_v20 = vpack.c.b16 %v4633_v13, %v4632_v3  ;;  %v11603_v57 = vrot.slane %v9415_v23, 5  ;;  %v6463_v3 = vld [vmem:[%s7632_s24 + $0xc8] sm:$0xe] }
 0x205   : > { %4568 = vrot.lane.b32.xlu2 %v6993_v31, %s7527_s11  ;;  %v2589_v27 = vsel %vm7643_vm2, %v2584_v48, %v2588_v38  ;;  %v3362_v24 = vrot.slane %v9341_v36, 5  ;;  %v4620_v53 = vunpack.c.l.b16 %v2579_v42  ;;  %v2320_v63 = vsel %vm8016_vm5, %v6367_v19, %v2319_v59  ;;  %v11721_v36 = vld [vmem:[#allocation29_spill] sm:$0xff] }
 0x206   : > { %v4621_v26 = vunpack.c.l.b16 %v2589_v27  ;;  %v2321_v31 = vrot.slane %v2319_v59, 4  ;;  %v9428_v1 = vsel %vm5096_vm8, %v11720_v29, %v11719_v7  ;;  %v9438_v13 = vsel %vm5161_vm9, %v9195_v21, %v9127_v17  ;;  %v6408_v42 = vld [vmem:[%s7632_s24 + $0xcc] sm:$0xf]  ;;  %v9455_v19 = vld [vmem:[%s7632_s24 + $0xd0] sm:$0xf]  ;;  %v9469_v7 = vpop.permute.xlu0 %4232 }
 0x207   : > { %4392 = vrot.lane.b32.xlu0 %v4351_v34, %s7524_s8  ;;  %v9433_v34 = vsel %vm5096_vm8, %v11721_v36, %v9109_v10  ;;  %v3364_v33 = vrot.slane %v3362_v24, 4  ;;  %v9443_v38 = vsel %vm5161_vm9, %v9263_v11, %v9170_v55  ;;  %v4841_v45 = vpack.c.b16 %v4781_v56, %v4780_v5  ;;  %v6345_v11 = vld [vmem:[%s7632_s24 + $0x3c] sm:$0xe]  ;;  %v7360_v27 = vld [vmem:[%s7632_s24 + $0x40] sm:$0xf] }
 0x208   : > { %11722 = vst [vmem:[#allocation51_spill] sm:$0xff] %v9443_v38  ;;  %v2323_v10 = vsel %vm8016_vm5, %v2321_v31, %v11603_v57  ;;  %v3363_v48 = vsel %vm8016_vm5, %v3361_v61, %v3362_v24  ;;  %v4310_v17 = vunpack.c.l.b16 %v2320_v63  ;;  %v6479_v6 = vrot.slane %v6463_v3, 9  ;;  %v6407_v61 = vld [vmem:[%s7632_s24 + $0xc8] sm:$0xf]  ;;  %v9467_v3 = vpop.permute.xlu2 %4254  ;;  %v9485_v36 = vld [vmem:[%s7632_s24 + $0x44] sm:$0xf] }
 0x209   : > { %v3366_v21 = vsel %vm8016_vm5, %v3364_v33, %v3365_v62  ;;  %v3408_v55 = vrot.slane %v6408_v42, 5  ;;  %v4681_v5 = vpack.c.b16 %v4621_v26, %v4620_v53  ;;  %v4311_v56 = vunpack.c.l.b16 %v2323_v10  ;;  %11723 = vst [vmem:[#allocation48_spill] sm:$0xff] %v9467_v3  ;;  %v6395_v57 = vld [vmem:[%s7632_s24 + $0x8c] sm:$0xf]  ;;  %v9563_v38 = vld [vmem:[%s7632_s24 + $0x58] sm:$0xf] }
 0x20a   : > { %4728 = vrot.lane.b32.xlu1 %v4687_v20, %s7526_s10  ;;  %v11604_v59 = vrot.slane %v9455_v19, 5  ;;  %v2241_v31 = vrot.slane %v7360_v27, 5  ;;  %v9465_v24 = vsel %vm5161_vm9, %v9323_v0, %v9247_v51  ;;  %v4792_v62 = vunpack.c.l.b16 %v3363_v48 }
 0x20b   : > { %v4793_v63 = vunpack.c.l.b16 %v3366_v21  ;;  %v3410_v20 = vrot.slane %v3408_v55, 4  ;;  %v9474_v53 = vsel %vm5161_vm9, %v9079_v43, %v9269_v60  ;;  %v9479_v26 = vsel %vm5161_vm9, %v9353_v18, %v9284_v8 }
 0x20c   : > { %11724 = vst [vmem:[#allocation23_spill] sm:$0xff] %v9479_v26  ;;  %v3409_v51 = vsel %vm8016_vm5, %v6479_v6, %v3408_v55  ;;  %v6361_v0 = vrot.slane %v6345_v11, 9  ;;  %v2243_v29 = vrot.slane %v2241_v31, 4  ;;  %v11605_v33 = vrot.slane %v9485_v36, 5  ;;  %v6348_v11 = vld [vmem:[%s7632_s24 + $0x78] sm:$0xe] }
 0x20d   : > { %4876 = vrot.lane.b32.xlu2 %v4841_v45, %s7525_s9  ;;  %v2855_v10 = vshrl.u32 %v6407_v61, 16  ;;  %v2858_v43 = vshll.u32 %v6407_v61, 16  ;;  %v4358_v60 = vpack.c.b16 %v4311_v56, %v4310_v17  ;;  %v3412_v8 = vsel %vm8016_vm5, %v3410_v20, %v11604_v59  ;;  %v9497_v61 = vpop.permute.xlu1 %4240  ;;  %v7000_v20 = vld [vmem:[%s7632_s24 + $0xc8] sm:$0xff] }
 0x20e   : > { %v2864_v18 = vshll.u32 %v6408_v42, 16  ;;  %v2868_v48 = vshrl.u32 %v6408_v42, 16  ;;  %v4847_v45 = vpack.c.b16 %v4793_v63, %v4792_v62  ;;  %v2874_v55 = vshll.u32 %v9455_v19, 16 }
 0x20f   : > { %4716 = vrot.lane.b32.xlu0 %v4681_v5, %s7526_s10  ;;  %v2857_v21 = vrot.slane %v2855_v10, 4  ;;  %v2860_v6 = vrot.slane %v2858_v43, 5  ;;  %v4806_v27 = vunpack.c.l.b16 %v3409_v51  ;;  %v2242_v5 = vsel %vm8016_vm5, %v6361_v0, %v2241_v31  ;;  %v7362_v0 = vld [vmem:[%s7632_s24 + $0x7c] sm:$0xf]  ;;  %v9510_v43 = vld [vmem:[%s7632_s24 + $0x80] sm:$0xf] }
 0x210   : > { %v2866_v17 = vrot.slane %v2864_v18, 5  ;;  %v2870_v56 = vrot.slane %v2868_v48, 4  ;;  %v4807_v59 = vunpack.c.l.b16 %v3412_v8  ;;  %v2245_v42 = vsel %vm8016_vm5, %v2243_v29, %v11605_v33 }
 0x211   : > { %v2861_v62 = vor.u32 %v2860_v6, %v2857_v21  ;;  %v9505_v63 = vrot.slane %v2874_v55, 5  ;;  %v6364_v31 = vrot.slane %v6348_v11, 9  ;;  %v2280_v10 = vrot.slane %v7362_v0, 5 }
 0x212   : > { %4406 = vrot.lane.b32.xlu1 %v4358_v60, %s7524_s8  ;;  %v2871_v51 = vor.u32 %v2870_v56, %v2866_v17  ;;  %v11606_v18 = vrot.slane %v9510_v43, 5  ;;  %v9516_v8 = vsel %vm5161_vm9, %v9143_v30, %v9286_v22  ;;  %v9521_v29 = vsel %vm5161_vm9, %v9092_v37, %v9318_v52  ;;  %v9524_v56 = vld [vmem:[%s7632_s24 + $0x90] sm:$0xf]  ;;  %v9531_v37 = vpop.permute.xlu0 %4238 }
 0x213   : > { %11725 = vst [vmem:[#allocation53_spill] sm:$0xff] %v9521_v29  ;;  %v2862_v60 = vrot.slane %v2861_v62, 4  ;;  %v2723_v48 = vshrl.u32 %v6395_v57, 16  ;;  %v4286_v21 = vunpack.c.l.b16 %v2242_v5  ;;  %v4287_v6 = vunpack.c.l.b16 %v2245_v42  ;;  %v9536_v5 = vld [vmem:[%s7632_s24 + $0x94] sm:$0xf] }
 0x214   : > { %v2872_v55 = vrot.slane %v2871_v51, 4  ;;  %v2282_v11 = vrot.slane %v2280_v10, 4  ;;  %v4854_v0 = vpack.c.b16 %v4807_v59, %v4806_v27  ;;  %v9529_v22 = vpop.permute.xlu2 %4260  ;;  %v2281_v52 = vsel %vm8016_vm5, %v6364_v31, %v2280_v10  ;;  %v6384_v10 = vld [vmem:[%s7632_s24 + $0x54] sm:$0xf] }
 0x215   : > { %4582 = vrot.lane.b32.xlu2 %v7000_v20, %s7527_s11  ;;  %v2867_v30 = vsel %vm7643_vm2, %v2862_v60, %v2866_v17  ;;  %11726 = vst [vmem:[#allocation22_spill] sm:$0xff] %v9529_v22  ;;  %v2725_v42 = vrot.slane %v2723_v48, 4  ;;  %v2726_v20 = vshll.u32 %v6395_v57, 16  ;;  %v9549_v62 = vsel %vm5161_vm9, %v9177_v40, %v9359_v15  ;;  %v6457_v60 = vld [vmem:[%s7632_s24 + $0x50] sm:$0xe]  ;;  %v9558_v15 = vpop.permute.xlu1 %4246 }
 0x216   : > { %v2877_v59 = vsel %vm7643_vm2, %v2872_v55, %v9505_v63  ;;  %v4646_v27 = vunpack.c.l.b16 %v2867_v30  ;;  %v2284_v17 = vsel %vm8016_vm5, %v2282_v11, %v11606_v18  ;;  %11727 = vst [vmem:[#allocation55_spill] sm:$0xff] %v9549_v62  ;;  %v2732_v31 = vshll.u32 %v9524_v56, 16  ;;  %v6383_v11 = vld [vmem:[%s7632_s24 + $0x50] sm:$0xf] }
 0x217   : > { %4888 = vrot.lane.b32.xlu0 %v4847_v45, %s7525_s9  ;;  %v4647_v51 = vunpack.c.l.b16 %v2877_v59  ;;  %v2736_v45 = vshrl.u32 %v9524_v56, 16  ;;  %v4346_v48 = vpack.c.b16 %v4287_v6, %v4286_v21  ;;  %v2728_v55 = vrot.slane %v2726_v20, 5 }
 0x218   : > { %v2742_v30 = vshll.u32 %v9536_v5, 16  ;;  %v3330_v33 = vrot.slane %v6384_v10, 5  ;;  %v4298_v57 = vunpack.c.l.b16 %v2281_v52  ;;  %v4299_v18 = vunpack.c.l.b16 %v2284_v17 }
 0x219   : > { %v2734_v22 = vrot.slane %v2732_v31, 5  ;;  %v2738_v3 = vrot.slane %v2736_v45, 4  ;;  %v4694_v40 = vpack.c.b16 %v4647_v51, %v4646_v27  ;;  %v2729_v59 = vor.u32 %v2728_v55, %v2725_v42 }
 0x21a   : > { %4902 = vrot.lane.b32.xlu1 %v4854_v0, %s7525_s9  ;;  %v9560_v26 = vrot.slane %v2742_v30, 5  ;;  %v6473_v21 = vrot.slane %v6457_v60, 9  ;;  %v3332_v20 = vrot.slane %v3330_v33, 4  ;;  %v3333_v29 = vrot.slane %v9563_v38, 5 }
 0x21b   : > { %v2739_v6 = vor.u32 %v2738_v3, %v2734_v22  ;;  %v2591_v52 = vshrl.u32 %v6383_v11, 16  ;;  %v2730_v17 = vrot.slane %v2729_v59, 4  ;;  %v2594_v31 = vshll.u32 %v6383_v11, 16  ;;  %v6994_v59 = vld [vmem:[%s7632_s24 + $0x8c] sm:$0xff] }
 0x21c   : > { %v2600_v45 = vshll.u32 %v6384_v10, 16  ;;  %v2604_v62 = vshrl.u32 %v6384_v10, 16  ;;  %v9569_v0 = vsel %vm5161_vm9, %v9134_v39, %v9384_v35  ;;  %v2610_v3 = vshll.u32 %v9563_v38, 16  ;;  %v6988_v35 = vld [vmem:[%s7632_s24 + $0x50] sm:$0xff] }
 0x21d   : > { %11728 = vst [vmem:[#allocation32_spill] sm:$0xff] %v9569_v0  ;;  %4382 = vrot.lane.b32.xlu2 %v4346_v48, %s7524_s8  ;;  %v2740_v42 = vrot.slane %v2739_v6, 4  ;;  %v2593_v27 = vrot.slane %v2591_v52, 4  ;;  %v9576_v51 = vsel %vm5161_vm9, %v9428_v1, %v9399_v47  ;;  %v9581_v10 = vsel %vm5161_vm9, %v9228_v4, %v9401_v50  ;;  %v9592_v47 = vpop.permute.xlu0 %4244 }
 0x21e   : > { %11729 = vst [vmem:[#allocation29_spill] sm:$0xff] %v9581_v10  ;;  %v9586_v39 = vsel %vm5161_vm9, %v9162_v16, %v9422_v49  ;;  %v2596_v60 = vrot.slane %v2594_v31, 5  ;;  %v2735_v1 = vsel %vm7643_vm2, %v2730_v17, %v2734_v22  ;;  %v2602_v50 = vrot.slane %v2600_v45, 5  ;;  %v6460_v16 = vld [vmem:[%s7632_s24 + $0x8c] sm:$0xe] }
 0x21f   : > { %4742 = vrot.lane.b32.xlu0 %v4694_v40, %s7526_s10  ;;  %v9590_v48 = vpop.permute.xlu2 %4374  ;;  %11730 = vst [vmem:[#allocation61_spill] sm:$0xff] %v9592_v47  ;;  %v2745_v4 = vsel %vm7643_vm2, %v2740_v42, %v9560_v26  ;;  %v2606_v55 = vrot.slane %v2604_v62, 4  ;;  %v4352_v49 = vpack.c.b16 %v4299_v18, %v4298_v57  ;;  %v3331_v30 = vsel %vm8016_vm5, %v6473_v21, %v3330_v33  ;;  %v7364_v31 = vld [vmem:[%s7632_s24 + $0xc0] sm:$0xf] }
 0x220   : > { %v3334_v11 = vsel %vm8016_vm5, %v3332_v20, %v3333_v29  ;;  %v2597_v40 = vor.u32 %v2596_v60, %v2593_v27  ;;  %v9607_v22 = vrot.slane %v2610_v3, 5  ;;  %v11731_v52 = vrot.slane %v9415_v23, 5 }
 0x221   : > { %v2607_v6 = vor.u32 %v2606_v55, %v2602_v50  ;;  %v2325_v62 = vrot.slane %v7364_v31, 5  ;;  %v4634_v18 = vunpack.c.l.b16 %v2735_v1  ;;  %v4635_v57 = vunpack.c.l.b16 %v2745_v4  ;;  %v9626_v1 = vpop.permute.xlu1 %4252  ;;  %v6410_v55 = vld [vmem:[%s7632_s24 + $0xd4] sm:$0xf] }
 0x222   : > { %v2324_v17 = vrot.slane %v11731_v52, 4  ;;  %4558 = vrot.lane.b32.xlu1 %v6988_v35, %s7527_s11  ;;  %v2598_v33 = vrot.slane %v2597_v40, 4  ;;  %v6476_v21 = vrot.slane %v6460_v16, 9  ;;  %v9616_v20 = vsel %vm5161_vm9, %v9294_v41, %v9469_v7 }
 0x223   : > { %v2608_v45 = vrot.slane %v2607_v6, 4  ;;  %v2327_v42 = vrot.slane %v2325_v62, 4  ;;  %v3369_v27 = vrot.slane %v9524_v56, 5  ;;  %v9622_v23 = vsel %vm5161_vm9, %v9190_v12, %v9497_v61 }
 0x224   : > { %11732 = vst [vmem:[#allocation62_spill] sm:$0xff] %v9622_v23  ;;  %v4782_v3 = vunpack.c.l.b16 %v3331_v30  ;;  %v4783_v35 = vunpack.c.l.b16 %v3334_v11  ;;  %v2603_v60 = vsel %vm7643_vm2, %v2598_v33, %v2602_v50  ;;  %v9631_v41 = vsel %vm5161_vm9, %v9335_v9, %v9531_v37 }
 0x225   : > { %11733 = vst [vmem:[#allocation63_spill] sm:$0xff] %v9631_v41  ;;  %4570 = vrot.lane.b32.xlu2 %v6994_v59, %s7527_s11  ;;  %v2613_v7 = vsel %vm7643_vm2, %v2608_v45, %v9607_v22  ;;  %v2326_v12 = vsel %vm8016_vm5, %v2324_v17, %v2325_v62  ;;  %v11734_v61 = vrot.slane %v8820_v2, 5  ;;  %v4688_v4 = vpack.c.b16 %v4635_v57, %v4634_v18  ;;  %v4251_v31 = vpop.permute.xlu0 %4250  ;;  %v7365_v57 = vld [vmem:[%s7632_s24 + $0x48] sm:$0xf] }
 0x226   : > { %v4622_v9 = vunpack.c.l.b16 %v2603_v60  ;;  %v4623_v37 = vunpack.c.l.b16 %v2613_v7  ;;  %v3370_v50 = vsel %vm8016_vm5, %v6476_v21, %v3369_v27  ;;  %v3371_v16 = vrot.slane %v3369_v27, 4 }
 0x227   : > { %v2329_v56 = vsel %vm8016_vm5, %v2327_v42, %v11734_v61  ;;  %4394 = vrot.lane.b32.xlu0 %v4352_v49, %s7524_s8  ;;  %v3372_v30 = vrot.slane %v9536_v5, 5  ;;  %v11735_v11 = vrot.slane %v9455_v19, 5  ;;  %v3414_v40 = vrot.slane %v6410_v55, 5  ;;  %v6447_v49 = vld [vmem:[%s7632_s24 + $0xd8] sm:$0x1] }
 0x228   : > { %v4842_v59 = vpack.c.b16 %v4783_v35, %v4782_v3  ;;  %v4312_v6 = vunpack.c.l.b16 %v2326_v12  ;;  %v4313_v52 = vunpack.c.l.b16 %v2329_v56  ;;  %v3417_v18 = vrot.slane %v6447_v49, 5  ;;  %v5490_v3 = vld [vmem:[%s11588_s1 + $0x10] sm:$0x3] }
 0x229   : > { %v3413_v2 = vrot.slane %v11735_v11, 4  ;;  %v3416_v62 = vrot.slane %v3414_v40, 4  ;;  %v2247_v33 = vrot.slane %v7365_v57, 5  ;;  %v2878_v21 = vshrl.u32 %v9455_v19, 16  ;;  %v11738_v57 = vld [vmem:[#allocation31_spill] sm:$0xff] }
 0x22a   : > { %v9651_v17 = vpop.permute.xlu2 %4870  ;;  %4730 = vrot.lane.b32.xlu1 %v4688_v4, %s7526_s10  ;;  %v4682_v45 = vpack.c.b16 %v4623_v37, %v4622_v9  ;;  %v4794_v42 = vunpack.c.l.b16 %v3370_v50  ;;  %v2884_v27 = vshll.u32 %v6410_v55, 16  ;;  %v2888_v60 = vshrl.u32 %v6410_v55, 16 }
 0x22b   : > { %v3373_v35 = vsel %vm8016_vm5, %v3371_v16, %v3372_v30  ;;  %v3415_v7 = vsel %vm8016_vm5, %v3413_v2, %v3414_v40  ;;  %v11736_v19 = vrot.slane %v9485_v36, 5  ;;  %v2880_v61 = vrot.slane %v2878_v21, 4  ;;  %v9672_v36 = vpop.permute.xlu1 %4258 }
 0x22c   : > { %v4359_v56 = vpack.c.b16 %v4313_v52, %v4312_v6  ;;  %v2249_v4 = vrot.slane %v2247_v33, 4  ;;  %v2886_v9 = vrot.slane %v2884_v27, 5  ;;  %v2890_v37 = vrot.slane %v2888_v60, 4  ;;  %11737 = vst [vmem:[#allocation64_spill] sm:$0xff] %v9672_v36  ;;  %v7366_v27 = vld [vmem:[%s7632_s24 + $0x84] sm:$0xf] }
 0x22d   : > { %v2246_v12 = vrot.slane %v11736_v19, 4  ;;  %4878 = vrot.lane.b32.xlu2 %v4842_v59, %s7525_s9  ;;  %v3418_v50 = vsel %vm8016_vm5, %v3416_v62, %v3417_v18  ;;  %v2881_v55 = vor.u32 %v2880_v61, %v9505_v63  ;;  %v2894_v16 = vshll.u32 %v6447_v49, 16  ;;  %v9699_v61 = vld [vmem:[%s7632_s24 + $0x98] sm:$0xf] }
 0x22e   : > { %v5504_v11 = vunpack.c.l.b16 %v5490_v3  ;;  %v4795_v2 = vunpack.c.l.b16 %v3373_v35  ;;  %v4808_v40 = vunpack.c.l.b16 %v3415_v7  ;;  %v2891_v6 = vor.u32 %v2890_v37, %v2886_v9  ;;  %v7001_v7 = vld [vmem:[%s7632_s24 + $0xd0] sm:$0xff] }
 0x22f   : > { %4718 = vrot.lane.b32.xlu0 %v4682_v45, %s7526_s10  ;;  %v2248_v59 = vsel %vm8016_vm5, %v2246_v12, %v2247_v33  ;;  %v2882_v52 = vrot.slane %v2881_v55, 4  ;;  %v2896_v62 = vrot.slane %v2894_v16, 5  ;;  %v4809_v63 = vunpack.c.l.b16 %v3418_v50 }
 0x230   : > { %v5507_v18 = vpack.c.b16 %v5504_v11, %v5504_v11  ;;  %v11739_v49 = vrot.slane %v11738_v57, 5  ;;  %v2892_v45 = vrot.slane %v2891_v6, 4  ;;  %v2286_v60 = vrot.slane %v7366_v27, 5 }
 0x231   : > { %v9684_v3 = vsel %vm5161_vm9, %v9240_v14, %v9558_v15  ;;  %v9689_v33 = vsel %vm5226_vm10, %v9516_v8, %v9590_v48  ;;  %v9693_v35 = vsel %vm5161_vm9, %v9375_v46, %v4251_v31  ;;  %v4848_v14 = vpack.c.b16 %v4795_v2, %v4794_v42  ;;  %v7017_v46 = vld [vmem:[%s11588_s1 + $0x8] sm:$0xff]  ;;  %v9711_v48 = vld [vmem:[%s7632_s24 + $0x9c] sm:$0x1]  ;;  %v9713_v31 = vpop.permute.xlu0 %4256 }
 0x232   : > { %v2251_v21 = vsel %vm8016_vm5, %v2249_v4, %v11739_v49  ;;  %v9696_v19 = vpop.permute.xlu2 %4552  ;;  %v5577_v12 = vsel %vm5575_vm11, %v5507_v18, 0  ;;  %4408 = vrot.lane.b32.xlu1 %v4359_v56, %s7524_s8  ;;  %v2887_v15 = vsel %vm7643_vm2, %v2882_v52, %v2886_v9  ;;  %v2897_v8 = vsel %vm7643_vm2, %v2892_v45, %v2896_v62  ;;  %11740 = vst [vmem:[#allocation31_spill] sm:$0xff] %v9713_v31  ;;  %v6386_v62 = vld [vmem:[%s7632_s24 + $0x5c] sm:$0xf]  ;;  %v7371_v4 = vld [vmem:[%s7632_s24 + $0x90] sm:$0xf] }
 0x233   : > { %5584 = vmatpush.bf16.msra.mxu0 %v5577_v12  ;;  %v4288_v37 = vunpack.c.l.b16 %v2248_v59  ;;  %v4289_v56 = vunpack.c.l.b16 %v2251_v21  ;;  %v11741_v42 = vrot.slane %v9510_v43, 5  ;;  %v2288_v9 = vrot.slane %v2286_v60, 4  ;;  %7209 = vmatpush.bf16.msra.mxu1 %v5577_v12  ;;  %v6441_v43 = vld [vmem:[%s7632_s24 + $0x60] sm:$0x1] }
 0x234   : > { %7210 = vmatpush.bf16.msra.mxu2 %v5577_v12  ;;  %v4855_v55 = vpack.c.b16 %v4809_v63, %v4808_v40  ;;  %v2746_v16 = vshrl.u32 %v9536_v5, 16  ;;  %v2752_v11 = vshll.u32 %v9699_v61, 16  ;;  %v2756_v2 = vshrl.u32 %v9699_v61, 16  ;;  %7211 = vmatpush.bf16.msra.mxu3 %v5577_v12  ;;  %v7016_v40 = vld [vmem:[%s11588_s1] sm:$0xff] }
 0x235   : > { %v2285_v50 = vrot.slane %v11741_v42, 4  ;;  %4584 = vrot.lane.b32.xlu2 %v7001_v7, %s7527_s11  ;;  %v4648_v6 = vunpack.c.l.b16 %v2887_v15  ;;  %v4649_v59 = vunpack.c.l.b16 %v2897_v8  ;;  %v2762_v52 = vshll.u32 %v9711_v48, 16 }
 0x236   : > { %v3335_v18 = vrot.slane %v3333_v29, 4  ;;  %v2748_v63 = vrot.slane %v2746_v16, 4  ;;  %v2754_v57 = vrot.slane %v2752_v11, 5  ;;  %v2758_v49 = vrot.slane %v2756_v2, 4 }
 0x237   : > { %4890 = vrot.lane.b32.xlu0 %v4848_v14, %s7525_s9  ;;  %5585 = vmatpush.bf16.msra.mxu0 %v7017_v46  ;;  %v3336_v21 = vrot.slane %v6386_v62, 5  ;;  %v4347_v45 = vpack.c.b16 %v4289_v56, %v4288_v37  ;;  %v2287_v27 = vsel %vm8016_vm5, %v2285_v50, %v2286_v60  ;;  %v11742_v7 = vrot.slane %v8683_v44, 5  ;;  %v9736_v14 = vpop.permute.xlu1 %4264 }
 0x238   : > { %v3339_v12 = vrot.slane %v6441_v43, 5  ;;  %7212 = vmatpush.bf16.msra.mxu1 %v7017_v46  ;;  %7213 = vmatpush.bf16.msra.mxu2 %v7017_v46  ;;  %v2749_v15 = vor.u32 %v2748_v63, %v9560_v26  ;;  %v2759_v8 = vor.u32 %v2758_v49, %v2754_v57  ;;  %v2764_v42 = vrot.slane %v2762_v52, 5  ;;  %v6352_v52 = vld [vmem:[%s7632_s24 + $0xc8] sm:$0xe] }
 0x239   : > { %v2290_v29 = vsel %vm8016_vm5, %v2288_v9, %v11742_v7  ;;  %v3338_v16 = vrot.slane %v3336_v21, 4  ;;  %7214 = vmatpush.bf16.msra.mxu3 %v7017_v46  ;;  %v4695_v37 = vpack.c.b16 %v4649_v59, %v4648_v6  ;;  %v2614_v60 = vshrl.u32 %v9563_v38, 16 }
 0x23a   : > { %v2620_v56 = vshll.u32 %v6386_v62, 16  ;;  %v2624_v44 = vshrl.u32 %v6386_v62, 16  ;;  %4904 = vrot.lane.b32.xlu1 %v4855_v55, %s7525_s9  ;;  %v2750_v50 = vrot.slane %v2749_v15, 4  ;;  %v2760_v9 = vrot.slane %v2759_v8, 4  ;;  %v7367_v15 = vld [vmem:[%s7632_s24 + $0xcc] sm:$0xf] }
 0x23b   : > { %5586 = vmatpush.bf16.msra.mxu0 %v7016_v40  ;;  %v3337_v11 = vsel %vm8016_vm5, %v3335_v18, %v3336_v21  ;;  %v3340_v26 = vsel %vm8016_vm5, %v3338_v16, %v3339_v12  ;;  %v9745_v2 = vpop.permute.xlu2 %4268  ;;  %v4300_v46 = vunpack.c.l.b16 %v2287_v27  ;;  %v2616_v6 = vrot.slane %v2614_v60, 4  ;;  %v6355_v8 = vld [vmem:[%s7632_s24 + $0x104] sm:$0xe]  ;;  %v9765_v60 = vld [vmem:[%s7632_s24 + $0xd0] sm:$0xf] }
 0x23c   : > { %11743 = vst [vmem:[#allocation65_spill] sm:$0xff] %v9745_v2  ;;  %v2622_v59 = vrot.slane %v2620_v56, 5  ;;  %v2630_v38 = vshll.u32 %v6441_v43, 16  ;;  %7215 = vmatpush.bf16.msra.mxu1 %v7016_v40  ;;  %7216 = vmatpush.bf16.msra.mxu2 %v7016_v40  ;;  %v4301_v55 = vunpack.c.l.b16 %v2290_v29  ;;  %v2755_v62 = vsel %vm7643_vm2, %v2750_v50, %v2754_v57  ;;  %v6989_v57 = vld [vmem:[%s7632_s24 + $0x58] sm:$0xff] }
 0x23d   : > { %v2765_v18 = vsel %vm7643_vm2, %v2760_v9, %v2764_v42  ;;  %v2626_v63 = vrot.slane %v2624_v44, 4  ;;  %7217 = vmatpush.bf16.msra.mxu3 %v7016_v40  ;;  %4384 = vrot.lane.b32.xlu2 %v4347_v45, %s7524_s8  ;;  %v9755_v43 = vunpack.c.l.b16 %v2755_v62  ;;  %v4784_v21 = vunpack.c.l.b16 %v3337_v11  ;;  %v7369_v44 = vld [vmem:[%s7632_s24 + $0x108] sm:$0xf]  ;;  %v6995_v9 = vld [vmem:[%s7632_s24 + $0x94] sm:$0xff] }
 0x23e   : > { %v9753_v49 = vpop.permute.xlu0 %4262  ;;  %v4785_v27 = vunpack.c.l.b16 %v3340_v26  ;;  %v2617_v7 = vor.u32 %v2616_v6, %v9607_v22  ;;  %v9760_v29 = vunpack.c.l.b16 %v2765_v18  ;;  %v6368_v40 = vrot.slane %v6352_v52, 9  ;;  %v6411_v52 = vld [vmem:[%s7632_s24 + $0xdc] sm:$0xf] }
 0x23f   : > { %4744 = vrot.lane.b32.xlu0 %v4695_v37, %s7526_s10  ;;  %v2627_v12 = vor.u32 %v2626_v63, %v2622_v59  ;;  %v2332_v45 = vrot.slane %v7367_v15, 5  ;;  %v2632_v16 = vrot.slane %v2630_v38, 5  ;;  %v11611_v22 = vrot.slane %v9765_v60, 5 }
 0x240   : > { %v2618_v42 = vrot.slane %v2617_v7, 4  ;;  %v2371_v50 = vrot.slane %v7369_v44, 5  ;;  %v4353_v11 = vpack.c.b16 %v4301_v55, %v4300_v46  ;;  %v4843_v26 = vpack.c.b16 %v4785_v27, %v4784_v21  ;;  %v9779_v7 = vld [vmem:[%s7632_s24 + $0x10c] sm:$0xf]  ;;  %v6412_v55 = vld [vmem:[%s7632_s24 + $0xe0] sm:$0xf] }
 0x241   : > { %v2628_v37 = vrot.slane %v2627_v12, 4  ;;  %v2334_v56 = vrot.slane %v2332_v45, 4  ;;  %v6371_v6 = vrot.slane %v6355_v8, 9  ;;  %v4689_v62 = vpack.c.b16 %v9760_v29, %v9755_v43 }
 0x242   : > { %4560 = vrot.lane.b32.xlu1 %v6989_v57, %s7527_s11  ;;  %v2623_v18 = vsel %vm7643_vm2, %v2618_v42, %v2622_v59  ;;  %v2333_v63 = vsel %vm8016_vm5, %v6368_v40, %v2332_v45  ;;  %v11609_v46 = vrot.slane %v9779_v7, 5  ;;  %v2373_v43 = vrot.slane %v2371_v50, 4 }
 0x243   : > { %v4711_v38 = vpop.permute.xlu1 %4710  ;;  %v2633_v21 = vsel %vm7643_vm2, %v2628_v37, %v2632_v16  ;;  %v2336_v27 = vsel %vm8016_vm5, %v2334_v56, %v11611_v22  ;;  %v3374_v59 = vrot.slane %v3372_v30, 4  ;;  %v3375_v57 = vrot.slane %v9699_v61, 5  ;;  %v9794_v15 = vpop.permute.xlu2 %4554  ;;  %v9802_v56 = vld [vmem:[%s7632_s24 + $0xe4] sm:$0xf] }
 0x244   : > { %v3378_v29 = vrot.slane %v9711_v48, 5  ;;  %v2899_v12 = vshrl.u32 %v6411_v52, 16  ;;  %v2902_v40 = vshll.u32 %v6411_v52, 16  ;;  %v4624_v8 = vunpack.c.l.b16 %v2623_v18 }
 0x245   : > { %4572 = vrot.lane.b32.xlu2 %v6995_v9, %s7527_s11  ;;  %v4314_v42 = vunpack.c.l.b16 %v2333_v63  ;;  %v2372_v16 = vsel %vm8016_vm5, %v6371_v6, %v2371_v50  ;;  %v2908_v5 = vshll.u32 %v6412_v55, 16  ;;  %v4625_v61 = vunpack.c.l.b16 %v2633_v21  ;;  %v6464_v6 = vld [vmem:[%s7632_s24 + $0xdc] sm:$0xe] }
 0x246   : > { %v4551_v45 = vpop.permute.xlu0 %4550  ;;  %v4315_v48 = vunpack.c.l.b16 %v2336_v27  ;;  %v3377_v37 = vrot.slane %v3375_v57, 4  ;;  %v2375_v9 = vsel %vm8016_vm5, %v2373_v43, %v11609_v46  ;;  %v2901_v52 = vrot.slane %v2899_v12, 4 }
 0x247   : > { %4396 = vrot.lane.b32.xlu0 %v4353_v11, %s7524_s8  ;;  %v5293_v30 = vsel %vm5291_vm12, %v9689_v33, %v4551_v45  ;;  %v2904_v50 = vrot.slane %v2902_v40, 5  ;;  %v4326_v18 = vunpack.c.l.b16 %v2372_v16  ;;  %v3376_v33 = vsel %vm8016_vm5, %v3374_v59, %v3375_v57 }
 0x248   : > { %v5358_v44 = vsel %vm5356_vm13, %v5293_v30, %v4711_v38  ;;  %v3379_v63 = vsel %vm8016_vm5, %v3377_v37, %v3378_v29  ;;  %v2910_v21 = vrot.slane %v2908_v5, 5  ;;  %v2912_v27 = vshrl.u32 %v6412_v55, 16  ;;  %v6467_v37 = vld [vmem:[%s7632_s24 + $0x118] sm:$0xe] }
 0x249   : > { %v5423_v11 = vsel %vm5421_vm14, %v5358_v44, %v9651_v17  ;;  %v2905_v38 = vor.u32 %v2904_v50, %v2901_v52  ;;  %v2918_v43 = vshll.u32 %v9802_v56, 16  ;;  %v4683_v12 = vpack.c.b16 %v4625_v61, %v4624_v8  ;;  %v6424_v8 = vld [vmem:[%s7632_s24 + $0x11c] sm:$0xf]  ;;  %v9835_v50 = vld [vmem:[%s7632_s24 + $0x120] sm:$0xf] }
 0x24a   : > { %6879 = vmatmul.msk.bf16.vlgmr.msra.gmra.mxu0 %vm5510_vm15, %v5423_v11  ;;  %4732 = vrot.lane.b32.xlu1 %v4689_v62, %s7526_s10  ;;  %v4327_v40 = vunpack.c.l.b16 %v2375_v9  ;;  %v6480_v45 = vrot.slane %v6464_v6, 9  ;;  %v3421_v59 = vrot.slane %v6412_v55, 5  ;;  %v4796_v57 = vunpack.c.l.b16 %v3376_v33  ;;  %v6423_v11 = vld [vmem:[%s7632_s24 + $0x118] sm:$0xf] }
 0x24b   : > { %v4377_v17 = vpop.permute.xlu1 %4376  ;;  %v4797_v29 = vunpack.c.l.b16 %v3379_v63  ;;  %v2906_v16 = vrot.slane %v2905_v38, 4  ;;  %v2914_v30 = vrot.slane %v2912_v27, 4  ;;  %v9823_v5 = vsel %vm5161_vm9, %v9433_v34, %v9753_v49 }
 0x24c   : > { %v4360_v44 = vpack.c.b16 %v4315_v48, %v4314_v42  ;;  %v9825_v52 = vrot.slane %v2918_v43, 5  ;;  %v11607_v62 = vrot.slane %v9802_v56, 5  ;;  %v9832_v61 = vsel %vm8016_vm5, %v6480_v45, %v3421_v59 }
 0x24d   : > { %4880 = vrot.lane.b32.xlu2 %v4843_v26, %s7525_s9  ;;  %v2915_v55 = vor.u32 %v2914_v30, %v2910_v21  ;;  %v3423_v9 = vrot.slane %v3421_v59, 4  ;;  %v3460_v6 = vrot.slane %v6424_v8, 5  ;;  %v4366_v49 = vpack.c.b16 %v4327_v40, %v4326_v18  ;;  %v6349_v18 = vld [vmem:[%s7632_s24 + $0x8c] sm:$0xe] }
 0x24e   : > { %v9839_v34 = vpop.permute.xlu0 %4266  ;;  %v2911_v42 = vsel %vm7643_vm2, %v2906_v16, %v2910_v21  ;;  %v6483_v26 = vrot.slane %v6467_v37, 9  ;;  %v11608_v48 = vrot.slane %v9835_v50, 5  ;;  %v5230_v33 = vsel %vm5226_vm10, %v9474_v53, %v4377_v17 }
 0x24f   : > { %4720 = vrot.lane.b32.xlu0 %v4683_v12, %s7526_s10  ;;  %11744 = vst [vmem:[#allocation66_spill] sm:$0xff] %v9839_v34  ;;  %v9846_v63 = vpop.permute.xlu2 %4726  ;;  %v4849_v38 = vpack.c.b16 %v4797_v29, %v4796_v57  ;;  %v2916_v27 = vrot.slane %v2915_v55, 4  ;;  %v3462_v43 = vrot.slane %v3460_v6, 4  ;;  %v4810_v45 = vunpack.c.l.b16 %v9832_v61 }
 0x250   : > { %v3031_v12 = vshrl.u32 %v6423_v11, 16  ;;  %v3034_v59 = vshll.u32 %v6423_v11, 16  ;;  %v3040_v30 = vshll.u32 %v6424_v8, 16  ;;  %v9853_v40 = vunpack.c.l.b16 %v2911_v42 }
 0x251   : > { %v2921_v21 = vsel %vm7643_vm2, %v2916_v27, %v9825_v52  ;;  %v3425_v53 = vsel %vm8016_vm5, %v3423_v9, %v11607_v62  ;;  %v3044_v17 = vshrl.u32 %v6424_v8, 16  ;;  %v3461_v29 = vsel %vm8016_vm5, %v6483_v26, %v3460_v6  ;;  %v6346_v26 = vld [vmem:[%s7632_s24 + $0x50] sm:$0xe]  ;;  %v6387_v62 = vld [vmem:[%s7632_s24 + $0x64] sm:$0xf] }
 0x252   : > { %4410 = vrot.lane.b32.xlu1 %v4360_v44, %s7524_s8  ;;  %v3464_v16 = vsel %vm8016_vm5, %v3462_v43, %v11608_v48  ;;  %v3033_v37 = vrot.slane %v3031_v12, 4  ;;  %v3036_v55 = vrot.slane %v3034_v59, 5  ;;  %v3042_v61 = vrot.slane %v3040_v30, 5  ;;  %v9874_v30 = vld [vmem:[%s7632_s24 + $0x94] sm:$0xf] }
 0x253   : > { %v4873_v57 = vpop.permute.xlu1 %4872  ;;  %v3046_v11 = vrot.slane %v3044_v17, 4  ;;  %v3050_v8 = vshll.u32 %v9835_v50, 16  ;;  %v6365_v9 = vrot.slane %v6349_v18, 9  ;;  %v4651_v44 = vunpack.c.l.b16 %v2921_v21  ;;  %v7008_v18 = vld [vmem:[%s7632_s24 + $0x118] sm:$0xff] }
 0x254   : > { %v4811_v42 = vunpack.c.l.b16 %v3425_v53  ;;  %v3037_v27 = vor.u32 %v3036_v55, %v3033_v37  ;;  %v2293_v6 = vrot.slane %v7371_v4, 5  ;;  %v4822_v43 = vunpack.c.l.b16 %v3461_v29  ;;  %v7373_v4 = vld [vmem:[%s7632_s24 + $0x54] sm:$0xf] }
 0x255   : > { %4422 = vrot.lane.b32.xlu2 %v4366_v49, %s7524_s8  ;;  %v3047_v12 = vor.u32 %v3046_v11, %v3042_v61  ;;  %v9871_v59 = vrot.slane %v3050_v8, 5  ;;  %v11610_v17 = vrot.slane %v9874_v30, 5  ;;  %v4823_v21 = vunpack.c.l.b16 %v3464_v16 }
 0x256   : > { %v3038_v53 = vrot.slane %v3037_v27, 4  ;;  %v2295_v37 = vrot.slane %v2293_v6, 4  ;;  %v2254_v55 = vrot.slane %v7373_v4, 5  ;;  %v9884_v29 = vsel %vm8016_vm5, %v6365_v9, %v2293_v6 }
 0x257   : > { %4892 = vrot.lane.b32.xlu0 %v4849_v38, %s7525_s9  ;;  %v9880_v48 = vpop.permute.xlu2 %4380  ;;  %v3048_v49 = vrot.slane %v3047_v12, 4  ;;  %v6362_v11 = vrot.slane %v6346_v26, 9  ;;  %v2635_v8 = vshrl.u32 %v6387_v62, 16  ;;  %v5295_v38 = vsel %vm5291_vm12, %v5230_v33, %v9696_v19  ;;  %v9902_v33 = vld [vmem:[%s7632_s24 + $0x58] sm:$0xf] }
 0x258   : > { %v4696_v27 = vpack.c.b16 %v4651_v44, %v9853_v40  ;;  %v4856_v46 = vpack.c.b16 %v4811_v42, %v4810_v45  ;;  %v3043_v4 = vsel %vm7643_vm2, %v3038_v53, %v3042_v61  ;;  %v9899_v19 = vsel %vm8016_vm5, %v2295_v37, %v11610_v17  ;;  %v9906_v40 = vld [vmem:[%s7632_s24 + $0x68] sm:$0xf]  ;;  %v7002_v44 = vld [vmem:[%s7632_s24 + $0xdc] sm:$0xff] }
 0x259   : > { %v4713_v16 = vpop.permute.xlu0 %4712  ;;  %v3053_v9 = vsel %vm7643_vm2, %v3048_v49, %v9871_v59  ;;  %v11612_v45 = vrot.slane %v9902_v33, 5  ;;  %v4862_v6 = vpack.c.b16 %v4823_v21, %v4822_v43  ;;  %v4302_v26 = vunpack.c.l.b16 %v9884_v29  ;;  %v9913_v49 = vld [vmem:[%s7632_s24 + $0x6c] sm:$0xf]  ;;  %v6399_v37 = vld [vmem:[%s7632_s24 + $0xa0] sm:$0xf] }
 0x25a   : > { %v5360_v12 = vsel %vm5356_vm13, %v5295_v38, %v4713_v16  ;;  %4598 = vrot.lane.b32.xlu1 %v7008_v18, %s7527_s11  ;;  %v2256_v53 = vrot.slane %v2254_v55, 4  ;;  %v4662_v38 = vunpack.c.l.b16 %v3043_v4  ;;  %v2255_v16 = vsel %vm8016_vm5, %v6362_v11, %v2254_v55 }
 0x25b   : > { %v5425_v61 = vsel %vm5421_vm14, %v5360_v12, %v4873_v57  ;;  %v4391_v42 = vpop.permute.xlu1 %4390  ;;  %v2637_v17 = vrot.slane %v2635_v8, 4  ;;  %v2638_v57 = vshll.u32 %v6387_v62, 16  ;;  %v6400_v12 = vld [vmem:[%s7632_s24 + $0xa4] sm:$0xf]  ;;  %v4663_v18 = vunpack.c.l.b16 %v3053_v9  ;;  %v9931_v9 = vld [vmem:[%s7632_s24 + $0xa8] sm:$0xf] }
 0x25c   : > { %6880 = vmatmul.msk.bf16.gmra.mxu0 %vm5510_vm15, %v5425_v61  ;;  %v4303_v22 = vunpack.c.l.b16 %v9899_v19  ;;  %v2644_v43 = vshll.u32 %v9906_v40, 16  ;;  %v2648_v21 = vshrl.u32 %v9906_v40, 16  ;;  %v2258_v29 = vsel %vm8016_vm5, %v2256_v53, %v11612_v45  ;;  %v6461_v53 = vld [vmem:[%s7632_s24 + $0xa0] sm:$0xe] }
 0x25d   : > { %4746 = vrot.lane.b32.xlu2 %v4696_v27, %s7526_s10  ;;  %v2640_v55 = vrot.slane %v2638_v57, 5  ;;  %v2654_v11 = vshll.u32 %v9913_v49, 16  ;;  %v2767_v62 = vshrl.u32 %v6399_v37, 16  ;;  %v2770_v19 = vshll.u32 %v6399_v37, 16 }
 0x25e   : > { %v2646_v8 = vrot.slane %v2644_v43, 5  ;;  %v2650_v4 = vrot.slane %v2648_v21, 4  ;;  %v2776_v61 = vshll.u32 %v6400_v12, 16  ;;  %v4290_v27 = vunpack.c.l.b16 %v2255_v16 }
 0x25f   : > { %4586 = vrot.lane.b32.xlu0 %v7002_v44, %s7527_s11  ;;  %v9933_v36 = vpop.permute.xlu2 %4568  ;;  %v2641_v47 = vor.u32 %v2640_v55, %v2637_v17  ;;  %v9935_v31 = vrot.slane %v2654_v11, 5  ;;  %v2769_v2 = vrot.slane %v2767_v62, 4  ;;  %v2772_v34 = vrot.slane %v2770_v19, 5  ;;  %v7375_v19 = vld [vmem:[%s7632_s24 + $0xd4] sm:$0xf] }
 0x260   : > { %v2651_v45 = vor.u32 %v2650_v4, %v2646_v8  ;;  %v2778_v23 = vrot.slane %v2776_v61, 5  ;;  %v2780_v0 = vshrl.u32 %v6400_v12, 16  ;;  %v4702_v44 = vpack.c.b16 %v4663_v18, %v4662_v38 }
 0x261   : > { %v4379_v57 = vpop.permute.xlu0 %4378  ;;  %v4291_v43 = vunpack.c.l.b16 %v2258_v29  ;;  %v2642_v21 = vrot.slane %v2641_v47, 4  ;;  %v2786_v10 = vshll.u32 %v9931_v9, 16  ;;  %v2773_v41 = vor.u32 %v2772_v34, %v2769_v2 }
 0x262   : > { %4906 = vrot.lane.b32.xlu1 %v4856_v46, %s7525_s9  ;;  %v2652_v37 = vrot.slane %v2651_v45, 4  ;;  %v2782_v16 = vrot.slane %v2780_v0, 4  ;;  %v6477_v17 = vrot.slane %v6461_v53, 9  ;;  %v5244_v55 = vsel %vm5226_vm10, %v9465_v24, %v4391_v42 }
 0x263   : > { %v2647_v11 = vsel %vm7643_vm2, %v2642_v21, %v2646_v8  ;;  %v3382_v62 = vrot.slane %v6400_v12, 5  ;;  %v3385_v38 = vrot.slane %v9931_v9, 5  ;;  %v2774_v46 = vrot.slane %v2773_v41, 4  ;;  %v6458_v12 = vld [vmem:[%s7632_s24 + $0x64] sm:$0xe] }
 0x264   : > { %v4715_v18 = vpop.permute.xlu1 %4714  ;;  %v2657_v47 = vsel %vm7643_vm2, %v2652_v37, %v9935_v31  ;;  %v2783_v45 = vor.u32 %v2782_v16, %v2778_v23  ;;  %v9948_v2 = vrot.slane %v2786_v10, 5  ;;  %v5232_v0 = vsel %vm5226_vm10, %v9438_v13, %v4379_v57 }
 0x265   : > { %4918 = vrot.lane.b32.xlu2 %v4862_v6, %s7525_s9  ;;  %v4354_v24 = vpack.c.b16 %v4303_v22, %v4302_v26  ;;  %v4348_v34 = vpack.c.b16 %v4291_v43, %v4290_v27  ;;  %v3384_v42 = vrot.slane %v3382_v62, 4  ;;  %v9955_v29 = vunpack.c.l.b16 %v2647_v11 }
 0x266   : > { %v9957_v8 = vunpack.c.l.b16 %v2657_v47  ;;  %v2784_v41 = vrot.slane %v2783_v45, 4  ;;  %v9961_v10 = vsel %vm8016_vm5, %v6477_v17, %v3382_v62  ;;  %v2779_v13 = vsel %vm7643_vm2, %v2774_v46, %v2778_v23 }
 0x267   : > { %4758 = vrot.lane.b32.xlu0 %v4702_v44, %s7526_s10  ;;  %v9963_v4 = vpop.permute.xlu2 %4876  ;;  %v9971_v22 = vsel %vm8016_vm5, %v3384_v42, %v3385_v38  ;;  %v11745_v6 = vrot.slane %v9765_v60, 5  ;;  %v2338_v61 = vrot.slane %v7375_v19, 5  ;;  %v5297_v27 = vsel %vm5291_vm12, %v5232_v0, %v9794_v15  ;;  %v6990_v60 = vld [vmem:[%s7632_s24 + $0x64] sm:$0xff] }
 0x268   : > { %v2789_v23 = vsel %vm7643_vm2, %v2784_v41, %v9948_v2  ;;  %v6474_v57 = vrot.slane %v6458_v12, 9  ;;  %v3343_v44 = vrot.slane %v9906_v40, 5  ;;  %v5362_v43 = vsel %vm5356_vm13, %v5297_v27, %v4715_v18  ;;  %v9991_v40 = vld [vmem:[%s7632_s24 + $0x124] sm:$0xf] }
 0x269   : > { %v2337_v26 = vrot.slane %v11745_v6, 4  ;;  %v4567_v53 = vpop.permute.xlu0 %4566  ;;  %v4798_v37 = vunpack.c.l.b16 %v9961_v10  ;;  %v2340_v16 = vrot.slane %v2338_v61, 4  ;;  %v4684_v15 = vpack.c.b16 %v9957_v8, %v9955_v29  ;;  %v7376_v8 = vld [vmem:[%s7632_s24 + $0x110] sm:$0xf] }
 0x26a   : > { %v5309_v21 = vsel %vm5291_vm12, %v5244_v55, %v4567_v53  ;;  %4398 = vrot.lane.b32.xlu1 %v4354_v24, %s7524_s8  ;;  %v4638_v17 = vunpack.c.l.b16 %v2779_v13  ;;  %v4639_v11 = vunpack.c.l.b16 %v2789_v23  ;;  %v4799_v62 = vunpack.c.l.b16 %v9971_v22  ;;  %v10020_v22 = vld [vmem:[%s7632_s24 + $0x128] sm:$0x1] }
 0x26b   : > { %v9995_v55 = vsel %vm8016_vm5, %v2337_v26, %v2338_v61  ;;  %v11746_v18 = vrot.slane %v8867_v28, 5  ;;  %v3345_v46 = vrot.slane %v3343_v44, 4  ;;  %v3346_v45 = vrot.slane %v9913_v49, 5 }
 0x26c   : > { %v4887_v0 = vpop.permute.xlu1 %4886  ;;  %v5374_v24 = vsel %vm5356_vm13, %v5309_v21, %v9846_v63  ;;  %v10008_v42 = vsel %vm8016_vm5, %v6474_v57, %v3343_v44  ;;  %v11747_v12 = vrot.slane %v9779_v7, 5  ;;  %v2377_v28 = vrot.slane %v7376_v8, 5 }
 0x26d   : > { %v10001_v47 = vsel %vm8016_vm5, %v2340_v16, %v11746_v18  ;;  %4562 = vrot.lane.b32.xlu2 %v6990_v60, %s7527_s11  ;;  %v5439_v41 = vsel %vm5421_vm14, %v5374_v24, %v4887_v0  ;;  %v3347_v13 = vsel %vm8016_vm5, %v3345_v46, %v3346_v45  ;;  %v3054_v63 = vshrl.u32 %v9835_v50, 16  ;;  %v6448_v0 = vld [vmem:[%s7632_s24 + $0xec] sm:$0x1] }
 0x26e   : > { %v2376_v29 = vrot.slane %v11747_v12, 4  ;;  %v3060_v6 = vshll.u32 %v9991_v40, 16  ;;  %6887 = vmatmul.msk.bf16.vlgmr.msra.gmra.mxu1 %vm5510_vm15, %v5439_v41  ;;  %v4690_v7 = vpack.c.b16 %v4639_v11, %v4638_v17  ;;  %v4316_v26 = vunpack.c.l.b16 %v9995_v55  ;;  %v6414_v55 = vld [vmem:[%s7632_s24 + $0xe8] sm:$0xf] }
 0x26f   : > { %4386 = vrot.lane.b32.xlu0 %v4348_v34, %s7524_s8  ;;  %v4317_v19 = vunpack.c.l.b16 %v10001_v47  ;;  %v2379_v61 = vrot.slane %v2377_v28, 4  ;;  %v10028_v27 = vpop.permute.xlu2 %4582  ;;  %v3056_v23 = vrot.slane %v3054_v63, 4  ;;  %v3064_v34 = vshrl.u32 %v9991_v40, 16 }
 0x270   : > { %v2378_v53 = vsel %vm8016_vm5, %v2376_v29, %v2377_v28  ;;  %v3062_v57 = vrot.slane %v3060_v6, 5  ;;  %v4786_v21 = vunpack.c.l.b16 %v10008_v42  ;;  %v4787_v60 = vunpack.c.l.b16 %v3347_v13 }
 0x271   : > { %v4875_v44 = vpop.permute.xlu0 %4874  ;;  %v11748_v16 = vrot.slane %v8998_v32, 5  ;;  %v3070_v11 = vshll.u32 %v10020_v22, 16  ;;  %v3057_v47 = vor.u32 %v3056_v23, %v9871_v59  ;;  %v3066_v46 = vrot.slane %v3064_v34, 4  ;;  %v6996_v32 = vld [vmem:[%s7632_s24 + $0xa0] sm:$0xff] }
 0x272   : > { %v5427_v18 = vsel %vm5421_vm14, %v5362_v43, %v4875_v44  ;;  %v11749_v24 = vrot.slane %v9802_v56, 5  ;;  %4722 = vrot.lane.b32.xlu1 %v4684_v15, %s7526_s10  ;;  %v4328_v42 = vunpack.c.l.b16 %v2378_v53  ;;  %v3427_v29 = vrot.slane %v6414_v55, 5  ;;  %v11750_v44 = vld [vmem:[#allocation55_spill] sm:$0xff] }
 0x273   : > { %v2381_v17 = vsel %vm8016_vm5, %v2379_v61, %v11748_v16  ;;  %6881 = vmatmul.msk.bf16.gmra.mxu0 %vm5510_vm15, %v5427_v18  ;;  %v3430_v8 = vrot.slane %v6448_v0, 5  ;;  %v2922_v28 = vshrl.u32 %v9802_v56, 16  ;;  %v3058_v41 = vrot.slane %v3057_v47, 4 }
 0x274   : > { %v3426_v12 = vrot.slane %v11749_v24, 4  ;;  %v3067_v13 = vor.u32 %v3066_v46, %v3062_v57  ;;  %v3072_v43 = vrot.slane %v3070_v11, 5  ;;  %v2928_v63 = vshll.u32 %v6414_v55, 16  ;;  %v4557_v59 = vpop.permute.xlu1 %4556 }
 0x275   : > { %v4329_v6 = vunpack.c.l.b16 %v2381_v17  ;;  %v3429_v61 = vrot.slane %v3427_v29, 4  ;;  %v2924_v23 = vrot.slane %v2922_v28, 4  ;;  %v2932_v34 = vshrl.u32 %v6414_v55, 16  ;;  %4734 = vrot.lane.b32.xlu2 %v4690_v7, %s7526_s10 }
 0x276   : > { %v5234_v16 = vsel %vm5226_vm10, %v11750_v44, %v9880_v48  ;;  %v4850_v15 = vpack.c.b16 %v4799_v62, %v4798_v37  ;;  %v3068_v53 = vrot.slane %v3067_v13, 4  ;;  %v3428_v56 = vsel %vm8016_vm5, %v3426_v12, %v3427_v29 }
 0x277   : > { %4574 = vrot.lane.b32.xlu0 %v6996_v32, %s7527_s11  ;;  %v3063_v17 = vsel %vm7643_vm2, %v3058_v41, %v3062_v57  ;;  %v3431_v11 = vsel %vm8016_vm5, %v3429_v61, %v3430_v8  ;;  %v2925_v55 = vor.u32 %v2924_v23, %v9825_v52  ;;  %v2930_v48 = vrot.slane %v2928_v63, 5  ;;  %v4383_v18 = vpop.permute.xlu2 %4382  ;;  %v11752_v41 = vld [vmem:[#allocation53_spill] sm:$0xff] }
 0x278   : > { %v4361_v7 = vpack.c.b16 %v4317_v19, %v4316_v26  ;;  %v3073_v10 = vsel %vm7643_vm2, %v3068_v53, %v3072_v43  ;;  %v2934_v37 = vrot.slane %v2932_v34, 4  ;;  %v2938_v62 = vshll.u32 %v6448_v0, 16 }
 0x279   : > { %v4393_v47 = vpop.permute.xlu0 %4392  ;;  %v4844_v46 = vpack.c.b16 %v4787_v60, %v4786_v21  ;;  %v10065_v24 = vpack.c.b16 %v4329_v6, %v4328_v42  ;;  %v4812_v57 = vunpack.c.l.b16 %v3428_v56  ;;  %v2926_v12 = vrot.slane %v2925_v55, 4  ;;  %v7377_v60 = vld [vmem:[%s7632_s24 + $0x5c] sm:$0xf] }
 0x27a   : > { %v10067_v32 = vunpack.c.l.b16 %v3063_v17  ;;  %v4813_v29 = vunpack.c.l.b16 %v3431_v11  ;;  %v2935_v52 = vor.u32 %v2934_v37, %v2930_v48  ;;  %v11751_v8 = vrot.slane %v9902_v33, 5  ;;  %4894 = vrot.lane.b32.xlu1 %v4850_v15, %s7525_s9  ;;  %v7378_v33 = vld [vmem:[%s7632_s24 + $0x98] sm:$0xf] }
 0x27b   : > { %v5246_v19 = vsel %vm5226_vm10, %v9616_v20, %v4393_v47  ;;  %v10074_v0 = vunpack.c.l.b16 %v3073_v10  ;;  %v2940_v21 = vrot.slane %v2938_v62, 5  ;;  %v2260_v42 = vrot.slane %v7377_v60, 5  ;;  %v11755_v11 = vld [vmem:[#allocation34_spill] sm:$0xff]  ;;  %v6390_v62 = vld [vmem:[%s7632_s24 + $0x70] sm:$0xf] }
 0x27c   : > { %v2259_v26 = vrot.slane %v11751_v8, 4  ;;  %v5299_v28 = vsel %vm5291_vm12, %v5234_v16, %v4557_v59  ;;  %v10080_v13 = vsel %vm5226_vm10, %v11752_v41, %v4383_v18  ;;  %v2936_v43 = vrot.slane %v2935_v52, 4  ;;  %v4729_v6 = vpop.permute.xlu1 %4728  ;;  %v6442_v8 = vld [vmem:[%s7632_s24 + $0x74] sm:$0x1] }
 0x27d   : > { %v2299_v63 = vrot.slane %v7378_v33, 5  ;;  %v2931_v20 = vsel %vm7643_vm2, %v2926_v12, %v2930_v48  ;;  %v2262_v61 = vrot.slane %v2260_v42, 4  ;;  %v11753_v23 = vrot.slane %v9874_v30, 5  ;;  %4412 = vrot.lane.b32.xlu2 %v4361_v7, %s7524_s8  ;;  %v7003_v30 = vld [vmem:[%s7632_s24 + $0xe4] sm:$0xff]  ;;  %v11757_v12 = vld [vmem:[#allocation43_spill] sm:$0xff] }
 0x27e   : > { %v3466_v44 = vrot.slane %v9991_v40, 5  ;;  %v5311_v59 = vsel %vm5291_vm12, %v5246_v19, %v9933_v36  ;;  %v10091_v16 = vpack.c.b16 %v4813_v29, %v4812_v57  ;;  %v2261_v15 = vsel %vm8016_vm5, %v2259_v26, %v2260_v42 }
 0x27f   : > { %v2298_v34 = vrot.slane %v11753_v23, 4  ;;  %v11754_v53 = vrot.slane %v9835_v50, 5  ;;  %4882 = vrot.lane.b32.xlu0 %v4844_v46, %s7525_s9  ;;  %v4703_v40 = vpack.c.b16 %v10074_v0, %v10067_v32  ;;  %v2941_v17 = vsel %vm7643_vm2, %v2936_v43, %v2940_v21  ;;  %v10108_v18 = vpop.permute.xlu2 %4570  ;;  %v7009_v21 = vld [vmem:[%s7632_s24 + $0x120] sm:$0xff] }
 0x280   : > { %v11756_v36 = vrot.slane %v11755_v11, 5  ;;  %v2301_v48 = vrot.slane %v2299_v63, 4  ;;  %v5376_v50 = vsel %vm5356_vm13, %v5311_v59, %v4729_v6  ;;  %v10110_v7 = vunpack.c.l.b16 %v2931_v20 }
 0x281   : > { %v3465_v56 = vrot.slane %v11754_v53, 4  ;;  %v3468_v10 = vrot.slane %v3466_v44, 4  ;;  %v3469_v37 = vrot.slane %v10020_v22, 5  ;;  %v4717_v47 = vpop.permute.xlu0 %4716  ;;  %v4292_v46 = vunpack.c.l.b16 %v2261_v15 }
 0x282   : > { %v2264_v55 = vsel %vm8016_vm5, %v2262_v61, %v11756_v36  ;;  %v2300_v57 = vsel %vm8016_vm5, %v2298_v34, %v2299_v63  ;;  %v11758_v29 = vrot.slane %v11757_v12, 5  ;;  %v2658_v26 = vshrl.u32 %v9913_v49, 16  ;;  %4588 = vrot.lane.b32.xlu1 %v7003_v30, %s7527_s11  ;;  %v6402_v49 = vld [vmem:[%s7632_s24 + $0xac] sm:$0xf] }
 0x283   : > { %v5364_v19 = vsel %vm5356_vm13, %v5299_v28, %v4717_v47  ;;  %v10124_v60 = vunpack.c.l.b16 %v2941_v17  ;;  %v4293_v22 = vunpack.c.l.b16 %v2264_v55  ;;  %v3467_v42 = vsel %vm8016_vm5, %v3465_v56, %v3466_v44 }
 0x284   : > { %v2303_v52 = vsel %vm8016_vm5, %v2301_v48, %v11758_v29  ;;  %v5429_v41 = vsel %vm5421_vm14, %v5364_v19, %v9963_v4  ;;  %v3470_v43 = vsel %vm8016_vm5, %v3468_v10, %v3469_v37  ;;  %v2660_v33 = vrot.slane %v2658_v26, 4  ;;  %v4407_v23 = vpop.permute.xlu1 %4406  ;;  %v6445_v10 = vld [vmem:[%s7632_s24 + $0xb0] sm:$0x1] }
 0x285   : > { %v2664_v63 = vshll.u32 %v6390_v62, 16  ;;  %6882 = vmatmul.msk.bf16.gmra.mxu0 %vm5510_vm15, %v5429_v41  ;;  %v4304_v28 = vunpack.c.l.b16 %v2300_v57  ;;  %v4305_v6 = vunpack.c.l.b16 %v2303_v52  ;;  %v2668_v20 = vshrl.u32 %v6390_v62, 16  ;;  %4600 = vrot.lane.b32.xlu2 %v7009_v21, %s7527_s11 }
 0x286   : > { %v2674_v61 = vshll.u32 %v6442_v8, 16  ;;  %v2661_v34 = vor.u32 %v2660_v33, %v9935_v31  ;;  %v3348_v4 = vrot.slane %v3346_v45, 4  ;;  %v3349_v59 = vrot.slane %v6390_v62, 5 }
 0x287   : > { %v2666_v44 = vrot.slane %v2664_v63, 5  ;;  %v4697_v15 = vpack.c.b16 %v10124_v60, %v10110_v7  ;;  %v4824_v53 = vunpack.c.l.b16 %v3467_v42  ;;  %v4825_v56 = vunpack.c.l.b16 %v3470_v43  ;;  %4424 = vrot.lane.b32.xlu0 %v10065_v24, %s7524_s8  ;;  %v10145_v45 = vpop.permute.xlu2 %4878  ;;  %v6356_v42 = vld [vmem:[%s7632_s24 + $0x118] sm:$0xe] }
 0x288   : > { %v2670_v30 = vrot.slane %v2668_v20, 4  ;;  %v10142_v17 = vpack.c.b16 %v4293_v22, %v4292_v46  ;;  %v2662_v31 = vrot.slane %v2661_v34, 4  ;;  %v3351_v11 = vrot.slane %v3349_v59, 4 }
 0x289   : > { %v3352_v36 = vrot.slane %v6442_v8, 5  ;;  %v10147_v55 = vpack.c.b16 %v4305_v6, %v4304_v28  ;;  %v3387_v7 = vrot.slane %v3385_v38, 4  ;;  %v3388_v37 = vrot.slane %v6402_v49, 5  ;;  %v4889_v62 = vpop.permute.xlu0 %4888 }
 0x28a   : > { %v2671_v48 = vor.u32 %v2670_v30, %v2666_v44  ;;  %v2676_v47 = vrot.slane %v2674_v61, 5  ;;  %v3350_v24 = vsel %vm8016_vm5, %v3348_v4, %v3349_v59  ;;  %v3391_v46 = vrot.slane %v6445_v10, 5  ;;  %4760 = vrot.lane.b32.xlu1 %v4703_v40, %s7526_s10 }
 0x28b   : > { %v2790_v57 = vshrl.u32 %v9931_v9, 16  ;;  %v5441_v12 = vsel %vm5421_vm14, %v5376_v50, %v4889_v62  ;;  %v10156_v29 = vpack.c.b16 %v4825_v56, %v4824_v53  ;;  %v2667_v52 = vsel %vm7643_vm2, %v2662_v31, %v2666_v44  ;;  %v6353_v44 = vld [vmem:[%s7632_s24 + $0xdc] sm:$0xe]  ;;  %v10189_v53 = vld [vmem:[%s7632_s24 + $0x120] sm:$0xf] }
 0x28c   : > { %v2672_v8 = vrot.slane %v2671_v48, 4  ;;  %6888 = vmatmul.msk.bf16.gmra.mxu1 %vm5510_vm15, %v5441_v12  ;;  %v3353_v38 = vsel %vm8016_vm5, %v3351_v11, %v3352_v36  ;;  %v3390_v26 = vrot.slane %v3388_v37, 4  ;;  %v2796_v19 = vshll.u32 %v6402_v49, 16  ;;  %v4903_v41 = vpop.permute.xlu1 %4902  ;;  %v7381_v36 = vld [vmem:[%s7632_s24 + $0xe0] sm:$0xf] }
 0x28d   : > { %v2792_v9 = vrot.slane %v2790_v57, 4  ;;  %v5260_v50 = vsel %vm5226_vm10, %v9684_v3, %v4407_v23  ;;  %v4788_v21 = vunpack.c.l.b16 %v3350_v24  ;;  %v3389_v60 = vsel %vm8016_vm5, %v3387_v7, %v3388_v37  ;;  %4908 = vrot.lane.b32.xlu2 %v10091_v16, %s7525_s9  ;;  %v7379_v23 = vld [vmem:[%s7632_s24 + $0x11c] sm:$0xf]  ;;  %v6415_v62 = vld [vmem:[%s7632_s24 + $0xf0] sm:$0xf] }
 0x28e   : > { %v2800_v22 = vshrl.u32 %v6402_v49, 16  ;;  %v2677_v32 = vsel %vm7643_vm2, %v2672_v8, %v2676_v47  ;;  %v3392_v0 = vsel %vm8016_vm5, %v3390_v26, %v3391_v46  ;;  %v2798_v43 = vrot.slane %v2796_v19, 5  ;;  %v10200_v47 = vld [vmem:[%s7632_s24 + $0xf4] sm:$0xf]  ;;  %v6427_v26 = vld [vmem:[%s7632_s24 + $0x12c] sm:$0xf] }
 0x28f   : > { %v2793_v40 = vor.u32 %v2792_v9, %v9948_v2  ;;  %v10179_v3 = vunpack.c.l.b16 %v2667_v52  ;;  %v4789_v33 = vunpack.c.l.b16 %v3353_v38  ;;  %v2806_v28 = vshll.u32 %v6445_v10, 16  ;;  %4748 = vrot.lane.b32.xlu0 %v4697_v15, %s7526_s10  ;;  %v10184_v2 = vpop.permute.xlu2 %4584 }
 0x290   : > { %v2802_v63 = vrot.slane %v2800_v22, 4  ;;  %v4800_v6 = vunpack.c.l.b16 %v3389_v60  ;;  %v6372_v61 = vrot.slane %v6356_v42, 9  ;;  %v2384_v34 = vrot.slane %v7379_v23, 5 }
 0x291   : > { %v2794_v20 = vrot.slane %v2793_v40, 4  ;;  %v10186_v4 = vunpack.c.l.b16 %v2677_v32  ;;  %v4801_v16 = vunpack.c.l.b16 %v3392_v0  ;;  %v2387_v56 = vrot.slane %v10189_v53, 5  ;;  %v4743_v30 = vpop.permute.xlu0 %4742  ;;  %v6997_v40 = vld [vmem:[%s7632_s24 + $0xa8] sm:$0xff] }
 0x292   : > { %v2803_v59 = vor.u32 %v2802_v63, %v2798_v43  ;;  %v5325_v15 = vsel %vm5291_vm12, %v5260_v50, %v10028_v27  ;;  %v2808_v31 = vrot.slane %v2806_v28, 5  ;;  %v2386_v11 = vrot.slane %v2384_v34, 4  ;;  %4388 = vrot.lane.b32.xlu1 %v10142_v17, %s7524_s8  ;;  %v10219_v17 = vld [vmem:[%s7632_s24 + $0xe4] sm:$0xf]  ;;  %v10226_v50 = vld [vmem:[%s7632_s24 + $0xf8] sm:$0xf] }
 0x293   : > { %v2345_v49 = vrot.slane %v7381_v36, 5  ;;  %v5390_v48 = vsel %vm5356_vm13, %v5325_v15, %v4743_v30  ;;  %v2799_v10 = vsel %vm7643_vm2, %v2794_v20, %v2798_v43  ;;  %v6369_v37 = vrot.slane %v6353_v44, 9  ;;  %v6991_v36 = vld [vmem:[%s7632_s24 + $0x6c] sm:$0xff] }
 0x294   : > { %v2804_v7 = vrot.slane %v2803_v59, 4  ;;  %v5455_v27 = vsel %vm5421_vm14, %v5390_v48, %v4903_v41  ;;  %v10205_v24 = vpack.c.b16 %v4789_v33, %v4788_v21  ;;  %v2385_v46 = vsel %vm8016_vm5, %v6372_v61, %v2384_v34  ;;  %v4559_v9 = vpop.permute.xlu1 %4558  ;;  %v6428_v61 = vld [vmem:[%s7632_s24 + $0x130] sm:$0xf] }
 0x295   : > { %v2347_v57 = vrot.slane %v2345_v49, 4  ;;  %6895 = vmatmul.msk.bf16.vlgmr.msra.gmra.mxu2 %vm5510_vm15, %v5455_v27  ;;  %v4685_v12 = vpack.c.b16 %v10186_v4, %v10179_v3  ;;  %v10212_v52 = vpack.c.b16 %v4801_v16, %v4800_v6  ;;  %v2388_v8 = vsel %vm8016_vm5, %v2386_v11, %v2387_v56  ;;  %4400 = vrot.lane.b32.xlu2 %v10147_v55, %s7524_s8  ;;  %v10248_v16 = vld [vmem:[%s7632_s24 + $0x134] sm:$0xf] }
 0x296   : > { %v2348_v38 = vrot.slane %v10219_v17, 5  ;;  %v10223_v19 = vunpack.c.l.b16 %v2799_v10  ;;  %v2943_v21 = vshrl.u32 %v6415_v62, 16  ;;  %v2946_v60 = vshll.u32 %v6415_v62, 16 }
 0x297   : > { %v2952_v22 = vshll.u32 %v10200_v47, 16  ;;  %v2809_v42 = vsel %vm7643_vm2, %v2804_v7, %v2808_v31  ;;  %v4330_v41 = vunpack.c.l.b16 %v2385_v46  ;;  %v2346_v32 = vsel %vm8016_vm5, %v6369_v37, %v2345_v49  ;;  %4920 = vrot.lane.b32.xlu0 %v10156_v29, %s7525_s9  ;;  %v4385_v63 = vpop.permute.xlu2 %4384  ;;  %v6468_v37 = vld [vmem:[%s7632_s24 + $0x12c] sm:$0xe] }
 0x298   : > { %v2956_v0 = vshrl.u32 %v10200_v47, 16  ;;  %v4331_v43 = vunpack.c.l.b16 %v2388_v8  ;;  %v2349_v55 = vsel %vm8016_vm5, %v2347_v57, %v2348_v38  ;;  %v2945_v3 = vrot.slane %v2943_v21, 4 }
 0x299   : > { %v2948_v33 = vrot.slane %v2946_v60, 5  ;;  %v2954_v28 = vrot.slane %v2952_v22, 5  ;;  %v2962_v20 = vshll.u32 %v10226_v50, 16  ;;  %v3075_v23 = vshrl.u32 %v6427_v26, 16  ;;  %v4395_v34 = vpop.permute.xlu0 %4394 }
 0x29a   : > { %v2958_v6 = vrot.slane %v2956_v0, 4  ;;  %v10245_v29 = vunpack.c.l.b16 %v2809_v42  ;;  %v4318_v44 = vunpack.c.l.b16 %v2346_v32  ;;  %v3078_v59 = vshll.u32 %v6427_v26, 16  ;;  %4576 = vrot.lane.b32.xlu1 %v6997_v40, %s7527_s11  ;;  %v6350_v32 = vld [vmem:[%s7632_s24 + $0xa0] sm:$0xe] }
 0x29b   : > { %v2949_v4 = vor.u32 %v2948_v33, %v2945_v3  ;;  %v5301_v15 = vsel %vm5291_vm12, %v10080_v13, %v4559_v9  ;;  %v10252_v31 = vrot.slane %v2962_v20, 5  ;;  %v3077_v11 = vrot.slane %v3075_v23, 4  ;;  %v11759_v0 = vld [vmem:[#allocation51_spill] sm:$0xff]  ;;  %v7383_v23 = vld [vmem:[%s7632_s24 + $0xa4] sm:$0xf] }
 0x29c   : > { %v2959_v30 = vor.u32 %v2958_v6, %v2954_v28  ;;  %v4319_v49 = vunpack.c.l.b16 %v2349_v55  ;;  %v3080_v10 = vrot.slane %v3078_v59, 5  ;;  %v3084_v7 = vshll.u32 %v6428_v61, 16  ;;  %v4731_v13 = vpop.permute.xlu1 %4730 }
 0x29d   : > { %v2950_v48 = vrot.slane %v2949_v4, 4  ;;  %v10257_v62 = vpack.c.b16 %v4331_v43, %v4330_v41  ;;  %v3088_v46 = vshrl.u32 %v6428_v61, 16  ;;  %v3094_v57 = vshll.u32 %v10248_v16, 16  ;;  %4724 = vrot.lane.b32.xlu2 %v4685_v12, %s7526_s10 }
 0x29e   : > { %v2960_v27 = vrot.slane %v2959_v30, 4  ;;  %v4691_v8 = vpack.c.b16 %v10245_v29, %v10223_v19  ;;  %v3081_v26 = vor.u32 %v3080_v10, %v3077_v11  ;;  %v3086_v9 = vrot.slane %v3084_v7, 5  ;;  %v6465_v29 = vld [vmem:[%s7632_s24 + $0xf0] sm:$0xe] }
 0x29f   : > { %v3473_v21 = vrot.slane %v6428_v61, 5  ;;  %v2955_v60 = vsel %vm7643_vm2, %v2950_v48, %v2954_v28  ;;  %v3090_v42 = vrot.slane %v3088_v46, 4  ;;  %v6484_v41 = vrot.slane %v6468_v37, 9  ;;  %4564 = vrot.lane.b32.xlu0 %v6991_v36, %s7527_s11  ;;  %v10278_v55 = vpop.permute.xlu2 %4572  ;;  %v10316_v48 = vld [vmem:[%s7632_s24 + $0xa8] sm:$0xf] }
 0x2a0   : > { %v2965_v22 = vsel %vm7643_vm2, %v2960_v27, %v10252_v31  ;;  %v10271_v40 = vsel %vm5226_vm10, %v11759_v0, %v4385_v63  ;;  %v5248_v19 = vsel %vm5226_vm10, %v9586_v39, %v4395_v34  ;;  %v10276_v12 = vpack.c.b16 %v4319_v49, %v4318_v44  ;;  %v6403_v49 = vld [vmem:[%s7632_s24 + $0xb4] sm:$0xf] }
 0x2a1   : > { %v3082_v43 = vrot.slane %v3081_v26, 4  ;;  %v3091_v3 = vor.u32 %v3090_v42, %v3086_v9  ;;  %v10280_v33 = vrot.slane %v3094_v57, 5  ;;  %v3475_v28 = vrot.slane %v3473_v21, 4  ;;  %v4719_v20 = vpop.permute.xlu0 %4718 }
 0x2a2   : > { %v3476_v6 = vrot.slane %v10248_v16, 5  ;;  %v10283_v63 = vunpack.c.l.b16 %v2955_v60  ;;  %v10285_v61 = vunpack.c.l.b16 %v2965_v22  ;;  %v6366_v39 = vrot.slane %v6350_v32, 9  ;;  %4884 = vrot.lane.b32.xlu1 %v10205_v24, %s7525_s9  ;;  %v10331_v22 = vld [vmem:[%s7632_s24 + $0xbc] sm:$0xf] }
 0x2a3   : > { %v2306_v34 = vrot.slane %v7383_v23, 5  ;;  %v5313_v44 = vsel %vm5291_vm12, %v5248_v19, %v10108_v18  ;;  %v5366_v4 = vsel %vm5356_vm13, %v5301_v15, %v4719_v20  ;;  %v3092_v59 = vrot.slane %v3091_v3, 4 }
 0x2a4   : > { %v10294_v30 = vsel %vm8016_vm5, %v6484_v41, %v3473_v21  ;;  %v5431_v11 = vsel %vm5421_vm14, %v5366_v4, %v10145_v45  ;;  %v3087_v36 = vsel %vm7643_vm2, %v3082_v43, %v3086_v9  ;;  %v3477_v18 = vsel %vm8016_vm5, %v3475_v28, %v3476_v6  ;;  %v4409_v27 = vpop.permute.xlu1 %4408  ;;  %v6404_v9 = vld [vmem:[%s7632_s24 + $0xb8] sm:$0xf]  ;;  %v7004_v4 = vld [vmem:[%s7632_s24 + $0xf0] sm:$0xff] }
 0x2a5   : > { %v2308_v15 = vrot.slane %v2306_v34, 4  ;;  %6883 = vmatmul.msk.bf16.gmra.mxu0 %vm5510_vm15, %v5431_v11  ;;  %v3097_v45 = vsel %vm7643_vm2, %v3092_v59, %v10280_v33  ;;  %v10313_v24 = vsel %vm8016_vm5, %v6366_v39, %v2306_v34  ;;  %v2309_v10 = vrot.slane %v10316_v48, 5  ;;  %4896 = vrot.lane.b32.xlu2 %v10212_v52, %s7525_s9 }
 0x2a6   : > { %v6481_v7 = vrot.slane %v6465_v29, 9  ;;  %v5378_v37 = vsel %vm5356_vm13, %v5313_v44, %v4731_v13  ;;  %v4698_v46 = vpack.c.b16 %v10285_v61, %v10283_v63  ;;  %v4826_v57 = vunpack.c.l.b16 %v10294_v30 }
 0x2a7   : > { %v3434_v26 = vrot.slane %v10200_v47, 5  ;;  %v10327_v21 = vunpack.c.l.b16 %v3087_v36  ;;  %v3437_v60 = vrot.slane %v10226_v50, 5  ;;  %v2811_v13 = vshrl.u32 %v6403_v49, 16  ;;  %4736 = vrot.lane.b32.xlu0 %v4691_v8, %s7526_s10  ;;  %v10341_v0 = vpop.permute.xlu2 %4880  ;;  %v6462_v8 = vld [vmem:[%s7632_s24 + $0xb4] sm:$0xe] }
 0x2a8   : > { %v2814_v42 = vshll.u32 %v6403_v49, 16  ;;  %v10334_v41 = vunpack.c.l.b16 %v3097_v45  ;;  %v4827_v32 = vunpack.c.l.b16 %v3477_v18  ;;  %v2310_v47 = vsel %vm8016_vm5, %v2308_v15, %v2309_v10 }
 0x2a9   : > { %v4306_v52 = vunpack.c.l.b16 %v10313_v24  ;;  %v3435_v19 = vsel %vm8016_vm5, %v6481_v7, %v3434_v26  ;;  %v3436_v43 = vrot.slane %v3434_v26, 4  ;;  %v2813_v3 = vrot.slane %v2811_v13, 4  ;;  %v4891_v39 = vpop.permute.xlu0 %4890 }
 0x2aa   : > { %v2816_v28 = vrot.slane %v2814_v42, 5  ;;  %v5262_v20 = vsel %vm5226_vm10, %v9576_v51, %v4409_v27  ;;  %v2820_v23 = vshll.u32 %v6404_v9, 16  ;;  %v2824_v34 = vshrl.u32 %v6404_v9, 16  ;;  %4426 = vrot.lane.b32.xlu1 %v10257_v62, %s7524_s8  ;;  %v7385_v42 = vld [vmem:[%s7632_s24 + $0x124] sm:$0xf] }
 0x2ab   : > { %v2830_v29 = vshll.u32 %v10331_v22, 16  ;;  %v5443_v44 = vsel %vm5421_vm14, %v5378_v37, %v4891_v39  ;;  %v4307_v59 = vunpack.c.l.b16 %v2310_v47  ;;  %v3438_v30 = vsel %vm8016_vm5, %v3436_v43, %v3437_v60 }
 0x2ac   : > { %v2817_v11 = vor.u32 %v2816_v28, %v2813_v3  ;;  %6889 = vmatmul.msk.bf16.gmra.mxu1 %vm5510_vm15, %v5443_v44  ;;  %v4814_v51 = vunpack.c.l.b16 %v3435_v19  ;;  %v2822_v36 = vrot.slane %v2820_v23, 5  ;;  %v2826_v18 = vrot.slane %v2824_v34, 4  ;;  %v4905_v37 = vpop.permute.xlu1 %4904  ;;  %v10398_v23 = vld [vmem:[%s7632_s24 + $0xfc] sm:$0xf] }
 0x2ad   : > { %v6478_v15 = vrot.slane %v6462_v8, 9  ;;  %v3395_v45 = vrot.slane %v6404_v9, 5  ;;  %v3398_v24 = vrot.slane %v10331_v22, 5  ;;  %v2389_v7 = vrot.slane %v2387_v56, 4  ;;  %4590 = vrot.lane.b32.xlu2 %v7004_v4, %s7527_s11 }
 0x2ae   : > { %v2818_v49 = vrot.slane %v2817_v11, 4  ;;  %v4815_v27 = vunpack.c.l.b16 %v3438_v30  ;;  %v2827_v26 = vor.u32 %v2826_v18, %v2822_v36  ;;  %v10361_v13 = vrot.slane %v2830_v29, 5  ;;  %v7010_v11 = vld [vmem:[%s7632_s24 + $0x12c] sm:$0xff] }
 0x2af   : > { %v2390_v47 = vrot.slane %v7385_v42, 5  ;;  %v10365_v62 = vpack.c.b16 %v4827_v32, %v4826_v57  ;;  %v3397_v19 = vrot.slane %v3395_v45, 4  ;;  %v2350_v53 = vrot.slane %v2348_v38, 4  ;;  %4414 = vrot.lane.b32.xlu0 %v10276_v12, %s7524_s8  ;;  %v4423_v32 = vpop.permute.xlu2 %4422 }
 0x2b0   : > { %v2823_v9 = vsel %vm7643_vm2, %v2818_v49, %v2822_v36  ;;  %v5327_v56 = vsel %vm5291_vm12, %v5262_v20, %v10184_v2  ;;  %v4704_v43 = vpack.c.b16 %v10334_v41, %v10327_v21  ;;  %v2828_v3 = vrot.slane %v2827_v26, 4  ;;  %v7386_v2 = vld [vmem:[%s7632_s24 + $0xe8] sm:$0xf] }
 0x2b1   : > { %v3396_v57 = vsel %vm8016_vm5, %v6478_v15, %v3395_v45  ;;  %v3399_v17 = vsel %vm8016_vm5, %v3397_v19, %v3398_v24  ;;  %v10385_v38 = vsel %vm8016_vm5, %v2389_v7, %v2390_v47  ;;  %v2392_v12 = vrot.slane %v2390_v47, 4  ;;  %v4745_v21 = vpop.permute.xlu0 %4744  ;;  %v6430_v7 = vld [vmem:[%s7632_s24 + $0x138] sm:$0xf] }
 0x2b2   : > { %v2351_v28 = vrot.slane %v7386_v2, 5  ;;  %v10388_v41 = vpack.c.b16 %v4307_v59, %v4306_v52  ;;  %v10390_v8 = vpack.c.b16 %v4815_v27, %v4814_v51  ;;  %v2833_v20 = vsel %vm7643_vm2, %v2828_v3, %v10361_v13  ;;  %v10406_v52 = vld [vmem:[%s7632_s24 + $0x100] sm:$0x1]  ;;  %4750 = vrot.lane.b32.xlu1 %v4698_v46, %s7526_s10 }
 0x2b3   : > { %v10395_v39 = vunpack.c.l.b16 %v2823_v9  ;;  %v5392_v34 = vsel %vm5356_vm13, %v5327_v56, %v4745_v21  ;;  %v4802_v29 = vunpack.c.l.b16 %v3396_v57  ;;  %v4803_v44 = vunpack.c.l.b16 %v3399_v17 }
 0x2b4   : > { %v10403_v4 = vsel %vm8016_vm5, %v2350_v53, %v2351_v28  ;;  %v10410_v59 = vsel %vm5226_vm10, %v9823_v5, %v4423_v32  ;;  %v5457_v30 = vsel %vm5421_vm14, %v5392_v34, %v4905_v37  ;;  %v11760_v51 = vrot.slane %v9149_v58, 5  ;;  %v4561_v63 = vpop.permute.xlu1 %4560  ;;  %v6452_v37 = vld [vmem:[%s7632_s24 + $0x13c] sm:$0x1] }
 0x2b5   : > { %v4332_v18 = vunpack.c.l.b16 %v10385_v38  ;;  %6896 = vmatmul.msk.bf16.gmra.mxu2 %vm5510_vm15, %v5457_v30  ;;  %v10424_v5 = vunpack.c.l.b16 %v2833_v20  ;;  %v2353_v15 = vrot.slane %v2351_v28, 4  ;;  %v2966_v49 = vshrl.u32 %v10226_v50, 16  ;;  %4762 = vrot.lane.b32.xlu2 %v4704_v43, %s7526_s10 }
 0x2b6   : > { %v2394_v36 = vsel %vm8016_vm5, %v2392_v12, %v11760_v51  ;;  %v2972_v45 = vshll.u32 %v10398_v23, 16  ;;  %v4320_v61 = vunpack.c.l.b16 %v10403_v4  ;;  %v2976_v58 = vshrl.u32 %v10398_v23, 16 }
 0x2b7   : > { %v2982_v46 = vshll.u32 %v10406_v52, 16  ;;  %v3098_v27 = vshrl.u32 %v10248_v16, 16  ;;  %v10435_v26 = vpack.c.b16 %v4803_v44, %v4802_v29  ;;  %v4333_v42 = vunpack.c.l.b16 %v2394_v36  ;;  %4602 = vrot.lane.b32.xlu0 %v7010_v11, %s7527_s11  ;;  %v10438_v57 = vpop.permute.xlu2 %4746  ;;  %v11761_v29 = vld [vmem:[#allocation26_spill] sm:$0xff] }
 0x2b8   : > { %v2968_v47 = vrot.slane %v2966_v49, 4  ;;  %v2974_v9 = vrot.slane %v2972_v45, 5  ;;  %v2978_v19 = vrot.slane %v2976_v58, 4  ;;  %v3104_v3 = vshll.u32 %v6430_v7, 16  ;;  %v11763_v58 = vld [vmem:[#allocation23_spill] sm:$0xff] }
 0x2b9   : > { %v2984_v53 = vrot.slane %v2982_v46, 5  ;;  %v3100_v56 = vrot.slane %v3098_v27, 4  ;;  %v3108_v17 = vshrl.u32 %v6430_v7, 16  ;;  %v3114_v38 = vshll.u32 %v6452_v37, 16  ;;  %v4397_v12 = vpop.permute.xlu0 %4396 }
 0x2ba   : > { %v2969_v32 = vor.u32 %v2968_v47, %v10252_v31  ;;  %v3478_v43 = vrot.slane %v3476_v6, 4  ;;  %v2979_v2 = vor.u32 %v2978_v19, %v2974_v9  ;;  %v3106_v21 = vrot.slane %v3104_v3, 5  ;;  %4922 = vrot.lane.b32.xlu1 %v10365_v62, %s7525_s9 }
 0x2bb   : > { %v3101_v28 = vor.u32 %v3100_v56, %v10280_v33  ;;  %v3479_v20 = vrot.slane %v6430_v7, 5  ;;  %v4692_v34 = vpack.c.b16 %v10424_v5, %v10395_v39  ;;  %v11762_v44 = vrot.slane %v11761_v29, 5 }
 0x2bc   : > { %v2970_v31 = vrot.slane %v2969_v32, 4  ;;  %v3110_v30 = vrot.slane %v3108_v17, 4  ;;  %v2980_v16 = vrot.slane %v2979_v2, 4  ;;  %v3116_v11 = vrot.slane %v3114_v38, 5  ;;  %v4733_v49 = vpop.permute.xlu1 %4732  ;;  %v6406_v38 = vld [vmem:[%s7632_s24 + $0xc0] sm:$0xf] }
 0x2bd   : > { %v2355_v4 = vsel %vm8016_vm5, %v2353_v15, %v11762_v44  ;;  %v3102_v6 = vrot.slane %v3101_v28, 4  ;;  %v3480_v33 = vsel %vm8016_vm5, %v3478_v43, %v3479_v20  ;;  %v3481_v36 = vrot.slane %v3479_v20, 4  ;;  %4402 = vrot.lane.b32.xlu2 %v10388_v41, %s7524_s8 }
 0x2be   : > { %v2975_v51 = vsel %vm7643_vm2, %v2970_v31, %v2974_v9  ;;  %v3111_v39 = vor.u32 %v3110_v30, %v3106_v21  ;;  %v3482_v5 = vrot.slane %v6452_v37, 5  ;;  %v5303_v15 = vsel %vm5291_vm12, %v10271_v40, %v4561_v63  ;;  %v11764_v31 = vld [vmem:[#allocation47_spill] sm:$0xff] }
 0x2bf   : > { %v10458_v45 = vpack.c.b16 %v4333_v42, %v4332_v18  ;;  %v4321_v62 = vunpack.c.l.b16 %v2355_v4  ;;  %v2985_v7 = vsel %vm7643_vm2, %v2980_v16, %v2984_v53  ;;  %v5250_v46 = vsel %vm5226_vm10, %v11763_v58, %v4397_v12  ;;  %4910 = vrot.lane.b32.xlu0 %v10390_v8, %s7525_s9  ;;  %v7387_v42 = vld [vmem:[%s7632_s24 + $0xac] sm:$0xf]  ;;  %v10477_v41 = vpop.permute.xlu2 %4918 }
 0x2c0   : > { %v10466_v27 = vunpack.c.l.b16 %v2975_v51  ;;  %v3107_v37 = vsel %vm7643_vm2, %v3102_v6, %v3106_v21  ;;  %v3112_v47 = vrot.slane %v3111_v39, 4  ;;  %v3483_v40 = vsel %vm8016_vm5, %v3481_v36, %v3482_v5 }
 0x2c1   : > { %v4828_v18 = vunpack.c.l.b16 %v3480_v33  ;;  %v2311_v63 = vrot.slane %v2309_v10, 4  ;;  %v2312_v9 = vrot.slane %v7387_v42, 5  ;;  %v10479_v19 = vunpack.c.l.b16 %v2985_v7  ;;  %v4721_v32 = vpop.permute.xlu0 %4720  ;;  %v6354_v7 = vld [vmem:[%s7632_s24 + $0xf0] sm:$0xe] }
 0x2c2   : > { %v3117_v53 = vsel %vm7643_vm2, %v3112_v47, %v3116_v11  ;;  %v4829_v56 = vunpack.c.l.b16 %v3483_v40  ;;  %v3440_v8 = vrot.slane %v10398_v23, 5  ;;  %v5315_v3 = vsel %vm5291_vm12, %v5250_v46, %v10278_v55  ;;  %v6446_v23 = vld [vmem:[%s7632_s24 + $0xc4] sm:$0x1]  ;;  %4738 = vrot.lane.b32.xlu1 %v4692_v34, %s7526_s10  ;;  %v10522_v11 = vld [vmem:[%s11589_s2] ss:$0 sm:$0xff] }
 0x2c3   : > { %v10486_v48 = vpack.c.b16 %v4321_v62, %v4320_v61  ;;  %v2314_v10 = vrot.slane %v2312_v9, 4  ;;  %v3439_v17 = vrot.slane %v3437_v60, 4  ;;  %v5368_v43 = vsel %vm5356_vm13, %v5303_v15, %v4721_v32  ;;  %v6998_v61 = vld [vmem:[%s7632_s24 + $0xb4] sm:$0xff] }
 0x2c4   : > { %v10492_v12 = vunpack.c.l.b16 %v3107_v37  ;;  %v10494_v2 = vunpack.c.l.b16 %v3117_v53  ;;  %v3443_v28 = vrot.slane %v10406_v52, 5  ;;  %v5380_v21 = vsel %vm5356_vm13, %v5315_v3, %v4733_v49  ;;  %v4411_v4 = vpop.permute.xlu1 %4410 }
 0x2c5   : > { %v5433_v55 = vsel %vm5421_vm14, %v5368_v43, %v10341_v0  ;;  %v2313_v50 = vsel %vm8016_vm5, %v2311_v63, %v2312_v9  ;;  %v3442_v60 = vrot.slane %v3440_v8, 4  ;;  %v4699_v20 = vpack.c.b16 %v10479_v19, %v10466_v27  ;;  %4898 = vrot.lane.b32.xlu2 %v10435_v26, %s7525_s9  ;;  %v10556_v43 = vld [vmem:[%s7632_s24 + $0x130] sm:$0xf] }
 0x2c6   : > { %6884 = vmatmul.msk.bf16.gmra.mxu0 %vm5510_vm15, %v5433_v55  ;;  %v10508_v29 = vpack.c.b16 %v4829_v56, %v4828_v18  ;;  %v2834_v52 = vshrl.u32 %v10331_v22, 16  ;;  %v2840_v44 = vshll.u32 %v6406_v38, 16  ;;  %v11765_v0 = vrot.slane %v11764_v31, 5  ;;  %v7005_v56 = vld [vmem:[%s7632_s24 + $0xf8] sm:$0xff]  ;;  %v6357_v55 = vld [vmem:[%s7632_s24 + $0x12c] sm:$0xe] }
 0x2c7   : > { %v3441_v30 = vsel %vm8016_vm5, %v3439_v17, %v3440_v8  ;;  %v2844_v16 = vshrl.u32 %v6406_v38, 16  ;;  %v2850_v6 = vshll.u32 %v6446_v23, 16  ;;  %v4705_v33 = vpack.c.b16 %v10494_v2, %v10492_v12  ;;  %4578 = vrot.lane.b32.xlu0 %v6998_v61, %s7527_s11  ;;  %v5588_v5 = vpop.f32.mrf.mxu0  ;;  %v10532_v58 = vpop.permute.xlu2 %4562  ;;  %v7388_v17 = vld [vmem:[%s7632_s24 + $0xf4] sm:$0xf] }
 0x2c8   : > { %v2316_v34 = vsel %vm8016_vm5, %v2314_v10, %v11765_v0  ;;  %v4308_v51 = vunpack.c.l.b16 %v2313_v50  ;;  %v3444_v39 = vsel %vm8016_vm5, %v3442_v60, %v3443_v28  ;;  %v2836_v36 = vrot.slane %v2834_v52, 4 }
 0x2c9   : > { %v2842_v15 = vrot.slane %v2840_v44, 5  ;;  %v2846_v49 = vrot.slane %v2844_v16, 4  ;;  %v3400_v26 = vrot.slane %v3398_v24, 4  ;;  %v3401_v62 = vrot.slane %v6406_v38, 5  ;;  %v4893_v18 = vpop.permute.xlu0 %4892  ;;  %v6319_v16 = vld [vmem:[%s7632_s24 + $0x12c] sm:$0xf] }
 0x2ca   : > { %v4309_v46 = vunpack.c.l.b16 %v2316_v34  ;;  %v4816_v37 = vunpack.c.l.b16 %v3441_v30  ;;  %v2837_v47 = vor.u32 %v2836_v36, %v10361_v13  ;;  %v3404_v40 = vrot.slane %v6446_v23, 5  ;;  %4428 = vrot.lane.b32.xlu1 %v10458_v45, %s7524_s8  ;;  %v10563_v23 = vld [vmem:[%s7632_s24 + $0xf8] sm:$0xf]  ;;  %v10585_v30 = vld [vmem:[%s7632_s24 + $0x134] sm:$0xf] }
 0x2cb   : > { %v4817_v63 = vunpack.c.l.b16 %v3444_v39  ;;  %v2847_v42 = vor.u32 %v2846_v49, %v2842_v15  ;;  %v2852_v9 = vrot.slane %v2850_v6, 5  ;;  %v3403_v53 = vrot.slane %v3401_v62, 4 }
 0x2cc   : > { %v10536_v22 = vadd.f32 %v10522_v11, %v5588_v5  ;;  %v5445_v24 = vsel %vm5421_vm14, %v5380_v21, %v4893_v18  ;;  %v2838_v8 = vrot.slane %v2837_v47, 4  ;;  %v6370_v3 = vrot.slane %v6354_v7, 9  ;;  %v4599_v50 = vpop.permute.xlu1 %4598 }
 0x2cd   : > { %6890 = vmatmul.msk.bf16.gmra.mxu1 %vm5510_vm15, %v5445_v24  ;;  %v2848_v13 = vrot.slane %v2847_v42, 4  ;;  %v10548_v32 = vsel %vm8016_vm5, %v3400_v26, %v3401_v62  ;;  %v10552_v10 = vsel %vm8016_vm5, %v3403_v53, %v3404_v40  ;;  %v2358_v38 = vrot.slane %v7388_v17, 5  ;;  %4592 = vrot.lane.b32.xlu2 %v7005_v56, %s7527_s11  ;;  %v7011_v53 = vld [vmem:[%s7632_s24 + $0x134] sm:$0xff] }
 0x2ce   : > { %v5264_v28 = vsel %vm5226_vm10, %v9693_v35, %v4411_v4  ;;  %v2843_v45 = vsel %vm7643_vm2, %v2838_v8, %v2842_v15  ;;  %v2361_v21 = vrot.slane %v10563_v23, 5  ;;  %v2397_v61 = vrot.slane %v10556_v43, 5 }
 0x2cf   : > { %v10568_v60 = vpack.c.b16 %v4309_v46, %v4308_v51  ;;  %v10570_v52 = vpack.c.b16 %v4817_v63, %v4816_v37  ;;  %v2853_v35 = vsel %vm7643_vm2, %v2848_v13, %v2852_v9  ;;  %v2360_v44 = vrot.slane %v2358_v38, 4  ;;  %4416 = vrot.lane.b32.xlu0 %v10486_v48, %s7524_s8  ;;  %v5590_v6 = vpop.f32.mrf.mxu0  ;;  %v10595_v49 = vpop.permute.xlu2 %4734  ;;  %v6419_v9 = vld [vmem:[%s7632_s24 + $0x104] sm:$0xf] }
 0x2d0   : > { %v5818_v4 = vmul.f32 %v10536_v22, %v10536_v22  ;;  %v4804_v31 = vunpack.c.l.b16 %v10548_v32  ;;  %v4805_v0 = vunpack.c.l.b16 %v10552_v10  ;;  %v10582_v34 = vsel %vm8016_vm5, %v6370_v3, %v2358_v38  ;;  %v10629_v3 = vld [vmem:[%s7632_s24 + $0x108] sm:$0xf] }
 0x2d1   : > { %v10590_v51 = vunpack.c.l.b16 %v2843_v45  ;;  %v6373_v39 = vrot.slane %v6357_v55, 9  ;;  %v2399_v36 = vrot.slane %v2397_v61, 4  ;;  %v2400_v5 = vrot.slane %v10585_v30, 5  ;;  %v4587_v7 = vpop.permute.xlu0 %4586  ;;  %v10641_v45 = vld [vmem:[%s7632_s24 + $0x10c] sm:$0xf] }
 0x2d2   : > { %v5341_v15 = vsel %vm5291_vm12, %v10410_v59, %v4599_v50  ;;  %v5591_v26 = vadd.f32 %v10522_v11, %v5590_v6  ;;  %v10598_v62 = vunpack.c.l.b16 %v2853_v35  ;;  %v10604_v48 = vsel %vm8016_vm5, %v2360_v44, %v2361_v21  ;;  %4752 = vrot.lane.b32.xlu1 %v4699_v20, %s7526_s10 }
 0x2d3   : > { %v4322_v46 = vunpack.c.l.b16 %v10582_v34  ;;  %v2030_v37 = vshrl.u32 %v6319_v16, 16  ;;  %v2033_v59 = vshll.u32 %v6319_v16, 16  ;;  %v2039_v47 = vshll.u32 %v10556_v43, 16 }
 0x2d4   : > { %v5329_v40 = vsel %vm5291_vm12, %v5264_v28, %v4587_v7  ;;  %v5748_v18 = vadd.f32 %v5591_v26, %v10536_v22  ;;  %v5819_v63 = vmul.f32 %v5591_v26, %v5591_v26  ;;  %v7021_v42 = vpack.c.bf16 %v5591_v26, %v10536_v22  ;;  %v4907_v17 = vpop.permute.xlu1 %4906 }
 0x2d5   : > { %v4323_v24 = vunpack.c.l.b16 %v10604_v48  ;;  %v10620_v56 = vsel %vm8016_vm5, %v6373_v39, %v2397_v61  ;;  %v10626_v8 = vsel %vm8016_vm5, %v2399_v36, %v2400_v5  ;;  %v2032_v22 = vrot.slane %v2030_v37, 4  ;;  %4764 = vrot.lane.b32.xlu2 %v4705_v33, %s7526_s10  ;;  %v6466_v39 = vld [vmem:[%s7632_s24 + $0x104] sm:$0xe]  ;;  %v6469_v48 = vld [vmem:[%s7632_s24 + $0x140] sm:$0xe] }
 0x2d6   : > { %v5882_v13 = vadd.f32 %v5819_v63, %v5818_v4  ;;  %7022 = vst [vmem:[%s10633_s30] sm:$0xff] %v7021_v42   ;;  %v2035_v27 = vrot.slane %v2033_v59, 5  ;;  %v2041_v19 = vrot.slane %v2039_v47, 5  ;;  %v2043_v20 = vshrl.u32 %v10556_v43, 16 }
 0x2d7   : > { %v5394_v38 = vsel %vm5356_vm13, %v5329_v40, %v10438_v57  ;;  %v2049_v28 = vshll.u32 %v10585_v30, 16  ;;  %v2987_v55 = vshrl.u32 %v6419_v9, 16  ;;  %v2990_v61 = vshll.u32 %v6419_v9, 16  ;;  %4604 = vrot.lane.b32.xlu0 %v7011_v53, %s7527_s11  ;;  %v4413_v36 = vpop.permute.xlu2 %4412 }
 0x2d8   : > { %v5459_v50 = vsel %vm5421_vm14, %v5394_v38, %v4907_v17  ;;  %v2036_v35 = vor.u32 %v2035_v27, %v2032_v22  ;;  %v2045_v43 = vrot.slane %v2043_v20, 4  ;;  %v2996_v44 = vshll.u32 %v10629_v3, 16 }
 0x2d9   : > { %6897 = vmatmul.msk.bf16.gmra.mxu2 %vm5510_vm15, %v5459_v50  ;;  %v10651_v57 = vrot.slane %v2049_v28, 5  ;;  %v2989_v4 = vrot.slane %v2987_v55, 4  ;;  %v2992_v16 = vrot.slane %v2990_v61, 5  ;;  %v3000_v6 = vshrl.u32 %v10629_v3, 16  ;;  %v4759_v7 = vpop.permute.xlu0 %4758  ;;  %v5593_v37 = vpop.f32.mrf.mxu0  ;;  %v11767_v28 = vld [vmem:[#allocation50_spill] sm:$0xff] }
 0x2da   : > { %v2037_v12 = vrot.slane %v2036_v35, 4  ;;  %v2046_v2 = vor.u32 %v2045_v43, %v2041_v19  ;;  %v2998_v33 = vrot.slane %v2996_v44, 5  ;;  %v3006_v26 = vshll.u32 %v10641_v45, 16  ;;  %4924 = vrot.lane.b32.xlu1 %v10508_v29, %s7525_s9  ;;  %v11766_v29 = vld [vmem:[#allocation46_spill] sm:$0xff] }
 0x2db   : > { %v4334_v59 = vunpack.c.l.b16 %v10620_v56  ;;  %v4335_v47 = vunpack.c.l.b16 %v10626_v8  ;;  %v2993_v40 = vor.u32 %v2992_v16, %v2989_v4  ;;  %v3002_v63 = vrot.slane %v3000_v6, 4 }
 0x2dc   : > { %v5406_v42 = vsel %vm5356_vm13, %v5341_v15, %v4759_v7  ;;  %v10660_v9 = vadd.f32 %v10522_v11, %v5593_v37  ;;  %v2047_v53 = vrot.slane %v2046_v2, 4  ;;  %v6482_v22 = vrot.slane %v6466_v39, 9  ;;  %v11768_v39 = vld [vmem:[#allocation63_spill] sm:$0xff] }
 0x2dd   : > { %v5471_v27 = vsel %vm5421_vm14, %v5406_v42, %v10477_v41  ;;  %v2042_v56 = vsel %vm7643_vm2, %v2037_v12, %v2041_v19  ;;  %v2994_v20 = vrot.slane %v2993_v40, 4  ;;  %v3003_v8 = vor.u32 %v3002_v63, %v2998_v33  ;;  %4404 = vrot.lane.b32.xlu2 %v10568_v60, %s7524_s8  ;;  %v6999_v7 = vld [vmem:[%s7632_s24 + $0xbc] sm:$0xff] }
 0x2de   : > { %v5749_v17 = vadd.f32 %v5748_v18, %v10660_v9  ;;  %v5820_v15 = vmul.f32 %v10660_v9, %v10660_v9  ;;  %6903 = vmatmul.msk.bf16.vlgmr.msra.gmra.mxu3 %vm5510_vm15, %v5471_v27  ;;  %v2052_v41 = vsel %vm7643_vm2, %v2047_v53, %v10651_v57  ;;  %v10675_v38 = vrot.slane %v3006_v26, 5  ;;  %v4399_v18 = vpop.permute.xlu1 %4398 }
 0x2df   : > { %v5201_v19 = vsel %vm5161_vm9, %v11766_v29, %v9626_v1  ;;  %v10683_v55 = vsel %vm5161_vm9, %v11767_v28, %v9736_v14  ;;  %v3004_v61 = vrot.slane %v3003_v8, 4  ;;  %v3447_v50 = vrot.slane %v10629_v3, 5  ;;  %v6431_v3 = vld [vmem:[%s7632_s24 + $0x140] sm:$0xf]  ;;  %4912 = vrot.lane.b32.xlu0 %v10570_v52, %s7525_s9 }
 0x2e0   : > { %v5883_v35 = vadd.f32 %v5882_v13, %v5820_v15  ;;  %v4693_v43 = vpack.c.b16 %v10598_v62, %v10590_v51  ;;  %v4853_v1 = vpack.c.b16 %v4805_v0, %v4804_v31  ;;  %v10698_v14 = vpack.c.b16 %v4323_v24, %v4322_v46  ;;  %v10712_v31 = vpop.permute.xlu2 %4600  ;;  %v6432_v62 = vld [vmem:[%s7632_s24 + $0x144] sm:$0xf] }
 0x2e1   : > { %v10703_v60 = vunpack.c.l.b16 %v2042_v56  ;;  %v10705_v13 = vunpack.c.l.b16 %v2052_v41  ;;  %v2999_v32 = vsel %vm7643_vm2, %v2994_v20, %v2998_v33  ;;  %v3009_v10 = vsel %vm7643_vm2, %v3004_v61, %v10675_v38  ;;  %v4387_v24 = vpop.permute.xlu0 %4386  ;;  %v5595_v44 = vpop.f32.mrf.mxu0  ;;  %v11769_v41 = vld [vmem:[#allocation29_spill] sm:$0xff] }
 0x2e2   : > { %v10714_v0 = vpack.c.b16 %v4335_v47, %v4334_v59  ;;  %v3448_v34 = vsel %vm8016_vm5, %v6482_v22, %v3447_v50  ;;  %v3449_v52 = vrot.slane %v3447_v50, 4  ;;  %v3450_v51 = vrot.slane %v10641_v45, 5  ;;  %4740 = vrot.lane.b32.xlu1 %v4693_v43, %s7526_s10  ;;  %v10743_v22 = vld [vmem:[%s7632_s24 + $0x148] sm:$0xf] }
 0x2e3   : > { %v10722_v46 = vsel %vm5226_vm10, %v5201_v19, %v4413_v36  ;;  %v3486_v4 = vrot.slane %v6432_v62, 5  ;;  %v3119_v16 = vshrl.u32 %v6431_v3, 16  ;;  %v3122_v6 = vshll.u32 %v6431_v3, 16 }
 0x2e4   : > { %v5252_v12 = vsel %vm5226_vm10, %v11768_v39, %v4399_v18  ;;  %v5596_v2 = vadd.f32 %v10522_v11, %v5595_v44  ;;  %v10727_v33 = vunpack.c.l.b16 %v2999_v32  ;;  %v10729_v26 = vunpack.c.l.b16 %v3009_v10  ;;  %v6322_v32 = vld [vmem:[%s7632_s24 + $0x138] sm:$0xf] }
 0x2e5   : > { %v4210_v36 = vpack.c.b16 %v10705_v13, %v10703_v60  ;;  %v4818_v37 = vunpack.c.l.b16 %v3448_v34  ;;  %v6485_v59 = vrot.slane %v6469_v48, 9  ;;  %v3121_v47 = vrot.slane %v3119_v16, 4  ;;  %4900 = vrot.lane.b32.xlu2 %v4853_v1, %s7525_s9  ;;  %v7390_v60 = vld [vmem:[%s7632_s24 + $0xfc] sm:$0xf] }
 0x2e6   : > { %v10735_v40 = vadd.f32 %v5749_v17, %v5596_v2  ;;  %v5821_v63 = vmul.f32 %v5596_v2, %v5596_v2  ;;  %v7026_v42 = vpack.c.bf16 %v5596_v2, %v10660_v9  ;;  %v3451_v53 = vsel %vm8016_vm5, %v3449_v52, %v3450_v51  ;;  %v4723_v27 = vpop.permute.xlu1 %4722 }
 0x2e7   : > { %v3488_v56 = vrot.slane %v3486_v4, 4  ;;  %v3489_v20 = vrot.slane %v10743_v22, 5  ;;  %v3124_v8 = vrot.slane %v3122_v6, 5  ;;  %v3128_v15 = vshll.u32 %v6432_v62, 16  ;;  %4580 = vrot.lane.b32.xlu0 %v6999_v7, %s7527_s11 }
 0x2e8   : > { %v5240_v17 = vsel %vm5226_vm10, %v11769_v41, %v4387_v24  ;;  %v10748_v29 = vadd.f32 %v5883_v35, %v5821_v63  ;;  %7178 = vst [vmem:[%s10633_s30 + $0x8] sm:$0xff] %v7026_v42   ;;  %v4700_v9 = vpack.c.b16 %v10729_v26, %v10727_v33  ;;  %v3132_v19 = vshrl.u32 %v6432_v62, 16  ;;  %v10756_v43 = vpop.permute.xlu2 %4908 }
 0x2e9   : > { %v4819_v28 = vunpack.c.l.b16 %v3451_v53  ;;  %v3125_v18 = vor.u32 %v3124_v8, %v3121_v47  ;;  %v3130_v61 = vrot.slane %v3128_v15, 5  ;;  %v3138_v50 = vshll.u32 %v10743_v22, 16  ;;  %v4575_v34 = vpop.permute.xlu0 %4574  ;;  %v6341_v47 = vld [vmem:[%s7632_s24 + $0x13c] sm:$0x1] }
 0x2ea   : > { %v10760_v35 = vsel %vm8016_vm5, %v6485_v59, %v3486_v4  ;;  %v3134_v3 = vrot.slane %v3132_v19, 4  ;;  %v2363_v1 = vrot.slane %v2361_v21, 4  ;;  %v2364_v13 = vrot.slane %v7390_v60, 5  ;;  %4418 = vrot.lane.b32.xlu1 %v10698_v14, %s7524_s8 }
 0x2eb   : > { %v5305_v10 = vsel %vm5291_vm12, %v5240_v17, %v10532_v58  ;;  %v10772_v52 = vsel %vm8016_vm5, %v3488_v56, %v3489_v20  ;;  %v3126_v62 = vrot.slane %v3125_v18, 4  ;;  %v2403_v48 = vrot.slane %v6322_v32, 5  ;;  %v5628_v39 = vpop.f32.mrf.mxu1  ;;  %v11770_v56 = vld [vmem:[#allocation24_spill] sm:$0xff] }
 0x2ec   : > { %v5317_v24 = vsel %vm5291_vm12, %v5252_v12, %v4575_v34  ;;  %v3135_v23 = vor.u32 %v3134_v3, %v3130_v61  ;;  %v10775_v21 = vrot.slane %v3138_v50, 5  ;;  %v2366_v44 = vrot.slane %v2364_v13, 4  ;;  %v10819_v3 = vld [vmem:[%s7632_s24 + $0x110] sm:$0xf] }
 0x2ed   : > { %v5370_v4 = vsel %vm5356_vm13, %v5305_v10, %v4723_v27  ;;  %v10780_v58 = vpack.c.b16 %v4819_v28, %v4818_v37  ;;  %v4830_v16 = vunpack.c.l.b16 %v10760_v35  ;;  %v2402_v6 = vrot.slane %v2400_v5, 4  ;;  %4430 = vrot.lane.b32.xlu2 %v10714_v0, %s7524_s8  ;;  %v7012_v0 = vld [vmem:[%s7632_s24 + $0x140] sm:$0xff] }
 0x2ee   : > { %v4831_v2 = vunpack.c.l.b16 %v10772_v52  ;;  %v3131_v12 = vsel %vm7643_vm2, %v3126_v62, %v3130_v61  ;;  %v3136_v7 = vrot.slane %v3135_v23, 4  ;;  %v2365_v59 = vsel %vm8016_vm5, %v2363_v1, %v2364_v13  ;;  %v4895_v14 = vpop.permute.xlu1 %4894  ;;  %v10829_v52 = vld [vmem:[%s7632_s24 + $0x114] sm:$0x1] }
 0x2ef   : > { %v5382_v37 = vsel %vm5356_vm13, %v5317_v24, %v10595_v49  ;;  %v2405_v63 = vrot.slane %v2403_v48, 4  ;;  %v2406_v42 = vrot.slane %v6341_v47, 5  ;;  %v2053_v5 = vshrl.u32 %v10585_v30, 16  ;;  %4270 = vrot.lane.b32.xlu0 %v4210_v36, %s7523_s6 }
 0x2f0   : > { %v5447_v53 = vsel %vm5421_vm14, %v5382_v37, %v4895_v14  ;;  %v3141_v27 = vsel %vm7643_vm2, %v3136_v7, %v10775_v21  ;;  %v11771_v8 = vrot.slane %v11770_v56, 5  ;;  %v2059_v49 = vshll.u32 %v6322_v32, 16  ;;  %v5598_v28 = vpop.f32.mrf.mxu0  ;;  %v10816_v18 = vpop.permute.xlu2 %4400 }
 0x2f1   : > { %v10806_v30 = vadd.f32 %v10522_v11, %v5628_v39  ;;  %6891 = vmatmul.msk.bf16.gmra.mxu1 %vm5510_vm15, %v5447_v53  ;;  %v10810_v41 = vunpack.c.l.b16 %v3131_v12  ;;  %v4324_v17 = vunpack.c.l.b16 %v2365_v59  ;;  %v10814_v19 = vsel %vm8016_vm5, %v2402_v6, %v2403_v48  ;;  %v4883_v60 = vpop.permute.xlu0 %4882  ;;  %v7006_v6 = vld [vmem:[%s7632_s24 + $0x104] sm:$0xff] }
 0x2f2   : > { %v2368_v15 = vsel %vm8016_vm5, %v2366_v44, %v11771_v8  ;;  %v2055_v61 = vrot.slane %v2053_v5, 4  ;;  %v2061_v50 = vrot.slane %v2059_v49, 5  ;;  %v2063_v36 = vshrl.u32 %v6322_v32, 16  ;;  %4606 = vrot.lane.b32.xlu1 %v7012_v0, %s7527_s11 }
 0x2f3   : > { %v2069_v35 = vshll.u32 %v6341_v47, 16  ;;  %v10822_v1 = vadd.f32 %v10522_v11, %v5598_v28  ;;  %v10824_v13 = vunpack.c.l.b16 %v3141_v27  ;;  %v4325_v10 = vunpack.c.l.b16 %v2368_v15 }
 0x2f4   : > { %v2407_v34 = vsel %vm8016_vm5, %v2405_v63, %v2406_v42  ;;  %v5435_v62 = vsel %vm5421_vm14, %v5370_v4, %v4883_v60  ;;  %v2056_v32 = vor.u32 %v2055_v61, %v10651_v57  ;;  %v2065_v48 = vrot.slane %v2063_v36, 4  ;;  %v5630_v4 = vpop.f32.mrf.mxu1 }
 0x2f5   : > { %v2071_v24 = vrot.slane %v2069_v35, 5  ;;  %v5751_v23 = vadd.f32 %v10735_v40, %v10822_v1  ;;  %v5822_v44 = vmul.f32 %v10822_v1, %v10822_v1  ;;  %6885 = vmatmul.msk.bf16.gmra.mxu0 %vm5510_vm15, %v5435_v62  ;;  %v3010_v39 = vshrl.u32 %v10641_v45, 16  ;;  %4754 = vrot.lane.b32.xlu2 %v4700_v9, %s7526_s10 }
 0x2f6   : > { %v3016_v12 = vshll.u32 %v10819_v3, 16  ;;  %v2057_v7 = vrot.slane %v2056_v32, 4  ;;  %v2066_v57 = vor.u32 %v2065_v48, %v2061_v50  ;;  %v3020_v59 = vshrl.u32 %v10819_v3, 16  ;;  %v4589_v37 = vpop.permute.xlu1 %4588 }
 0x2f7   : > { %v3026_v47 = vshll.u32 %v10829_v52, 16  ;;  %v5885_v40 = vadd.f32 %v10748_v29, %v5822_v44  ;;  %v10846_v14 = vadd.f32 %v10522_v11, %v5630_v4  ;;  %v3012_v63 = vrot.slane %v3010_v39, 4  ;;  %4594 = vrot.lane.b32.xlu0 %v7006_v6, %s7527_s11 }
 0x2f8   : > { %v3018_v42 = vrot.slane %v3016_v12, 5  ;;  %v4866_v5 = vpack.c.b16 %v4831_v2, %v4830_v16  ;;  %v4336_v53 = vunpack.c.l.b16 %v10814_v19  ;;  %v2067_v27 = vrot.slane %v2066_v57, 4  ;;  %v5600_v33 = vpop.f32.mrf.mxu0  ;;  %v10861_v26 = vpop.permute.xlu2 %4724 }
 0x2f9   : > { %v3022_v56 = vrot.slane %v3020_v59, 4  ;;  %v7061_v29 = vpack.c.bf16 %v10846_v14, %v10806_v30  ;;  %v10856_v8 = vpack.c.b16 %v4325_v10, %v4324_v17  ;;  %v2062_v15 = vsel %vm7643_vm2, %v2057_v7, %v2061_v50  ;;  %v4425_v17 = vpop.permute.xlu0 %4424 }
 0x2fa   : > { %v3013_v49 = vor.u32 %v3012_v63, %v10675_v38  ;;  %v4706_v9 = vpack.c.b16 %v10824_v13, %v10810_v41  ;;  %v4337_v16 = vunpack.c.l.b16 %v2407_v34  ;;  %v2072_v2 = vsel %vm7643_vm2, %v2067_v27, %v2071_v24  ;;  %4914 = vrot.lane.b32.xlu1 %v10780_v58, %s7525_s9 }
 0x2fb   : > { %v3023_v0 = vor.u32 %v3022_v56, %v3018_v42  ;;  %v5601_v19 = vadd.f32 %v10522_v11, %v5600_v33  ;;  %7185 = vst [vmem:[%s10633_s30 + $0x40] sm:$0xff] %v7061_v29   ;;  %v3028_v61 = vrot.slane %v3026_v47, 5  ;;  %v3453_v38 = vrot.slane %v10819_v3, 5 }
 0x2fc   : > { %v3014_v28 = vrot.slane %v3013_v49, 4  ;;  %v10870_v50 = vunpack.c.l.b16 %v2062_v15  ;;  %v10872_v36 = vunpack.c.l.b16 %v2072_v2  ;;  %v3452_v35 = vrot.slane %v3450_v51, 4  ;;  %v6434_v51 = vld [vmem:[%s7632_s24 + $0x14c] sm:$0xf]  ;;  %v6324_v2 = vld [vmem:[%s7632_s24 + $0x144] sm:$0xf] }
 0x2fd   : > { %v3024_v41 = vrot.slane %v3023_v0, 4  ;;  %v5752_v60 = vadd.f32 %v5751_v23, %v5601_v19  ;;  %v5823_v13 = vmul.f32 %v5601_v19, %v5601_v19  ;;  %v7031_v10 = vpack.c.bf16 %v5601_v19, %v10822_v1  ;;  %v6453_v23 = vld [vmem:[%s7632_s24 + $0x150] sm:$0x1]  ;;  %4926 = vrot.lane.b32.xlu2 %v4866_v5, %s7525_s9 }
 0x2fe   : > { %v5278_v34 = vsel %vm5226_vm10, %v10683_v55, %v4425_v17  ;;  %v5331_v3 = vsel %vm5291_vm12, %v10722_v46, %v4589_v37  ;;  %v4371_v62 = vpack.c.b16 %v4337_v16, %v4336_v53  ;;  %v3019_v32 = vsel %vm7643_vm2, %v3014_v28, %v3018_v42  ;;  %v4761_v24 = vpop.permute.xlu1 %4760  ;;  %v6323_v53 = vld [vmem:[%s7632_s24 + $0x140] sm:$0xf] }
 0x2ff   : > { %v3456_v45 = vrot.slane %v10829_v52, 5  ;;  %v5886_v48 = vadd.f32 %v5885_v40, %v5823_v13  ;;  %7179 = vst [vmem:[%s10633_s30 + $0x10] sm:$0xff] %v7031_v10   ;;  %v3029_v1 = vsel %vm7643_vm2, %v3024_v41, %v3028_v61  ;;  %v3455_v55 = vrot.slane %v3453_v38, 4  ;;  %4766 = vrot.lane.b32.xlu0 %v4706_v9, %s7526_s10  ;;  %v6358_v13 = vld [vmem:[%s7632_s24 + $0x140] sm:$0xe] }
 0x300   : > { %v3491_v58 = vrot.slane %v3489_v20, 4  ;;  %v5343_v46 = vsel %vm5291_vm12, %v5278_v34, %v10712_v31  ;;  %v4211_v52 = vpack.c.b16 %v10872_v36, %v10870_v50  ;;  %v3492_v44 = vrot.slane %v6434_v51, 5  ;;  %v10904_v7 = vpop.permute.xlu2 %4896  ;;  %v10933_v50 = vld [vmem:[%s7632_s24 + $0x148] sm:$0xf] }
 0x301   : > { %v3495_v6 = vrot.slane %v6453_v23, 5  ;;  %v10899_v39 = vunpack.c.l.b16 %v3019_v32  ;;  %v3454_v12 = vsel %vm8016_vm5, %v3452_v35, %v3453_v38  ;;  %v3142_v20 = vshrl.u32 %v10743_v22, 16  ;;  %v4749_v37 = vpop.permute.xlu0 %4748  ;;  %v7013_v34 = vld [vmem:[%s7632_s24 + $0x148] sm:$0xff] }
 0x302   : > { %v3148_v4 = vshll.u32 %v6434_v51, 16  ;;  %v10906_v57 = vunpack.c.l.b16 %v3029_v1  ;;  %v3457_v31 = vsel %vm8016_vm5, %v3455_v55, %v3456_v45  ;;  %v3494_v59 = vrot.slane %v3492_v44, 4  ;;  %v5603_v40 = vpop.f32.mrf.mxu0  ;;  %4420 = vrot.lane.b32.xlu1 %v10856_v8, %s7524_s8 }
 0x303   : > { %v3152_v47 = vshrl.u32 %v6434_v51, 16  ;;  %v3493_v63 = vsel %vm8016_vm5, %v3491_v58, %v3492_v44  ;;  %v3144_v42 = vrot.slane %v3142_v20, 4  ;;  %v3158_v22 = vshll.u32 %v6453_v23, 16 }
 0x304   : > { %v10912_v5 = vrot.slane %v3148_v4, 5  ;;  %v10916_v27 = vadd.f32 %v10522_v11, %v5603_v40  ;;  %v5396_v56 = vsel %vm5356_vm13, %v5331_v3, %v4749_v37  ;;  %v4820_v29 = vunpack.c.l.b16 %v3454_v12  ;;  %v11772_v37 = vld [vmem:[#allocation32_spill] sm:$0xff] }
 0x305   : > { %v3496_v15 = vsel %vm8016_vm5, %v3494_v59, %v3495_v6  ;;  %v5461_v49 = vsel %vm5421_vm14, %v5396_v56, %v10756_v43  ;;  %v4821_v33 = vunpack.c.l.b16 %v3457_v31  ;;  %v3145_v9 = vor.u32 %v3144_v42, %v10775_v21  ;;  %4432 = vrot.lane.b32.xlu2 %v4371_v62, %s7524_s8 }
 0x306   : > { %v3154_v16 = vrot.slane %v3152_v47, 4  ;;  %v5753_v0 = vadd.f32 %v5752_v60, %v10916_v27  ;;  %v5824_v19 = vmul.f32 %v10916_v27, %v10916_v27  ;;  %6898 = vmatmul.msk.bf16.gmra.mxu2 %vm5510_vm15, %v5461_v49  ;;  %v4832_v17 = vunpack.c.l.b16 %v3493_v63  ;;  %v4389_v43 = vpop.permute.xlu1 %4388 }
 0x307   : > { %v2074_v28 = vshrl.u32 %v6323_v53, 16  ;;  %v4833_v61 = vunpack.c.l.b16 %v3496_v15  ;;  %v3160_v38 = vrot.slane %v3158_v22, 5  ;;  %v2077_v21 = vshll.u32 %v6323_v53, 16  ;;  %4272 = vrot.lane.b32.xlu0 %v4211_v52, %s7523_s6  ;;  %v10963_v53 = vld [vmem:[%s7632_s24 + $0x14c] sm:$0xf] }
 0x308   : > { %v3155_v8 = vor.u32 %v3154_v16, %v10912_v5  ;;  %v5887_v36 = vadd.f32 %v5886_v48, %v5824_v19  ;;  %v3146_v41 = vrot.slane %v3145_v9, 4  ;;  %v2083_v60 = vshll.u32 %v6324_v2, 16  ;;  %v10940_v1 = vpop.permute.xlu2 %4590  ;;  %v10970_v9 = vld [vmem:[%s7632_s24 + $0x150] sm:$0x1] }
 0x309   : > { %v2076_v35 = vrot.slane %v2074_v28, 4  ;;  %v5408_v10 = vsel %vm5356_vm13, %v5343_v46, %v4761_v24  ;;  %v2079_v32 = vrot.slane %v2077_v21, 5  ;;  %v2087_v45 = vshrl.u32 %v6324_v2, 16  ;;  %v5633_v51 = vpop.f32.mrf.mxu1  ;;  %v4921_v44 = vpop.permute.xlu0 %4920 }
 0x30a   : > { %v3156_v3 = vrot.slane %v3155_v8, 4  ;;  %v4701_v48 = vpack.c.b16 %v10906_v57, %v10899_v39  ;;  %v4861_v62 = vpack.c.b16 %v4821_v33, %v4820_v29  ;;  %v2085_v55 = vrot.slane %v2083_v60, 5  ;;  %v5605_v58 = vpop.f32.mrf.mxu0  ;;  %4608 = vrot.lane.b32.xlu1 %v7013_v34, %s7527_s11  ;;  %v7007_v57 = vld [vmem:[%s7632_s24 + $0x10c] sm:$0xff]  ;;  %v6435_v34 = vld [vmem:[%s7632_s24 + $0x154] sm:$0xf] }
 0x30b   : > { %v2093_v23 = vshll.u32 %v10933_v50, 16  ;;  %v10945_v24 = vpack.c.b16 %v4833_v61, %v4832_v17  ;;  %v2080_v46 = vor.u32 %v2079_v32, %v2076_v35  ;;  %v2089_v52 = vrot.slane %v2087_v45, 4 }
 0x30c   : > { %v6374_v6 = vrot.slane %v6358_v13, 9  ;;  %v5606_v12 = vadd.f32 %v10522_v11, %v5605_v58  ;;  %v5473_v20 = vsel %vm5421_vm14, %v5408_v10, %v4921_v44  ;;  %v3151_v39 = vsel %vm7643_vm2, %v3146_v41, %v10912_v5 }
 0x30d   : > { %v3161_v4 = vsel %vm7643_vm2, %v3156_v3, %v3160_v38  ;;  %6904 = vmatmul.msk.bf16.gmra.mxu3 %vm5510_vm15, %v5473_v20  ;;  %v2081_v31 = vrot.slane %v2080_v46, 4  ;;  %v2090_v59 = vor.u32 %v2089_v52, %v2085_v55  ;;  %v2095_v47 = vrot.slane %v2093_v23, 5  ;;  %4756 = vrot.lane.b32.xlu2 %v4701_v48, %s7526_s10  ;;  %v11006_v23 = vld [vmem:[%s7632_s24 + $0x15c] sm:$0xf] }
 0x30e   : > { %v2410_v40 = vrot.slane %v6324_v2, 5  ;;  %v5242_v63 = vsel %vm5226_vm10, %v11772_v37, %v4389_v43  ;;  %v10959_v42 = vadd.f32 %v5753_v0, %v5606_v12  ;;  %v5825_v5 = vmul.f32 %v5606_v12, %v5606_v12  ;;  %v10965_v56 = vpop.permute.xlu1 %4576 }
 0x30f   : > { %v7036_v22 = vpack.c.bf16 %v5606_v12, %v10916_v27  ;;  %v4672_v29 = vunpack.c.l.b16 %v3151_v39  ;;  %v2091_v15 = vrot.slane %v2090_v59, 4  ;;  %v10973_v16 = vadd.f32 %v10522_v11, %v5633_v51  ;;  %4596 = vrot.lane.b32.xlu0 %v7007_v57, %s7527_s11 }
 0x310   : > { %v2411_v49 = vsel %vm8016_vm5, %v6374_v6, %v2410_v40  ;;  %v2412_v33 = vrot.slane %v2410_v40, 4  ;;  %v10975_v2 = vadd.f32 %v5887_v36, %v5825_v5  ;;  %v4673_v27 = vunpack.c.l.b16 %v3161_v4  ;;  %v10999_v3 = vpop.permute.xlu2 %4762  ;;  %v6470_v6 = vld [vmem:[%s7632_s24 + $0x154] sm:$0xe] }
 0x311   : > { %7180 = vst [vmem:[%s10633_s30 + $0x18] sm:$0xff] %v7036_v22   ;;  %v2413_v0 = vrot.slane %v10933_v50, 5  ;;  %v2086_v19 = vsel %vm7643_vm2, %v2081_v31, %v2085_v55  ;;  %v2096_v17 = vsel %vm7643_vm2, %v2091_v15, %v2095_v47  ;;  %v2097_v28 = vshrl.u32 %v10933_v50, 16  ;;  %v5635_v61 = vpop.f32.mrf.mxu1  ;;  %v4565_v35 = vpop.permute.xlu0 %4564  ;;  %v6436_v55 = vld [vmem:[%s7632_s24 + $0x158] sm:$0xf] }
 0x312   : > { %v2103_v43 = vshll.u32 %v10963_v53, 16  ;;  %v4338_v38 = vunpack.c.l.b16 %v2411_v49  ;;  %v2107_v21 = vshrl.u32 %v10963_v53, 16  ;;  %v2113_v36 = vshll.u32 %v10970_v9, 16  ;;  %4916 = vrot.lane.b32.xlu1 %v4861_v62, %s7525_s9 }
 0x313   : > { %v2414_v8 = vsel %vm8016_vm5, %v2412_v33, %v2413_v0  ;;  %v10994_v41 = vadd.f32 %v10522_v11, %v5635_v61  ;;  %v2099_v13 = vrot.slane %v2097_v28, 4  ;;  %v5307_v32 = vsel %vm5291_vm12, %v5242_v63, %v4565_v35  ;;  %v11773_v33 = vld [vmem:[#allocation62_spill] sm:$0xff] }
 0x314   : > { %v4339_v60 = vunpack.c.l.b16 %v2414_v8  ;;  %v10996_v10 = vrot.slane %v2103_v43, 5  ;;  %v4707_v45 = vpack.c.b16 %v4673_v27, %v4672_v29  ;;  %v11002_v51 = vunpack.c.l.b16 %v2086_v19 }
 0x315   : > { %v2109_v48 = vrot.slane %v2107_v21, 4  ;;  %v7066_v58 = vpack.c.bf16 %v10994_v41, %v10973_v16  ;;  %v5372_v44 = vsel %vm5356_vm13, %v5307_v32, %v10861_v26  ;;  %v4179_v46 = vunpack.c.l.b16 %v2096_v17  ;;  %4928 = vrot.lane.b32.xlu2 %v10945_v24, %s7525_s9 }
 0x316   : > { %v2115_v52 = vrot.slane %v2113_v36, 5  ;;  %v2100_v12 = vor.u32 %v2099_v13, %v2095_v47  ;;  %v3163_v39 = vshrl.u32 %v6435_v34, 16  ;;  %v3166_v4 = vshll.u32 %v6435_v34, 16  ;;  %v4885_v57 = vpop.permute.xlu1 %4884 }
 0x317   : > { %v2110_v20 = vor.u32 %v2109_v48, %v10996_v10  ;;  %7186 = vst [vmem:[%s10633_s30 + $0x48] sm:$0xff] %v7066_v58   ;;  %v4372_v31 = vpack.c.b16 %v4339_v60, %v4338_v38  ;;  %v3172_v59 = vshll.u32 %v6436_v55, 16  ;;  %v3176_v40 = vshrl.u32 %v6436_v55, 16  ;;  %4768 = vrot.lane.b32.xlu0 %v4707_v45, %s7526_s10  ;;  %v7014_v38 = vld [vmem:[%s7632_s24 + $0x154] sm:$0xff]  ;;  %v6940_v45 = vld [vmem:[%s7632_s24 + $0xc8] sm:$0xff] }
 0x318   : > { %v3182_v37 = vshll.u32 %v11006_v23, 16  ;;  %v5437_v26 = vsel %vm5421_vm14, %v5372_v44, %v4885_v57  ;;  %v2101_v62 = vrot.slane %v2100_v12, 4  ;;  %v3165_v63 = vrot.slane %v3163_v39, 4  ;;  %v5668_v47 = vpop.f32.mrf.mxu2  ;;  %v11042_v34 = vpop.permute.xlu2 %4402  ;;  %v6946_v58 = vld [vmem:[%s7632_s24 + $0x104] sm:$0xff] }
 0x319   : > { %v6486_v5 = vrot.slane %v6470_v6, 9  ;;  %6886 = vmatmul.msk.bf16.gmra.mxu0 %vm5510_vm15, %v5437_v26  ;;  %v2111_v22 = vrot.slane %v2110_v20, 4  ;;  %v3168_v29 = vrot.slane %v3166_v4, 5  ;;  %v3174_v15 = vrot.slane %v3172_v59, 5  ;;  %v4737_v17 = vpop.permute.xlu0 %4736 }
 0x31a   : > { %v3178_v49 = vrot.slane %v3176_v40, 4  ;;  %v5254_v27 = vsel %vm5226_vm10, %v11773_v33, %v10816_v18  ;;  %v3499_v24 = vrot.slane %v6436_v55, 5  ;;  %v4212_v28 = vpack.c.b16 %v4179_v46, %v11002_v51  ;;  %4434 = vrot.lane.b32.xlu1 %v4372_v31, %s7524_s8  ;;  %v11777_v33 = vld [vmem:[#allocation41_spill] sm:$0xff] }
 0x31b   : > { %v5319_v19 = vsel %vm5291_vm12, %v5254_v27, %v10965_v56  ;;  %v3169_v43 = vor.u32 %v3168_v29, %v3165_v63  ;;  %v11028_v61 = vrot.slane %v3182_v37, 5  ;;  %v2106_v21 = vsel %vm7643_vm2, %v2101_v62, %v10996_v10  ;;  %v11774_v37 = vld [vmem:[#allocation10_spill] sm:$0xff]  ;;  %v11775_v29 = vld [vmem:[#allocation12_spill] sm:$0xff] }
 0x31c   : > { %v5384_v8 = vsel %vm5356_vm13, %v5319_v19, %v4737_v17  ;;  %v3179_v36 = vor.u32 %v3178_v49, %v3174_v15  ;;  %v3500_v18 = vsel %vm8016_vm5, %v6486_v5, %v3499_v24  ;;  %v2116_v35 = vsel %vm7643_vm2, %v2111_v22, %v2115_v52  ;;  %v6438_v22 = vld [vmem:[%s7632_s24 + $0x160] sm:$0xf] }
 0x31d   : > { %v5449_v56 = vsel %vm5421_vm14, %v5384_v8, %v10904_v7  ;;  %v3170_v60 = vrot.slane %v3169_v43, 4  ;;  %v3501_v13 = vrot.slane %v3499_v24, 4  ;;  %v3502_v32 = vrot.slane %v11006_v23, 5  ;;  %4610 = vrot.lane.b32.xlu2 %v7014_v38, %s7527_s11  ;;  %v11776_v49 = vld [vmem:[#allocation35_spill] sm:$0xff]  ;;  %v11778_v8 = vld [vmem:[#allocation58_spill] sm:$0xff] }
 0x31e   : > { %6892 = vmatmul.msk.bf16.gmra.mxu1 %vm5510_vm15, %v5449_v56  ;;  %v3180_v10 = vrot.slane %v3179_v36, 4  ;;  %v11047_v51 = vpop.permute.xlu1 %4426  ;;  %v4834_v48 = vunpack.c.l.b16 %v3500_v18  ;;  %v2416_v55 = vrot.slane %v10963_v53, 5  ;;  %v4180_v44 = vunpack.c.l.b16 %v2106_v21  ;;  %v6454_v36 = vld [vmem:[%s7632_s24 + $0x164] sm:$0x1] }
 0x31f   : > { %v3175_v7 = vsel %vm7643_vm2, %v3170_v60, %v3174_v15  ;;  %v4181_v46 = vunpack.c.l.b16 %v2116_v35  ;;  %v3503_v6 = vsel %vm8016_vm5, %v3501_v13, %v3502_v32  ;;  %4274 = vrot.lane.b32.xlu0 %v4212_v28, %s7523_s6  ;;  %v2415_v53 = vrot.slane %v2413_v0, 4 }
 0x320   : > { %v3185_v52 = vsel %vm7643_vm2, %v3180_v10, %v11028_v61  ;;  %v5670_v12 = vpop.f32.mrf.mxu2  ;;  %v4674_v20 = vunpack.c.l.b16 %v3175_v7  ;;  %v4835_v4 = vunpack.c.l.b16 %v3503_v6  ;;  %v11063_v57 = vadd.f32 %v10522_v11, %v5668_v47  ;;  %v11092_v60 = vpop.permute.xlu2 %4898 }
 0x321   : > { %v4675_v39 = vunpack.c.l.b16 %v3185_v52  ;;  %v11066_v31 = vadd.f32 %v10522_v11, %v5670_v12  ;;  %v2418_v59 = vrot.slane %v2416_v55, 4  ;;  %v2419_v40 = vrot.slane %v10970_v9, 5  ;;  %v4415_v63 = vpop.permute.xlu0 %4414  ;;  %v11780_v52 = vld [vmem:[#allocation66_spill] sm:$0xff] }
 0x322   : > { %v4997_v26 = vsel %vm4934_vm6, %v6940_v45, %v11774_v37  ;;  %v5608_v62 = vpop.f32.mrf.mxu0  ;;  %v4868_v5 = vpack.c.b16 %v4835_v4, %v4834_v48  ;;  %v5015_v50 = vsel %vm4934_vm6, %v6946_v58, %v11775_v29  ;;  %v4213_v15 = vpack.c.b16 %v4181_v46, %v4180_v44  ;;  %v7015_v48 = vld [vmem:[%s7632_s24 + $0x15c] sm:$0xff]  ;;  %v11781_v37 = vld [vmem:[#allocation48_spill] sm:$0xff] }
 0x323   : > { %v7101_v0 = vpack.c.bf16 %v11066_v31, %v11063_v57  ;;  %v5609_v47 = vadd.f32 %v10522_v11, %v5608_v62  ;;  %v5073_v9 = vsel %vm5031_vm7, %v4997_v26, %v11776_v49  ;;  %v5085_v27 = vsel %vm5031_vm7, %v5015_v50, %v11777_v33  ;;  %v11779_v46 = vld [vmem:[#allocation39_spill] sm:$0xff] }
 0x324   : > { %v4708_v24 = vpack.c.b16 %v4675_v39, %v4674_v20  ;;  %4930 = vrot.lane.b32.xlu1 %v4868_v5, %s7525_s9  ;;  %v2417_v19 = vsel %vm8016_vm5, %v2415_v53, %v2416_v55  ;;  %v2420_v11 = vsel %vm8016_vm5, %v2418_v59, %v2419_v40  ;;  %v3505_v43 = vrot.slane %v6438_v22, 5  ;;  %v11110_v62 = vld [vmem:[%s11589_s2] ss:$0 sm:$0xff] }
 0x325   : > { %7193 = vst [vmem:[%s10633_s30 + $0x80] sm:$0xff] %v7101_v0   ;;  %v5755_v17 = vadd.f32 %v10959_v42, %v5609_v47  ;;  %v5826_v28 = vmul.f32 %v5609_v47, %v5609_v47  ;;  %v5150_v38 = vsel %vm5096_vm8, %v5085_v27, %v11778_v8  ;;  %v3186_v18 = vshrl.u32 %v11006_v23, 16  ;;  %4276 = vrot.lane.b32.xlu2 %v4213_v15, %s7523_s6 }
 0x326   : > { %v4751_v21 = vpop.permute.xlu1 %4750  ;;  %v3192_v56 = vshll.u32 %v6438_v22, 16  ;;  %v3196_v35 = vshrl.u32 %v6438_v22, 16  ;;  %v4340_v42 = vunpack.c.l.b16 %v2417_v19  ;;  %v3504_v10 = vrot.slane %v3502_v32, 4 }
 0x327   : > { %v5889_v13 = vadd.f32 %v10975_v2, %v5826_v28  ;;  %v3202_v45 = vshll.u32 %v6454_v36, 16  ;;  %4770 = vrot.lane.b32.xlu0 %v4708_v24, %s7526_s10  ;;  %v4341_v7 = vunpack.c.l.b16 %v2420_v11  ;;  %v3188_v55 = vrot.slane %v3186_v18, 4 }
 0x328   : > { %v3194_v58 = vrot.slane %v3192_v56, 5  ;;  %v3198_v44 = vrot.slane %v3196_v35, 4  ;;  %v5138_v23 = vsel %vm5096_vm8, %v5073_v9, %v11779_v46  ;;  %v5215_v6 = vsel %vm5161_vm9, %v5150_v38, %v11780_v52  ;;  %v11132_v8 = vpop.permute.xlu2 %4592 }
 0x329   : > { %v5638_v12 = vpop.f32.mrf.mxu1  ;;  %v3507_v2 = vrot.slane %v3505_v43, 4  ;;  %v3508_v20 = vrot.slane %v6454_v36, 5  ;;  %v5280_v32 = vsel %vm5226_vm10, %v5215_v6, %v11047_v51  ;;  %v4603_v4 = vpop.permute.xlu0 %4602  ;;  %v3189_v53 = vor.u32 %v3188_v55, %v11028_v61  ;;  %v6934_v36 = vld [vmem:[%s7632_s24 + $0x8c] sm:$0xff] }
 0x32a   : > { %v5610_v39 = vpop.f32.mrf.mxu0  ;;  %v3199_v59 = vor.u32 %v3198_v44, %v3194_v58  ;;  %v3204_v40 = vrot.slane %v3202_v45, 5  ;;  %v5203_v26 = vsel %vm5161_vm9, %v5138_v23, %v11781_v37  ;;  %v5345_v22 = vsel %vm5291_vm12, %v5280_v32, %v4603_v4  ;;  %v11782_v45 = vld [vmem:[#allocation9_spill] sm:$0xff] }
 0x32b   : > { %v5611_v5 = vadd.f32 %v11110_v62, %v5610_v39  ;;  %v4373_v51 = vpack.c.b16 %v4341_v7, %v4340_v42  ;;  %v3506_v61 = vsel %vm8016_vm5, %v3504_v10, %v3505_v43  ;;  %v3190_v29 = vrot.slane %v3189_v53, 4  ;;  %v11785_v23 = vld [vmem:[#allocation49_spill] sm:$0xff] }
 0x32c   : > { %4612 = vrot.lane.b32.xlu1 %v7015_v48, %s7527_s11  ;;  %v3200_v50 = vrot.slane %v3199_v59, 4  ;;  %v3509_v9 = vsel %vm8016_vm5, %v3507_v2, %v3508_v20  ;;  %v5268_v33 = vsel %vm5226_vm10, %v5203_v26, %v4415_v63  ;;  %v5410_v24 = vsel %vm5356_vm13, %v5345_v22, %v10999_v3 }
 0x32d   : > { %v5756_v0 = vadd.f32 %v5755_v17, %v5611_v5  ;;  %v5827_v15 = vmul.f32 %v5611_v5, %v5611_v5  ;;  %v7041_v49 = vpack.c.bf16 %v5611_v5, %v5609_v47  ;;  %v3195_v19 = vsel %vm7643_vm2, %v3190_v29, %v3194_v58  ;;  %v11784_v58 = vld [vmem:[#allocation28_spill] sm:$0xff]  ;;  %v6941_v29 = vld [vmem:[%s7632_s24 + $0xd0] sm:$0xff] }
 0x32e   : > { %v4923_v27 = vpop.permute.xlu1 %4922  ;;  %v3205_v28 = vsel %vm7643_vm2, %v3200_v50, %v3204_v40  ;;  %v4676_v17 = vunpack.c.l.b16 %v3195_v19  ;;  %v4836_v63 = vunpack.c.l.b16 %v3506_v61  ;;  %v4837_v43 = vunpack.c.l.b16 %v3509_v9  ;;  %v6947_v40 = vld [vmem:[%s7632_s24 + $0x10c] sm:$0xff]  ;;  %v11786_v50 = vld [vmem:[#allocation18_spill] sm:$0xff] }
 0x32f   : > { %v5890_v11 = vadd.f32 %v5889_v13, %v5827_v15  ;;  %7181 = vst [vmem:[%s10633_s30 + $0x20] sm:$0xff] %v7041_v49   ;;  %v5475_v47 = vsel %vm5421_vm14, %v5410_v24, %v4923_v27  ;;  %v4677_v54 = vunpack.c.l.b16 %v3205_v28  ;;  %4436 = vrot.lane.b32.xlu0 %v4373_v51, %s7524_s8  ;;  %v5333_v3 = vsel %vm5291_vm12, %v5268_v33, %v10940_v1  ;;  %v11787_v9 = vld [vmem:[#allocation33_spill] sm:$0xff]  ;;  %s6914_s8 = sshll.u32 %s7506_s19, 7  ;;  %s7412_s19 = scalar_lea.hbm %s11590_s3, 1024 }
 0x330   : > { %6905 = vmatmul.msk.bf16.gmra.mxu3 %vm5510_vm15, %v5475_v47  ;;  %v11136_v18 = vadd.f32 %v11110_v62, %v5638_v12  ;;  %v5398_v56 = vsel %vm5356_vm13, %v5333_v3, %v4751_v21  ;;  %v4869_v10 = vpack.c.b16 %v4837_v43, %v4836_v63  ;;  %v4979_v7 = vsel %vm4934_vm6, %v6934_v36, %v11782_v45  ;;  %v11783_v21 = vld [vmem:[#allocation30_spill] sm:$0xff]  ;;  %v4765_v2 = vpop.permute.xlu2 %4764  ;;  %v11788_v24 = vld [vmem:[#allocation57_spill] sm:$0xff] }
 0x331   : > { %v5640_v25 = vpop.f32.mrf.mxu1  ;;  %v4709_v38 = vpack.c.b16 %v4677_v54, %v4676_v17  ;;  %v4911_v13 = vpop.permute.xlu0 %4910  ;;  %v5061_v55 = vsel %vm5031_vm7, %v4979_v7, %v11783_v21  ;;  %v5018_v15 = vsel %vm4934_vm6, %v6947_v40, %v11786_v50  ;;  %v11789_v28 = vld [vmem:[#allocation65_spill] sm:$0xff]  ;;  %v11790_v54 = vld [vmem:[#allocation16_spill] sm:$0xff] }
 0x332   : > { %v11140_v35 = vadd.f32 %v11110_v62, %v5640_v25  ;;  %v5463_v42 = vsel %vm5421_vm14, %v5398_v56, %v4911_v13  ;;  %v5126_v44 = vsel %vm5096_vm8, %v5061_v55, %v11784_v58  ;;  %v5087_v33 = vsel %vm5031_vm7, %v5018_v15, %v11787_v9  ;;  %v11791_v25 = vld [vmem:[#allocation27_spill] sm:$0xff]  ;;  %v11792_v56 = vld [vmem:[#allocation8_spill] sm:$0xff] }
 0x333   : > { %4772 = vrot.lane.b32.xlu2 %v4709_v38, %s7526_s10  ;;  %6899 = vmatmul.msk.bf16.gmra.mxu2 %vm5510_vm15, %v5463_v42  ;;  %v5191_v52 = vsel %vm5161_vm9, %v5126_v44, %v11785_v23  ;;  %v5152_v19 = vsel %vm5096_vm8, %v5087_v33, %v11788_v24  ;;  %v11793_v42 = vld [vmem:[#allocation31_spill] sm:$0xff] }
 0x334   : > { %v7071_v1 = vpack.c.bf16 %v11140_v35, %v11136_v18  ;;  %v5256_v6 = vsel %vm5226_vm10, %v5191_v52, %v11042_v34  ;;  %v5217_v47 = vsel %vm5161_vm9, %v5152_v19, %v11789_v28  ;;  %v6942_v28 = vld [vmem:[%s7632_s24 + $0xdc] sm:$0xff] }
 0x336   : > { %7187 = vst [vmem:[%s10633_s30 + $0x50] sm:$0xff] %v7071_v1   ;;  %v4739_v48 = vpop.permute.xlu1 %4738 }
 0x337   : > { %4932 = vrot.lane.b32.xlu0 %v4869_v10, %s7525_s9 }
 0x338   : > { %v5673_v46 = vpop.f32.mrf.mxu2  ;;  %v4405_v51 = vpop.permute.xlu2 %4404 }
 0x339   : > { %v4579_v12 = vpop.permute.xlu0 %4578  ;;  %v11165_v59 = vadd.f32 %v11110_v62, %v5673_v46 }
 0x33a   : > { %v5321_v20 = vsel %vm5291_vm12, %v5256_v6, %v4579_v12  ;;  %v6935_v6 = vld [vmem:[%s7632_s24 + $0x94] sm:$0xff] }
 0x33b   : > { %v5386_v32 = vsel %vm5356_vm13, %v5321_v20, %v4739_v48 }
 0x33c   : > { %v5451_v39 = vsel %vm5421_vm14, %v5386_v32, %v11092_v60 }
 0x33d   : > { %6893 = vmatmul.msk.bf16.gmra.mxu1 %vm5510_vm15, %v5451_v39 }
 0x33e   : > { %v4429_v4 = vpop.permute.xlu1 %4428 }
 0x33f   : > { %v5282_v63 = vsel %vm5226_vm10, %v5217_v47, %v4429_v4 }
 0x340   : > { %v5675_v53 = vpop.f32.mrf.mxu2  ;;  %v4901_v58 = vpop.permute.xlu2 %4900 }
 0x341   : > { %v11168_v34 = vadd.f32 %v11110_v62, %v5675_v53  ;;  %v4417_v26 = vpop.permute.xlu0 %4416  ;;  %v11794_v53 = vld [vmem:[#allocation13_spill] sm:$0xff] }
 0x343   : > { %v5613_v37 = vpop.f32.mrf.mxu0  ;;  %v7106_v5 = vpack.c.bf16 %v11168_v34, %v11165_v59 }
 0x344   : > { %v5614_v22 = vadd.f32 %v11110_v62, %v5613_v37  ;;  %v11795_v37 = vld [vmem:[#allocation21_spill] sm:$0xff] }
 0x345   : > { %7194 = vst [vmem:[%s10633_s30 + $0x88] sm:$0xff] %v7106_v5   ;;  %v11796_v5 = vld [vmem:[#allocation52_spill] sm:$0xff] }
 0x346   : > { %v5757_v60 = vadd.f32 %v5756_v0, %v5614_v22  ;;  %v5828_v61 = vmul.f32 %v5614_v22, %v5614_v22  ;;  %v4753_v49 = vpop.permute.xlu1 %4752  ;;  %v5000_v0 = vsel %vm4934_vm6, %v6941_v29, %v11790_v54 }
 0x347   : > { %v5075_v38 = vsel %vm5031_vm7, %v5000_v0, %v11791_v25 }
 0x348   : > { %v5891_v27 = vadd.f32 %v5890_v11, %v5828_v61  ;;  %v5140_v13 = vsel %vm5096_vm8, %v5075_v38, %v11792_v56  ;;  %v4431_v29 = vpop.permute.xlu2 %4430  ;;  %v6948_v38 = vld [vmem:[%s7632_s24 + $0x118] sm:$0xff]  ;;  %v11800_v56 = vld [vmem:[#allocation25_spill] sm:$0xff] }
 0x349   : > { %v4605_v3 = vpop.permute.xlu0 %4604  ;;  %v5205_v1 = vsel %vm5161_vm9, %v5140_v13, %v11793_v42 }
 0x34a   : > { %v5643_v17 = vpop.f32.mrf.mxu1  ;;  %v5347_v36 = vsel %vm5291_vm12, %v5282_v63, %v4605_v3  ;;  %v5270_v48 = vsel %vm5226_vm10, %v5205_v1, %v4417_v26  ;;  %v11798_v63 = vld [vmem:[#allocation15_spill] sm:$0xff]  ;;  %v11801_v1 = vld [vmem:[#allocation64_spill] sm:$0xff] }
 0x34b   : > { %v5615_v43 = vpop.f32.mrf.mxu0  ;;  %v5412_v55 = vsel %vm5356_vm13, %v5347_v36, %v4765_v2  ;;  %v5335_v23 = vsel %vm5291_vm12, %v5270_v48, %v11132_v8  ;;  %v11208_v12 = vadd.f32 %v11110_v62, %v5643_v17  ;;  %v4982_v8 = vsel %vm4934_vm6, %v6935_v6, %v11794_v53  ;;  %v11803_v6 = vld [vmem:[#allocation44_spill] sm:$0xff] }
 0x34c   : > { %v5616_v11 = vadd.f32 %v11110_v62, %v5615_v43  ;;  %v5400_v20 = vsel %vm5356_vm13, %v5335_v23, %v4753_v49  ;;  %v5063_v26 = vsel %vm5031_vm7, %v4982_v8, %v11795_v37  ;;  %v5003_v43 = vsel %vm4934_vm6, %v6942_v28, %v11798_v63 }
 0x34e   : > { %v11195_v10 = vadd.f32 %v5757_v60, %v5616_v11  ;;  %v5829_v45 = vmul.f32 %v5616_v11, %v5616_v11  ;;  %v7046_v7 = vpack.c.bf16 %v5616_v11, %v5614_v22  ;;  %v4925_v21 = vpop.permute.xlu1 %4924  ;;  %v5128_v22 = vsel %vm5096_vm8, %v5063_v26, %v11796_v5  ;;  %v11797_v60 = vld [vmem:[#allocation61_spill] sm:$0xff]  ;;  %v11799_v11 = vld [vmem:[#allocation40_spill] sm:$0xff] }
 0x34f   : > { %v5477_v46 = vsel %vm5421_vm14, %v5412_v55, %v4925_v21  ;;  %v5193_v61 = vsel %vm5161_vm9, %v5128_v22, %v11797_v60  ;;  %v5077_v36 = vsel %vm5031_vm7, %v5003_v43, %v11799_v11 }
 0x350   : > { %v11199_v44 = vadd.f32 %v5891_v27, %v5829_v45  ;;  %7182 = vst [vmem:[%s10633_s30 + $0x28] sm:$0xff] %v7046_v7   ;;  %6906 = vmatmul.msk.bf16.gmra.mxu3 %vm5510_vm15, %v5477_v46  ;;  %v5258_v50 = vsel %vm5226_vm10, %v5193_v61, %v4405_v51  ;;  %v4755_v17 = vpop.permute.xlu2 %4754  ;;  %v5142_v13 = vsel %vm5096_vm8, %v5077_v36, %v11800_v56 }
 0x351   : > { %v4913_v32 = vpop.permute.xlu0 %4912  ;;  %v5207_v45 = vsel %vm5161_vm9, %v5142_v13, %v11801_v1  ;;  %v6949_v13 = vld [vmem:[%s7632_s24 + $0x120] sm:$0xff] }
 0x352   : > { %v5645_v52 = vpop.f32.mrf.mxu1  ;;  %v5465_v39 = vsel %vm5421_vm14, %v5400_v20, %v4913_v32  ;;  %v11804_v32 = vld [vmem:[#allocation54_spill] sm:$0xff] }
 0x353   : > { %v11212_v2 = vadd.f32 %v11110_v62, %v5645_v52  ;;  %6900 = vmatmul.msk.bf16.gmra.mxu2 %vm5510_vm15, %v5465_v39 }
 0x355   : > { %v7076_v4 = vpack.c.bf16 %v11212_v2, %v11208_v12 }
 0x356   : > { %v4741_v40 = vpop.permute.xlu1 %4740 }
 0x357   : > { %7188 = vst [vmem:[%s10633_s30 + $0x58] sm:$0xff] %v7076_v4  }
 0x358   : > { %v4927_v4 = vpop.permute.xlu2 %4926 }
 0x359   : > { %v4581_v15 = vpop.permute.xlu0 %4580 }
 0x35a   : > { %v5323_v49 = vsel %vm5291_vm12, %v5258_v50, %v4581_v15 }
 0x35b   : > { %v5388_v33 = vsel %vm5356_vm13, %v5323_v49, %v4741_v40 }
 0x35c   : > { %v5678_v9 = vpop.f32.mrf.mxu2  ;;  %v5453_v27 = vsel %vm5421_vm14, %v5388_v33, %v4901_v58  ;;  %v11802_v58 = vld [vmem:[#allocation17_spill] sm:$0xff] }
 0x35d   : > { %6894 = vmatmul.msk.bf16.gmra.mxu1 %vm5510_vm15, %v5453_v27  ;;  %v11234_v51 = vadd.f32 %v11110_v62, %v5678_v9  ;;  %v5021_v46 = vsel %vm4934_vm6, %v6948_v38, %v11802_v58  ;;  %v11805_v38 = vld [vmem:[#allocation11_spill] sm:$0xff] }
 0x35e   : > { %v4419_v24 = vpop.permute.xlu1 %4418  ;;  %v5089_v20 = vsel %vm5031_vm7, %v5021_v46, %v11803_v6  ;;  %v11809_v6 = vld [vmem:[#allocation14_spill] sm:$0xff] }
 0x35f   : > { %v5272_v21 = vsel %vm5226_vm10, %v5207_v45, %v4419_v24  ;;  %v5154_v39 = vsel %vm5096_vm8, %v5089_v20, %v11804_v32  ;;  %v11807_v45 = vld [vmem:[#allocation56_spill] sm:$0xff]  ;;  %v5024_v20 = vsel %vm4934_vm6, %v6949_v13, %v11809_v6 }
 0x361   : > { %v5708_v19 = vpop.f32.mrf.mxu3  ;;  %v4271_v47 = vpop.permute.xlu0 %4270 }
 0x362   : > { %v11252_v7 = vadd.f32 %v11110_v62, %v5708_v19  ;;  %v5219_v8 = vsel %vm5161_vm9, %v5154_v39, %v4271_v47  ;;  %v4433_v47 = vpop.permute.xlu2 %4432  ;;  %v11810_v39 = vld [vmem:[#allocation42_spill] sm:$0xff] }
 0x363   : > { %v5284_v5 = vsel %vm5226_vm10, %v5219_v8, %v4431_v29 }
 0x364   : > { %v5680_v54 = vpop.f32.mrf.mxu2 }
 0x365   : > { %v11237_v0 = vadd.f32 %v11110_v62, %v5680_v54  ;;  %v6943_v54 = vld [vmem:[%s7632_s24 + $0xe4] sm:$0xff] }
 0x366   : > { %v4607_v25 = vpop.permute.xlu1 %4606  ;;  %v5006_v11 = vsel %vm4934_vm6, %v6943_v54, %v11805_v38 }
 0x367   : > { %v7111_v3 = vpack.c.bf16 %v11237_v0, %v11234_v51  ;;  %v5349_v60 = vsel %vm5291_vm12, %v5284_v5, %v4607_v25 }
 0x369   : > { %7195 = vst [vmem:[%s10633_s30 + $0x90] sm:$0xff] %v7111_v3   ;;  %v5710_v42 = vpop.f32.mrf.mxu3  ;;  %v4595_v55 = vpop.permute.xlu0 %4594 }
 0x36a   : > { %v11255_v48 = vadd.f32 %v11110_v62, %v5710_v42  ;;  %v5337_v52 = vsel %vm5291_vm12, %v5272_v21, %v4595_v55  ;;  %v11806_v42 = vld [vmem:[#allocation38_spill] sm:$0xff]  ;;  %v4757_v46 = vpop.permute.xlu2 %4756 }
 0x36b   : > { %v5402_v37 = vsel %vm5356_vm13, %v5337_v52, %v4755_v17  ;;  %v5079_v1 = vsel %vm5031_vm7, %v5006_v11, %v11806_v42  ;;  %v11808_v55 = vld [vmem:[#allocation22_spill] sm:$0xff] }
 0x36c   : > { %v7141_v23 = vpack.c.bf16 %v11255_v48, %v11252_v7  ;;  %v5144_v21 = vsel %vm5096_vm8, %v5079_v1, %v11807_v45 }
 0x36d   : > { %v5209_v58 = vsel %vm5161_vm9, %v5144_v21, %v11808_v55 }
 0x36e   : > { %7201 = vst [vmem:[%s10633_s30 + $0xc0] sm:$0xff] %v7141_v23   ;;  %v5648_v53 = vpop.f32.mrf.mxu1  ;;  %v4915_v40 = vpop.permute.xlu1 %4914 }
 0x36f   : > { %v5467_v26 = vsel %vm5421_vm14, %v5402_v37, %v4915_v40  ;;  %v11281_v24 = vadd.f32 %v11110_v62, %v5648_v53  ;;  %v11811_v53 = vld [vmem:[#allocation60_spill] sm:$0xff] }
 0x370   : > { %6901 = vmatmul.msk.bf16.gmra.mxu2 %vm5510_vm15, %v5467_v26 }
 0x371   : > { %v4767_v50 = vpop.permute.xlu0 %4766 }
 0x372   : > { %v5618_v22 = vpop.f32.mrf.mxu0  ;;  %v5414_v15 = vsel %vm5356_vm13, %v5349_v60, %v4767_v50 }
 0x373   : > { %v5619_v61 = vadd.f32 %v11110_v62, %v5618_v22  ;;  %v5479_v33 = vsel %vm5421_vm14, %v5414_v15, %v4927_v4  ;;  %v5091_v4 = vsel %vm5031_vm7, %v5024_v20, %v11810_v39  ;;  %v4929_v15 = vpop.permute.xlu2 %4928 }
 0x374   : > { %6907 = vmatmul.msk.bf16.gmra.mxu3 %vm5510_vm15, %v5479_v33  ;;  %v5156_v8 = vsel %vm5096_vm8, %v5091_v4, %v11811_v53  ;;  %v6950_v33 = vld [vmem:[%s7632_s24 + $0x12c] sm:$0xff] }
 0x375   : > { %v5759_v49 = vadd.f32 %v11195_v10, %v5619_v61  ;;  %v5830_v9 = vmul.f32 %v5619_v61, %v5619_v61 }
 0x376   : > { %v5650_v27 = vpop.f32.mrf.mxu1  ;;  %v4421_v28 = vpop.permute.xlu1 %4420 }
 0x377   : > { %v5893_v29 = vadd.f32 %v11199_v44, %v5830_v9  ;;  %v11284_v19 = vadd.f32 %v11110_v62, %v5650_v27  ;;  %v5274_v23 = vsel %vm5226_vm10, %v5209_v58, %v4421_v28 }
 0x379   : > { %v7081_v10 = vpack.c.bf16 %v11284_v19, %v11281_v24  ;;  %v4273_v43 = vpop.permute.xlu0 %4272 }
 0x37a   : > { %v5620_v17 = vpop.f32.mrf.mxu0  ;;  %v5221_v40 = vsel %vm5161_vm9, %v5156_v8, %v4273_v43 }
 0x37b   : > { %v5621_v63 = vadd.f32 %v11110_v62, %v5620_v17  ;;  %7189 = vst [vmem:[%s10633_s30 + $0x60] sm:$0xff] %v7081_v10   ;;  %v5286_v60 = vsel %vm5226_vm10, %v5221_v40, %v4433_v47  ;;  %v11812_v10 = vld [vmem:[#allocation20_spill] sm:$0xff]  ;;  %v4611_v13 = vpop.permute.xlu2 %4610 }
 0x37c   : > { %v5027_v17 = vsel %vm4934_vm6, %v6950_v33, %v11812_v10  ;;  %v11817_v33 = vld [vmem:[#allocation37_spill] sm:$0xff] }
 0x37d   : > { %v11291_v44 = vadd.f32 %v5759_v49, %v5621_v63  ;;  %v5831_v3 = vmul.f32 %v5621_v63, %v5621_v63  ;;  %v7051_v25 = vpack.c.bf16 %v5621_v63, %v5619_v61  ;;  %v11813_v63 = vld [vmem:[#allocation36_spill] sm:$0xff] }
 0x37e   : > { %v4609_v56 = vpop.permute.xlu1 %4608  ;;  %v5093_v43 = vsel %vm5031_vm7, %v5027_v17, %v11813_v63 }
 0x37f   : > { %v11295_v36 = vadd.f32 %v5893_v29, %v5831_v3  ;;  %7183 = vst [vmem:[%s10633_s30 + $0x30] sm:$0xff] %v7051_v25   ;;  %v5351_v61 = vsel %vm5291_vm12, %v5286_v60, %v4609_v56  ;;  %v11814_v25 = vld [vmem:[#allocation59_spill] sm:$0xff] }
 0x380   : > { %v5158_v38 = vsel %vm5096_vm8, %v5093_v43, %v11814_v25 }
 0x381   : > { %v4597_v52 = vpop.permute.xlu0 %4596 }
 0x382   : > { %v5339_v32 = vsel %vm5291_vm12, %v5274_v23, %v4597_v52 }
 0x383   : > { %v5404_v26 = vsel %vm5356_vm13, %v5339_v32, %v4757_v46  ;;  %v6951_v32 = vld [vmem:[%s7632_s24 + $0x134] sm:$0xff]  ;;  %s6913_s24 = sshll.u32 %s7502_s18, 6 }
 0x384   : > { %s6097_s9 = sadd.s32 %s6914_s8, %s6913_s24  ;;  %s6115_s24 = sadd.s32 %s7502_s18, %s6916_s5 }
 0x385   : > { %s6915_s10 = sshll.u32 %s6097_s9, 2  ;;  %s6081_s8 = scalar_lea.sflag [#allocation3], %s10544_s14 }
 0x386   : > { %v4917_v37 = vpop.permute.xlu1 %4916  ;;  %s6099_s13 = scalar_lea.hbm %s11590_s3, %s6915_s10 }
 0x387   : > { %v5469_v5 = vsel %vm5421_vm14, %v5404_v26, %v4917_v37  ;;  %v11815_v26 = vld [vmem:[#allocation19_spill] sm:$0xff]  ;;  %s6102_s6 = sshll.u32 %s6099_s13, 4  ;;  %s6103_s6 = int_to_ptr.hbm [resolvable:$true] %s6102_s6 }
 0x388   : > { %6902 = vmatmul.msk.bf16.gmra.mxu2 %vm5510_vm15, %v5469_v5  ;;  %v5030_v5 = vsel %vm4934_vm6, %v6951_v32, %v11815_v26  ;;  %s7406_s9 = sshra.s32 %s6103_s6, 4  ;;  %s7407_s9 = int_to_ptr.hbm [resolvable:$true] %s7406_s9 }
 0x389   : > { %v5683_v22 = vpop.f32.mrf.mxu2  ;;  %v4769_v50 = vpop.permute.xlu0 %4768  ;;  %s7408_s10 = scalar_lea.hbm %s7407_s9, 256  ;;  %p7413_p4 = scmp.lt.s32.totalorder %s7407_s9, %s11590_s3 }
 0x38a   : > { %v5416_v49 = vsel %vm5356_vm13, %v5351_v61, %v4769_v50  ;;  %v11326_v47 = vadd.f32 %v11110_v62, %v5683_v22  ;;  %v4277_v22 = vpop.permute.xlu2 %4276  ;;  %p7409_p0 = scmp.ne.s32.totalorder %s7407_s9, %s7408_s10  ;;  %p7414_p5 = scmp.lt.s32.totalorder %s7412_s19, %s7408_s10 }
 0x38b   : > { %v5481_v9 = vsel %vm5421_vm14, %v5416_v49, %v4929_v15  ;;  %v11816_v49 = vld [vmem:[#allocation45_spill] sm:$0xff] }
 0x38c   : > { %6908 = vmatmul.msk.bf16.gmra.mxu3 %vm5510_vm15, %v5481_v9  ;;  %v5095_v9 = vsel %vm5031_vm7, %v5030_v5, %v11816_v49  ;;  %p7410_p1 = pnand %p7409_p0, %p7605_p3  ;;  %p7415_p6 = por %p7414_p5, %p7413_p4 }
 0x38e   : > { %v4435_v29 = vpop.permute.xlu1 %4434  ;;  %p7411_p2 = pneg %p7410_p1 }
 0x390   : > { %v5713_v27 = vpop.f32.mrf.mxu3  ;;  %p7416_p7 = pnand %p7415_p6, %p7411_p2 }
 0x391   : > { %v5685_v28 = vpop.f32.mrf.mxu2  ;;  %v4275_v3 = vpop.permute.xlu0 %4274  ;;  %v11341_v21 = vadd.f32 %v11110_v62, %v5713_v27  ;;  %v5160_v27 = vsel %vm5096_vm8, %v5095_v9, %v11817_v33 }
 0x392   : > { %v11329_v54 = vadd.f32 %v11110_v62, %v5685_v28  ;;  %v5223_v56 = vsel %vm5161_vm9, %v5158_v38, %v4275_v3  ;;  %v5835_v3 = vmul.f32 %v10846_v14, %v10846_v14 }
 0x393   : > { %v5288_v1 = vsel %vm5226_vm10, %v5223_v56, %v4435_v29 }
 0x394   : > { %v7116_v11 = vpack.c.bf16 %v11329_v54, %v11326_v47  ;;  %v5353_v6 = vsel %vm5291_vm12, %v5288_v1, %v4611_v13  ;;  %v5836_v13 = vmul.f32 %v10973_v16, %v10973_v16 }
 0x396   : > { %7196 = vst [vmem:[%s10633_s30 + $0x98] sm:$0xff] %v7116_v11   ;;  %v5623_v42 = vpop.f32.mrf.mxu0  ;;  %v4931_v46 = vpop.permute.xlu1 %4930 }
 0x397   : > { %v5624_v58 = vadd.f32 %v11110_v62, %v5623_v42 }
 0x398   : > { %v5715_v45 = vpop.f32.mrf.mxu3 }
 0x399   : > { %v11344_v55 = vadd.f32 %v11110_v62, %v5715_v45  ;;  %v4771_v20 = vpop.permute.xlu0 %4770  ;;  %v5832_v4 = vmul.f32 %v5624_v58, %v5624_v58  ;;  %v5761_v40 = vadd.f32 %v11291_v44, %v5624_v58  ;;  %v5834_v44 = vmul.f32 %v10806_v30, %v10806_v30 }
 0x39a   : > { %v5418_v39 = vsel %vm5356_vm13, %v5353_v6, %v4771_v20 }
 0x39b   : > { %v7146_v23 = vpack.c.bf16 %v11344_v55, %v11341_v21  ;;  %v5653_v52 = vpop.f32.mrf.mxu1  ;;  %v5483_v53 = vsel %vm5421_vm14, %v5418_v39, %v4931_v46  ;;  %v5895_v60 = vadd.f32 %v11295_v36, %v5832_v4  ;;  %v5225_v36 = vsel %vm5161_vm9, %v5160_v27, %v4277_v22 }
 0x39c   : > { %6909 = vmatmul.msk.bf16.gmra.mxu3 %vm5510_vm15, %v5483_v53  ;;  %v5654_v63 = vadd.f32 %v11110_v62, %v5653_v52  ;;  %v5837_v46 = vmul.f32 %v10994_v41, %v10994_v41  ;;  %v5838_v52 = vmul.f32 %v11136_v18, %v11136_v18  ;;  %v5839_v4 = vmul.f32 %v11140_v35, %v11140_v35 }
 0x39d   : > { %7202 = vst [vmem:[%s10633_s30 + $0xc8] sm:$0xff] %v7146_v23   ;;  %v5842_v22 = vmul.f32 %v11281_v24, %v11281_v24 }
 0x39e   : > { %v5625_v8 = vpop.f32.mrf.mxu0  ;;  %v5844_v49 = vmul.f32 %v5654_v63, %v5654_v63 }
 0x39f   : > { %v5626_v37 = vadd.f32 %v11110_v62, %v5625_v8 }
 0x3a1   : > { %v5762_v61 = vadd.f32 %v5761_v40, %v5626_v37  ;;  %v5833_v50 = vmul.f32 %v5626_v37, %v5626_v37  ;;  %v7056_v15 = vpack.c.bf16 %v5626_v37, %v5624_v58  ;;  %v4437_v17 = vpop.permute.xlu0 %4436  ;;  %v4773_v58 = vpop.permute.xlu2 %4772  ;;  %v5841_v37 = vmul.f32 %v11212_v2, %v11212_v2 }
 0x3a2   : > { %v5290_v11 = vsel %vm5226_vm10, %v5225_v36, %v4437_v17 }
 0x3a3   : > { %v5763_v29 = vadd.f32 %v5762_v61, %v10806_v30  ;;  %v5896_v28 = vadd.f32 %v5895_v60, %v5833_v50  ;;  %7184 = vst [vmem:[%s10633_s30 + $0x38] sm:$0xff] %v7056_v15   ;;  %v5655_v10 = vpop.f32.mrf.mxu1  ;;  %v4613_v30 = vpop.permute.xlu1 %4612  ;;  %v5843_v50 = vmul.f32 %v11284_v19, %v11284_v19 }
 0x3a4   : > { %v5656_v43 = vadd.f32 %v11110_v62, %v5655_v10  ;;  %v5355_v45 = vsel %vm5291_vm12, %v5290_v11, %v4613_v30 }
 0x3a5   : > { %v5764_v25 = vadd.f32 %v5763_v29, %v10846_v14  ;;  %v5897_v38 = vadd.f32 %v5896_v28, %v5834_v44  ;;  %v5420_v32 = vsel %vm5356_vm13, %v5355_v45, %v4773_v58 }
 0x3a6   : > { %v7086_v56 = vpack.c.bf16 %v5656_v43, %v5654_v63  ;;  %v5845_v44 = vmul.f32 %v5656_v43, %v5656_v43 }
 0x3a7   : > { %v5765_v42 = vadd.f32 %v5764_v25, %v10973_v16  ;;  %v5898_v1 = vadd.f32 %v5897_v38, %v5835_v3 }
 0x3a8   : > { %7190 = vst [vmem:[%s10633_s30 + $0x68] sm:$0xff] %v7086_v56  }
 0x3a9   : > { %v5766_v14 = vadd.f32 %v5765_v42, %v10994_v41  ;;  %v5899_v23 = vadd.f32 %v5898_v1, %v5836_v13  ;;  %v4933_v16 = vpop.permute.xlu0 %4932  ;;  %v5840_v41 = vmul.f32 %v11208_v12, %v11208_v12 }
 0x3aa   : > { %v5485_v39 = vsel %vm5421_vm14, %v5420_v32, %v4933_v16 }
 0x3ab   : > { %v5767_v6 = vadd.f32 %v5766_v14, %v11136_v18  ;;  %v5900_v20 = vadd.f32 %v5899_v23, %v5837_v46 }
 0x3ac   : > { %6910 = vmatmul.msk.bf16.gmra.mxu3 %vm5510_vm15, %v5485_v39 }
 0x3ad   : > { %v5901_v53 = vadd.f32 %v5900_v20, %v5838_v52  ;;  %v5768_v8 = vadd.f32 %v5767_v6, %v11140_v35 }
 0x3af   : > { %v5769_v40 = vadd.f32 %v5768_v8, %v11208_v12  ;;  %v5902_v18 = vadd.f32 %v5901_v53, %v5839_v4 }
 0x3b1   : > { %v5770_v26 = vadd.f32 %v5769_v40, %v11212_v2  ;;  %v5903_v5 = vadd.f32 %v5902_v18, %v5840_v41 }
 0x3b3   : > { %v5771_v60 = vadd.f32 %v5770_v26, %v11281_v24  ;;  %v5904_v35 = vadd.f32 %v5903_v5, %v5841_v37  ;;  %v5718_v61 = vpop.f32.mrf.mxu3 }
 0x3b4   : > { %v11405_v17 = vadd.f32 %v11110_v62, %v5718_v61  ;;  %v5850_v61 = vmul.f32 %v11063_v57, %v11063_v57 }
 0x3b5   : > { %v5772_v15 = vadd.f32 %v5771_v60, %v11284_v19  ;;  %v5905_v12 = vadd.f32 %v5904_v35, %v5842_v22 }
 0x3b6   : > { %v5688_v27 = vpop.f32.mrf.mxu2 }
 0x3b7   : > { %v5773_v9 = vadd.f32 %v5772_v15, %v5654_v63  ;;  %v5906_v33 = vadd.f32 %v5905_v12, %v5843_v50  ;;  %v11413_v3 = vadd.f32 %v11110_v62, %v5688_v27  ;;  %v5851_v12 = vmul.f32 %v11066_v31, %v11066_v31 }
 0x3b9   : > { %v5774_v2 = vadd.f32 %v5773_v9, %v5656_v43  ;;  %v5907_v29 = vadd.f32 %v5906_v33, %v5844_v49  ;;  %v5852_v33 = vmul.f32 %v11165_v59, %v11165_v59 }
 0x3ba   : > { %v5658_v24 = vpop.f32.mrf.mxu1 }
 0x3bb   : > { %v5908_v28 = vadd.f32 %v5907_v29, %v5845_v44  ;;  %v5720_v10 = vpop.f32.mrf.mxu3  ;;  %v5659_v11 = vadd.f32 %v11110_v62, %v5658_v24  ;;  %v5853_v44 = vmul.f32 %v11168_v34, %v11168_v34 }
 0x3bc   : > { %v11408_v36 = vadd.f32 %v11110_v62, %v5720_v10 }
 0x3bd   : > { %v5846_v14 = vmul.f32 %v5659_v11, %v5659_v11  ;;  %v5775_v20 = vadd.f32 %v5774_v2, %v5659_v11 }
 0x3be   : > { %v7151_v19 = vpack.c.bf16 %v11408_v36, %v11405_v17  ;;  %v5690_v63 = vpop.f32.mrf.mxu2 }
 0x3bf   : > { %v11416_v43 = vadd.f32 %v11110_v62, %v5690_v63  ;;  %v5909_v4 = vadd.f32 %v5908_v28, %v5846_v14  ;;  %v5854_v28 = vmul.f32 %v11234_v51, %v11234_v51 }
 0x3c0   : > { %7203 = vst [vmem:[%s10633_s30 + $0xd0] sm:$0xff] %v7151_v19  }
 0x3c1   : > { %v7121_v25 = vpack.c.bf16 %v11416_v43, %v11413_v3 }
 0x3c2   : > { %v5660_v38 = vpop.f32.mrf.mxu1 }
 0x3c3   : > { %7197 = vst [vmem:[%s10633_s30 + $0xa0] sm:$0xff] %v7121_v25   ;;  %v5661_v30 = vadd.f32 %v11110_v62, %v5660_v38  ;;  %v5856_v25 = vmul.f32 %v11326_v47, %v11326_v47 }
 0x3c5   : > { %v7091_v56 = vpack.c.bf16 %v5661_v30, %v5659_v11  ;;  %v5847_v32 = vmul.f32 %v5661_v30, %v5661_v30  ;;  %v5776_v53 = vadd.f32 %v5775_v20, %v5661_v30  ;;  %v5857_v11 = vmul.f32 %v11329_v54, %v11329_v54 }
 0x3c7   : > { %7191 = vst [vmem:[%s10633_s30 + $0x70] sm:$0xff] %v7091_v56   ;;  %v5910_v18 = vadd.f32 %v5909_v4, %v5847_v32  ;;  %v5858_v56 = vmul.f32 %v11413_v3, %v11413_v3 }
 0x3d3   : > { %v5723_v13 = vpop.f32.mrf.mxu3 }
 0x3d4   : > { %v11426_v58 = vadd.f32 %v11110_v62, %v5723_v13 }
 0x3d6   : > { %v5693_v42 = vpop.f32.mrf.mxu2 }
 0x3d7   : > { %v5694_v16 = vadd.f32 %v11110_v62, %v5693_v42 }
 0x3da   : > { %v5663_v1 = vpop.f32.mrf.mxu1 }
 0x3db   : > { %v5725_v45 = vpop.f32.mrf.mxu3  ;;  %v5664_v23 = vadd.f32 %v11110_v62, %v5663_v1  ;;  %v5859_v1 = vmul.f32 %v11416_v43, %v11416_v43 }
 0x3dc   : > { %v11429_v46 = vadd.f32 %v11110_v62, %v5725_v45 }
 0x3dd   : > { %v5848_v8 = vmul.f32 %v5664_v23, %v5664_v23  ;;  %v5777_v37 = vadd.f32 %v5776_v53, %v5664_v23  ;;  %v5860_v53 = vmul.f32 %v5694_v16, %v5694_v16 }
 0x3de   : > { %v7156_v52 = vpack.c.bf16 %v11429_v46, %v11426_v58  ;;  %v5695_v6 = vpop.f32.mrf.mxu2 }
 0x3df   : > { %v11436_v39 = vadd.f32 %v11110_v62, %v5695_v6  ;;  %v5911_v5 = vadd.f32 %v5910_v18, %v5848_v8 }
 0x3e0   : > { %7204 = vst [vmem:[%s10633_s30 + $0xd8] sm:$0xff] %v7156_v52  }
 0x3e1   : > { %v7126_v41 = vpack.c.bf16 %v11436_v39, %v5694_v16 }
 0x3e2   : > { %v5665_v40 = vpop.f32.mrf.mxu1 }
 0x3e3   : > { %7198 = vst [vmem:[%s10633_s30 + $0xa8] sm:$0xff] %v7126_v41   ;;  %v5666_v26 = vadd.f32 %v11110_v62, %v5665_v40  ;;  %v5861_v41 = vmul.f32 %v11436_v39, %v11436_v39 }
 0x3e5   : > { %v5778_v22 = vadd.f32 %v5777_v37, %v5666_v26  ;;  %v5849_v60 = vmul.f32 %v5666_v26, %v5666_v26  ;;  %v7096_v35 = vpack.c.bf16 %v5666_v26, %v5664_v23 }
 0x3e7   : > { %v5779_v50 = vadd.f32 %v5778_v22, %v11063_v57  ;;  %v5912_v15 = vadd.f32 %v5911_v5, %v5849_v60  ;;  %7192 = vst [vmem:[%s10633_s30 + $0x78] sm:$0xff] %v7096_v35  }
 0x3e9   : > { %v5780_v49 = vadd.f32 %v5779_v50, %v11066_v31  ;;  %v5913_v9 = vadd.f32 %v5912_v15, %v5850_v61  ;;  %v5855_v31 = vmul.f32 %v11237_v0, %v11237_v0 }
 0x3eb   : > { %v5781_v27 = vadd.f32 %v5780_v49, %v11165_v59  ;;  %v5914_v2 = vadd.f32 %v5913_v9, %v5851_v12 }
 0x3ed   : > { %v5782_v29 = vadd.f32 %v5781_v27, %v11168_v34  ;;  %v5915_v57 = vadd.f32 %v5914_v2, %v5852_v33 }
 0x3ef   : > { %v5783_v24 = vadd.f32 %v5782_v29, %v11234_v51  ;;  %v5916_v10 = vadd.f32 %v5915_v57, %v5853_v44  ;;  %v5866_v44 = vmul.f32 %v11252_v7, %v11252_v7 }
 0x3f1   : > { %v5784_v19 = vadd.f32 %v5783_v24, %v11237_v0  ;;  %v5917_v63 = vadd.f32 %v5916_v10, %v5854_v28 }
 0x3f3   : > { %v5698_v59 = vpop.f32.mrf.mxu2  ;;  %v5918_v38 = vadd.f32 %v5917_v63, %v5855_v31  ;;  %v5785_v34 = vadd.f32 %v5784_v19, %v11326_v47  ;;  %v5867_v31 = vmul.f32 %v11255_v48, %v11255_v48 }
 0x3f4   : > { %v5699_v23 = vadd.f32 %v11110_v62, %v5698_v59 }
 0x3f5   : > { %v5786_v51 = vadd.f32 %v5785_v34, %v11329_v54  ;;  %v5919_v30 = vadd.f32 %v5918_v38, %v5856_v25  ;;  %v5868_v25 = vmul.f32 %v11341_v21, %v11341_v21  ;;  %v5869_v34 = vmul.f32 %v11344_v55, %v11344_v55 }
 0x3f6   : > { %v5862_v5 = vmul.f32 %v5699_v23, %v5699_v23 }
 0x3f7   : > { %v5787_v0 = vadd.f32 %v5786_v51, %v11413_v3  ;;  %v5920_v13 = vadd.f32 %v5919_v30, %v5857_v11  ;;  %v5728_v42 = vpop.f32.mrf.mxu3  ;;  %v5870_v30 = vmul.f32 %v11405_v17, %v11405_v17 }
 0x3f8   : > { %v5729_v3 = vadd.f32 %v11110_v62, %v5728_v42 }
 0x3f9   : > { %v5788_v47 = vadd.f32 %v5787_v0, %v11416_v43  ;;  %v5921_v45 = vadd.f32 %v5920_v13, %v5858_v56  ;;  %v5871_v13 = vmul.f32 %v11408_v36, %v11408_v36 }
 0x3fb   : > { %v5700_v14 = vpop.f32.mrf.mxu2  ;;  %v5922_v52 = vadd.f32 %v5921_v45, %v5859_v1  ;;  %v5789_v43 = vadd.f32 %v5788_v47, %v5694_v16  ;;  %v5872_v1 = vmul.f32 %v11426_v58, %v11426_v58  ;;  %v5873_v45 = vmul.f32 %v11429_v46, %v11429_v46 }
 0x3fc   : > { %v5701_v54 = vadd.f32 %v11110_v62, %v5700_v14 }
 0x3fd   : > { %v5923_v8 = vadd.f32 %v5922_v52, %v5860_v53  ;;  %v5790_v40 = vadd.f32 %v5789_v43, %v11436_v39 }
 0x3fe   : > { %v7131_v6 = vpack.c.bf16 %v5701_v54, %v5699_v23  ;;  %v5863_v35 = vmul.f32 %v5701_v54, %v5701_v54 }
 0x3ff   : > { %v5730_v20 = vpop.f32.mrf.mxu3  ;;  %v5924_v37 = vadd.f32 %v5923_v8, %v5861_v41  ;;  %v5791_v26 = vadd.f32 %v5790_v40, %v5699_v23  ;;  %v5874_v23 = vmul.f32 %v5729_v3, %v5729_v3 }
 0x400   : > { %7199 = vst [vmem:[%s10633_s30 + $0xb0] sm:$0xff] %v7131_v6   ;;  %v11478_v32 = vadd.f32 %v11110_v62, %v5730_v20 }
 0x401   : > { %v5925_v60 = vadd.f32 %v5924_v37, %v5862_v5  ;;  %v5792_v50 = vadd.f32 %v5791_v26, %v5701_v54 }
 0x402   : > { %v7161_v4 = vpack.c.bf16 %v11478_v32, %v5729_v3 }
 0x403   : > { %v5926_v16 = vadd.f32 %v5925_v60, %v5863_v35 }
 0x404   : > { %7205 = vst [vmem:[%s10633_s30 + $0xe0] sm:$0xff] %v7161_v4  }
 0x40b   : > { %v5703_v18 = vpop.f32.mrf.mxu2 }
 0x40c   : > { %v5704_v22 = vadd.f32 %v11110_v62, %v5703_v18 }
 0x40e   : > { %v5864_v15 = vmul.f32 %v5704_v22, %v5704_v22  ;;  %v5793_v49 = vadd.f32 %v5792_v50, %v5704_v22 }
 0x40f   : > { %v5733_v61 = vpop.f32.mrf.mxu3 }
 0x410   : > { %v5927_v33 = vadd.f32 %v5926_v16, %v5864_v15  ;;  %v5734_v24 = vadd.f32 %v11110_v62, %v5733_v61 }
 0x412   : > { %v5876_v8 = vmul.f32 %v5734_v24, %v5734_v24 }
 0x413   : > { %v5705_v12 = vpop.f32.mrf.mxu2 }
 0x414   : > { %v5706_v9 = vadd.f32 %v11110_v62, %v5705_v12 }
 0x416   : > { %v5794_v27 = vadd.f32 %v5793_v49, %v5706_v9  ;;  %v5865_v39 = vmul.f32 %v5706_v9, %v5706_v9  ;;  %v7136_v2 = vpack.c.bf16 %v5706_v9, %v5704_v22 }
 0x417   : > { %v5735_v28 = vpop.f32.mrf.mxu3 }
 0x418   : > { %v5795_v29 = vadd.f32 %v5794_v27, %v11252_v7  ;;  %v5928_v57 = vadd.f32 %v5927_v33, %v5865_v39  ;;  %7200 = vst [vmem:[%s10633_s30 + $0xb8] sm:$0xff] %v7136_v2   ;;  %v5736_v10 = vadd.f32 %v11110_v62, %v5735_v28 }
 0x41a   : > { %v5796_v19 = vadd.f32 %v5795_v29, %v11255_v48  ;;  %v5929_v63 = vadd.f32 %v5928_v57, %v5866_v44  ;;  %v7166_v59 = vpack.c.bf16 %v5736_v10, %v5734_v24  ;;  %v5877_v40 = vmul.f32 %v5736_v10, %v5736_v10 }
 0x41c   : > { %v5797_v38 = vadd.f32 %v5796_v19, %v11341_v21  ;;  %v5930_v7 = vadd.f32 %v5929_v63, %v5867_v31  ;;  %7206 = vst [vmem:[%s10633_s30 + $0xe8] sm:$0xff] %v7166_v59  }
 0x41e   : > { %v5798_v11 = vadd.f32 %v5797_v38, %v11344_v55  ;;  %v5931_v51 = vadd.f32 %v5930_v7, %v5868_v25 }
 0x41f   : > { %v5738_v0 = vpop.f32.mrf.mxu3 }
 0x420   : > { %v5799_v48 = vadd.f32 %v5798_v11, %v11405_v17  ;;  %v5932_v56 = vadd.f32 %v5931_v51, %v5869_v34 }
 0x422   : > { %v5933_v42 = vadd.f32 %v5932_v56, %v5870_v30  ;;  %v5800_v21 = vadd.f32 %v5799_v48, %v11408_v36  ;;  %v5739_v36 = vadd.f32 %v11110_v62, %v5738_v0 }
 0x424   : > { %v5801_v47 = vadd.f32 %v5800_v21, %v11426_v58  ;;  %v5934_v55 = vadd.f32 %v5933_v42, %v5871_v13  ;;  %v5875_v58 = vmul.f32 %v11478_v32, %v11478_v32  ;;  %v5878_v5 = vmul.f32 %v5739_v36, %v5739_v36 }
 0x426   : > { %v5802_v17 = vadd.f32 %v5801_v47, %v11429_v46  ;;  %v5935_v14 = vadd.f32 %v5934_v55, %v5872_v1 }
 0x427   : > { %v5740_v6 = vpop.f32.mrf.mxu3 }
 0x428   : > { %v5803_v52 = vadd.f32 %v5802_v17, %v5729_v3  ;;  %v5936_v54 = vadd.f32 %v5935_v14, %v5873_v45  ;;  %v5741_v20 = vadd.f32 %v11110_v62, %v5740_v6 }
 0x42a   : > { %v5804_v4 = vadd.f32 %v5803_v52, %v11478_v32  ;;  %v5937_v53 = vadd.f32 %v5936_v54, %v5874_v23  ;;  %v7171_v43 = vpack.c.bf16 %v5741_v20, %v5739_v36  ;;  %v5879_v35 = vmul.f32 %v5741_v20, %v5741_v20 }
 0x42c   : > { %v5805_v46 = vadd.f32 %v5804_v4, %v5734_v24  ;;  %v5938_v41 = vadd.f32 %v5937_v53, %v5875_v58  ;;  %7207 = vst [vmem:[%s10633_s30 + $0xf0] sm:$0xff] %v7171_v43  }
 0x42e   : > { %v5806_v3 = vadd.f32 %v5805_v46, %v5736_v10  ;;  %v5939_v18 = vadd.f32 %v5938_v41, %v5876_v8 }
 0x42f   : > { %v5743_v22 = vpop.f32.mrf.mxu3 }
 0x430   : > { %v5940_v37 = vadd.f32 %v5939_v18, %v5877_v40  ;;  %v5807_v26 = vadd.f32 %v5806_v3, %v5739_v36  ;;  %v5744_v61 = vadd.f32 %v11110_v62, %v5743_v22 }
 0x432   : > { %v5941_v60 = vadd.f32 %v5940_v37, %v5878_v5  ;;  %v5808_v32 = vadd.f32 %v5807_v26, %v5741_v20  ;;  %v5880_v12 = vmul.f32 %v5744_v61, %v5744_v61 }
 0x434   : > { %v5942_v50 = vadd.f32 %v5941_v60, %v5879_v35  ;;  %v5809_v15 = vadd.f32 %v5808_v32, %v5744_v61 }
 0x436   : > { %v5943_v49 = vadd.f32 %v5942_v50, %v5880_v12 }
 0x437   : > { %v5745_v16 = vpop.f32.mrf.mxu3 }
 0x438   : > { %v5746_v9 = vadd.f32 %v11110_v62, %v5745_v16 }
 0x43a   : > { %v5810_v33 = vadd.f32 %v5809_v15, %v5746_v9  ;;  %v5881_v27 = vmul.f32 %v5746_v9, %v5746_v9  ;;  %v7176_v39 = vpack.c.bf16 %v5746_v9, %v5744_v61 }
 0x43c   : > { %v5811_v2 = vrot.slane %v5810_v33, 4  ;;  %v5944_v44 = vadd.f32 %v5943_v49, %v5881_v27  ;;  %7208 = vst [vmem:[%s10633_s30 + $0xf8] sm:$0xff] %v7176_v39  }
 0x43d   : > { %7419 = shalt.err (!%p7416_p7)
}
 0x43e   : > { %s7528_s18 = smov 64   ;;  %s11818_s30 = smov 4   ;;  %v5812_v62 = vadd.f32 %v5811_v2, %v5810_v33  ;;  %v5945_v29 = vrot.slane %v5944_v44, 4 }
 0x43f   : > { %7220 = dma.vmem_to_hbm [thread:$0]  (%p7605_p3), %s6101_s23, 4096, %s6103_s6, %s6081_s8, %s7528_s18, %s7528_s18, %s11818_s30  }
 0x440   : > { %s6245_s5 = sshll.u32 %s10544_s14, 1  ;;  %s6917_s0 = sshll.u32 %s6115_s24, 1  ;;  %v5813_v57 = vrot.slane %v5812_v62, 2  ;;  %v5946_v28 = vadd.f32 %v5945_v29, %v5944_v44 }
 0x441   : > { %s6117_s10 = scalar_lea.hbm %s11591_s4, %s6917_s0  ;;  %s227_s11 = scalar_lea.vmem [#allocation4], %s6245_s5 }
 0x442   : > { %v5814_v24 = vadd.f32 %v5813_v57, %v5812_v62  ;;  %v5947_v10 = vrot.slane %v5946_v28, 2  ;;  %s6119_s12 = sshll.u32 %s227_s11, 4  ;;  %s6121_s19 = sshll.u32 %s6117_s10, 4  ;;  %s6120_s12 = int_to_ptr.vmem [resolvable:$true] %s6119_s12  ;;  %s6122_s19 = int_to_ptr.hbm [resolvable:$true] %s6121_s19 }
 0x443   : > { %s6086_s23 = scalar_lea.sflag [#allocation5], %s10544_s14  ;;  %s7434_s6 = sshra.s32 %s6122_s19, 4  ;;  %s7435_s6 = int_to_ptr.hbm [resolvable:$true] %s7434_s6 }
 0x444   : > { %v5815_v31 = vrot.slane %v5814_v24, 1  ;;  %v5948_v19 = vadd.f32 %v5947_v10, %v5946_v28  ;;  %s7436_s24 = scalar_lea.hbm %s7435_s6, 2  ;;  %s7440_s13 = scalar_lea.hbm %s11591_s4, 8 }
 0x445   : > { %p7437_p9 = scmp.ne.s32.totalorder %s7435_s6, %s7436_s24  ;;  %p7441_p12 = scmp.lt.s32.totalorder %s7435_s6, %s11591_s4 }
 0x446   : > { %v5816_v63 = vadd.f32 %v5815_v31, %v5814_v24  ;;  %v5949_v59 = vrot.slane %v5948_v19, 1  ;;  %p7442_p13 = scmp.lt.s32.totalorder %s7440_s13, %s7436_s24 }
 0x447   : > { %p7438_p10 = pnand %p7437_p9, %p7605_p3 }
 0x448   : > { %5817 = vst [vmem:[%s227_s11] sm:$0x1] %v5816_v63  ;;  %v5950_v25 = vadd.f32 %v5949_v59, %v5948_v19  ;;  %p7443_p0 = por %p7442_p13, %p7441_p12 }
 0x449   : > { %p7439_p11 = pneg %p7438_p10 }
 0x44a   : > { %5951 = vst [vmem:[%s227_s11 + $0x1] sm:$0x1] %v5950_v25 }
 0x44b   : > { %p7444_p1 = pnand %p7443_p0, %p7439_p11 }
 0x44d   : > { %7447 = shalt.err (!%p7444_p1)
}
 0x44e   : > { %7221 = dma.vmem_to_hbm [thread:$0]  (%p7605_p3), %s6120_s12, 32, %s6122_s19, %s6086_s23  }
 0x44f PF: > { %p7231_p2 = scmp.ge.s32.totalorder %s7518_s22, 2  ;;  %s6133_s14 = sand.u32 1, %s7490_s15  }
 0x450   : > { %s6134_s5 = scalar_lea.sflag [#allocation3], %s6133_s14 }
 0x451   : > { %p7225_p4 = pnand %p7231_p2, %p7614_p8 }
 0x453   : > { %p7226_p5 = pneg %p7225_p4 }
 0x455   : > { %7481 = dma.done.wait (%p7226_p5), %s6134_s5, 4096  }
 0x456   : > { %7483 = vsyncadd (%p7226_p5), %s6134_s5, 4294963200  ;;  %s6144_s27 = scalar_lea.sflag [#allocation5], %s6133_s14 }
 0x457   : > { %7485 = dma.done.wait (%p7226_p5), %s6144_s27, 32  }
 0x458   : > { %7487 = vsyncadd (%p7226_p5), %s6144_s27, 4294967264  ;;  %s21_s22 = sadd.s32 1, %s7518_s22   ;;  %s11819_s15 = smov %s7494_s16 }
 0x459   : > { %p18_p6 = scmp.ge.s32.totalorder %s21_s22, 6   ;;  %s11820_s16 = smov %s7498_s17 }
 0x45a   : > { %s11821_s17 = smov %s7623_s7  ;;  %s11822_s18 = smov %s7510_s20 }
 0x45b   : > { %s11823_s19 = smov %s7514_s21  ;;  %s11824_s20 = smov %s11827_s25 }
 0x45c   : > { %s11825_s21 = smov %s11831_s26  ;;  %20 = sbr.rel (!%p18_p6) target bundleno = 9 (0x9), region = 86 }
 0x461   :  { %6150 = vsyncpa [#allocation3], 1 }
 0x462   :  { %6152 = vsyncpa [#allocation3 + $0x1], 1 }
 0x463   :  { %6153 = vsyncpa [#allocation5], 1 }
 0x464   :  { %6155 = vsyncpa [#allocation5 + $0x1], 1 }

</bundles_post_ra>
